<compile_context>
chip_gen: v5e
topology: v5e:2x2
jax: 0.10.0
libtpu: 0.0.40
codegen_flags: <defaults>
</compile_context>

<pallas_src>
import jax
import jax.numpy as jnp
from jax import lax
from jax.experimental import pallas as pl
from jax.experimental.pallas import tpu as pltpu

# -------------------- module configuration (synthetic, small) --------------------
B = 2
N = 128
C_FEAT = 4
NPOINT_LIST = [64]                 # one sampling type
SAMPLE_TYPE_LIST = ["D-FPS"]
SAMPLE_RANGE_LIST = [-1]
RADII = [0.5, 1.0]
NSAMPLES = [8, 16]
MLPS = [[C_FEAT, 16, 32], [C_FEAT, 16, 32]]   # mlp_spec[0] += 3 because use_xyz=True
USE_XYZ = True
AGGREGATION_MLP = [64]
CONFIDENCE_MLP = [32]
NUM_CLASS = 3
BN_EPS = 1e-5
M_TOTAL = sum(NPOINT_LIST)


# -------------------- single fused Pallas kernel --------------------
def make_fused_kernel(npoint, radii, nsamples, n_layers_per_scale, n_agg, n_conf, use_xyz):
    """One grid step = one batch element.  Channel-major (C, points) layout."""
    n_scales = len(nsamples)

    def kernel(*refs):
        pos = 0
        xyz_cm_ref = refs[pos]; pos += 1          # (1, 3, N)  channel-major
        xyz_pm_ref = refs[pos]; pos += 1          # (1, N, 3)  point-major (for d^2 matmul)
        feat_ref = refs[pos]; pos += 1            # (1, C_feat, N)
        scale_layers = []
        for s in range(n_scales):
            lys = []
            for _ in range(n_layers_per_scale[s]):
                lys.append((refs[pos], refs[pos + 1])); pos += 2
            scale_layers.append(lys)
        agg_layers = []
        for _ in range(n_agg):
            agg_layers.append((refs[pos], refs[pos + 1])); pos += 2
        conf_layers = []
        for _ in range(n_conf):
            conf_layers.append((refs[pos], refs[pos + 1])); pos += 2
        ctr_out_ref = refs[pos]; pos += 1         # (1, 3, M)
        feat_out_ref = refs[pos]; pos += 1        # (1, C_agg, M)
        cls_out_ref = refs[pos]                   # (1, num_class, M)

        xyz_cm = xyz_cm_ref[0]                    # (3, N)
        xyz_pm = xyz_pm_ref[0]                    # (N, 3)
        feat_cm = feat_ref[0]                     # (C_feat, N)
        n = xyz_cm.shape[1]
        m = npoint

        # ---------------- farthest point sampling (D-FPS, on-chip dist) ----------------
        lane_iota = lax.broadcasted_iota(jnp.int32, (1, n), 1)      # point index per lane
        slot_iota = lax.broadcasted_iota(jnp.int32, (1, m), 1)      # output slot index
        ctr0 = jnp.where(slot_iota == 0, xyz_cm[:, 0:1], 0.0)       # slot 0 = point 0 (CUDA FPS)

        def fps_body(i, carry):
            ctr, dist, last = carry
            onehot = (lane_iota == last).astype(jnp.float32)                  # (1, N)
            last_xyz = jnp.sum(xyz_cm * onehot, axis=1, keepdims=True)        # (3, 1)
            d = jnp.sum((xyz_cm - last_xyz) ** 2, axis=0, keepdims=True)      # (1, N)
            dist = jnp.minimum(dist, d)
            maxv = jnp.max(dist)
            # first index attaining the max (no argmax lowering needed)
            nxt = jnp.min(jnp.where(dist >= maxv, lane_iota, n)).astype(jnp.int32)
            nxt_onehot = (lane_iota == nxt).astype(jnp.float32)
            nxt_xyz = jnp.sum(xyz_cm * nxt_onehot, axis=1, keepdims=True)     # (3, 1)
            ctr = jnp.where(slot_iota == i, nxt_xyz, ctr)                     # write column i
            return ctr, dist, nxt

        ctr_cm, _, _ = lax.fori_loop(
            1, m, fps_body,
            (ctr0, jnp.full((1, n), 1e10, jnp.float32), jnp.zeros((), jnp.int32)))
        ctr_out_ref[0] = ctr_cm                                               # (3, M)

        # ---------------- in-kernel ball query (first-k, CUDA padding semantics) ----------------
        # pairwise squared distances (N, M) via one MXU matmul + rank-1 terms
        x2_col = jnp.sum(xyz_pm * xyz_pm, axis=1, keepdims=True)              # (N, 1)
        c2_row = jnp.sum(ctr_cm * ctr_cm, axis=0, keepdims=True)              # (1, M)
        xc = jnp.dot(xyz_pm, ctr_cm, preferred_element_type=jnp.float32)      # (N, M)
        d2 = x2_col + c2_row - 2.0 * xc

        # inclusive prefix count along the point axis via a triangular MXU matmul
        row_i = lax.broadcasted_iota(jnp.int32, (n, n), 0)
        col_i = lax.broadcasted_iota(jnp.int32, (n, n), 1)
        tril = (col_i <= row_i).astype(jnp.float32)                           # (N, N)
        fallback0 = (lax.broadcasted_iota(jnp.int32, (n, m), 0) == 0
                     ).astype(jnp.float32)                                    # one-hot point 0

        pooled = []
        for s in range(n_scales):
            ns = nsamples[s]
            r2 = radii[s] * radii[s]
            mask = (d2 < r2).astype(jnp.float32)                              # (N, M)
            cnt = jnp.dot(tril, mask, preferred_element_type=jnp.float32)     # in-radius rank + 1
            total = jnp.sum(mask, axis=0, keepdims=True)                      # (1, M)
            first = mask * (cnt < 1.5).astype(jnp.float32)                    # rank-0 neighbour
            has_any = total > 0.5

            # one-hot selection matrix (N, ns*M), slot-major columns (q = k*M + m)
            sel_cols = []
            for k in range(ns):
                in_k = mask * (jnp.abs(cnt - float(k + 1)) < 0.5).astype(jnp.float32)
                has_k = total > (k + 0.5)
                sel_cols.append(jnp.where(has_k, in_k,
                                          jnp.where(has_any, first, fallback0)))
            sel = jnp.concatenate(sel_cols, axis=1)                           # (N, q)

            # gather via MXU, center xyz
            gx = jnp.dot(xyz_cm, sel, preferred_element_type=jnp.float32)     # (3, q)
            gx = gx - jnp.concatenate([ctr_cm] * ns, axis=1)
            gf = jnp.dot(feat_cm, sel, preferred_element_type=jnp.float32)    # (C_feat, q)

            # shared MLP: h = relu(W @ h + b), BN folded into W / b ahead of time
            w0, b0 = scale_layers[s][0]
            w0v = w0[...]
            if use_xyz:
                h = (jnp.dot(w0v[:, :3], gx, preferred_element_type=jnp.float32)
                     + jnp.dot(w0v[:, 3:], gf, preferred_element_type=jnp.float32))
            else:
                h = jnp.dot(w0v, gf, preferred_element_type=jnp.float32)
            h = jnp.maximum(h + b0[...], 0.0)
            for (w, bb) in scale_layers[s][1:]:
                h = jnp.maximum(
                    jnp.dot(w[...], h, preferred_element_type=jnp.float32) + bb[...], 0.0)

            # max-pool over the neighbour axis (slot-major chunks of M columns)
            p = h[:, 0:m]
            for k in range(1, ns):
                p = jnp.maximum(p, h[:, k * m:(k + 1) * m])
            pooled.append(p)

        feat_c = jnp.concatenate(pooled, axis=0) if len(pooled) > 1 else pooled[0]  # (sumC, M)

        # aggregation MLP (Conv1d + folded BN + ReLU)
        for (w, bb) in agg_layers:
            feat_c = jnp.maximum(
                jnp.dot(w[...], feat_c, preferred_element_type=jnp.float32) + bb[...], 0.0)
        feat_out_ref[0] = feat_c                                              # (C_agg, M)

        # confidence MLP: hidden Conv1d+BN+ReLU layers, final Conv1d(bias) without ReLU
        h = feat_c
        for li, (w, bb) in enumerate(conf_layers):
            h = jnp.dot(w[...], h, preferred_element_type=jnp.float32) + bb[...]
            if li < n_conf - 1:
                h = jnp.maximum(h, 0.0)
        cls_out_ref[0] = h                                                    # (num_class, M)

    return kernel


def fused_sa_forward_pallas(xyz_cm, xyz_pm, feat, params):
    """Single pallas_call for FPS + ball query + gather + MSG MLPs + pool + heads."""
    b, _, n = xyz_cm.shape
    c_feat = feat.shape[1]
    m = NPOINT_LIST[0]

    flat = []
    for lys in params["scales"]:
        flat += lys
    flat += params["agg"]
    flat += params["conf"]

    c_concat = sum(lys[-1][0].shape[0] for lys in params["scales"])
    c_agg = params["agg"][-1][0].shape[0] if params["agg"] else c_concat
    num_class = params["conf"][-1][0].shape[0]

    args = [xyz_cm, xyz_pm, feat]
    in_specs = [
        pl.BlockSpec((1, 3, n), lambda i: (i, 0, 0)),
        pl.BlockSpec((1, n, 3), lambda i: (i, 0, 0)),
        pl.BlockSpec((1, c_feat, n), lambda i: (i, 0, 0)),
    ]
    for (w, bb) in flat:
        args += [w, bb]
        in_specs += [pl.BlockSpec(w.shape, lambda i: (0, 0)),
                     pl.BlockSpec(bb.shape, lambda i: (0, 0))]

    kernel = make_fused_kernel(
        m, tuple(RADII), tuple(NSAMPLES),
        tuple(len(lys) for lys in params["scales"]),
        len(params["agg"]), len(params["conf"]), USE_XYZ)

    out_shape = (jax.ShapeDtypeStruct((b, 3, m), jnp.float32),
                 jax.ShapeDtypeStruct((b, c_agg, m), jnp.float32),
                 jax.ShapeDtypeStruct((b, num_class, m), jnp.float32))
    out_specs = (pl.BlockSpec((1, 3, m), lambda i: (i, 0, 0)),
                 pl.BlockSpec((1, c_agg, m), lambda i: (i, 0, 0)),
                 pl.BlockSpec((1, num_class, m), lambda i: (i, 0, 0)))

    return pl.pallas_call(
        kernel,
        out_shape=out_shape,
        grid=(b,),
        in_specs=in_specs,
        out_specs=out_specs,
        compiler_params=pltpu.CompilerParams(dimension_semantics=("parallel",)),
    )(*args)


# -------------------- deterministic parameter init (BN folded, transposed) --------------------
def init_params(key):
    keys = iter(jax.random.split(key, 64))

    def conv_bn(c_in, c_out):
        # Conv weight in (C_out, C_in) layout; BatchNorm(eval, default stats) folded in.
        w = 0.1 * jax.random.normal(next(keys), (c_out, c_in), jnp.float32)
        gamma = jnp.ones((c_out,), jnp.float32)
        beta = jnp.zeros((c_out,), jnp.float32)
        mean = jnp.zeros((c_out,), jnp.float32)
        var = jnp.ones((c_out,), jnp.float32)
        scale = gamma * lax.rsqrt(var + BN_EPS)
        wt = w * scale[:, None]
        bias = (beta - mean * scale)[:, None]          # (C_out, 1)
        return wt, bias

    params = {"scales": [], "agg": [], "conf": []}

    # per-scale shared MLPs (Conv2d 1x1 bias=False + BN + ReLU)
    for spec in MLPS:
        full = ([spec[0] + 3] if USE_XYZ else [spec[0]]) + spec[1:]
        params["scales"].append(
            [conv_bn(full[k], full[k + 1]) for k in range(len(full) - 1)])

    c = sum(spec[-1] for spec in MLPS)

    # aggregation MLP (Conv1d 1x1 bias=False + BN + ReLU)
    for c_out in AGGREGATION_MLP:
        params["agg"].append(conv_bn(c, c_out))
        c = c_out

    # confidence MLP: Conv1d+BN+ReLU layers, then Conv1d(bias=True) to num_class (no ReLU)
    for c_out in CONFIDENCE_MLP:
        params["conf"].append(conv_bn(c, c_out))
        c = c_out
    w_fin = 0.1 * jax.random.normal(next(keys), (NUM_CLASS, c), jnp.float32)
    b_fin = 0.01 * jax.random.normal(next(keys), (NUM_CLASS, 1), jnp.float32)
    params["conf"].append((w_fin, b_fin))
    return params


# -------------------- forward pass --------------------
# TODO(synk): only the 'D-FPS' sampling branch (sample_range=-1, ctr_xyz=None) is
# implemented; the other sample_type_list options (F-FPS, ctr/cls, Rand, ...) are not.
@jax.jit
def forward(params, xyz, features):
    """xyz: (B, N, 3), features: (B, C_feat, N).
    Returns new_xyz (B, M, 3), new_features (B, C_agg, M), cls (B, M, num_class)."""
    xyz_cm = jnp.transpose(xyz, (0, 2, 1))                              # (B, 3, N)

    # single fused kernel: FPS + ball query + gather + MSG MLPs + pool + agg + confidence
    ctr_cm, new_features, cls_cm = fused_sa_forward_pallas(xyz_cm, xyz, features, params)

    new_xyz = jnp.transpose(ctr_cm, (0, 2, 1))                          # (B, M, 3)
    cls_features = jnp.transpose(cls_cm, (0, 2, 1))                     # (B, M, num_class)
    return new_xyz, new_features, cls_features


# -------------------- main --------------------
if __name__ == "__main__":
    key = jax.random.PRNGKey(0)
    k_xyz, k_feat, k_params = jax.random.split(key, 3)
    xyz = jax.random.normal(k_xyz, (B, N, 3), jnp.float32)
    features = jax.random.normal(k_feat, (B, C_FEAT, N), jnp.float32)
    params = init_params(k_params)

    new_xyz, new_features, cls_features = forward(params, xyz, features)
    jax.block_until_ready((new_xyz, new_features, cls_features))

    assert new_xyz.shape == (B, M_TOTAL, 3)
    assert new_features.shape == (B, AGGREGATION_MLP[-1], M_TOTAL)
    assert cls_features.shape == (B, M_TOTAL, NUM_CLASS)
    print("KERNEL_OK")
</pallas_src>

<mosaic_0001>
module attributes {stable_mosaic.version = 11 : i64} {
  func.func @kernel(%arg0: i32, %arg1: memref<1x3x128xf32, #tpu.memory_space<vmem>>, %arg2: memref<1x128x3xf32, #tpu.memory_space<vmem>>, %arg3: memref<1x4x128xf32, #tpu.memory_space<vmem>>, %arg4: memref<16x7xf32, #tpu.memory_space<vmem>>, %arg5: memref<16x1xf32, #tpu.memory_space<vmem>>, %arg6: memref<32x16xf32, #tpu.memory_space<vmem>>, %arg7: memref<32x1xf32, #tpu.memory_space<vmem>>, %arg8: memref<16x7xf32, #tpu.memory_space<vmem>>, %arg9: memref<16x1xf32, #tpu.memory_space<vmem>>, %arg10: memref<32x16xf32, #tpu.memory_space<vmem>>, %arg11: memref<32x1xf32, #tpu.memory_space<vmem>>, %arg12: memref<64x64xf32, #tpu.memory_space<vmem>>, %arg13: memref<64x1xf32, #tpu.memory_space<vmem>>, %arg14: memref<32x64xf32, #tpu.memory_space<vmem>>, %arg15: memref<32x1xf32, #tpu.memory_space<vmem>>, %arg16: memref<3x32xf32, #tpu.memory_space<vmem>>, %arg17: memref<3x1xf32, #tpu.memory_space<vmem>>, %arg18: memref<1x3x64xf32, #tpu.memory_space<vmem>>, %arg19: memref<1x64x64xf32, #tpu.memory_space<vmem>>, %arg20: memref<1x3x64xf32, #tpu.memory_space<vmem>>) attributes {dimension_semantics = [#tpu.dimension_semantics<parallel>], iteration_bounds = array<i64: 2>, scalar_prefetch = 0 : i64, scratch_operands = 0 : i64, tpu.core_type = #tpu.core_type<tc>, window_params = [{transform_indices = @transform_0, window_bounds = array<i64: 1, 3, 128>}, {transform_indices = @transform_1, window_bounds = array<i64: 1, 128, 3>}, {transform_indices = @transform_2, window_bounds = array<i64: 1, 4, 128>}, {pipeline_mode = #tpu.pipeline_mode<synchronous>, transform_indices = @transform_3, window_bounds = array<i64: 16, 7>}, {pipeline_mode = #tpu.pipeline_mode<synchronous>, transform_indices = @transform_4, window_bounds = array<i64: 16, 1>}, {pipeline_mode = #tpu.pipeline_mode<synchronous>, transform_indices = @transform_5, window_bounds = array<i64: 32, 16>}, {pipeline_mode = #tpu.pipeline_mode<synchronous>, transform_indices = @transform_6, window_bounds = array<i64: 32, 1>}, {pipeline_mode = #tpu.pipeline_mode<synchronous>, transform_indices = @transform_7, window_bounds = array<i64: 16, 7>}, {pipeline_mode = #tpu.pipeline_mode<synchronous>, transform_indices = @transform_8, window_bounds = array<i64: 16, 1>}, {pipeline_mode = #tpu.pipeline_mode<synchronous>, transform_indices = @transform_9, window_bounds = array<i64: 32, 16>}, {pipeline_mode = #tpu.pipeline_mode<synchronous>, transform_indices = @transform_10, window_bounds = array<i64: 32, 1>}, {pipeline_mode = #tpu.pipeline_mode<synchronous>, transform_indices = @transform_11, window_bounds = array<i64: 64, 64>}, {pipeline_mode = #tpu.pipeline_mode<synchronous>, transform_indices = @transform_12, window_bounds = array<i64: 64, 1>}, {pipeline_mode = #tpu.pipeline_mode<synchronous>, transform_indices = @transform_13, window_bounds = array<i64: 32, 64>}, {pipeline_mode = #tpu.pipeline_mode<synchronous>, transform_indices = @transform_14, window_bounds = array<i64: 32, 1>}, {pipeline_mode = #tpu.pipeline_mode<synchronous>, transform_indices = @transform_15, window_bounds = array<i64: 3, 32>}, {pipeline_mode = #tpu.pipeline_mode<synchronous>, transform_indices = @transform_16, window_bounds = array<i64: 3, 1>}, {transform_indices = @transform_17, window_bounds = array<i64: 1, 3, 64>}, {transform_indices = @transform_18, window_bounds = array<i64: 1, 64, 64>}, {transform_indices = @transform_19, window_bounds = array<i64: 1, 3, 64>}]} {
    %c0 = arith.constant 0 : index
    %c0_0 = arith.constant 0 : index
    %c0_1 = arith.constant 0 : index
    %0 = vector.load %arg1[%c0, %c0_0, %c0_1] : memref<1x3x128xf32, #tpu.memory_space<vmem>>, vector<1x3x128xf32>
    %1 = vector.shape_cast %0 : vector<1x3x128xf32> to vector<3x128xf32>
    %c0_2 = arith.constant 0 : index
    %c0_3 = arith.constant 0 : index
    %c0_4 = arith.constant 0 : index
    %2 = vector.load %arg2[%c0_2, %c0_3, %c0_4] : memref<1x128x3xf32, #tpu.memory_space<vmem>>, vector<1x128x3xf32>
    %3 = vector.shape_cast %2 : vector<1x128x3xf32> to vector<128x3xf32>
    %c0_5 = arith.constant 0 : index
    %c0_6 = arith.constant 0 : index
    %c0_7 = arith.constant 0 : index
    %4 = vector.load %arg3[%c0_5, %c0_6, %c0_7] : memref<1x4x128xf32, #tpu.memory_space<vmem>>, vector<1x4x128xf32>
    %5 = vector.shape_cast %4 : vector<1x4x128xf32> to vector<4x128xf32>
    %6 = tpu.iota {dimensions = array<i32: 1>} : vector<1x128xi32>
    %7 = tpu.iota {dimensions = array<i32: 1>} : vector<1x64xi32>
    %c0_i32 = arith.constant 0 : i32
    %8 = vector.broadcast %c0_i32 : i32 to vector<1x64xi32>
    %9 = arith.cmpi eq, %7, %8 : vector<1x64xi32>
    %10 = vector.extract_strided_slice %1 {offsets = [0, 0], sizes = [3, 1], strides = [1, 1]} : vector<3x128xf32> to vector<3x1xf32>
    %cst = arith.constant 0.000000e+00 : f32
    %11 = vector.shape_cast %9 : vector<1x64xi1> to vector<1x64xi1>
    %12 = vector.broadcast %11 : vector<1x64xi1> to vector<3x64xi1>
    %13 = vector.shape_cast %10 : vector<3x1xf32> to vector<3x1xf32>
    %14 = vector.broadcast %13 : vector<3x1xf32> to vector<3x64xf32>
    %15 = vector.broadcast %cst : f32 to vector<3x64xf32>
    %16 = arith.select %12, %14, %15 : vector<3x64xi1>, vector<3x64xf32>
    %cst_8 = arith.constant 1.000000e+10 : f32
    %17 = vector.broadcast %cst_8 : f32 to vector<1x128xf32>
    %c0_i32_9 = arith.constant 0 : i32
    %c1_i32 = arith.constant 1 : i32
    %c63_i32 = arith.constant 63 : i32
    %18 = arith.addi %c1_i32, %c63_i32 : i32
    %c1_i32_10 = arith.constant 1 : i32
    %19:3 = scf.for %arg21 = %c1_i32 to %18 step %c1_i32_10 iter_args(%arg22 = %16, %arg23 = %17, %arg24 = %c0_i32_9) -> (vector<3x64xf32>, vector<1x128xf32>, i32)  : i32 {
      %576 = vector.broadcast %arg24 : i32 to vector<1x128xi32>
      %577 = arith.cmpi eq, %6, %576 : vector<1x128xi32>
      %578 = arith.extui %577 : vector<1x128xi1> to vector<1x128xi32>
      %579 = arith.sitofp %578 : vector<1x128xi32> to vector<1x128xf32>
      %580 = vector.broadcast %579 : vector<1x128xf32> to vector<3x128xf32>
      %581 = arith.mulf %1, %580 : vector<3x128xf32>
      %cst_155 = arith.constant dense<0.000000e+00> : vector<3xf32>
      %582 = vector.multi_reduction <add>, %581, %cst_155 [1] : vector<3x128xf32> to vector<3xf32>
      %583 = vector.shape_cast %582 : vector<3xf32> to vector<3x1xf32>
      %584 = vector.broadcast %583 : vector<3x1xf32> to vector<3x128xf32>
      %585 = arith.subf %1, %584 : vector<3x128xf32>
      %586 = arith.mulf %585, %585 : vector<3x128xf32>
      %cst_156 = arith.constant dense<0.000000e+00> : vector<128xf32>
      %587 = vector.multi_reduction <add>, %586, %cst_156 [0] : vector<3x128xf32> to vector<128xf32>
      %588 = vector.shape_cast %587 : vector<128xf32> to vector<1x128xf32>
      %589 = arith.minimumf %arg23, %588 : vector<1x128xf32>
      %590 = vector.shape_cast %589 : vector<1x128xf32> to vector<1x1x128xf32>
      %cst_157 = arith.constant dense<0xFF800000> : vector<1xf32>
      %591 = vector.multi_reduction <maximumf>, %590, %cst_157 [1, 2] : vector<1x1x128xf32> to vector<1xf32>
      %592 = vector.shape_cast %591 : vector<1xf32> to vector<1x1x1xf32>
      %593 = vector.extract %592[0, 0, 0] : f32 from vector<1x1x1xf32>
      %594 = vector.broadcast %593 : f32 to vector<1x128xf32>
      %595 = arith.cmpf oge, %589, %594 : vector<1x128xf32>
      %c128_i32 = arith.constant 128 : i32
      %596 = vector.broadcast %c128_i32 : i32 to vector<1x128xi32>
      %597 = arith.select %595, %6, %596 : vector<1x128xi1>, vector<1x128xi32>
      %598 = vector.shape_cast %597 : vector<1x128xi32> to vector<1x1x128xi32>
      %cst_158 = arith.constant dense<2147483647> : vector<1xi32>
      %599 = vector.multi_reduction <minsi>, %598, %cst_158 [1, 2] : vector<1x1x128xi32> to vector<1xi32>
      %600 = vector.shape_cast %599 : vector<1xi32> to vector<1x1x1xi32>
      %601 = vector.extract %600[0, 0, 0] : i32 from vector<1x1x1xi32>
      %602 = vector.broadcast %601 : i32 to vector<1x128xi32>
      %603 = arith.cmpi eq, %6, %602 : vector<1x128xi32>
      %604 = arith.extui %603 : vector<1x128xi1> to vector<1x128xi32>
      %605 = arith.sitofp %604 : vector<1x128xi32> to vector<1x128xf32>
      %606 = vector.broadcast %605 : vector<1x128xf32> to vector<3x128xf32>
      %607 = arith.mulf %1, %606 : vector<3x128xf32>
      %cst_159 = arith.constant dense<0.000000e+00> : vector<3xf32>
      %608 = vector.multi_reduction <add>, %607, %cst_159 [1] : vector<3x128xf32> to vector<3xf32>
      %609 = vector.shape_cast %608 : vector<3xf32> to vector<3x1xf32>
      %610 = vector.broadcast %arg21 : i32 to vector<1x64xi32>
      %611 = arith.cmpi eq, %7, %610 : vector<1x64xi32>
      %612 = vector.shape_cast %611 : vector<1x64xi1> to vector<1x64xi1>
      %613 = vector.broadcast %612 : vector<1x64xi1> to vector<3x64xi1>
      %614 = vector.shape_cast %609 : vector<3x1xf32> to vector<3x1xf32>
      %615 = vector.broadcast %614 : vector<3x1xf32> to vector<3x64xf32>
      %616 = arith.select %613, %615, %arg22 : vector<3x64xi1>, vector<3x64xf32>
      scf.yield %616, %589, %601 : vector<3x64xf32>, vector<1x128xf32>, i32
    }
    %c63_i32_11 = arith.constant 63 : i32
    %c0_12 = arith.constant 0 : index
    %c0_13 = arith.constant 0 : index
    %c0_14 = arith.constant 0 : index
    %20 = vector.load %arg18[%c0_12, %c0_13, %c0_14] : memref<1x3x64xf32, #tpu.memory_space<vmem>>, vector<1x3x64xf32>
    %21 = vector.shape_cast %20 : vector<1x3x64xf32> to vector<3x64xf32>
    %22 = vector.shape_cast %19#0 : vector<3x64xf32> to vector<1x3x64xf32>
    tpu.vector_store %arg18[%c0_12, %c0_13, %c0_14], %22 {strides = array<i32>} : memref<1x3x64xf32, #tpu.memory_space<vmem>>, vector<1x3x64xf32>,
    %23 = arith.mulf %3, %3 : vector<128x3xf32>
    %cst_15 = arith.constant dense<0.000000e+00> : vector<128xf32>
    %24 = vector.multi_reduction <add>, %23, %cst_15 [1] : vector<128x3xf32> to vector<128xf32>
    %25 = vector.shape_cast %24 : vector<128xf32> to vector<128x1xf32>
    %26 = arith.mulf %19#0, %19#0 : vector<3x64xf32>
    %cst_16 = arith.constant dense<0.000000e+00> : vector<64xf32>
    %27 = vector.multi_reduction <add>, %26, %cst_16 [0] : vector<3x64xf32> to vector<64xf32>
    %28 = vector.shape_cast %27 : vector<64xf32> to vector<1x64xf32>
    %cst_17 = arith.constant dense<0.000000e+00> : vector<128x64xf32>
    %29 = tpu.matmul %3, %19#0, %cst_17 {dimension_numbers = #tpu.dot_dimension_numbers<[1], [0], [0], [1], [0, 0, 1, 1], [], []>} : vector<128x3xf32>, vector<3x64xf32>, vector<128x64xf32> -> vector<128x64xf32>
    %30 = vector.broadcast %25 : vector<128x1xf32> to vector<128x64xf32>
    %31 = vector.broadcast %28 : vector<1x64xf32> to vector<128x64xf32>
    %32 = arith.addf %30, %31 : vector<128x64xf32>
    %cst_18 = arith.constant 2.000000e+00 : f32
    %33 = vector.broadcast %cst_18 : f32 to vector<128x64xf32>
    %34 = arith.mulf %33, %29 : vector<128x64xf32>
    %35 = arith.subf %32, %34 : vector<128x64xf32>
    %36 = tpu.iota {dimensions = array<i32: 0>} : vector<128x128xi32>
    %37 = tpu.iota {dimensions = array<i32: 1>} : vector<128x128xi32>
    %38 = arith.cmpi sle, %37, %36 : vector<128x128xi32>
    %39 = arith.extui %38 : vector<128x128xi1> to vector<128x128xi32>
    %40 = arith.sitofp %39 : vector<128x128xi32> to vector<128x128xf32>
    %41 = tpu.iota {dimensions = array<i32: 0>} : vector<128x64xi32>
    %c0_i32_19 = arith.constant 0 : i32
    %42 = vector.broadcast %c0_i32_19 : i32 to vector<128x64xi32>
    %43 = arith.cmpi eq, %41, %42 : vector<128x64xi32>
    %44 = arith.extui %43 : vector<128x64xi1> to vector<128x64xi32>
    %45 = arith.sitofp %44 : vector<128x64xi32> to vector<128x64xf32>
    %cst_20 = arith.constant 2.500000e-01 : f32
    %46 = vector.broadcast %cst_20 : f32 to vector<128x64xf32>
    %47 = arith.cmpf olt, %35, %46 : vector<128x64xf32>
    %48 = arith.extui %47 : vector<128x64xi1> to vector<128x64xi32>
    %49 = arith.sitofp %48 : vector<128x64xi32> to vector<128x64xf32>
    %cst_21 = arith.constant dense<0.000000e+00> : vector<128x64xf32>
    %50 = tpu.matmul %40, %49, %cst_21 {dimension_numbers = #tpu.dot_dimension_numbers<[1], [0], [0], [1], [0, 0, 1, 1], [], []>} : vector<128x128xf32>, vector<128x64xf32>, vector<128x64xf32> -> vector<128x64xf32>
    %cst_22 = arith.constant dense<0.000000e+00> : vector<64xf32>
    %51 = vector.multi_reduction <add>, %49, %cst_22 [0] : vector<128x64xf32> to vector<64xf32>
    %52 = vector.shape_cast %51 : vector<64xf32> to vector<1x64xf32>
    %cst_23 = arith.constant 1.500000e+00 : f32
    %53 = vector.broadcast %cst_23 : f32 to vector<128x64xf32>
    %54 = arith.cmpf olt, %50, %53 : vector<128x64xf32>
    %55 = arith.extui %54 : vector<128x64xi1> to vector<128x64xi32>
    %56 = arith.sitofp %55 : vector<128x64xi32> to vector<128x64xf32>
    %57 = arith.mulf %49, %56 : vector<128x64xf32>
    %cst_24 = arith.constant 5.000000e-01 : f32
    %58 = vector.broadcast %cst_24 : f32 to vector<1x64xf32>
    %59 = arith.cmpf ogt, %52, %58 : vector<1x64xf32>
    %cst_25 = arith.constant 1.000000e+00 : f32
    %60 = vector.broadcast %cst_25 : f32 to vector<128x64xf32>
    %61 = arith.subf %50, %60 : vector<128x64xf32>
    %62 = math.absf %61 : vector<128x64xf32>
    %cst_26 = arith.constant 5.000000e-01 : f32
    %63 = vector.broadcast %cst_26 : f32 to vector<128x64xf32>
    %64 = arith.cmpf olt, %62, %63 : vector<128x64xf32>
    %65 = arith.extui %64 : vector<128x64xi1> to vector<128x64xi32>
    %66 = arith.sitofp %65 : vector<128x64xi32> to vector<128x64xf32>
    %67 = arith.mulf %49, %66 : vector<128x64xf32>
    %cst_27 = arith.constant 5.000000e-01 : f32
    %68 = vector.broadcast %cst_27 : f32 to vector<1x64xf32>
    %69 = arith.cmpf ogt, %52, %68 : vector<1x64xf32>
    %70 = vector.shape_cast %59 : vector<1x64xi1> to vector<1x64xi1>
    %71 = vector.broadcast %70 : vector<1x64xi1> to vector<128x64xi1>
    %72 = arith.select %71, %57, %45 : vector<128x64xi1>, vector<128x64xf32>
    %73 = vector.shape_cast %69 : vector<1x64xi1> to vector<1x64xi1>
    %74 = vector.broadcast %73 : vector<1x64xi1> to vector<128x64xi1>
    %75 = arith.select %74, %67, %72 : vector<128x64xi1>, vector<128x64xf32>
    %cst_28 = arith.constant 2.000000e+00 : f32
    %76 = vector.broadcast %cst_28 : f32 to vector<128x64xf32>
    %77 = arith.subf %50, %76 : vector<128x64xf32>
    %78 = math.absf %77 : vector<128x64xf32>
    %cst_29 = arith.constant 5.000000e-01 : f32
    %79 = vector.broadcast %cst_29 : f32 to vector<128x64xf32>
    %80 = arith.cmpf olt, %78, %79 : vector<128x64xf32>
    %81 = arith.extui %80 : vector<128x64xi1> to vector<128x64xi32>
    %82 = arith.sitofp %81 : vector<128x64xi32> to vector<128x64xf32>
    %83 = arith.mulf %49, %82 : vector<128x64xf32>
    %cst_30 = arith.constant 1.500000e+00 : f32
    %84 = vector.broadcast %cst_30 : f32 to vector<1x64xf32>
    %85 = arith.cmpf ogt, %52, %84 : vector<1x64xf32>
    %86 = vector.shape_cast %59 : vector<1x64xi1> to vector<1x64xi1>
    %87 = vector.broadcast %86 : vector<1x64xi1> to vector<128x64xi1>
    %88 = arith.select %87, %57, %45 : vector<128x64xi1>, vector<128x64xf32>
    %89 = vector.shape_cast %85 : vector<1x64xi1> to vector<1x64xi1>
    %90 = vector.broadcast %89 : vector<1x64xi1> to vector<128x64xi1>
    %91 = arith.select %90, %83, %88 : vector<128x64xi1>, vector<128x64xf32>
    %cst_31 = arith.constant 3.000000e+00 : f32
    %92 = vector.broadcast %cst_31 : f32 to vector<128x64xf32>
    %93 = arith.subf %50, %92 : vector<128x64xf32>
    %94 = math.absf %93 : vector<128x64xf32>
    %cst_32 = arith.constant 5.000000e-01 : f32
    %95 = vector.broadcast %cst_32 : f32 to vector<128x64xf32>
    %96 = arith.cmpf olt, %94, %95 : vector<128x64xf32>
    %97 = arith.extui %96 : vector<128x64xi1> to vector<128x64xi32>
    %98 = arith.sitofp %97 : vector<128x64xi32> to vector<128x64xf32>
    %99 = arith.mulf %49, %98 : vector<128x64xf32>
    %cst_33 = arith.constant 2.500000e+00 : f32
    %100 = vector.broadcast %cst_33 : f32 to vector<1x64xf32>
    %101 = arith.cmpf ogt, %52, %100 : vector<1x64xf32>
    %102 = vector.shape_cast %59 : vector<1x64xi1> to vector<1x64xi1>
    %103 = vector.broadcast %102 : vector<1x64xi1> to vector<128x64xi1>
    %104 = arith.select %103, %57, %45 : vector<128x64xi1>, vector<128x64xf32>
    %105 = vector.shape_cast %101 : vector<1x64xi1> to vector<1x64xi1>
    %106 = vector.broadcast %105 : vector<1x64xi1> to vector<128x64xi1>
    %107 = arith.select %106, %99, %104 : vector<128x64xi1>, vector<128x64xf32>
    %cst_34 = arith.constant 4.000000e+00 : f32
    %108 = vector.broadcast %cst_34 : f32 to vector<128x64xf32>
    %109 = arith.subf %50, %108 : vector<128x64xf32>
    %110 = math.absf %109 : vector<128x64xf32>
    %cst_35 = arith.constant 5.000000e-01 : f32
    %111 = vector.broadcast %cst_35 : f32 to vector<128x64xf32>
    %112 = arith.cmpf olt, %110, %111 : vector<128x64xf32>
    %113 = arith.extui %112 : vector<128x64xi1> to vector<128x64xi32>
    %114 = arith.sitofp %113 : vector<128x64xi32> to vector<128x64xf32>
    %115 = arith.mulf %49, %114 : vector<128x64xf32>
    %cst_36 = arith.constant 3.500000e+00 : f32
    %116 = vector.broadcast %cst_36 : f32 to vector<1x64xf32>
    %117 = arith.cmpf ogt, %52, %116 : vector<1x64xf32>
    %118 = vector.shape_cast %59 : vector<1x64xi1> to vector<1x64xi1>
    %119 = vector.broadcast %118 : vector<1x64xi1> to vector<128x64xi1>
    %120 = arith.select %119, %57, %45 : vector<128x64xi1>, vector<128x64xf32>
    %121 = vector.shape_cast %117 : vector<1x64xi1> to vector<1x64xi1>
    %122 = vector.broadcast %121 : vector<1x64xi1> to vector<128x64xi1>
    %123 = arith.select %122, %115, %120 : vector<128x64xi1>, vector<128x64xf32>
    %cst_37 = arith.constant 5.000000e+00 : f32
    %124 = vector.broadcast %cst_37 : f32 to vector<128x64xf32>
    %125 = arith.subf %50, %124 : vector<128x64xf32>
    %126 = math.absf %125 : vector<128x64xf32>
    %cst_38 = arith.constant 5.000000e-01 : f32
    %127 = vector.broadcast %cst_38 : f32 to vector<128x64xf32>
    %128 = arith.cmpf olt, %126, %127 : vector<128x64xf32>
    %129 = arith.extui %128 : vector<128x64xi1> to vector<128x64xi32>
    %130 = arith.sitofp %129 : vector<128x64xi32> to vector<128x64xf32>
    %131 = arith.mulf %49, %130 : vector<128x64xf32>
    %cst_39 = arith.constant 4.500000e+00 : f32
    %132 = vector.broadcast %cst_39 : f32 to vector<1x64xf32>
    %133 = arith.cmpf ogt, %52, %132 : vector<1x64xf32>
    %134 = vector.shape_cast %59 : vector<1x64xi1> to vector<1x64xi1>
    %135 = vector.broadcast %134 : vector<1x64xi1> to vector<128x64xi1>
    %136 = arith.select %135, %57, %45 : vector<128x64xi1>, vector<128x64xf32>
    %137 = vector.shape_cast %133 : vector<1x64xi1> to vector<1x64xi1>
    %138 = vector.broadcast %137 : vector<1x64xi1> to vector<128x64xi1>
    %139 = arith.select %138, %131, %136 : vector<128x64xi1>, vector<128x64xf32>
    %cst_40 = arith.constant 6.000000e+00 : f32
    %140 = vector.broadcast %cst_40 : f32 to vector<128x64xf32>
    %141 = arith.subf %50, %140 : vector<128x64xf32>
    %142 = math.absf %141 : vector<128x64xf32>
    %cst_41 = arith.constant 5.000000e-01 : f32
    %143 = vector.broadcast %cst_41 : f32 to vector<128x64xf32>
    %144 = arith.cmpf olt, %142, %143 : vector<128x64xf32>
    %145 = arith.extui %144 : vector<128x64xi1> to vector<128x64xi32>
    %146 = arith.sitofp %145 : vector<128x64xi32> to vector<128x64xf32>
    %147 = arith.mulf %49, %146 : vector<128x64xf32>
    %cst_42 = arith.constant 5.500000e+00 : f32
    %148 = vector.broadcast %cst_42 : f32 to vector<1x64xf32>
    %149 = arith.cmpf ogt, %52, %148 : vector<1x64xf32>
    %150 = vector.shape_cast %59 : vector<1x64xi1> to vector<1x64xi1>
    %151 = vector.broadcast %150 : vector<1x64xi1> to vector<128x64xi1>
    %152 = arith.select %151, %57, %45 : vector<128x64xi1>, vector<128x64xf32>
    %153 = vector.shape_cast %149 : vector<1x64xi1> to vector<1x64xi1>
    %154 = vector.broadcast %153 : vector<1x64xi1> to vector<128x64xi1>
    %155 = arith.select %154, %147, %152 : vector<128x64xi1>, vector<128x64xf32>
    %cst_43 = arith.constant 7.000000e+00 : f32
    %156 = vector.broadcast %cst_43 : f32 to vector<128x64xf32>
    %157 = arith.subf %50, %156 : vector<128x64xf32>
    %158 = math.absf %157 : vector<128x64xf32>
    %cst_44 = arith.constant 5.000000e-01 : f32
    %159 = vector.broadcast %cst_44 : f32 to vector<128x64xf32>
    %160 = arith.cmpf olt, %158, %159 : vector<128x64xf32>
    %161 = arith.extui %160 : vector<128x64xi1> to vector<128x64xi32>
    %162 = arith.sitofp %161 : vector<128x64xi32> to vector<128x64xf32>
    %163 = arith.mulf %49, %162 : vector<128x64xf32>
    %cst_45 = arith.constant 6.500000e+00 : f32
    %164 = vector.broadcast %cst_45 : f32 to vector<1x64xf32>
    %165 = arith.cmpf ogt, %52, %164 : vector<1x64xf32>
    %166 = vector.shape_cast %59 : vector<1x64xi1> to vector<1x64xi1>
    %167 = vector.broadcast %166 : vector<1x64xi1> to vector<128x64xi1>
    %168 = arith.select %167, %57, %45 : vector<128x64xi1>, vector<128x64xf32>
    %169 = vector.shape_cast %165 : vector<1x64xi1> to vector<1x64xi1>
    %170 = vector.broadcast %169 : vector<1x64xi1> to vector<128x64xi1>
    %171 = arith.select %170, %163, %168 : vector<128x64xi1>, vector<128x64xf32>
    %cst_46 = arith.constant 8.000000e+00 : f32
    %172 = vector.broadcast %cst_46 : f32 to vector<128x64xf32>
    %173 = arith.subf %50, %172 : vector<128x64xf32>
    %174 = math.absf %173 : vector<128x64xf32>
    %cst_47 = arith.constant 5.000000e-01 : f32
    %175 = vector.broadcast %cst_47 : f32 to vector<128x64xf32>
    %176 = arith.cmpf olt, %174, %175 : vector<128x64xf32>
    %177 = arith.extui %176 : vector<128x64xi1> to vector<128x64xi32>
    %178 = arith.sitofp %177 : vector<128x64xi32> to vector<128x64xf32>
    %179 = arith.mulf %49, %178 : vector<128x64xf32>
    %cst_48 = arith.constant 7.500000e+00 : f32
    %180 = vector.broadcast %cst_48 : f32 to vector<1x64xf32>
    %181 = arith.cmpf ogt, %52, %180 : vector<1x64xf32>
    %182 = vector.shape_cast %59 : vector<1x64xi1> to vector<1x64xi1>
    %183 = vector.broadcast %182 : vector<1x64xi1> to vector<128x64xi1>
    %184 = arith.select %183, %57, %45 : vector<128x64xi1>, vector<128x64xf32>
    %185 = vector.shape_cast %181 : vector<1x64xi1> to vector<1x64xi1>
    %186 = vector.broadcast %185 : vector<1x64xi1> to vector<128x64xi1>
    %187 = arith.select %186, %179, %184 : vector<128x64xi1>, vector<128x64xf32>
    %188 = tpu.concatenate %75, %91, %107, %123, %139, %155, %171, %187 in 1 : vector<128x64xf32>, vector<128x64xf32>, vector<128x64xf32>, vector<128x64xf32>, vector<128x64xf32>, vector<128x64xf32>, vector<128x64xf32>, vector<128x64xf32> -> vector<128x512xf32>
    %cst_49 = arith.constant dense<0.000000e+00> : vector<3x512xf32>
    %189 = tpu.matmul %1, %188, %cst_49 {dimension_numbers = #tpu.dot_dimension_numbers<[1], [0], [0], [1], [0, 0, 1, 1], [], []>} : vector<3x128xf32>, vector<128x512xf32>, vector<3x512xf32> -> vector<3x512xf32>
    %190 = tpu.concatenate %19#0, %19#0, %19#0, %19#0, %19#0, %19#0, %19#0, %19#0 in 1 : vector<3x64xf32>, vector<3x64xf32>, vector<3x64xf32>, vector<3x64xf32>, vector<3x64xf32>, vector<3x64xf32>, vector<3x64xf32>, vector<3x64xf32> -> vector<3x512xf32>
    %191 = arith.subf %189, %190 : vector<3x512xf32>
    %cst_50 = arith.constant dense<0.000000e+00> : vector<4x512xf32>
    %192 = tpu.matmul %5, %188, %cst_50 {dimension_numbers = #tpu.dot_dimension_numbers<[1], [0], [0], [1], [0, 0, 1, 1], [], []>} : vector<4x128xf32>, vector<128x512xf32>, vector<4x512xf32> -> vector<4x512xf32>
    %c0_51 = arith.constant 0 : index
    %c0_52 = arith.constant 0 : index
    %193 = vector.load %arg4[%c0_51, %c0_52] : memref<16x7xf32, #tpu.memory_space<vmem>>, vector<16x7xf32>
    %194 = vector.extract_strided_slice %193 {offsets = [0, 0], sizes = [16, 3], strides = [1, 1]} : vector<16x7xf32> to vector<16x3xf32>
    %cst_53 = arith.constant dense<0.000000e+00> : vector<16x512xf32>
    %195 = tpu.matmul %194, %191, %cst_53 {dimension_numbers = #tpu.dot_dimension_numbers<[1], [0], [0], [1], [0, 0, 1, 1], [], []>} : vector<16x3xf32>, vector<3x512xf32>, vector<16x512xf32> -> vector<16x512xf32>
    %196 = vector.extract_strided_slice %193 {offsets = [0, 3], sizes = [16, 4], strides = [1, 1]} : vector<16x7xf32> to vector<16x4xf32>
    %cst_54 = arith.constant dense<0.000000e+00> : vector<16x512xf32>
    %197 = tpu.matmul %196, %192, %cst_54 {dimension_numbers = #tpu.dot_dimension_numbers<[1], [0], [0], [1], [0, 0, 1, 1], [], []>} : vector<16x4xf32>, vector<4x512xf32>, vector<16x512xf32> -> vector<16x512xf32>
    %198 = arith.addf %195, %197 : vector<16x512xf32>
    %c0_55 = arith.constant 0 : index
    %c0_56 = arith.constant 0 : index
    %199 = vector.load %arg5[%c0_55, %c0_56] : memref<16x1xf32, #tpu.memory_space<vmem>>, vector<16x1xf32>
    %200 = vector.broadcast %199 : vector<16x1xf32> to vector<16x512xf32>
    %201 = arith.addf %198, %200 : vector<16x512xf32>
    %cst_57 = arith.constant 0.000000e+00 : f32
    %202 = vector.broadcast %cst_57 : f32 to vector<16x512xf32>
    %203 = arith.maximumf %201, %202 : vector<16x512xf32>
    %c0_58 = arith.constant 0 : index
    %c0_59 = arith.constant 0 : index
    %204 = vector.load %arg6[%c0_58, %c0_59] : memref<32x16xf32, #tpu.memory_space<vmem>>, vector<32x16xf32>
    %cst_60 = arith.constant dense<0.000000e+00> : vector<32x512xf32>
    %205 = tpu.matmul %204, %203, %cst_60 {dimension_numbers = #tpu.dot_dimension_numbers<[1], [0], [0], [1], [0, 0, 1, 1], [], []>} : vector<32x16xf32>, vector<16x512xf32>, vector<32x512xf32> -> vector<32x512xf32>
    %c0_61 = arith.constant 0 : index
    %c0_62 = arith.constant 0 : index
    %206 = vector.load %arg7[%c0_61, %c0_62] : memref<32x1xf32, #tpu.memory_space<vmem>>, vector<32x1xf32>
    %207 = vector.broadcast %206 : vector<32x1xf32> to vector<32x512xf32>
    %208 = arith.addf %205, %207 : vector<32x512xf32>
    %cst_63 = arith.constant 0.000000e+00 : f32
    %209 = vector.broadcast %cst_63 : f32 to vector<32x512xf32>
    %210 = arith.maximumf %208, %209 : vector<32x512xf32>
    %211 = vector.extract_strided_slice %210 {offsets = [0, 0], sizes = [32, 64], strides = [1, 1]} : vector<32x512xf32> to vector<32x64xf32>
    %212 = vector.extract_strided_slice %210 {offsets = [0, 64], sizes = [32, 64], strides = [1, 1]} : vector<32x512xf32> to vector<32x64xf32>
    %213 = arith.maximumf %211, %212 : vector<32x64xf32>
    %214 = vector.extract_strided_slice %210 {offsets = [0, 128], sizes = [32, 64], strides = [1, 1]} : vector<32x512xf32> to vector<32x64xf32>
    %215 = arith.maximumf %213, %214 : vector<32x64xf32>
    %216 = vector.extract_strided_slice %210 {offsets = [0, 192], sizes = [32, 64], strides = [1, 1]} : vector<32x512xf32> to vector<32x64xf32>
    %217 = arith.maximumf %215, %216 : vector<32x64xf32>
    %218 = vector.extract_strided_slice %210 {offsets = [0, 256], sizes = [32, 64], strides = [1, 1]} : vector<32x512xf32> to vector<32x64xf32>
    %219 = arith.maximumf %217, %218 : vector<32x64xf32>
    %220 = vector.extract_strided_slice %210 {offsets = [0, 320], sizes = [32, 64], strides = [1, 1]} : vector<32x512xf32> to vector<32x64xf32>
    %221 = arith.maximumf %219, %220 : vector<32x64xf32>
    %222 = vector.extract_strided_slice %210 {offsets = [0, 384], sizes = [32, 64], strides = [1, 1]} : vector<32x512xf32> to vector<32x64xf32>
    %223 = arith.maximumf %221, %222 : vector<32x64xf32>
    %224 = vector.extract_strided_slice %210 {offsets = [0, 448], sizes = [32, 64], strides = [1, 1]} : vector<32x512xf32> to vector<32x64xf32>
    %225 = arith.maximumf %223, %224 : vector<32x64xf32>
    %cst_64 = arith.constant 1.000000e+00 : f32
    %226 = vector.broadcast %cst_64 : f32 to vector<128x64xf32>
    %227 = arith.cmpf olt, %35, %226 : vector<128x64xf32>
    %228 = arith.extui %227 : vector<128x64xi1> to vector<128x64xi32>
    %229 = arith.sitofp %228 : vector<128x64xi32> to vector<128x64xf32>
    %cst_65 = arith.constant dense<0.000000e+00> : vector<128x64xf32>
    %230 = tpu.matmul %40, %229, %cst_65 {dimension_numbers = #tpu.dot_dimension_numbers<[1], [0], [0], [1], [0, 0, 1, 1], [], []>} : vector<128x128xf32>, vector<128x64xf32>, vector<128x64xf32> -> vector<128x64xf32>
    %cst_66 = arith.constant dense<0.000000e+00> : vector<64xf32>
    %231 = vector.multi_reduction <add>, %229, %cst_66 [0] : vector<128x64xf32> to vector<64xf32>
    %232 = vector.shape_cast %231 : vector<64xf32> to vector<1x64xf32>
    %cst_67 = arith.constant 1.500000e+00 : f32
    %233 = vector.broadcast %cst_67 : f32 to vector<128x64xf32>
    %234 = arith.cmpf olt, %230, %233 : vector<128x64xf32>
    %235 = arith.extui %234 : vector<128x64xi1> to vector<128x64xi32>
    %236 = arith.sitofp %235 : vector<128x64xi32> to vector<128x64xf32>
    %237 = arith.mulf %229, %236 : vector<128x64xf32>
    %cst_68 = arith.constant 5.000000e-01 : f32
    %238 = vector.broadcast %cst_68 : f32 to vector<1x64xf32>
    %239 = arith.cmpf ogt, %232, %238 : vector<1x64xf32>
    %cst_69 = arith.constant 1.000000e+00 : f32
    %240 = vector.broadcast %cst_69 : f32 to vector<128x64xf32>
    %241 = arith.subf %230, %240 : vector<128x64xf32>
    %242 = math.absf %241 : vector<128x64xf32>
    %cst_70 = arith.constant 5.000000e-01 : f32
    %243 = vector.broadcast %cst_70 : f32 to vector<128x64xf32>
    %244 = arith.cmpf olt, %242, %243 : vector<128x64xf32>
    %245 = arith.extui %244 : vector<128x64xi1> to vector<128x64xi32>
    %246 = arith.sitofp %245 : vector<128x64xi32> to vector<128x64xf32>
    %247 = arith.mulf %229, %246 : vector<128x64xf32>
    %cst_71 = arith.constant 5.000000e-01 : f32
    %248 = vector.broadcast %cst_71 : f32 to vector<1x64xf32>
    %249 = arith.cmpf ogt, %232, %248 : vector<1x64xf32>
    %250 = vector.shape_cast %239 : vector<1x64xi1> to vector<1x64xi1>
    %251 = vector.broadcast %250 : vector<1x64xi1> to vector<128x64xi1>
    %252 = arith.select %251, %237, %45 : vector<128x64xi1>, vector<128x64xf32>
    %253 = vector.shape_cast %249 : vector<1x64xi1> to vector<1x64xi1>
    %254 = vector.broadcast %253 : vector<1x64xi1> to vector<128x64xi1>
    %255 = arith.select %254, %247, %252 : vector<128x64xi1>, vector<128x64xf32>
    %cst_72 = arith.constant 2.000000e+00 : f32
    %256 = vector.broadcast %cst_72 : f32 to vector<128x64xf32>
    %257 = arith.subf %230, %256 : vector<128x64xf32>
    %258 = math.absf %257 : vector<128x64xf32>
    %cst_73 = arith.constant 5.000000e-01 : f32
    %259 = vector.broadcast %cst_73 : f32 to vector<128x64xf32>
    %260 = arith.cmpf olt, %258, %259 : vector<128x64xf32>
    %261 = arith.extui %260 : vector<128x64xi1> to vector<128x64xi32>
    %262 = arith.sitofp %261 : vector<128x64xi32> to vector<128x64xf32>
    %263 = arith.mulf %229, %262 : vector<128x64xf32>
    %cst_74 = arith.constant 1.500000e+00 : f32
    %264 = vector.broadcast %cst_74 : f32 to vector<1x64xf32>
    %265 = arith.cmpf ogt, %232, %264 : vector<1x64xf32>
    %266 = vector.shape_cast %239 : vector<1x64xi1> to vector<1x64xi1>
    %267 = vector.broadcast %266 : vector<1x64xi1> to vector<128x64xi1>
    %268 = arith.select %267, %237, %45 : vector<128x64xi1>, vector<128x64xf32>
    %269 = vector.shape_cast %265 : vector<1x64xi1> to vector<1x64xi1>
    %270 = vector.broadcast %269 : vector<1x64xi1> to vector<128x64xi1>
    %271 = arith.select %270, %263, %268 : vector<128x64xi1>, vector<128x64xf32>
    %cst_75 = arith.constant 3.000000e+00 : f32
    %272 = vector.broadcast %cst_75 : f32 to vector<128x64xf32>
    %273 = arith.subf %230, %272 : vector<128x64xf32>
    %274 = math.absf %273 : vector<128x64xf32>
    %cst_76 = arith.constant 5.000000e-01 : f32
    %275 = vector.broadcast %cst_76 : f32 to vector<128x64xf32>
    %276 = arith.cmpf olt, %274, %275 : vector<128x64xf32>
    %277 = arith.extui %276 : vector<128x64xi1> to vector<128x64xi32>
    %278 = arith.sitofp %277 : vector<128x64xi32> to vector<128x64xf32>
    %279 = arith.mulf %229, %278 : vector<128x64xf32>
    %cst_77 = arith.constant 2.500000e+00 : f32
    %280 = vector.broadcast %cst_77 : f32 to vector<1x64xf32>
    %281 = arith.cmpf ogt, %232, %280 : vector<1x64xf32>
    %282 = vector.shape_cast %239 : vector<1x64xi1> to vector<1x64xi1>
    %283 = vector.broadcast %282 : vector<1x64xi1> to vector<128x64xi1>
    %284 = arith.select %283, %237, %45 : vector<128x64xi1>, vector<128x64xf32>
    %285 = vector.shape_cast %281 : vector<1x64xi1> to vector<1x64xi1>
    %286 = vector.broadcast %285 : vector<1x64xi1> to vector<128x64xi1>
    %287 = arith.select %286, %279, %284 : vector<128x64xi1>, vector<128x64xf32>
    %cst_78 = arith.constant 4.000000e+00 : f32
    %288 = vector.broadcast %cst_78 : f32 to vector<128x64xf32>
    %289 = arith.subf %230, %288 : vector<128x64xf32>
    %290 = math.absf %289 : vector<128x64xf32>
    %cst_79 = arith.constant 5.000000e-01 : f32
    %291 = vector.broadcast %cst_79 : f32 to vector<128x64xf32>
    %292 = arith.cmpf olt, %290, %291 : vector<128x64xf32>
    %293 = arith.extui %292 : vector<128x64xi1> to vector<128x64xi32>
    %294 = arith.sitofp %293 : vector<128x64xi32> to vector<128x64xf32>
    %295 = arith.mulf %229, %294 : vector<128x64xf32>
    %cst_80 = arith.constant 3.500000e+00 : f32
    %296 = vector.broadcast %cst_80 : f32 to vector<1x64xf32>
    %297 = arith.cmpf ogt, %232, %296 : vector<1x64xf32>
    %298 = vector.shape_cast %239 : vector<1x64xi1> to vector<1x64xi1>
    %299 = vector.broadcast %298 : vector<1x64xi1> to vector<128x64xi1>
    %300 = arith.select %299, %237, %45 : vector<128x64xi1>, vector<128x64xf32>
    %301 = vector.shape_cast %297 : vector<1x64xi1> to vector<1x64xi1>
    %302 = vector.broadcast %301 : vector<1x64xi1> to vector<128x64xi1>
    %303 = arith.select %302, %295, %300 : vector<128x64xi1>, vector<128x64xf32>
    %cst_81 = arith.constant 5.000000e+00 : f32
    %304 = vector.broadcast %cst_81 : f32 to vector<128x64xf32>
    %305 = arith.subf %230, %304 : vector<128x64xf32>
    %306 = math.absf %305 : vector<128x64xf32>
    %cst_82 = arith.constant 5.000000e-01 : f32
    %307 = vector.broadcast %cst_82 : f32 to vector<128x64xf32>
    %308 = arith.cmpf olt, %306, %307 : vector<128x64xf32>
    %309 = arith.extui %308 : vector<128x64xi1> to vector<128x64xi32>
    %310 = arith.sitofp %309 : vector<128x64xi32> to vector<128x64xf32>
    %311 = arith.mulf %229, %310 : vector<128x64xf32>
    %cst_83 = arith.constant 4.500000e+00 : f32
    %312 = vector.broadcast %cst_83 : f32 to vector<1x64xf32>
    %313 = arith.cmpf ogt, %232, %312 : vector<1x64xf32>
    %314 = vector.shape_cast %239 : vector<1x64xi1> to vector<1x64xi1>
    %315 = vector.broadcast %314 : vector<1x64xi1> to vector<128x64xi1>
    %316 = arith.select %315, %237, %45 : vector<128x64xi1>, vector<128x64xf32>
    %317 = vector.shape_cast %313 : vector<1x64xi1> to vector<1x64xi1>
    %318 = vector.broadcast %317 : vector<1x64xi1> to vector<128x64xi1>
    %319 = arith.select %318, %311, %316 : vector<128x64xi1>, vector<128x64xf32>
    %cst_84 = arith.constant 6.000000e+00 : f32
    %320 = vector.broadcast %cst_84 : f32 to vector<128x64xf32>
    %321 = arith.subf %230, %320 : vector<128x64xf32>
    %322 = math.absf %321 : vector<128x64xf32>
    %cst_85 = arith.constant 5.000000e-01 : f32
    %323 = vector.broadcast %cst_85 : f32 to vector<128x64xf32>
    %324 = arith.cmpf olt, %322, %323 : vector<128x64xf32>
    %325 = arith.extui %324 : vector<128x64xi1> to vector<128x64xi32>
    %326 = arith.sitofp %325 : vector<128x64xi32> to vector<128x64xf32>
    %327 = arith.mulf %229, %326 : vector<128x64xf32>
    %cst_86 = arith.constant 5.500000e+00 : f32
    %328 = vector.broadcast %cst_86 : f32 to vector<1x64xf32>
    %329 = arith.cmpf ogt, %232, %328 : vector<1x64xf32>
    %330 = vector.shape_cast %239 : vector<1x64xi1> to vector<1x64xi1>
    %331 = vector.broadcast %330 : vector<1x64xi1> to vector<128x64xi1>
    %332 = arith.select %331, %237, %45 : vector<128x64xi1>, vector<128x64xf32>
    %333 = vector.shape_cast %329 : vector<1x64xi1> to vector<1x64xi1>
    %334 = vector.broadcast %333 : vector<1x64xi1> to vector<128x64xi1>
    %335 = arith.select %334, %327, %332 : vector<128x64xi1>, vector<128x64xf32>
    %cst_87 = arith.constant 7.000000e+00 : f32
    %336 = vector.broadcast %cst_87 : f32 to vector<128x64xf32>
    %337 = arith.subf %230, %336 : vector<128x64xf32>
    %338 = math.absf %337 : vector<128x64xf32>
    %cst_88 = arith.constant 5.000000e-01 : f32
    %339 = vector.broadcast %cst_88 : f32 to vector<128x64xf32>
    %340 = arith.cmpf olt, %338, %339 : vector<128x64xf32>
    %341 = arith.extui %340 : vector<128x64xi1> to vector<128x64xi32>
    %342 = arith.sitofp %341 : vector<128x64xi32> to vector<128x64xf32>
    %343 = arith.mulf %229, %342 : vector<128x64xf32>
    %cst_89 = arith.constant 6.500000e+00 : f32
    %344 = vector.broadcast %cst_89 : f32 to vector<1x64xf32>
    %345 = arith.cmpf ogt, %232, %344 : vector<1x64xf32>
    %346 = vector.shape_cast %239 : vector<1x64xi1> to vector<1x64xi1>
    %347 = vector.broadcast %346 : vector<1x64xi1> to vector<128x64xi1>
    %348 = arith.select %347, %237, %45 : vector<128x64xi1>, vector<128x64xf32>
    %349 = vector.shape_cast %345 : vector<1x64xi1> to vector<1x64xi1>
    %350 = vector.broadcast %349 : vector<1x64xi1> to vector<128x64xi1>
    %351 = arith.select %350, %343, %348 : vector<128x64xi1>, vector<128x64xf32>
    %cst_90 = arith.constant 8.000000e+00 : f32
    %352 = vector.broadcast %cst_90 : f32 to vector<128x64xf32>
    %353 = arith.subf %230, %352 : vector<128x64xf32>
    %354 = math.absf %353 : vector<128x64xf32>
    %cst_91 = arith.constant 5.000000e-01 : f32
    %355 = vector.broadcast %cst_91 : f32 to vector<128x64xf32>
    %356 = arith.cmpf olt, %354, %355 : vector<128x64xf32>
    %357 = arith.extui %356 : vector<128x64xi1> to vector<128x64xi32>
    %358 = arith.sitofp %357 : vector<128x64xi32> to vector<128x64xf32>
    %359 = arith.mulf %229, %358 : vector<128x64xf32>
    %cst_92 = arith.constant 7.500000e+00 : f32
    %360 = vector.broadcast %cst_92 : f32 to vector<1x64xf32>
    %361 = arith.cmpf ogt, %232, %360 : vector<1x64xf32>
    %362 = vector.shape_cast %239 : vector<1x64xi1> to vector<1x64xi1>
    %363 = vector.broadcast %362 : vector<1x64xi1> to vector<128x64xi1>
    %364 = arith.select %363, %237, %45 : vector<128x64xi1>, vector<128x64xf32>
    %365 = vector.shape_cast %361 : vector<1x64xi1> to vector<1x64xi1>
    %366 = vector.broadcast %365 : vector<1x64xi1> to vector<128x64xi1>
    %367 = arith.select %366, %359, %364 : vector<128x64xi1>, vector<128x64xf32>
    %cst_93 = arith.constant 9.000000e+00 : f32
    %368 = vector.broadcast %cst_93 : f32 to vector<128x64xf32>
    %369 = arith.subf %230, %368 : vector<128x64xf32>
    %370 = math.absf %369 : vector<128x64xf32>
    %cst_94 = arith.constant 5.000000e-01 : f32
    %371 = vector.broadcast %cst_94 : f32 to vector<128x64xf32>
    %372 = arith.cmpf olt, %370, %371 : vector<128x64xf32>
    %373 = arith.extui %372 : vector<128x64xi1> to vector<128x64xi32>
    %374 = arith.sitofp %373 : vector<128x64xi32> to vector<128x64xf32>
    %375 = arith.mulf %229, %374 : vector<128x64xf32>
    %cst_95 = arith.constant 8.500000e+00 : f32
    %376 = vector.broadcast %cst_95 : f32 to vector<1x64xf32>
    %377 = arith.cmpf ogt, %232, %376 : vector<1x64xf32>
    %378 = vector.shape_cast %239 : vector<1x64xi1> to vector<1x64xi1>
    %379 = vector.broadcast %378 : vector<1x64xi1> to vector<128x64xi1>
    %380 = arith.select %379, %237, %45 : vector<128x64xi1>, vector<128x64xf32>
    %381 = vector.shape_cast %377 : vector<1x64xi1> to vector<1x64xi1>
    %382 = vector.broadcast %381 : vector<1x64xi1> to vector<128x64xi1>
    %383 = arith.select %382, %375, %380 : vector<128x64xi1>, vector<128x64xf32>
    %cst_96 = arith.constant 1.000000e+01 : f32
    %384 = vector.broadcast %cst_96 : f32 to vector<128x64xf32>
    %385 = arith.subf %230, %384 : vector<128x64xf32>
    %386 = math.absf %385 : vector<128x64xf32>
    %cst_97 = arith.constant 5.000000e-01 : f32
    %387 = vector.broadcast %cst_97 : f32 to vector<128x64xf32>
    %388 = arith.cmpf olt, %386, %387 : vector<128x64xf32>
    %389 = arith.extui %388 : vector<128x64xi1> to vector<128x64xi32>
    %390 = arith.sitofp %389 : vector<128x64xi32> to vector<128x64xf32>
    %391 = arith.mulf %229, %390 : vector<128x64xf32>
    %cst_98 = arith.constant 9.500000e+00 : f32
    %392 = vector.broadcast %cst_98 : f32 to vector<1x64xf32>
    %393 = arith.cmpf ogt, %232, %392 : vector<1x64xf32>
    %394 = vector.shape_cast %239 : vector<1x64xi1> to vector<1x64xi1>
    %395 = vector.broadcast %394 : vector<1x64xi1> to vector<128x64xi1>
    %396 = arith.select %395, %237, %45 : vector<128x64xi1>, vector<128x64xf32>
    %397 = vector.shape_cast %393 : vector<1x64xi1> to vector<1x64xi1>
    %398 = vector.broadcast %397 : vector<1x64xi1> to vector<128x64xi1>
    %399 = arith.select %398, %391, %396 : vector<128x64xi1>, vector<128x64xf32>
    %cst_99 = arith.constant 1.100000e+01 : f32
    %400 = vector.broadcast %cst_99 : f32 to vector<128x64xf32>
    %401 = arith.subf %230, %400 : vector<128x64xf32>
    %402 = math.absf %401 : vector<128x64xf32>
    %cst_100 = arith.constant 5.000000e-01 : f32
    %403 = vector.broadcast %cst_100 : f32 to vector<128x64xf32>
    %404 = arith.cmpf olt, %402, %403 : vector<128x64xf32>
    %405 = arith.extui %404 : vector<128x64xi1> to vector<128x64xi32>
    %406 = arith.sitofp %405 : vector<128x64xi32> to vector<128x64xf32>
    %407 = arith.mulf %229, %406 : vector<128x64xf32>
    %cst_101 = arith.constant 1.050000e+01 : f32
    %408 = vector.broadcast %cst_101 : f32 to vector<1x64xf32>
    %409 = arith.cmpf ogt, %232, %408 : vector<1x64xf32>
    %410 = vector.shape_cast %239 : vector<1x64xi1> to vector<1x64xi1>
    %411 = vector.broadcast %410 : vector<1x64xi1> to vector<128x64xi1>
    %412 = arith.select %411, %237, %45 : vector<128x64xi1>, vector<128x64xf32>
    %413 = vector.shape_cast %409 : vector<1x64xi1> to vector<1x64xi1>
    %414 = vector.broadcast %413 : vector<1x64xi1> to vector<128x64xi1>
    %415 = arith.select %414, %407, %412 : vector<128x64xi1>, vector<128x64xf32>
    %cst_102 = arith.constant 1.200000e+01 : f32
    %416 = vector.broadcast %cst_102 : f32 to vector<128x64xf32>
    %417 = arith.subf %230, %416 : vector<128x64xf32>
    %418 = math.absf %417 : vector<128x64xf32>
    %cst_103 = arith.constant 5.000000e-01 : f32
    %419 = vector.broadcast %cst_103 : f32 to vector<128x64xf32>
    %420 = arith.cmpf olt, %418, %419 : vector<128x64xf32>
    %421 = arith.extui %420 : vector<128x64xi1> to vector<128x64xi32>
    %422 = arith.sitofp %421 : vector<128x64xi32> to vector<128x64xf32>
    %423 = arith.mulf %229, %422 : vector<128x64xf32>
    %cst_104 = arith.constant 1.150000e+01 : f32
    %424 = vector.broadcast %cst_104 : f32 to vector<1x64xf32>
    %425 = arith.cmpf ogt, %232, %424 : vector<1x64xf32>
    %426 = vector.shape_cast %239 : vector<1x64xi1> to vector<1x64xi1>
    %427 = vector.broadcast %426 : vector<1x64xi1> to vector<128x64xi1>
    %428 = arith.select %427, %237, %45 : vector<128x64xi1>, vector<128x64xf32>
    %429 = vector.shape_cast %425 : vector<1x64xi1> to vector<1x64xi1>
    %430 = vector.broadcast %429 : vector<1x64xi1> to vector<128x64xi1>
    %431 = arith.select %430, %423, %428 : vector<128x64xi1>, vector<128x64xf32>
    %cst_105 = arith.constant 1.300000e+01 : f32
    %432 = vector.broadcast %cst_105 : f32 to vector<128x64xf32>
    %433 = arith.subf %230, %432 : vector<128x64xf32>
    %434 = math.absf %433 : vector<128x64xf32>
    %cst_106 = arith.constant 5.000000e-01 : f32
    %435 = vector.broadcast %cst_106 : f32 to vector<128x64xf32>
    %436 = arith.cmpf olt, %434, %435 : vector<128x64xf32>
    %437 = arith.extui %436 : vector<128x64xi1> to vector<128x64xi32>
    %438 = arith.sitofp %437 : vector<128x64xi32> to vector<128x64xf32>
    %439 = arith.mulf %229, %438 : vector<128x64xf32>
    %cst_107 = arith.constant 1.250000e+01 : f32
    %440 = vector.broadcast %cst_107 : f32 to vector<1x64xf32>
    %441 = arith.cmpf ogt, %232, %440 : vector<1x64xf32>
    %442 = vector.shape_cast %239 : vector<1x64xi1> to vector<1x64xi1>
    %443 = vector.broadcast %442 : vector<1x64xi1> to vector<128x64xi1>
    %444 = arith.select %443, %237, %45 : vector<128x64xi1>, vector<128x64xf32>
    %445 = vector.shape_cast %441 : vector<1x64xi1> to vector<1x64xi1>
    %446 = vector.broadcast %445 : vector<1x64xi1> to vector<128x64xi1>
    %447 = arith.select %446, %439, %444 : vector<128x64xi1>, vector<128x64xf32>
    %cst_108 = arith.constant 1.400000e+01 : f32
    %448 = vector.broadcast %cst_108 : f32 to vector<128x64xf32>
    %449 = arith.subf %230, %448 : vector<128x64xf32>
    %450 = math.absf %449 : vector<128x64xf32>
    %cst_109 = arith.constant 5.000000e-01 : f32
    %451 = vector.broadcast %cst_109 : f32 to vector<128x64xf32>
    %452 = arith.cmpf olt, %450, %451 : vector<128x64xf32>
    %453 = arith.extui %452 : vector<128x64xi1> to vector<128x64xi32>
    %454 = arith.sitofp %453 : vector<128x64xi32> to vector<128x64xf32>
    %455 = arith.mulf %229, %454 : vector<128x64xf32>
    %cst_110 = arith.constant 1.350000e+01 : f32
    %456 = vector.broadcast %cst_110 : f32 to vector<1x64xf32>
    %457 = arith.cmpf ogt, %232, %456 : vector<1x64xf32>
    %458 = vector.shape_cast %239 : vector<1x64xi1> to vector<1x64xi1>
    %459 = vector.broadcast %458 : vector<1x64xi1> to vector<128x64xi1>
    %460 = arith.select %459, %237, %45 : vector<128x64xi1>, vector<128x64xf32>
    %461 = vector.shape_cast %457 : vector<1x64xi1> to vector<1x64xi1>
    %462 = vector.broadcast %461 : vector<1x64xi1> to vector<128x64xi1>
    %463 = arith.select %462, %455, %460 : vector<128x64xi1>, vector<128x64xf32>
    %cst_111 = arith.constant 1.500000e+01 : f32
    %464 = vector.broadcast %cst_111 : f32 to vector<128x64xf32>
    %465 = arith.subf %230, %464 : vector<128x64xf32>
    %466 = math.absf %465 : vector<128x64xf32>
    %cst_112 = arith.constant 5.000000e-01 : f32
    %467 = vector.broadcast %cst_112 : f32 to vector<128x64xf32>
    %468 = arith.cmpf olt, %466, %467 : vector<128x64xf32>
    %469 = arith.extui %468 : vector<128x64xi1> to vector<128x64xi32>
    %470 = arith.sitofp %469 : vector<128x64xi32> to vector<128x64xf32>
    %471 = arith.mulf %229, %470 : vector<128x64xf32>
    %cst_113 = arith.constant 1.450000e+01 : f32
    %472 = vector.broadcast %cst_113 : f32 to vector<1x64xf32>
    %473 = arith.cmpf ogt, %232, %472 : vector<1x64xf32>
    %474 = vector.shape_cast %239 : vector<1x64xi1> to vector<1x64xi1>
    %475 = vector.broadcast %474 : vector<1x64xi1> to vector<128x64xi1>
    %476 = arith.select %475, %237, %45 : vector<128x64xi1>, vector<128x64xf32>
    %477 = vector.shape_cast %473 : vector<1x64xi1> to vector<1x64xi1>
    %478 = vector.broadcast %477 : vector<1x64xi1> to vector<128x64xi1>
    %479 = arith.select %478, %471, %476 : vector<128x64xi1>, vector<128x64xf32>
    %cst_114 = arith.constant 1.600000e+01 : f32
    %480 = vector.broadcast %cst_114 : f32 to vector<128x64xf32>
    %481 = arith.subf %230, %480 : vector<128x64xf32>
    %482 = math.absf %481 : vector<128x64xf32>
    %cst_115 = arith.constant 5.000000e-01 : f32
    %483 = vector.broadcast %cst_115 : f32 to vector<128x64xf32>
    %484 = arith.cmpf olt, %482, %483 : vector<128x64xf32>
    %485 = arith.extui %484 : vector<128x64xi1> to vector<128x64xi32>
    %486 = arith.sitofp %485 : vector<128x64xi32> to vector<128x64xf32>
    %487 = arith.mulf %229, %486 : vector<128x64xf32>
    %cst_116 = arith.constant 1.550000e+01 : f32
    %488 = vector.broadcast %cst_116 : f32 to vector<1x64xf32>
    %489 = arith.cmpf ogt, %232, %488 : vector<1x64xf32>
    %490 = vector.shape_cast %239 : vector<1x64xi1> to vector<1x64xi1>
    %491 = vector.broadcast %490 : vector<1x64xi1> to vector<128x64xi1>
    %492 = arith.select %491, %237, %45 : vector<128x64xi1>, vector<128x64xf32>
    %493 = vector.shape_cast %489 : vector<1x64xi1> to vector<1x64xi1>
    %494 = vector.broadcast %493 : vector<1x64xi1> to vector<128x64xi1>
    %495 = arith.select %494, %487, %492 : vector<128x64xi1>, vector<128x64xf32>
    %496 = tpu.concatenate %255, %271, %287, %303, %319, %335, %351, %367, %383, %399, %415, %431, %447, %463, %479, %495 in 1 : vector<128x64xf32>, vector<128x64xf32>, vector<128x64xf32>, vector<128x64xf32>, vector<128x64xf32>, vector<128x64xf32>, vector<128x64xf32>, vector<128x64xf32>, vector<128x64xf32>, vector<128x64xf32>, vector<128x64xf32>, vector<128x64xf32>, vector<128x64xf32>, vector<128x64xf32>, vector<128x64xf32>, vector<128x64xf32> -> vector<128x1024xf32>
    %cst_117 = arith.constant dense<0.000000e+00> : vector<3x1024xf32>
    %497 = tpu.matmul %1, %496, %cst_117 {dimension_numbers = #tpu.dot_dimension_numbers<[1], [0], [0], [1], [0, 0, 1, 1], [], []>} : vector<3x128xf32>, vector<128x1024xf32>, vector<3x1024xf32> -> vector<3x1024xf32>
    %498 = tpu.concatenate %19#0, %19#0, %19#0, %19#0, %19#0, %19#0, %19#0, %19#0, %19#0, %19#0, %19#0, %19#0, %19#0, %19#0, %19#0, %19#0 in 1 : vector<3x64xf32>, vector<3x64xf32>, vector<3x64xf32>, vector<3x64xf32>, vector<3x64xf32>, vector<3x64xf32>, vector<3x64xf32>, vector<3x64xf32>, vector<3x64xf32>, vector<3x64xf32>, vector<3x64xf32>, vector<3x64xf32>, vector<3x64xf32>, vector<3x64xf32>, vector<3x64xf32>, vector<3x64xf32> -> vector<3x1024xf32>
    %499 = arith.subf %497, %498 : vector<3x1024xf32>
    %cst_118 = arith.constant dense<0.000000e+00> : vector<4x1024xf32>
    %500 = tpu.matmul %5, %496, %cst_118 {dimension_numbers = #tpu.dot_dimension_numbers<[1], [0], [0], [1], [0, 0, 1, 1], [], []>} : vector<4x128xf32>, vector<128x1024xf32>, vector<4x1024xf32> -> vector<4x1024xf32>
    %c0_119 = arith.constant 0 : index
    %c0_120 = arith.constant 0 : index
    %501 = vector.load %arg8[%c0_119, %c0_120] : memref<16x7xf32, #tpu.memory_space<vmem>>, vector<16x7xf32>
    %502 = vector.extract_strided_slice %501 {offsets = [0, 0], sizes = [16, 3], strides = [1, 1]} : vector<16x7xf32> to vector<16x3xf32>
    %cst_121 = arith.constant dense<0.000000e+00> : vector<16x1024xf32>
    %503 = tpu.matmul %502, %499, %cst_121 {dimension_numbers = #tpu.dot_dimension_numbers<[1], [0], [0], [1], [0, 0, 1, 1], [], []>} : vector<16x3xf32>, vector<3x1024xf32>, vector<16x1024xf32> -> vector<16x1024xf32>
    %504 = vector.extract_strided_slice %501 {offsets = [0, 3], sizes = [16, 4], strides = [1, 1]} : vector<16x7xf32> to vector<16x4xf32>
    %cst_122 = arith.constant dense<0.000000e+00> : vector<16x1024xf32>
    %505 = tpu.matmul %504, %500, %cst_122 {dimension_numbers = #tpu.dot_dimension_numbers<[1], [0], [0], [1], [0, 0, 1, 1], [], []>} : vector<16x4xf32>, vector<4x1024xf32>, vector<16x1024xf32> -> vector<16x1024xf32>
    %506 = arith.addf %503, %505 : vector<16x1024xf32>
    %c0_123 = arith.constant 0 : index
    %c0_124 = arith.constant 0 : index
    %507 = vector.load %arg9[%c0_123, %c0_124] : memref<16x1xf32, #tpu.memory_space<vmem>>, vector<16x1xf32>
    %508 = vector.broadcast %507 : vector<16x1xf32> to vector<16x1024xf32>
    %509 = arith.addf %506, %508 : vector<16x1024xf32>
    %cst_125 = arith.constant 0.000000e+00 : f32
    %510 = vector.broadcast %cst_125 : f32 to vector<16x1024xf32>
    %511 = arith.maximumf %509, %510 : vector<16x1024xf32>
    %c0_126 = arith.constant 0 : index
    %c0_127 = arith.constant 0 : index
    %512 = vector.load %arg10[%c0_126, %c0_127] : memref<32x16xf32, #tpu.memory_space<vmem>>, vector<32x16xf32>
    %cst_128 = arith.constant dense<0.000000e+00> : vector<32x1024xf32>
    %513 = tpu.matmul %512, %511, %cst_128 {dimension_numbers = #tpu.dot_dimension_numbers<[1], [0], [0], [1], [0, 0, 1, 1], [], []>} : vector<32x16xf32>, vector<16x1024xf32>, vector<32x1024xf32> -> vector<32x1024xf32>
    %c0_129 = arith.constant 0 : index
    %c0_130 = arith.constant 0 : index
    %514 = vector.load %arg11[%c0_129, %c0_130] : memref<32x1xf32, #tpu.memory_space<vmem>>, vector<32x1xf32>
    %515 = vector.broadcast %514 : vector<32x1xf32> to vector<32x1024xf32>
    %516 = arith.addf %513, %515 : vector<32x1024xf32>
    %cst_131 = arith.constant 0.000000e+00 : f32
    %517 = vector.broadcast %cst_131 : f32 to vector<32x1024xf32>
    %518 = arith.maximumf %516, %517 : vector<32x1024xf32>
    %519 = vector.extract_strided_slice %518 {offsets = [0, 0], sizes = [32, 64], strides = [1, 1]} : vector<32x1024xf32> to vector<32x64xf32>
    %520 = vector.extract_strided_slice %518 {offsets = [0, 64], sizes = [32, 64], strides = [1, 1]} : vector<32x1024xf32> to vector<32x64xf32>
    %521 = arith.maximumf %519, %520 : vector<32x64xf32>
    %522 = vector.extract_strided_slice %518 {offsets = [0, 128], sizes = [32, 64], strides = [1, 1]} : vector<32x1024xf32> to vector<32x64xf32>
    %523 = arith.maximumf %521, %522 : vector<32x64xf32>
    %524 = vector.extract_strided_slice %518 {offsets = [0, 192], sizes = [32, 64], strides = [1, 1]} : vector<32x1024xf32> to vector<32x64xf32>
    %525 = arith.maximumf %523, %524 : vector<32x64xf32>
    %526 = vector.extract_strided_slice %518 {offsets = [0, 256], sizes = [32, 64], strides = [1, 1]} : vector<32x1024xf32> to vector<32x64xf32>
    %527 = arith.maximumf %525, %526 : vector<32x64xf32>
    %528 = vector.extract_strided_slice %518 {offsets = [0, 320], sizes = [32, 64], strides = [1, 1]} : vector<32x1024xf32> to vector<32x64xf32>
    %529 = arith.maximumf %527, %528 : vector<32x64xf32>
    %530 = vector.extract_strided_slice %518 {offsets = [0, 384], sizes = [32, 64], strides = [1, 1]} : vector<32x1024xf32> to vector<32x64xf32>
    %531 = arith.maximumf %529, %530 : vector<32x64xf32>
    %532 = vector.extract_strided_slice %518 {offsets = [0, 448], sizes = [32, 64], strides = [1, 1]} : vector<32x1024xf32> to vector<32x64xf32>
    %533 = arith.maximumf %531, %532 : vector<32x64xf32>
    %534 = vector.extract_strided_slice %518 {offsets = [0, 512], sizes = [32, 64], strides = [1, 1]} : vector<32x1024xf32> to vector<32x64xf32>
    %535 = arith.maximumf %533, %534 : vector<32x64xf32>
    %536 = vector.extract_strided_slice %518 {offsets = [0, 576], sizes = [32, 64], strides = [1, 1]} : vector<32x1024xf32> to vector<32x64xf32>
    %537 = arith.maximumf %535, %536 : vector<32x64xf32>
    %538 = vector.extract_strided_slice %518 {offsets = [0, 640], sizes = [32, 64], strides = [1, 1]} : vector<32x1024xf32> to vector<32x64xf32>
    %539 = arith.maximumf %537, %538 : vector<32x64xf32>
    %540 = vector.extract_strided_slice %518 {offsets = [0, 704], sizes = [32, 64], strides = [1, 1]} : vector<32x1024xf32> to vector<32x64xf32>
    %541 = arith.maximumf %539, %540 : vector<32x64xf32>
    %542 = vector.extract_strided_slice %518 {offsets = [0, 768], sizes = [32, 64], strides = [1, 1]} : vector<32x1024xf32> to vector<32x64xf32>
    %543 = arith.maximumf %541, %542 : vector<32x64xf32>
    %544 = vector.extract_strided_slice %518 {offsets = [0, 832], sizes = [32, 64], strides = [1, 1]} : vector<32x1024xf32> to vector<32x64xf32>
    %545 = arith.maximumf %543, %544 : vector<32x64xf32>
    %546 = vector.extract_strided_slice %518 {offsets = [0, 896], sizes = [32, 64], strides = [1, 1]} : vector<32x1024xf32> to vector<32x64xf32>
    %547 = arith.maximumf %545, %546 : vector<32x64xf32>
    %548 = vector.extract_strided_slice %518 {offsets = [0, 960], sizes = [32, 64], strides = [1, 1]} : vector<32x1024xf32> to vector<32x64xf32>
    %549 = arith.maximumf %547, %548 : vector<32x64xf32>
    %550 = tpu.concatenate %225, %549 in 0 : vector<32x64xf32>, vector<32x64xf32> -> vector<64x64xf32>
    %c0_132 = arith.constant 0 : index
    %c0_133 = arith.constant 0 : index
    %551 = vector.load %arg12[%c0_132, %c0_133] : memref<64x64xf32, #tpu.memory_space<vmem>>, vector<64x64xf32>
    %cst_134 = arith.constant dense<0.000000e+00> : vector<64x64xf32>
    %552 = tpu.matmul %551, %550, %cst_134 {dimension_numbers = #tpu.dot_dimension_numbers<[1], [0], [0], [1], [0, 0, 1, 1], [], []>} : vector<64x64xf32>, vector<64x64xf32>, vector<64x64xf32> -> vector<64x64xf32>
    %c0_135 = arith.constant 0 : index
    %c0_136 = arith.constant 0 : index
    %553 = vector.load %arg13[%c0_135, %c0_136] : memref<64x1xf32, #tpu.memory_space<vmem>>, vector<64x1xf32>
    %554 = vector.broadcast %553 : vector<64x1xf32> to vector<64x64xf32>
    %555 = arith.addf %552, %554 : vector<64x64xf32>
    %cst_137 = arith.constant 0.000000e+00 : f32
    %556 = vector.broadcast %cst_137 : f32 to vector<64x64xf32>
    %557 = arith.maximumf %555, %556 : vector<64x64xf32>
    %c0_138 = arith.constant 0 : index
    %c0_139 = arith.constant 0 : index
    %c0_140 = arith.constant 0 : index
    %558 = vector.load %arg19[%c0_138, %c0_139, %c0_140] : memref<1x64x64xf32, #tpu.memory_space<vmem>>, vector<1x64x64xf32>
    %559 = vector.shape_cast %558 : vector<1x64x64xf32> to vector<64x64xf32>
    %560 = vector.shape_cast %557 : vector<64x64xf32> to vector<1x64x64xf32>
    tpu.vector_store %arg19[%c0_138, %c0_139, %c0_140], %560 {strides = array<i32>} : memref<1x64x64xf32, #tpu.memory_space<vmem>>, vector<1x64x64xf32>,
    %c0_141 = arith.constant 0 : index
    %c0_142 = arith.constant 0 : index
    %561 = vector.load %arg14[%c0_141, %c0_142] : memref<32x64xf32, #tpu.memory_space<vmem>>, vector<32x64xf32>
    %cst_143 = arith.constant dense<0.000000e+00> : vector<32x64xf32>
    %562 = tpu.matmul %561, %557, %cst_143 {dimension_numbers = #tpu.dot_dimension_numbers<[1], [0], [0], [1], [0, 0, 1, 1], [], []>} : vector<32x64xf32>, vector<64x64xf32>, vector<32x64xf32> -> vector<32x64xf32>
    %c0_144 = arith.constant 0 : index
    %c0_145 = arith.constant 0 : index
    %563 = vector.load %arg15[%c0_144, %c0_145] : memref<32x1xf32, #tpu.memory_space<vmem>>, vector<32x1xf32>
    %564 = vector.broadcast %563 : vector<32x1xf32> to vector<32x64xf32>
    %565 = arith.addf %562, %564 : vector<32x64xf32>
    %cst_146 = arith.constant 0.000000e+00 : f32
    %566 = vector.broadcast %cst_146 : f32 to vector<32x64xf32>
    %567 = arith.maximumf %565, %566 : vector<32x64xf32>
    %c0_147 = arith.constant 0 : index
    %c0_148 = arith.constant 0 : index
    %568 = vector.load %arg16[%c0_147, %c0_148] : memref<3x32xf32, #tpu.memory_space<vmem>>, vector<3x32xf32>
    %cst_149 = arith.constant dense<0.000000e+00> : vector<3x64xf32>
    %569 = tpu.matmul %568, %567, %cst_149 {dimension_numbers = #tpu.dot_dimension_numbers<[1], [0], [0], [1], [0, 0, 1, 1], [], []>} : vector<3x32xf32>, vector<32x64xf32>, vector<3x64xf32> -> vector<3x64xf32>
    %c0_150 = arith.constant 0 : index
    %c0_151 = arith.constant 0 : index
    %570 = vector.load %arg17[%c0_150, %c0_151] : memref<3x1xf32, #tpu.memory_space<vmem>>, vector<3x1xf32>
    %571 = vector.broadcast %570 : vector<3x1xf32> to vector<3x64xf32>
    %572 = arith.addf %569, %571 : vector<3x64xf32>
    %c0_152 = arith.constant 0 : index
    %c0_153 = arith.constant 0 : index
    %c0_154 = arith.constant 0 : index
    %573 = vector.load %arg20[%c0_152, %c0_153, %c0_154] : memref<1x3x64xf32, #tpu.memory_space<vmem>>, vector<1x3x64xf32>
    %574 = vector.shape_cast %573 : vector<1x3x64xf32> to vector<3x64xf32>
    %575 = vector.shape_cast %572 : vector<3x64xf32> to vector<1x3x64xf32>
    tpu.vector_store %arg20[%c0_152, %c0_153, %c0_154], %575 {strides = array<i32>} : memref<1x3x64xf32, #tpu.memory_space<vmem>>, vector<1x3x64xf32>,
    return
  }
  func.func @transform_0(%arg0: i32) -> (i32, i32, i32) {
    %c0_i32 = arith.constant 0 : i32
    %c0_i32_0 = arith.constant 0 : i32
    %c0_i32_1 = arith.constant 0 : i32
    return %arg0, %c0_i32, %c0_i32_0 : i32, i32, i32
  }
  func.func @transform_1(%arg0: i32) -> (i32, i32, i32) {
    %c0_i32 = arith.constant 0 : i32
    %c0_i32_0 = arith.constant 0 : i32
    %c0_i32_1 = arith.constant 0 : i32
    return %arg0, %c0_i32, %c0_i32_0 : i32, i32, i32
  }
  func.func @transform_2(%arg0: i32) -> (i32, i32, i32) {
    %c0_i32 = arith.constant 0 : i32
    %c0_i32_0 = arith.constant 0 : i32
    %c0_i32_1 = arith.constant 0 : i32
    return %arg0, %c0_i32, %c0_i32_0 : i32, i32, i32
  }
  func.func @transform_3(%arg0: i32) -> (i32, i32) {
    %c0_i32 = arith.constant 0 : i32
    %c0_i32_0 = arith.constant 0 : i32
    %c0_i32_1 = arith.constant 0 : i32
    return %c0_i32, %c0_i32_0 : i32, i32
  }
  func.func @transform_4(%arg0: i32) -> (i32, i32) {
    %c0_i32 = arith.constant 0 : i32
    %c0_i32_0 = arith.constant 0 : i32
    %c0_i32_1 = arith.constant 0 : i32
    return %c0_i32, %c0_i32_0 : i32, i32
  }
  func.func @transform_5(%arg0: i32) -> (i32, i32) {
    %c0_i32 = arith.constant 0 : i32
    %c0_i32_0 = arith.constant 0 : i32
    %c0_i32_1 = arith.constant 0 : i32
    return %c0_i32, %c0_i32_0 : i32, i32
  }
  func.func @transform_6(%arg0: i32) -> (i32, i32) {
    %c0_i32 = arith.constant 0 : i32
    %c0_i32_0 = arith.constant 0 : i32
    %c0_i32_1 = arith.constant 0 : i32
    return %c0_i32, %c0_i32_0 : i32, i32
  }
  func.func @transform_7(%arg0: i32) -> (i32, i32) {
    %c0_i32 = arith.constant 0 : i32
    %c0_i32_0 = arith.constant 0 : i32
    %c0_i32_1 = arith.constant 0 : i32
    return %c0_i32, %c0_i32_0 : i32, i32
  }
  func.func @transform_8(%arg0: i32) -> (i32, i32) {
    %c0_i32 = arith.constant 0 : i32
    %c0_i32_0 = arith.constant 0 : i32
    %c0_i32_1 = arith.constant 0 : i32
    return %c0_i32, %c0_i32_0 : i32, i32
  }
  func.func @transform_9(%arg0: i32) -> (i32, i32) {
    %c0_i32 = arith.constant 0 : i32
    %c0_i32_0 = arith.constant 0 : i32
    %c0_i32_1 = arith.constant 0 : i32
    return %c0_i32, %c0_i32_0 : i32, i32
  }
  func.func @transform_10(%arg0: i32) -> (i32, i32) {
    %c0_i32 = arith.constant 0 : i32
    %c0_i32_0 = arith.constant 0 : i32
    %c0_i32_1 = arith.constant 0 : i32
    return %c0_i32, %c0_i32_0 : i32, i32
  }
  func.func @transform_11(%arg0: i32) -> (i32, i32) {
    %c0_i32 = arith.constant 0 : i32
    %c0_i32_0 = arith.constant 0 : i32
    %c0_i32_1 = arith.constant 0 : i32
    return %c0_i32, %c0_i32_0 : i32, i32
  }
  func.func @transform_12(%arg0: i32) -> (i32, i32) {
    %c0_i32 = arith.constant 0 : i32
    %c0_i32_0 = arith.constant 0 : i32
    %c0_i32_1 = arith.constant 0 : i32
    return %c0_i32, %c0_i32_0 : i32, i32
  }
  func.func @transform_13(%arg0: i32) -> (i32, i32) {
    %c0_i32 = arith.constant 0 : i32
    %c0_i32_0 = arith.constant 0 : i32
    %c0_i32_1 = arith.constant 0 : i32
    return %c0_i32, %c0_i32_0 : i32, i32
  }
  func.func @transform_14(%arg0: i32) -> (i32, i32) {
    %c0_i32 = arith.constant 0 : i32
    %c0_i32_0 = arith.constant 0 : i32
    %c0_i32_1 = arith.constant 0 : i32
    return %c0_i32, %c0_i32_0 : i32, i32
  }
  func.func @transform_15(%arg0: i32) -> (i32, i32) {
    %c0_i32 = arith.constant 0 : i32
    %c0_i32_0 = arith.constant 0 : i32
    %c0_i32_1 = arith.constant 0 : i32
    return %c0_i32, %c0_i32_0 : i32, i32
  }
  func.func @transform_16(%arg0: i32) -> (i32, i32) {
    %c0_i32 = arith.constant 0 : i32
    %c0_i32_0 = arith.constant 0 : i32
    %c0_i32_1 = arith.constant 0 : i32
    return %c0_i32, %c0_i32_0 : i32, i32
  }
  func.func @transform_17(%arg0: i32) -> (i32, i32, i32) {
    %c0_i32 = arith.constant 0 : i32
    %c0_i32_0 = arith.constant 0 : i32
    %c0_i32_1 = arith.constant 0 : i32
    return %arg0, %c0_i32, %c0_i32_0 : i32, i32, i32
  }
  func.func @transform_18(%arg0: i32) -> (i32, i32, i32) {
    %c0_i32 = arith.constant 0 : i32
    %c0_i32_0 = arith.constant 0 : i32
    %c0_i32_1 = arith.constant 0 : i32
    return %arg0, %c0_i32, %c0_i32_0 : i32, i32, i32
  }
  func.func @transform_19(%arg0: i32) -> (i32, i32, i32) {
    %c0_i32 = arith.constant 0 : i32
    %c0_i32_0 = arith.constant 0 : i32
    %c0_i32_1 = arith.constant 0 : i32
    return %arg0, %c0_i32, %c0_i32_0 : i32, i32, i32
  }
}

</mosaic_0001>

<bundles_post_ra>
// kernel: forward.1
= control target key start
LH: loop header
LB: loop body
LE: loop exit
PB: predicated region body
PF: predicated region fallthrough
CT: control target
= control target key end

     0   :  { %s15873_s0 = inlined_call_operand.vmem [shape: f32[2,3,128], index: 0, kind: input, shape index: {}]   ;;  %s15874_s1 = inlined_call_operand.vmem [shape: f32[2,128,3], index: 1, kind: input, shape index: {}]   ;;  %s15875_s2 = inlined_call_operand.vmem [shape: f32[2,4,128], index: 2, kind: input, shape index: {}]   ;;  %s15876_s3 = inlined_call_operand.vmem [shape: f32[16,7], index: 3, kind: input, shape index: {}]   ;;  %s15877_s4 = inlined_call_operand.vmem [shape: f32[16,1], index: 4, kind: input, shape index: {}]   ;;  %s15878_s5 = inlined_call_operand.vmem [shape: f32[32,16], index: 5, kind: input, shape index: {}]   ;;  %s15879_s6 = inlined_call_operand.vmem [shape: f32[32,1], index: 6, kind: input, shape index: {}]   ;;  %s15880_s7 = inlined_call_operand.vmem [shape: f32[16,7], index: 7, kind: input, shape index: {}]   ;;  %s15881_s8 = inlined_call_operand.vmem [shape: f32[16,1], index: 8, kind: input, shape index: {}]   ;;  %s15882_s9 = inlined_call_operand.vmem [shape: f32[32,16], index: 9, kind: input, shape index: {}]   ;;  %s15883_s10 = inlined_call_operand.vmem [shape: f32[32,1], index: 10, kind: input, shape index: {}]   ;;  %s15884_s11 = inlined_call_operand.vmem [shape: f32[64,64], index: 11, kind: input, shape index: {}]   ;;  %s15885_s12 = inlined_call_operand.vmem [shape: f32[64,1], index: 12, kind: input, shape index: {}]   ;;  %s15886_s13 = inlined_call_operand.vmem [shape: f32[32,64], index: 13, kind: input, shape index: {}]   ;;  %s15887_s14 = inlined_call_operand.vmem [shape: f32[32,1], index: 14, kind: input, shape index: {}]   ;;  %s15888_s15 = inlined_call_operand.vmem [shape: f32[3,32], index: 15, kind: input, shape index: {}]   ;;  %s15889_s16 = inlined_call_operand.vmem [shape: f32[3,1], index: 16, kind: input, shape index: {}]   ;;  %s15890_s17 = inlined_call_operand.vmem [shape: f32[2,3,64], index: 17, kind: output, shape index: {0}]   ;;  %s15891_s18 = inlined_call_operand.hbm [shape: f32[2,64,64], index: 18, kind: output, shape index: {1}]   ;;  %s15892_s19 = inlined_call_operand.vmem [shape: f32[2,3,64], index: 19, kind: output, shape index: {2}]  }
   0x1   :  { %16394 = sst [smem:[#allocation138_spill]] %s15873_s0 }
   0x2   :  { %16395 = sst [smem:[#allocation139_spill]] %s15874_s1 }
   0x3   :  { %16396 = sst [smem:[#allocation140_spill]] %s15875_s2 }
   0x4   :  { %16397 = sst [smem:[#allocation141_spill]] %s15876_s3 }
   0x5   :  { %16398 = sst [smem:[#allocation142_spill]] %s15877_s4 }
   0x6   :  { %16399 = sst [smem:[#allocation143_spill]] %s15878_s5 }
   0x7   :  { %16400 = sst [smem:[#allocation144_spill]] %s15879_s6 }
   0x8   :  { %16401 = sst [smem:[#allocation145_spill]] %s15888_s15 }
   0x9   :  { %16402 = sst [smem:[#allocation146_spill]] %s15891_s18 }
   0xa   :  { %25 = vsyncpa [#allocation3], 0 }
   0xb   :  { %27 = vsyncpa [#allocation3 + $0x1], 0  ;;  %s9660_s0 = smov 0   ;;  %s9662_s30 = smov 0  }
   0xc   :  { %s9664_s20 = smov 0   ;;  %s9666_s21 = smov 0  }
   0xd LB: > { %16403 = sst [smem:[#allocation5_spill]] %s9522_s0  ;;  %s9681_s1 = sadd.s32 4294967295, %s9534_s21   ;;  %s9534_s21 = sphi %s9666_s21, %s17424_s21   ;;  %s9530_s20 = sphi %s9664_s20, %s17427_s20   ;;  %s9526_s30 = sphi %s9662_s30, %s17426_s30   ;;  %s9522_s0 = sphi %s9660_s0, %s17425_s0  }
   0xe   : > { %16404 = sst [smem:[#allocation6_spill]] %s9526_s30  ;;  %s7684_s22 = sadd.s32 4294967294, %s9534_s21  }
   0xf   : > { %16405 = sst [smem:[#allocation7_spill]] %s9530_s20  ;;  %s9685_s2 = sadd.s32 1, %s9534_s21  }
  0x10   : > { %16406 = sst [smem:[#allocation8_spill]] %s9534_s21  ;;  %s438_s23 = sadd.s32 1, %s9530_s20 }
  0x11   : > { %16407 = sst [smem:[#allocation9_spill]] %s9681_s1  ;;  %s435_s24 = ssub.s32 %s9534_s21, %s9685_s2 }
  0x12   : > { %16408 = sst [smem:[#allocation10_spill]] %s9685_s2  ;;  %p448_p0 = scmp.ne.s32.totalorder %s9530_s20, %s9526_s30 }
  0x13   : > { %p436_p1 = scmp.eq.s32.totalorder %s435_s24, 0  ;;  %p449_p2 = scmp.eq.s32.totalorder %s9681_s1, 1 }
  0x14   : > { %p454_p3 = scmp.ne.s32.totalorder %s9526_s30, %s9522_s0  ;;  %p455_p4 = scmp.eq.s32.totalorder %s7684_s22, 1 }
  0x15   : > { %s9696_s25 = scalar_select %p436_p1, %s9530_s20, %s438_s23  }
  0x16   : > { %p9698_p5 = por %p449_p2, %p448_p0  ;;  %p9702_p6 = por %p455_p4, %p454_p3 }
  0x17   : > { %16409 = sst [smem:[#allocation11_spill]] %s9696_s25  ;;  %p7687_p7 = scmp.ge.s32.totalorder %s9534_s21, 1 }
  0x18   : > { %s16410_s3 = scalar_select %p9698_p5, 1, 0 }
  0x19   : > { %s16412_s26 = scalar_select %p9702_p6, 1, 0 }
  0x1a   : > { %16411 = sst [smem:[#allocation12_spill]] %s16410_s3  ;;  %p563_p8 = scmp.lt.s32.totalorder %s9534_s21, 3 }
  0x1b   : > { %16413 = sst [smem:[#allocation13_spill]] %s16412_s26 }
  0x1c   : > { %p564_p9 = pnand %p7687_p7, %p563_p8 }
  0x1e   : > { %567 = sbr.rel (%p564_p9) target bundleno = 3842 (0xf02), region = 88 }
  0x23   : > { %p635_p10 = scmp.lt.s32.totalorder %s9681_s1, 1  ;;  %s15903_s27 = sand.u32 1, %s9526_s30   ;;  %v9552_v0 = vmov 0   ;;  %v674_v19 = vlaneseq  ;;  %v9783_v23 = vmov 1e+10  }
  0x24   : > { %8850 = vset.pattern.permute.xlu0 %v9552_v0  ;;  %s9713_s28 = sshll.u32 %s15903_s27, 6  ;;  %s16414_s20 = sld [smem:[#allocation138_spill]] }
  0x25   : > { %s636_s29 = scalar_select %p635_p10, %s9681_s1, 1  ;;  %v9775_v20 = vand.u32 127, %v674_v19 }
  0x26   : > { %s16415_s21 = sld [smem:[#allocation139_spill]]  ;;  %s9779_s30 = scalar_lea.vmem [#allocation2], %s9713_s28 }
  0x27   : > { %s9716_s22 = sshll.u32 %s636_s29, 2  ;;  %s8765_s23 = sshll.u32 %s636_s29, 7  ;;  %16419 = vst [vmem:[#allocation16_spill] sm:$0xff] %v9775_v20  ;;  %vm676_vm0 = vcmp.eq.s32.totalorder %v9775_v20, 0 }
  0x28   : > { %s651_s27 = scalar_lea.vmem %s15890_s17, %s9716_s22 }
  0x2a   : > { %s638_s2 = scalar_lea.vmem %s16414_s20, %s9716_s22  ;;  %s16417_s20 = sld [smem:[#allocation140_spill]] }
  0x2b   : > { %v9729_v1 = vld [vmem:[%s638_s2] sm:$0x7]  ;;  %s9781_s2 = smov 0  }
  0x2c   : > { %s643_s18 = scalar_lea.vmem %s16415_s21, %s8765_s23  ;;  %16416 = vst [vmem:[#allocation14_spill] sm:$0xff] %v9729_v1  ;;  %681 = vperm.xlu0 %8850, %v9729_v1  }
  0x2d   : > { %v9731_v2 = vld [vmem:[%s643_s18] sm:$0xff]  ;;  %v9733_v3 = vld [vmem:[%s643_s18 + $0x8] sm:$0xff]  ;;  %v9739_v4 = vld [vmem:[%s643_s18 + $0x10] sm:$0xff] }
  0x2e   : > { %v9741_v5 = vld [vmem:[%s643_s18 + $0x18] sm:$0xff]  ;;  %v9743_v6 = vld [vmem:[%s643_s18 + $0x20] sm:$0xff]  ;;  %v9750_v7 = vld [vmem:[%s643_s18 + $0x28] sm:$0xff] }
  0x2f   : > { %v9752_v8 = vld [vmem:[%s643_s18 + $0x30] sm:$0xff]  ;;  %v9754_v9 = vld [vmem:[%s643_s18 + $0x38] sm:$0xff]  ;;  %v9756_v10 = vld [vmem:[%s643_s18 + $0x40] sm:$0xff] }
  0x30   : > { %s647_s21 = scalar_lea.vmem %s16417_s20, %s9716_s22  ;;  %v9758_v11 = vld [vmem:[%s643_s18 + $0x48] sm:$0xff]  ;;  %v9760_v12 = vld [vmem:[%s643_s18 + $0x50] sm:$0xff]  ;;  %v9762_v13 = vld [vmem:[%s643_s18 + $0x58] sm:$0xff] }
  0x31   : > { %v9764_v14 = vld [vmem:[%s643_s18 + $0x60] sm:$0xff]  ;;  %v9766_v15 = vld [vmem:[%s643_s18 + $0x68] sm:$0xff]  ;;  %v9768_v16 = vld [vmem:[%s643_s18 + $0x70] sm:$0xff] }
  0x32   : > { %v9770_v17 = vld [vmem:[%s643_s18 + $0x78] sm:$0xff]  ;;  %v9772_v18 = vld [vmem:[%s647_s21] sm:$0xf]  ;;  %s9787_s18 = smov 1  }
  0x33   : > { %16418 = vst [vmem:[#allocation15_spill] sm:$0xff] %v9772_v18 }
  0x9e   : > { %v682_v21 = vpop.permute.xlu0 %681 }
  0x9f   : > { %v684_v22 = vsel %vm676_vm0, %v682_v21, 0.0  }
  0xa0 LB: >> { %v694_v24 = vstv %s9538_s2  ;;  %v9553_v25 = vmov 0.0   ;;  %vm15908_vm2 = vcmask 1042432   ;;  %v742_v57 = vstv %s9550_s18  ;;  %s690_s18 = sadd.s32 1, %s9550_s18   ;;  %s9550_s18 = sphi %s9787_s18, %s690_s18   ;;  %v9546_v22 = vphi %v684_v22, %v16422_v22   ;;  %v9542_v23 = vphi %v9783_v23, %v712_v23   ;;  %s9538_s2 = sphi %s9781_s2, %s8770_s2  }
  0xa1   : >> { %vm695_vm1 = vcmp.eq.s32.totalorder %v9775_v20, %v694_v24  ;;  %vm743_vm6 = vcmp.eq.s32.totalorder %v9775_v20, %v742_v57  ;;  %p687_p11 = scmp.ge.s32.totalorder %s690_s18, 64  }
  0xa2   : >> { %v7695_v26 = vsel %vm695_vm1, 1.0, %v9553_v25  ;;  %vm15907_vm7 = vcmask (%p687_p11), 23552   ;;  %v764_v60 = vmul.f32 (%p687_p11), %v9770_v17, %v9770_v17  ;;  %v762_v61 = vmul.f32 (%p687_p11), %v9766_v15, %v9766_v15  ;;  %9011 = vset.pattern.permute.xlu0 (%p687_p11), %v9552_v0  ;;  %9012 = vset.pattern.permute.xlu2 (%p687_p11), %v9552_v0  ;;  %s16704_s24 = sld [smem:[#allocation141_spill]] (%p687_p11)  ;;  %s9557_s29 = smov (%p687_p11), 125  }
  0xa3   : >> { %v698_v27 = vmul.f32 %v7695_v26, %v9729_v1  ;;  %v760_v62 = vmul.f32 (%p687_p11), %v9762_v13, %v9762_v13  ;;  %9333 = vset.pattern.permute.xlu1 (%p687_p11), %v9552_v0  ;;  %v761_v24 = vmul.f32 (%p687_p11), %v9764_v14, %v9764_v14  ;;  %vm15906_vm8 = vcmask (%p687_p11), 518144   ;;  %s16719_s4 = sld [smem:[#allocation142_spill]] (%p687_p11)  ;;  %s7530_s0 = sshll.u32 (%p687_p11), %s9779_s30, 4  ;;  %s7531_s0 = int_to_ptr.vmem [resolvable:$true] %s7530_s0 }
  0xa4   : > { %v811_v63 = vsel (%p687_p11), %vm15907_vm7, %v764_v60, 0.0  ;;  %v805_v21 = vsel (%p687_p11), %vm15907_vm7, %v762_v61, 0.0  ;;  %s16727_s5 = sld [smem:[#allocation143_spill]] (%p687_p11) }
  0xa5   : >> { %v700_v28 = vsel %vm15908_vm2, %v698_v27, 0.0  ;;  %v802_v27 = vsel (%p687_p11), %vm15907_vm7, %v761_v24, 0.0  ;;  %s16880_s6 = sld [smem:[#allocation144_spill]] (%p687_p11) }
  0xa6   : >> { %701 = vadd.xlane.f32.xlu0 %v700_v28  ;;  %v758_v28 = vmul.f32 (%p687_p11), %v9758_v11, %v9758_v11  ;;  %s17413_s21 = sld [smem:[#allocation9_spill]] (%p687_p11) }
  0xa7   : > { %s17415_s3 = sld [smem:[#allocation145_spill]] (%p687_p11) }
  0xa8   : > { %s17417_s23 = sld [smem:[#allocation146_spill]] (%p687_p11) }
  0xac   : > { %s8766_s26 = sshll.u32 (%p687_p11), %s17413_s21, 6 }
  0xae   : > { %s7529_s15 = scalar_lea.hbm (%p687_p11), %s17417_s23, %s8766_s26  ;;  %s9476_s21 = scalar_lea.hbm (%p687_p11), %s17417_s23, 128 }
  0xaf   : > { %s7532_s20 = sshll.u32 (%p687_p11), %s7529_s15, 4  ;;  %s7533_s20 = int_to_ptr.hbm [resolvable:$true] %s7532_s20 }
 0x119   : >> { %v702_v29 = vpop.xlane.xlu0 %701 }
 0x11a   : >> { %v703_v30 = vsub.f32 %v9729_v1, %v702_v29  ;;  %v757_v29 = vmul.f32 (%p687_p11), %v9756_v10, %v9756_v10 }
 0x11c   : >> { %v704_v31 = vmul.f32 %v703_v30, %v703_v30  ;;  %v756_v30 = vmul.f32 (%p687_p11), %v9754_v9, %v9754_v9 }
 0x11e   : >> { %v705_v32 = vsel %vm15908_vm2, %v704_v31, 0.0  ;;  %v793_v31 = vsel (%p687_p11), %vm15907_vm7, %v758_v28, 0.0 }
 0x11f   : >> { %v706_v33 = vrot.slane %v705_v32, 4 }
 0x121   : >> { %v707_v34 = vadd.f32 %v706_v33, %v705_v32  ;;  %v790_v32 = vsel (%p687_p11), %vm15907_vm7, %v757_v29, 0.0  ;;  %v787_v33 = vsel (%p687_p11), %vm15907_vm7, %v756_v30, 0.0 }
 0x123   : >> { %v708_v35 = vrot.slane %v707_v34, 2 }
 0x125   : >> { %v709_v36 = vadd.f32 %v708_v35, %v707_v34  ;;  %v755_v34 = vmul.f32 (%p687_p11), %v9752_v8, %v9752_v8  ;;  %v754_v35 = vmul.f32 (%p687_p11), %v9750_v7, %v9750_v7 }
 0x127   : >> { %v710_v37 = vrot.slane %v709_v36, 1 }
 0x129   : >> { %v711_v38 = vadd.f32 %v710_v37, %v709_v36  ;;  %v753_v36 = vmul.f32 (%p687_p11), %v9743_v6, %v9743_v6  ;;  %v784_v37 = vsel (%p687_p11), %vm15907_vm7, %v755_v34, 0.0 }
 0x12b   : >> { %v712_v23 = vmin.f32 %v9542_v23, %v711_v38   ;;  %v781_v38 = vsel (%p687_p11), %vm15907_vm7, %v754_v35, 0.0 }
 0x12d   : >> { %713 = vmax.xlane.f32.xlu0 %v712_v23 }
 0x135   : > { %812 = vadd.xlane.f32.xlu0 (%p687_p11), %v811_v63 }
 0x1a0   : >> { %v714_v39 = vpop.xlane.xlu0 %713 }
 0x1a1   : >> { %8767 = vpush %v714_v39  ;;  %v778_v39 = vsel (%p687_p11), %vm15907_vm7, %v753_v36, 0.0  ;;  %v15926_v36 = vmov (%p687_p11), 1.0  }
 0x1d2   : >> { %s8768_s25 = spop %8767 }
 0x1d3   : >> { %v716_v40 = vstv %s8768_s25 }
 0x1d4   : >> { %vm717_vm3 = vcmp.ge.f32.partialorder %v712_v23, %v716_v40  ;;  %v763_v23 = vmul.f32 (%p687_p11), %v9768_v16, %v9768_v16  ;;  %v752_v40 = vmul.f32 (%p687_p11), %v9741_v5, %v9741_v5 }
 0x1d5   : >> { %v718_v41 = vsel %vm717_vm3, %v9775_v20, 128 }
 0x1d6   : >> { %v720_v42 = vshra.s32 %v718_v41, 16  ;;  %v719_v44 = vand.u32 65535, %v718_v41  ;;  %v808_v26 = vsel (%p687_p11), %vm15907_vm7, %v763_v23, 0.0  ;;  %v751_v41 = vmul.f32 (%p687_p11), %v9739_v4, %v9739_v4 }
 0x1d7   : > { %809 = vadd.xlane.f32.xlu0 (%p687_p11), %v808_v26 }
 0x1d8   : >> { %v722_v43 = vcvt.s32.f32 %v720_v42  ;;  %v721_v46 = vcvt.s32.f32 %v719_v44  ;;  %v750_v42 = vmul.f32 (%p687_p11), %v9733_v3, %v9733_v3  ;;  %v772_v44 = vsel (%p687_p11), %vm15907_vm7, %v751_v41, 0.0 }
 0x1da   : >> { %723 = vmin.xlane.f32.xlu1 %v722_v43 }
 0x1df   : > { %794 = vadd.xlane.f32.xlu0 (%p687_p11), %v793_v31 }
 0x1e7   : > { %785 = vadd.xlane.f32.xlu0 (%p687_p11), %v784_v37 }
 0x24d   : >> { %v724_v45 = vpop.xlane.xlu1 %723 }
 0x24e   : >> { %vm725_vm4 = vcmp.eq.f32.partialorder %v722_v43, %v724_v45  ;;  %v730_v48 = vcvt.f32.s32 %v724_v45  ;;  %v775_v43 = vsel (%p687_p11), %vm15907_vm7, %v752_v40, 0.0  ;;  %v769_v45 = vsel (%p687_p11), %vm15907_vm7, %v750_v42, 0.0 }
 0x24f   : >> { %v726_v47 = vsel %vm725_vm4, %v721_v46, inf  ;;  %776 = vadd.xlane.f32.xlu0 (%p687_p11), %v775_v43 }
 0x250   : >> { %727 = vmin.xlane.f32.xlu1 %v726_v47  ;;  %v731_v50 = vshll.u32 %v730_v48, 16 }
 0x258   : > { %806 = vadd.xlane.f32.xlu1 (%p687_p11), %v805_v21 }
 0x260   : > { %803 = vadd.xlane.f32.xlu1 (%p687_p11), %v802_v27 }
 0x268   : > { %791 = vadd.xlane.f32.xlu1 (%p687_p11), %v790_v32 }
 0x270   : > { %782 = vadd.xlane.f32.xlu1 (%p687_p11), %v781_v38 }
 0x278   : > { %773 = vadd.xlane.f32.xlu1 (%p687_p11), %v772_v44 }
 0x2c3   : >> { %v728_v49 = vpop.xlane.xlu1 %727 }
 0x2c4   : >> { %v729_v51 = vcvt.f32.s32 %v728_v49 }
 0x2c6   : >> { %v732_v52 = vadd.s32 %v731_v50, %v729_v51 }
 0x2c8   : >> { %8769 = vpush %v732_v52 }
 0x2cb   : > { %v807_v49 = vpop.xlane.xlu1 (%p687_p11), %806 }
 0x2f9   : >> { %s8770_s2 = spop %8769  }
 0x2fa   : >> { %v734_v53 = vstv %s8770_s2  ;;  %s17414_s2 = sld [smem:[#allocation6_spill]] (%p687_p11) }
 0x2fb   : >> { %vm735_vm5 = vcmp.eq.s32.totalorder %v9775_v20, %v734_v53 }
 0x2fc   : >> { %v7696_v54 = vsel %vm735_vm5, 1.0, %v9553_v25  ;;  %v759_v25 = vmul.f32 (%p687_p11), %v9760_v12, %v9760_v12 }
 0x2fd   : >> { %v738_v55 = vmul.f32 %v7696_v54, %v9729_v1 }
 0x2fe   : > { %v796_v0 = vsel (%p687_p11), %vm15907_vm7, %v759_v25, 0.0 }
 0x2ff   : >> { %v739_v56 = vsel %vm15908_vm2, %v738_v55, 0.0 }
 0x300   : >> { %740 = vadd.xlane.f32.xlu2 %v739_v56  ;;  %v804_v56 = vpop.xlane.xlu1 (%p687_p11), %803  ;;  %s17418_s1 = sand.u32 (%p687_p11), 1, %s17414_s2  }
 0x372   : > { %689 = sbr.rel (!%p687_p11) target bundleno = 160 (0xa0), region = 160 }
 0x373   : >> { %v741_v58 = vpop.xlane.xlu2 %740 }
 0x374   : >> { %v9806_v22 = vsel %vm743_vm6, %v741_v58, %v9546_v22  }
 0x375   : >> { %16420 = vst [vmem:[#allocation17_spill] sm:$0xff] %v9806_v22  ;;  %v16421_v59 = vmov %v9806_v22 }
 0x376   : >> { %v16422_v22 = vmov %v16421_v59  ;;  %7697 = vmatpush.msk.msra.mxu0 (%p687_p11), %vm15908_vm2, %v16421_v59  ;;  %748 = vst.msk [vmem:[%s651_s27] sm:$0x7] (%p687_p11), %vm15906_vm8, %v16421_v59  ;;  %s9556_s27 = smov (%p687_p11), 64  }
 0x377   : > { %7698 = vmatmul.msk.f32.vlgmr.msra.gmra.mxu0 %vm15907_vm7, %v9731_v2  ;;  %v799_v22 = vsel %vm15907_vm7, %v760_v62, 0.0 }
 0x378   : > { %800 = vadd.xlane.f32.xlu2 %v799_v22  ;;  %v792_v22 = vpop.xlane.xlu1 %791 }
 0x37f   : > { %7699 = vmatmul.msk.f32.gmra.mxu0 %vm15907_vm7, %v9733_v3 }
 0x380   : > { %797 = vadd.xlane.f32.xlu2 %v796_v0  ;;  %v783_v43 = vpop.xlane.xlu1 %782 }
 0x387   : > { %7700 = vmatmul.msk.f32.gmra.mxu0 %vm15907_vm7, %v9739_v4 }
 0x388   : > { %788 = vadd.xlane.f32.xlu2 %v787_v33 }
 0x38f   : > { %7701 = vmatmul.msk.f32.gmra.mxu0 %vm15907_vm7, %v9741_v5  ;;  %v749_v5 = vmul.f32 %v9731_v2, %v9731_v2 }
 0x390   : > { %779 = vadd.xlane.f32.xlu2 %v778_v39 }
 0x391   : > { %v766_v4 = vsel %vm15907_vm7, %v749_v5, 0.0 }
 0x392   : > { %767 = vadd.xlane.f32.xlu0 %v766_v4 }
 0x397   : > { %7702 = vmatmul.msk.f32.gmra.mxu0 %vm15907_vm7, %v9743_v6 }
 0x398   : > { %770 = vadd.xlane.f32.xlu2 %v769_v45 }
 0x39f   : > { %7703 = vmatmul.msk.f32.gmra.mxu0 %vm15907_vm7, %v9750_v7 }
 0x3a7   : > { %7704 = vmatmul.msk.f32.gmra.mxu0 %vm15907_vm7, %v9752_v8 }
 0x3af   : > { %7705 = vmatmul.msk.f32.gmra.mxu0 %vm15907_vm7, %v9754_v9 }
 0x3b7   : > { %7706 = vmatmul.msk.f32.gmra.mxu0 %vm15907_vm7, %v9756_v10 }
 0x3bf   : > { %7707 = vmatmul.msk.f32.gmra.mxu0 %vm15907_vm7, %v9758_v11 }
 0x3c7   : > { %7708 = vmatmul.msk.f32.gmra.mxu0 %vm15907_vm7, %v9760_v12 }
 0x3cf   : > { %7709 = vmatmul.msk.f32.gmra.mxu0 %vm15907_vm7, %v9762_v13 }
 0x3d7   : > { %7710 = vmatmul.msk.f32.gmra.mxu0 %vm15907_vm7, %v9764_v14 }
 0x3df   : > { %7711 = vmatmul.msk.f32.gmra.mxu0 %vm15907_vm7, %v9766_v15 }
 0x3e7   : > { %7712 = vmatmul.msk.f32.gmra.mxu0 %vm15907_vm7, %v9768_v16  ;;  %v814_v16 = vmul.f32 %v16421_v59, %v16421_v59 }
 0x3e9   : > { %v815_v46 = vsel %vm15906_vm8, %v814_v16, 0.0 }
 0x3ea   : > { %v816_v48 = vrot.slane %v815_v46, 4 }
 0x3eb   : > { %v801_v51 = vpop.xlane.xlu2 %800 }
 0x3ec   : > { %v817_v50 = vadd.f32 %v816_v48, %v815_v46 }
 0x3ee   : > { %v818_v54 = vrot.slane %v817_v50, 2 }
 0x3ef   : > { %7713 = vmatmul.msk.f32.gmra.mxu0 %vm15907_vm7, %v9770_v17  ;;  %v813_v17 = vpop.xlane.xlu0 %812 }
 0x3f0   : > { %v819_v55 = vadd.f32 %v818_v54, %v817_v50 }
 0x3f2   : > { %v820_v60 = vrot.slane %v819_v55, 1 }
 0x3f3   : > { %v798_v57 = vpop.xlane.xlu2 %797 }
 0x3f4   : > { %v9910_v2 = vpop.f32.mrf.mxu0  ;;  %v9927_v62 = vadd.f32 %v820_v60, %v819_v55 }
 0x3f6   : > { %v954_v24 = vadd.f32 %v9927_v62, %v813_v17  ;;  %v952_v25 = vadd.f32 %v9927_v62, %v807_v49  ;;  %v951_v0 = vadd.f32 %v9927_v62, %v804_v56  ;;  %v950_v33 = vadd.f32 %v9927_v62, %v801_v51  ;;  %v774_v51 = vpop.xlane.xlu1 %773 }
 0x3f7   : > { %v810_v52 = vpop.xlane.xlu0 %809  ;;  %v949_v37 = vadd.f32 %v9927_v62, %v798_v57  ;;  %v947_v44 = vadd.f32 %v9927_v62, %v792_v22 }
 0x3f8   : > { %v953_v63 = vadd.f32 %v9927_v62, %v810_v52 }
 0x3fb   : > { %v789_v28 = vpop.xlane.xlu2 %788 }
 0x3fc   : > { %v9912_v3 = vpop.f32.mrf.mxu0 }
 0x3fd   : > { %v956_v60 = vmul.f32 2.0, %v9912_v3  ;;  %v10035_v3 = vshrl.u32 %v674_v19, 7 }
 0x3ff   : > { %v795_v61 = vpop.xlane.xlu0 %794  ;;  %16438 = vst [vmem:[#allocation33_spill] sm:$0xff] %v10035_v3  ;;  %vm15912_vm2 = vcmp.le.s32.totalorder %v9775_v20, %v10035_v3  ;;  %v10058_v19 = vadd.s32 8, %v10035_v3  ;;  %v10076_v22 = vadd.s32 24, %v10035_v3 }
 0x400   : > { %v948_v40 = vadd.f32 %v9927_v62, %v795_v61 }
 0x401   : > { %16440 = vst [vmem:[#allocation35_spill] sm:$0xff] %v10058_v19 }
 0x402   : > { %16442 = vst [vmem:[#allocation37_spill] sm:$0xff] %v10076_v22 }
 0x403   : > { %v780_v4 = vpop.xlane.xlu2 %779 }
 0x404   : > { %v9914_v6 = vpop.f32.mrf.mxu0 }
 0x407   : > { %v786_v32 = vpop.xlane.xlu0 %785 }
 0x40b   : > { %v771_v54 = vpop.xlane.xlu2 %770 }
 0x40c   : > { %v9916_v7 = vpop.f32.mrf.mxu0  ;;  %v940_v57 = vadd.f32 %v9927_v62, %v771_v54 }
 0x40f   : > { %v777_v16 = vpop.xlane.xlu0 %776 }
 0x410   : > { %v942_v52 = vadd.f32 %v9927_v62, %v777_v16 }
 0x414   : > { %v9918_v8 = vpop.f32.mrf.mxu0 }
 0x415   : > { %v959_v49 = vmul.f32 2.0, %v9918_v8  ;;  %v941_v8 = vadd.f32 %v9927_v62, %v774_v51 }
 0x417   : > { %v768_v56 = vpop.xlane.xlu0 %767 }
 0x418   : > { %v939_v61 = vadd.f32 %v9927_v62, %v768_v56 }
 0x41c   : > { %v9920_v9 = vpop.f32.mrf.mxu0 }
 0x424   : > { %v9922_v10 = vpop.f32.mrf.mxu0 }
 0x425   : > { %v961_v17 = vmul.f32 2.0, %v9922_v10  ;;  %v943_v10 = vadd.f32 %v9927_v62, %v780_v4 }
 0x427   : > { %v10006_v55 = vsub.f32 %v943_v10, %v959_v49 }
 0x429   : > { %16434 = vst [vmem:[#allocation29_spill] sm:$0xff] %v10006_v55  ;;  %vm1104_vm5 = vcmp.lt.f32.partialorder %v10006_v55, 0.25 }
 0x42c   : > { %v912_v11 = vpop.f32.mrf.mxu0 }
 0x434   : > { %v915_v12 = vpop.f32.mrf.mxu0 }
 0x435   : > { %v963_v45 = vmul.f32 2.0, %v915_v12  ;;  %v945_v12 = vadd.f32 %v9927_v62, %v786_v32  ;;  %v10157_v32 = vadd.s32 96, %v10035_v3 }
 0x437   : > { %v9975_v46 = vsub.f32 %v947_v44, %v963_v45  ;;  %v9991_v50 = vsub.f32 %v945_v12, %v961_v17  ;;  %16451 = vst [vmem:[#allocation46_spill] sm:$0xff] %v10157_v32 }
 0x439   : > { %16430 = vst [vmem:[#allocation25_spill] sm:$0xff] %v9975_v46  ;;  %vm1108_vm0 = vcmp.lt.f32.partialorder %v9975_v46, 0.25  ;;  %vm1106_vm3 = vcmp.lt.f32.partialorder %v9991_v50, 0.25 }
 0x43a   : > { %16432 = vst [vmem:[#allocation27_spill] sm:$0xff] %v9991_v50 }
 0x43c   : > { %v918_v13 = vpop.f32.mrf.mxu0 }
 0x43d   : > { %v964_v41 = vmul.f32 2.0, %v918_v13  ;;  %v946_v13 = vadd.f32 %v9927_v62, %v789_v28  ;;  %v10139_v28 = vadd.s32 80, %v10035_v3 }
 0x43f   : > { %16449 = vst [vmem:[#allocation44_spill] sm:$0xff] %v10139_v28 }
 0x444   : > { %v921_v14 = vpop.f32.mrf.mxu0 }
 0x445   : > { %v965_v38 = vmul.f32 2.0, %v921_v14  ;;  %v962_v14 = vmul.f32 2.0, %v912_v11  ;;  %v944_v11 = vadd.f32 %v9927_v62, %v783_v43 }
 0x447   : > { %v9960_v5 = vsub.f32 %v949_v37, %v965_v38  ;;  %v9983_v48 = vsub.f32 %v946_v13, %v962_v14  ;;  %v10184_v37 = vadd.s32 120, %v10035_v3 }
 0x449   : > { %16428 = vst [vmem:[#allocation23_spill] sm:$0xff] %v9960_v5  ;;  %vm1110_vm14 = vcmp.lt.f32.partialorder %v9960_v5, 0.25  ;;  %vm1107_vm1 = vcmp.lt.f32.partialorder %v9983_v48, 0.25 }
 0x44a   : > { %16431 = vst [vmem:[#allocation26_spill] sm:$0xff] %v9983_v48 }
 0x44b   : > { %16454 = vst [vmem:[#allocation49_spill] sm:$0xff] %v10184_v37 }
 0x44c   : > { %v924_v15 = vpop.f32.mrf.mxu0 }
 0x44d   : > { %v966_v34 = vmul.f32 2.0, %v924_v15  ;;  %v9967_v15 = vsub.f32 %v948_v40, %v964_v41  ;;  %v15937_v40 = vmov 0.0  }
 0x44e   : > { %v10248_v56 = vsel %vm1107_vm1, 1.0, %v15937_v40 }
 0x44f   : > { %v9953_v42 = vsub.f32 %v950_v33, %v966_v34  ;;  %16429 = vst [vmem:[#allocation24_spill] sm:$0xff] %v9967_v15  ;;  %vm1109_vm15 = vcmp.lt.f32.partialorder %v9967_v15, 0.25  ;;  %v10166_v33 = vadd.s32 104, %v10035_v3  ;;  %v10175_v34 = vadd.s32 112, %v10035_v3 }
 0x450   : > { %16465 = vst [vmem:[#allocation60_spill] sm:$0xff] %v10248_v56 }
 0x451   : > { %16427 = vst [vmem:[#allocation22_spill] sm:$0xff] %v9953_v42  ;;  %vm1111_vm13 = vcmp.lt.f32.partialorder %v9953_v42, 0.25 }
 0x452   : > { %16452 = vst [vmem:[#allocation47_spill] sm:$0xff] %v10166_v33 }
 0x453   : > { %16453 = vst [vmem:[#allocation48_spill] sm:$0xff] %v10175_v34 }
 0x454   : > { %v927_v47 = vpop.f32.mrf.mxu0 }
 0x455   : > { %v967_v29 = vmul.f32 2.0, %v927_v47  ;;  %v960_v47 = vmul.f32 2.0, %v9920_v9  ;;  %v958_v9 = vmul.f32 2.0, %v9916_v7  ;;  %v957_v7 = vmul.f32 2.0, %v9914_v6 }
 0x456   : > { %v955_v6 = vmul.f32 2.0, %v9910_v2  ;;  %v10067_v2 = vadd.s32 16, %v10035_v3 }
 0x457   : > { %v9946_v39 = vsub.f32 %v951_v0, %v967_v29  ;;  %v10130_v0 = vadd.s32 72, %v10035_v3  ;;  %v10148_v29 = vadd.s32 88, %v10035_v3 }
 0x458   : > { %v10037_v62 = vsub.f32 %v939_v61, %v955_v6  ;;  %16441 = vst [vmem:[#allocation36_spill] sm:$0xff] %v10067_v2 }
 0x459   : > { %16426 = vst [vmem:[#allocation21_spill] sm:$0xff] %v9946_v39  ;;  %vm1112_vm12 = vcmp.lt.f32.partialorder %v9946_v39, 0.25 }
 0x45a   : > { %16439 = vst [vmem:[#allocation34_spill] sm:$0xff] %v10037_v62 }
 0x45b   : > { %16448 = vst [vmem:[#allocation43_spill] sm:$0xff] %v10130_v0 }
 0x45c   : > { %v930_v53 = vpop.f32.mrf.mxu0  ;;  %16450 = vst [vmem:[#allocation45_spill] sm:$0xff] %v10148_v29 }
 0x45d   : > { %v968_v26 = vmul.f32 2.0, %v930_v53  ;;  %v9999_v53 = vsub.f32 %v944_v11, %v960_v47  ;;  %v10227_v47 = vsel %vm1104_vm5, 1.0, %v15937_v40 }
 0x45e   : > { %16461 = vst [vmem:[#allocation56_spill] sm:$0xff] %v10227_v47 }
 0x45f   : > { %v9939_v35 = vsub.f32 %v952_v25, %v968_v26  ;;  %16433 = vst [vmem:[#allocation28_spill] sm:$0xff] %v9999_v53  ;;  %vm1105_vm4 = vcmp.lt.f32.partialorder %v9999_v53, 0.25  ;;  %v10103_v25 = vadd.s32 48, %v10035_v3  ;;  %v10112_v26 = vadd.s32 56, %v10035_v3 }
 0x460   : > { %v10234_v51 = vsel %vm1105_vm4, 1.0, %v15937_v40 }
 0x461   : > { %16425 = vst [vmem:[#allocation20_spill] sm:$0xff] %v9939_v35  ;;  %vm15911_vm11 = vcmp.lt.f32.partialorder %v9939_v35, 0.25 }
 0x462   : > { %16445 = vst [vmem:[#allocation40_spill] sm:$0xff] %v10103_v25 }
 0x463   : > { %16446 = vst [vmem:[#allocation41_spill] sm:$0xff] %v10112_v26 }
 0x464   : > { %v933_v58 = vpop.f32.mrf.mxu0  ;;  %16463 = vst [vmem:[#allocation58_spill] sm:$0xff] %v10234_v51 }
 0x465   : > { %v969_v21 = vmul.f32 2.0, %v933_v58  ;;  %v10013_v58 = vsub.f32 %v942_v52, %v958_v9  ;;  %v10241_v52 = vsel %vm1106_vm3, 1.0, %v15937_v40 }
 0x466   : > { %16464 = vst [vmem:[#allocation59_spill] sm:$0xff] %v10241_v52 }
 0x467   : > { %v9935_v31 = vsub.f32 %v953_v63, %v969_v21  ;;  %16435 = vst [vmem:[#allocation30_spill] sm:$0xff] %v10013_v58  ;;  %v10021_v63 = vsub.f32 %v941_v8, %v957_v7  ;;  %v10028_v21 = vsub.f32 %v940_v57, %v956_v60  ;;  %vm1103_vm6 = vcmp.lt.f32.partialorder %v10013_v58, 0.25 }
 0x468   : > { %v10220_v12 = vsel %vm1103_vm6, 1.0, %v15937_v40  ;;  %v10255_v57 = vsel %vm1108_vm0, 1.0, %v15937_v40 }
 0x469   : > { %16424 = vst [vmem:[#allocation19_spill] sm:$0xff] %v9935_v31  ;;  %vm15910_vm10 = vcmp.lt.f32.partialorder %v9935_v31, 0.25  ;;  %vm1102_vm8 = vcmp.lt.f32.partialorder %v10021_v63, 0.25  ;;  %vm1101_vm7 = vcmp.lt.f32.partialorder %v10028_v21, 0.25 }
 0x46a   : > { %16436 = vst [vmem:[#allocation31_spill] sm:$0xff] %v10021_v63  ;;  %v10202_v43 = vsel %vm1101_vm7, 1.0, %v15937_v40  ;;  %v10211_v4 = vsel %vm1102_vm8, 1.0, %v15937_v40 }
 0x46b   : > { %16437 = vst [vmem:[#allocation32_spill] sm:$0xff] %v10028_v21 }
 0x46c   : > { %v936_v23 = vpop.f32.mrf.mxu0  ;;  %16457 = vst [vmem:[#allocation52_spill] sm:$0xff] %v10202_v43 }
 0x46d   : > { %v970_v27 = vmul.f32 2.0, %v936_v23  ;;  %v10085_v23 = vadd.s32 32, %v10035_v3  ;;  %16458 = vst [vmem:[#allocation53_spill] sm:$0xff] %v10211_v4 }
 0x46e   : > { %16460 = vst [vmem:[#allocation55_spill] sm:$0xff] %v10220_v12 }
 0x46f   : > { %v9933_v30 = vsub.f32 %v954_v24, %v970_v27  ;;  %16443 = vst [vmem:[#allocation38_spill] sm:$0xff] %v10085_v23  ;;  %v10094_v24 = vadd.s32 40, %v10035_v3  ;;  %v10121_v27 = vadd.s32 64, %v10035_v3 }
 0x470   : > { %16466 = vst [vmem:[#allocation61_spill] sm:$0xff] %v10255_v57 }
 0x471   : > { %16423 = vst [vmem:[#allocation18_spill] sm:$0xff] %v9933_v30  ;;  %vm15909_vm9 = vcmp.lt.f32.partialorder %v9933_v30, 0.25 }
 0x472   : > { %7747 = vmatpush.msk.msra.mxu1 %vm15909_vm9, %v15926_v36  ;;  %vm1100_vm9 = vcmp.lt.f32.partialorder %v10037_v62, 0.25  ;;  %16444 = vst [vmem:[#allocation39_spill] sm:$0xff] %v10094_v24 }
 0x473   : > { %16447 = vst [vmem:[#allocation42_spill] sm:$0xff] %v10121_v27  ;;  %v10197_v41 = vsel %vm1100_vm9, 1.0, %v15937_v40 }
 0x474   : > { %7748 = vmatpush.msk.msra.mxu1 %vm15910_vm10, %v15926_v36  ;;  %vm15913_vm10 = vcmp.le.s32.totalorder %v9775_v20, %v10058_v19  ;;  %16456 = vst [vmem:[#allocation51_spill] sm:$0xff] %v10197_v41 }
 0x476   : > { %7749 = vmatpush.msk.msra.mxu1 %vm15911_vm11, %v15926_v36  ;;  %vm15914_vm11 = vcmp.le.s32.totalorder %v9775_v20, %v10067_v2 }
 0x478   : > { %7750 = vmatpush.msk.msra.mxu1 %vm1112_vm12, %v15926_v36 }
 0x47a   : > { %7751 = vmatpush.msk.msra.mxu1 %vm1111_vm13, %v15926_v36 }
 0x47c   : > { %7752 = vmatpush.msk.msra.mxu1 %vm1110_vm14, %v15926_v36 }
 0x47e   : > { %7753 = vmatpush.msk.msra.mxu1 %vm1109_vm15, %v15926_v36 }
 0x480   : > { %7754 = vmatpush.msk.msra.mxu1 %vm1108_vm0, %v15926_v36 }
 0x482   : > { %7755 = vmatpush.msk.msra.mxu1 %vm1107_vm1, %v15926_v36 }
 0x484   : > { %7756 = vmatpush.msk.msra.mxu1 %vm1106_vm3, %v15926_v36 }
 0x486   : > { %7757 = vmatpush.msk.msra.mxu1 %vm1105_vm4, %v15926_v36 }
 0x488   : > { %7758 = vmatpush.msk.msra.mxu1 %vm1104_vm5, %v15926_v36 }
 0x48a   : > { %7759 = vmatpush.msk.msra.mxu1 %vm1103_vm6, %v15926_v36 }
 0x48c   : > { %7760 = vmatpush.msk.msra.mxu1 %vm1102_vm8, %v15926_v36  ;;  %vm16475_vm8 = vcmp.lt.f32.partialorder %v9935_v31, 0.25 }
 0x48e   : > { %7761 = vmatpush.msk.msra.mxu1 %vm1101_vm7, %v15926_v36  ;;  %vm16473_vm7 = vcmp.lt.f32.partialorder %v9939_v35, 0.25 }
 0x490   : > { %7762 = vmatpush.msk.msra.mxu1 %vm1100_vm9, %v15926_v36  ;;  %vm16477_vm9 = vcmp.lt.f32.partialorder %v9933_v30, 0.25 }
 0x491   : > { %7763 = vmatmul.msk.f32.vlgmr.msra.gmra.mxu1 %vm15912_vm2, %v15926_v36  ;;  %vm15915_vm2 = vcmp.le.s32.totalorder %v9775_v20, %v10076_v22 }
 0x499   : > { %7764 = vmatmul.msk.f32.gmra.mxu1 %vm15913_vm10, %v15926_v36  ;;  %vm15916_vm10 = vcmp.le.s32.totalorder %v9775_v20, %v10085_v23 }
 0x4a1   : > { %7765 = vmatmul.msk.f32.gmra.mxu1 %vm15914_vm11, %v15926_v36  ;;  %vm15917_vm11 = vcmp.le.s32.totalorder %v9775_v20, %v10094_v24 }
 0x4a9   : > { %7766 = vmatmul.msk.f32.gmra.mxu1 %vm15915_vm2, %v15926_v36  ;;  %vm15918_vm2 = vcmp.le.s32.totalorder %v9775_v20, %v10103_v25 }
 0x4b1   : > { %7767 = vmatmul.msk.f32.gmra.mxu1 %vm15916_vm10, %v15926_v36  ;;  %vm15919_vm10 = vcmp.le.s32.totalorder %v9775_v20, %v10112_v26 }
 0x4b9   : > { %7768 = vmatmul.msk.f32.gmra.mxu1 %vm15917_vm11, %v15926_v36  ;;  %vm15920_vm11 = vcmp.le.s32.totalorder %v9775_v20, %v10121_v27 }
 0x4c1   : > { %7769 = vmatmul.msk.f32.gmra.mxu1 %vm15918_vm2, %v15926_v36  ;;  %vm15921_vm2 = vcmp.le.s32.totalorder %v9775_v20, %v10130_v0 }
 0x4c9   : > { %7770 = vmatmul.msk.f32.gmra.mxu1 %vm15919_vm10, %v15926_v36  ;;  %vm15922_vm10 = vcmp.le.s32.totalorder %v9775_v20, %v10139_v28 }
 0x4d1   : > { %7771 = vmatmul.msk.f32.gmra.mxu1 %vm15920_vm11, %v15926_v36  ;;  %vm15923_vm11 = vcmp.le.s32.totalorder %v9775_v20, %v10148_v29 }
 0x4d9   : > { %7772 = vmatmul.msk.f32.gmra.mxu1 %vm15921_vm2, %v15926_v36  ;;  %vm15924_vm2 = vcmp.le.s32.totalorder %v9775_v20, %v10157_v32 }
 0x4e1   : > { %7773 = vmatmul.msk.f32.gmra.mxu1 %vm15922_vm10, %v15926_v36  ;;  %vm1017_vm10 = vcmp.le.s32.totalorder %v9775_v20, %v10166_v33 }
 0x4e9   : > { %7774 = vmatmul.msk.f32.gmra.mxu1 %vm15923_vm11, %v15926_v36  ;;  %vm15925_vm11 = vcmp.le.s32.totalorder %v9775_v20, %v10175_v34 }
 0x4f1   : > { %7775 = vmatmul.msk.f32.gmra.mxu1 %vm15924_vm2, %v15926_v36  ;;  %vm16101_vm2 = vcmp.le.s32.totalorder %v9775_v20, %v10184_v37  ;;  %v10308_v37 = vsel %vm16477_vm9, 1.0, %v15937_v40 }
 0x4f2   : > { %16478 = vst [vmem:[#allocation70_spill] sm:$0xff] %v10308_v37 }
 0x4f9   : > { %7776 = vmatmul.msk.f32.gmra.mxu1 %vm1017_vm10, %v15926_v36 }
 0x501   : > { %7777 = vmatmul.msk.f32.gmra.mxu1 %vm15925_vm11, %v15926_v36  ;;  %vm1213_vm11 = vcmask 523264  }
 0x502   : > { %v1214_v44 = vsel %vm1213_vm11, %v10197_v41, 0.0  ;;  %v1215_v45 = vsel %vm1213_vm11, %v10202_v43, 0.0  ;;  %v1217_v16 = vsel %vm1213_vm11, %v10211_v4, 0.0  ;;  %v1219_v11 = vsel %vm1213_vm11, %v10220_v12, 0.0 }
 0x503   : > { %v1216_v13 = vadd.f32 %v1215_v45, %v1214_v44  ;;  %v1221_v9 = vsel %vm1213_vm11, %v10227_v47, 0.0  ;;  %v1223_v8 = vsel %vm1213_vm11, %v10234_v51, 0.0  ;;  %v1225_v7 = vsel %vm1213_vm11, %v10241_v52, 0.0 }
 0x504   : > { %v1227_v61 = vsel %vm1213_vm11, %v10248_v56, 0.0  ;;  %v10264_v44 = vsel %vm1109_vm15, 1.0, %v15937_v40  ;;  %v1243_v33 = vsel %vm1213_vm11, %v10308_v37, 0.0 }
 0x505   : > { %v1218_v17 = vadd.f32 %v1217_v16, %v1216_v13  ;;  %16468 = vst [vmem:[#allocation63_spill] sm:$0xff] %v10264_v44  ;;  %v1229_v13 = vsel %vm1213_vm11, %v10255_v57, 0.0  ;;  %v10271_v16 = vsel %vm1110_vm14, 1.0, %v15937_v40 }
 0x506   : > { %16469 = vst [vmem:[#allocation64_spill] sm:$0xff] %v10271_v16 }
 0x507   : > { %v1220_v10 = vadd.f32 %v1219_v11, %v1218_v17  ;;  %v1231_v11 = vsel %vm1213_vm11, %v10264_v44, 0.0 }
 0x509   : > { %7778 = vmatmul.msk.f32.gmra.mxu1 %vm16101_vm2, %v15926_v36  ;;  %v1222_v54 = vadd.f32 %v1221_v9, %v1220_v10  ;;  %v10278_v10 = vsel %vm1111_vm13, 1.0, %v15937_v40  ;;  %v10301_v36 = vsel %vm16475_vm8, 1.0, %v15937_v40  ;;  %vm1052_vm13 = vcmp.eq.s32.totalorder %v10035_v3, 0 }
 0x50a   : > { %16470 = vst [vmem:[#allocation65_spill] sm:$0xff] %v10278_v10 }
 0x50b   : > { %v1224_v60 = vadd.f32 %v1223_v8, %v1222_v54  ;;  %v1233_v54 = vsel %vm1213_vm11, %v10271_v16, 0.0  ;;  %v10285_v8 = vsel %vm1112_vm12, 1.0, %v15937_v40  ;;  %16476 = vst [vmem:[#allocation69_spill] sm:$0xff] %v10301_v36 }
 0x50c   : > { %16471 = vst [vmem:[#allocation66_spill] sm:$0xff] %v10285_v8 }
 0x50d   : > { %v1226_v45 = vadd.f32 %v1225_v7, %v1224_v60  ;;  %v1235_v60 = vsel %vm1213_vm11, %v10278_v10, 0.0 }
 0x50e   : > { %v10192_v38 = vpop.f32.mrf.mxu1 }
 0x50f   : > { %16455 = vst [vmem:[#allocation50_spill] sm:$0xff] %v10192_v38  ;;  %v1228_v17 = vadd.f32 %v1227_v61, %v1226_v45  ;;  %v10294_v45 = vsel %vm16473_vm7, 1.0, %v15937_v40  ;;  %vm1251_vm12 = vcmp.lt.f32.partialorder %v10192_v38, 1.5 }
 0x510   : > { %16474 = vst [vmem:[#allocation68_spill] sm:$0xff] %v10294_v45 }
 0x511   : > { %v1230_v9 = vadd.f32 %v1229_v13, %v1228_v17  ;;  %v1237_v17 = vsel %vm1213_vm11, %v10285_v8, 0.0 }
 0x513   : > { %v1232_v7 = vadd.f32 %v1231_v11, %v1230_v9  ;;  %v1239_v9 = vsel %vm1213_vm11, %v10294_v45, 0.0 }
 0x515   : > { %v1234_v13 = vadd.f32 %v1233_v54, %v1232_v7  ;;  %v1241_v54 = vsel %vm1213_vm11, %v10301_v36, 0.0 }
 0x516   : > { %v10213_v14 = vpop.f32.mrf.mxu1 }
 0x517   : > { %16459 = vst [vmem:[#allocation54_spill] sm:$0xff] %v10213_v14  ;;  %v1236_v11 = vadd.f32 %v1235_v60, %v1234_v13  ;;  %v7892_v25 = vadd.f32 -4.0, %v10213_v14  ;;  %vm1252_vm3 = vcmp.lt.f32.partialorder %v10213_v14, 1.5 }
 0x519   : > { %v1238_v34 = vadd.f32 %v1237_v17, %v1236_v11 }
 0x51b   : > { %v1240_v7 = vadd.f32 %v1239_v9, %v1238_v34  ;;  %v7891_v34 = vadd.f32 -4.0, %v10192_v38 }
 0x51d   : > { %v1242_v29 = vadd.f32 %v1241_v54, %v1240_v7  ;;  %v8019_v54 = vadd.f32 -8.0, %v10192_v38  ;;  %v7827_v7 = vadd.f32 -2.0, %v10192_v38 }
 0x51e   : > { %v10229_v49 = vpop.f32.mrf.mxu1 }
 0x51f   : > { %16462 = vst [vmem:[#allocation57_spill] sm:$0xff] %v10229_v49  ;;  %v1244_v60 = vadd.f32 %v1243_v33, %v1242_v29  ;;  %v7893_v23 = vadd.f32 -4.0, %v10229_v49  ;;  %v8021_v3 = vadd.f32 -8.0, %v10229_v49 }
 0x521   : > { %v1245_v13 = vrot.slane %v1244_v60, 4  ;;  %v1694_v19 = vand.u32 2147483647, %v7893_v23 }
 0x523   : > { %v1246_v0 = vadd.f32 %v1245_v13, %v1244_v60  ;;  %v1693_v60 = vand.u32 2147483647, %v7892_v25  ;;  %v16480_v13 = vmov 0.0  }
 0x524   : > { %v7779_v24 = vsel %vm1251_vm12, 1.0, %v16480_v13 }
 0x525   : > { %v1247_v27 = vrot.slane %v1246_v0, 2  ;;  %v1299_v25 = vmul.f32 %v7779_v24, %v10197_v41  ;;  %vm1709_vm6 = vcmp.lt.f32.partialorder %v1693_v60, 0.5  ;;  %v7780_v60 = vsel %vm1252_vm3, 1.0, %v16480_v13 }
 0x526   : > { %v10259_v6 = vpop.f32.mrf.mxu1  ;;  %v1300_v21 = vmul.f32 %v7780_v60, %v10202_v43 }
 0x527   : > { %16467 = vst [vmem:[#allocation62_spill] sm:$0xff] %v10259_v6  ;;  %v1248_v40 = vadd.f32 %v1247_v27, %v1246_v0  ;;  %v1692_v27 = vand.u32 2147483647, %v7891_v34  ;;  %v8020_v0 = vadd.f32 -8.0, %v10213_v14 }
 0x529   : > { %v1249_v17 = vrot.slane %v1248_v40, 1  ;;  %vm1708_vm4 = vcmp.lt.f32.partialorder %v1692_v27, 0.5  ;;  %v2153_v34 = vand.u32 2147483647, %v8020_v0 }
 0x52a   : > { %v7907_v62 = vsel %vm1708_vm4, 1.0, %v16480_v13  ;;  %vm1254_vm4 = vcmp.lt.f32.partialorder %v10259_v6, 1.5 }
 0x52b   : > { %v10326_v29 = vadd.f32 %v1249_v17, %v1248_v40  ;;  %v10337_v40 = vsel %vm1052_vm13, 1.0, %v16480_v13  ;;  %v2152_v17 = vand.u32 2147483647, %v8019_v54  ;;  %vm2169_vm9 = vcmp.lt.f32.partialorder %v2153_v34, 0.5 }
 0x52c   : > { %16481 = vst [vmem:[#allocation72_spill] sm:$0xff] %v10337_v40  ;;  %v8036_v34 = vsel %vm2169_vm9, 1.0, %v16480_v13  ;;  %v7782_v48 = vsel %vm1254_vm4, 1.0, %v16480_v13 }
 0x52d   : > { %vm1315_vm15 = vcmp.gt.f32.partialorder %v10326_v29, 0.5  ;;  %vm1772_vm1 = vcmp.gt.f32.partialorder %v10326_v29, 3.5  ;;  %vm2168_vm7 = vcmp.lt.f32.partialorder %v2152_v17, 0.5  ;;  %vm2232_vm13 = vcmp.gt.f32.partialorder %v10326_v29, 7.5 }
 0x52e   : > { %v10289_v61 = vpop.f32.mrf.mxu1 }
 0x52f   : > { %16472 = vst [vmem:[#allocation67_spill] sm:$0xff] %v10289_v61 }
 0x536   : > { %v10314_v32 = vpop.f32.mrf.mxu1 }
 0x537   : > { %v7896_v24 = vadd.f32 -4.0, %v10314_v32  ;;  %v8024_v18 = vadd.f32 -8.0, %v10314_v32 }
 0x539   : > { %v1697_v15 = vand.u32 2147483647, %v7896_v24 }
 0x53e   : > { %v10316_v28 = vpop.f32.mrf.mxu1 }
 0x546   : > { %v10318_v26 = vpop.f32.mrf.mxu1 }
 0x54e   : > { %v10320_v11 = vpop.f32.mrf.mxu1 }
 0x54f   : > { %16479 = vst [vmem:[#allocation71_spill] sm:$0xff] %v10320_v11  ;;  %v7899_v9 = vadd.f32 -4.0, %v10320_v11  ;;  %vm1259_vm14 = vcmp.lt.f32.partialorder %v10320_v11, 1.5 }
 0x550   : > { %v7787_v2 = vsel %vm1259_vm14, 1.0, %v16480_v13  ;;  %vm1253_vm14 = vcmp.lt.f32.partialorder %v10229_v49, 1.5 }
 0x551   : > { %v1700_v33 = vand.u32 2147483647, %v7899_v9  ;;  %v1462_v9 = vand.u32 2147483647, %v7827_v7  ;;  %v1307_v27 = vmul.f32 %v7787_v2, %v10255_v57  ;;  %v2154_v2 = vand.u32 2147483647, %v8021_v3 }
 0x553   : > { %vm1716_vm0 = vcmp.lt.f32.partialorder %v1700_v33, 0.5  ;;  %vm10351_vm8 = vcmp.lt.f32.partialorder %v1462_v9, 0.5  ;;  %v8035_v9 = vsel %vm2168_vm7, 1.0, %v16480_v13  ;;  %v10374_v63 = vsel %vm1315_vm15, %v1307_v27, 0.0 }
 0x554   : > { %v7915_v7 = vsel %vm1716_vm0, 1.0, %v16480_v13  ;;  %vm1710_vm0 = vcmp.lt.f32.partialorder %v1694_v19, 0.5  ;;  %16485 = vst [vmem:[#allocation74_spill] sm:$0xff] %v10374_v63  ;;  %vm2170_vm3 = vcmp.lt.f32.partialorder %v2154_v2, 0.5 }
 0x555   : > { %v1764_v23 = vmul.f32 %v7915_v7, %v10255_v57  ;;  %v7909_v27 = vsel %vm1710_vm0, 1.0, %v16480_v13  ;;  %vm1713_vm0 = vcmp.lt.f32.partialorder %v1697_v15, 0.5 }
 0x556   : > { %v10339_v22 = vpop.f32.mrf.mxu1  ;;  %v1758_v2 = vmul.f32 %v7909_v27, %v10211_v4 }
 0x557   : > { %vm1260_vm5 = vcmp.lt.f32.partialorder %v10339_v22, 1.5  ;;  %v7900_v33 = vadd.f32 -4.0, %v10339_v22 }
 0x558   : > { %v7788_v54 = vsel %vm1260_vm5, 1.0, %v16480_v13 }
 0x559   : > { %v1701_v20 = vand.u32 2147483647, %v7900_v33  ;;  %v1308_v0 = vmul.f32 %v7788_v54, %v10264_v44  ;;  %v7908_v33 = vsel %vm1709_vm6, 1.0, %v16480_v13 }
 0x55a   : > { %v1757_v3 = vmul.f32 %v7908_v33, %v10202_v43  ;;  %v2217_v33 = vmul.f32 %v8036_v34, %v10202_v43  ;;  %v10415_v34 = vmul.f32 %v8035_v9, %v10197_v41  ;;  %v8027_v43 = vadd.f32 -8.0, %v10320_v11 }
 0x55b   : > { %vm1717_vm12 = vcmp.lt.f32.partialorder %v1701_v20, 0.5  ;;  %v1756_v20 = vmul.f32 %v7907_v62, %v10197_v41  ;;  %v10378_v19 = vsel %vm1315_vm15, %v1308_v0, 0.0  ;;  %v1783_v62 = vsel %vm1772_vm1, %v1764_v23, %v10374_v63 }
 0x55c   : > { %v7916_v17 = vsel %vm1717_vm12, 1.0, %v16480_v13  ;;  %16486 = vst [vmem:[#allocation75_spill] sm:$0xff] %v10378_v19  ;;  %v10393_v0 = vsel %vm1315_vm15, %v1299_v25, %v10337_v40  ;;  %v8022_v23 = vadd.f32 -8.0, %v10259_v6  ;;  %v10406_v25 = vsel %vm1315_vm15, %v1300_v21, 0.0 }
 0x55d   : > { %v1765_v54 = vmul.f32 %v7916_v17, %v10264_v44  ;;  %v7781_v17 = vsel %vm1253_vm14, 1.0, %v16480_v13  ;;  %16487 = vst [vmem:[#allocation76_spill] sm:$0xff] %v10393_v0  ;;  %v8037_v21 = vsel %vm2170_vm3, 1.0, %v16480_v13  ;;  %v10431_v9 = vsel %vm2232_vm13, %v2217_v33, %v10406_v25 }
 0x55e   : > { %v10370_v7 = vpop.f32.mrf.mxu1  ;;  %v1301_v50 = vmul.f32 %v7781_v17, %v10211_v4  ;;  %16489 = vst [vmem:[#allocation78_spill] sm:$0xff] %v10406_v25  ;;  %v7894_v17 = vadd.f32 -4.0, %v10259_v6  ;;  %v10447_v33 = vmul.f32 %v8037_v21, %v10211_v4  ;;  %vm1256_vm12 = vcmp.lt.f32.partialorder %v10314_v32, 1.5 }
 0x55f   : > { %16484 = vst [vmem:[#allocation73_spill] sm:$0xff] %v10370_v7  ;;  %v1784_v60 = vsel %vm1772_vm1, %v1765_v54, %v10378_v19  ;;  %v7901_v58 = vadd.f32 -4.0, %v10370_v7  ;;  %v10401_v54 = vsel %vm10351_vm8, 1.0, %v16480_v13  ;;  %vm1261_vm5 = vcmp.lt.f32.partialorder %v10370_v7, 1.5 }
 0x560   : > { %v8851_v55 = vpack.i.bf16 %v1783_v62, %v1784_v60  ;;  %16488 = vst [vmem:[#allocation77_spill] sm:$0xff] %v10401_v54  ;;  %v8023_v62 = vadd.f32 -8.0, %v10289_v61  ;;  %v10436_v60 = vsel %vm1315_vm15, %v1301_v50, 0.0  ;;  %v7789_v50 = vsel %vm1261_vm5, 1.0, %v16480_v13 }
 0x561   : > { %v1702_v53 = vand.u32 2147483647, %v7901_v58  ;;  %v10411_v58 = vsel %vm1772_vm1, %v1756_v20, %v10393_v0  ;;  %16490 = vst [vmem:[#allocation79_spill] sm:$0xff] %v10415_v34  ;;  %v7895_v20 = vadd.f32 -4.0, %v10289_v61  ;;  %v10444_v46 = vsel %vm1772_vm1, %v1758_v2, %v10436_v60 }
 0x562   : > { %8852 = vrot.lane.b32.xlu2 %v8851_v55, %s9556_s27  ;;  %v10421_v55 = vsel %vm1772_vm1, %v1757_v3, %v10406_v25  ;;  %v2155_v3 = vand.u32 2147483647, %v8022_v23  ;;  %16491 = vst [vmem:[#allocation80_spill] sm:$0xff] %v10436_v60  ;;  %v1695_v2 = vand.u32 2147483647, %v7894_v17  ;;  %vm1255_vm8 = vcmp.lt.f32.partialorder %v10289_v61, 1.5 }
 0x563   : > { %vm1718_vm6 = vcmp.lt.f32.partialorder %v1702_v53, 0.5  ;;  %v10450_v53 = vadd.f32 -2.0, %v10259_v6  ;;  %v1696_v39 = vand.u32 2147483647, %v7895_v20  ;;  %v2156_v21 = vand.u32 2147483647, %v8023_v62 }
 0x564   : > { %v7917_v42 = vsel %vm1718_vm6, 1.0, %v16480_v13  ;;  %vm2171_vm9 = vcmp.lt.f32.partialorder %v2155_v3, 0.5  ;;  %v1309_v31 = vmul.f32 %v7789_v50, %v10271_v16  ;;  %v1302_v20 = vmul.f32 %v7782_v48, %v10220_v12 }
 0x565   : > { %v1766_v24 = vmul.f32 %v7917_v42, %v10271_v16  ;;  %vm1712_vm3 = vcmp.lt.f32.partialorder %v1696_v39, 0.5  ;;  %v8038_v62 = vsel %vm2171_vm9, 1.0, %v16480_v13  ;;  %vm10466_vm4 = vcmp.lt.f32.partialorder %v1695_v2, 0.5 }
 0x566   : > { %v10438_v27 = vpop.f32.mrf.mxu1  ;;  %v7784_v42 = vsel %vm1256_vm12, 1.0, %v16480_v13  ;;  %vm10475_vm5 = vcmp.lt.f32.partialorder %v2156_v21, 0.5  ;;  %v10483_v39 = vsel %vm1315_vm15, %v1309_v31, 0.0  ;;  %v2157_v2 = vand.u32 2147483647, %v8024_v18 }
 0x567   : > { %16492 = vst [vmem:[#allocation81_spill] sm:$0xff] %v10438_v27  ;;  %vm1262_vm7 = vcmp.lt.f32.partialorder %v10438_v27, 1.5  ;;  %v7902_v23 = vadd.f32 -4.0, %v10438_v27  ;;  %v1785_v21 = vsel %vm1772_vm1, %v1766_v24, %v10483_v39  ;;  %v7911_v40 = vsel %vm1712_vm3, 1.0, %v16480_v13 }
 0x568   : > { %v7790_v5 = vsel %vm1262_vm7, 1.0, %v16480_v13  ;;  %16498 = vst [vmem:[#allocation83_spill] sm:$0xff] %v10483_v39  ;;  %v7910_v18 = vsel %vm10466_vm4, 1.0, %v16480_v13  ;;  %vm2173_vm6 = vcmp.lt.f32.partialorder %v2157_v2, 0.5  ;;  %v10515_v3 = vsel %vm1315_vm15, %v1302_v20, 0.0 }
 0x569   : > { %v1703_v35 = vand.u32 2147483647, %v7902_v23  ;;  %v1310_v30 = vmul.f32 %v7790_v5, %v10278_v10  ;;  %v7912_v23 = vsel %vm1713_vm0, 1.0, %v16480_v13  ;;  %16500 = vst [vmem:[#allocation85_spill] sm:$0xff] %v10515_v3  ;;  %v1759_v2 = vmul.f32 %v7910_v18, %v10220_v12 }
 0x56a   : > { %v1761_v25 = vmul.f32 %v7912_v23, %v10234_v51  ;;  %v10518_v23 = vmul.f32 %v8038_v62, %v10220_v12  ;;  %v8040_v62 = vsel %vm2173_vm6, 1.0, %v16480_v13  ;;  %v7897_v6 = vadd.f32 -4.0, %v10316_v28 }
 0x56b   : > { %vm1719_vm14 = vcmp.lt.f32.partialorder %v1703_v35, 0.5  ;;  %v7783_v35 = vsel %vm1255_vm8, 1.0, %v16480_v13  ;;  %v10487_v50 = vsel %vm1315_vm15, %v1310_v30, 0.0  ;;  %v1304_v30 = vmul.f32 %v7784_v42, %v10234_v51 }
 0x56c   : > { %v7918_v17 = vsel %vm1719_vm14, 1.0, %v16480_v13  ;;  %16499 = vst [vmem:[#allocation84_spill] sm:$0xff] %v10487_v50  ;;  %v1303_v59 = vmul.f32 %v7783_v35, %v10227_v47  ;;  %v8028_v35 = vadd.f32 -8.0, %v10339_v22  ;;  %v2221_v4 = vmul.f32 %v8040_v62, %v10234_v51 }
 0x56d   : > { %v1767_v5 = vmul.f32 %v7918_v17, %v10278_v10  ;;  %v7898_v54 = vadd.f32 -4.0, %v10318_v26 }
 0x56e   : > { %v10479_v48 = vpop.f32.mrf.mxu1 }
 0x56f   : > { %16497 = vst [vmem:[#allocation82_spill] sm:$0xff] %v10479_v48  ;;  %v1786_v17 = vsel %vm1772_vm1, %v1767_v5, %v10487_v50  ;;  %v7903_v31 = vadd.f32 -4.0, %v10479_v48  ;;  %v8039_v5 = vsel %vm10475_vm5, 1.0, %v16480_v13  ;;  %v8031_v42 = vadd.f32 -8.0, %v10479_v48 }
 0x570   : > { %v8856_v1 = vpack.i.bf16 %v1785_v21, %v1786_v17  ;;  %v1760_v21 = vmul.f32 %v7911_v40, %v10227_v47  ;;  %vm1263_vm7 = vcmp.lt.f32.partialorder %v10479_v48, 1.5  ;;  %v10527_v40 = vsel %vm1315_vm15, %v1304_v30, 0.0 }
 0x571   : > { %v1704_v24 = vand.u32 2147483647, %v7903_v31  ;;  %16502 = vst [vmem:[#allocation87_spill] sm:$0xff] %v10527_v40  ;;  %v1780_v20 = vsel %vm1772_vm1, %v1761_v25, %v10527_v40  ;;  %v2160_v17 = vand.u32 2147483647, %v8027_v43  ;;  %v2220_v31 = vmul.f32 %v8039_v5, %v10227_v47 }
 0x572   : > { %8857 = vrot.lane.b32.xlu0 %v8856_v1, %s9556_s27  ;;  %v10523_v1 = vsel %vm1315_vm15, %v1303_v59, 0.0  ;;  %v7791_v30 = vsel %vm1263_vm7, 1.0, %v16480_v13  ;;  %v2164_v38 = vand.u32 2147483647, %v8031_v42  ;;  %vm1257_vm5 = vcmp.lt.f32.partialorder %v10316_v28, 1.5 }
 0x573   : > { %16501 = vst [vmem:[#allocation86_spill] sm:$0xff] %v10523_v1  ;;  %vm1720_vm8 = vcmp.lt.f32.partialorder %v1704_v24, 0.5  ;;  %v1779_v59 = vsel %vm1772_vm1, %v1760_v21, %v10523_v1  ;;  %v2161_v24 = vand.u32 2147483647, %v8028_v35  ;;  %v1311_v21 = vmul.f32 %v7791_v30, %v10285_v8 }
 0x574   : > { %v7919_v43 = vsel %vm1720_vm8, 1.0, %v16480_v13  ;;  %v8876_v14 = vpack.i.bf16 %v1779_v59, %v1780_v20  ;;  %vm2176_vm12 = vcmp.lt.f32.partialorder %v2160_v17, 0.5  ;;  %v7839_v20 = vadd.f32 -2.0, %v10479_v48 }
 0x575   : > { %v1768_v49 = vmul.f32 %v7919_v43, %v10285_v8  ;;  %vm2177_vm14 = vcmp.lt.f32.partialorder %v2161_v24, 0.5  ;;  %vm2180_vm4 = vcmp.lt.f32.partialorder %v2164_v38, 0.5  ;;  %v8043_v17 = vsel %vm2176_vm12, 1.0, %v16480_v13 }
 0x576   : > { %v10535_v15 = vpop.f32.mrf.mxu1  ;;  %vm1542_vm12 = vcmp.gt.f32.partialorder %v10326_v29, 1.5 }
 0x577   : > { %16503 = vst [vmem:[#allocation88_spill] sm:$0xff] %v10535_v15  ;;  %vm1264_vm9 = vcmp.lt.f32.partialorder %v10535_v15, 1.5  ;;  %v7904_v18 = vadd.f32 -4.0, %v10535_v15  ;;  %v8032_v25 = vadd.f32 -8.0, %v10535_v15  ;;  %v7840_v62 = vadd.f32 -2.0, %v10535_v15 }
 0x578   : > { %v7792_v5 = vsel %vm1264_vm9, 1.0, %v16480_v13 }
 0x579   : > { %v1705_v47 = vand.u32 2147483647, %v7904_v18  ;;  %v2165_v35 = vand.u32 2147483647, %v8032_v25  ;;  %v1312_v42 = vmul.f32 %v7792_v5, %v10294_v45  ;;  %v1698_v18 = vand.u32 2147483647, %v7897_v6 }
 0x57a   : > { %8877 = vrot.lane.b32.xlu0 %v8876_v14, %s9556_s27  ;;  %v10559_v14 = vsel %vm1315_vm15, %v1311_v21, 0.0  ;;  %v8047_v5 = vsel %vm2180_vm4, 1.0, %v16480_v13  ;;  %v1474_v21 = vand.u32 2147483647, %v7839_v20  ;;  %v1475_v51 = vand.u32 2147483647, %v7840_v62 }
 0x57b   : > { %vm1721_vm0 = vcmp.lt.f32.partialorder %v1705_v47, 0.5  ;;  %vm2181_vm3 = vcmp.lt.f32.partialorder %v2165_v35, 0.5  ;;  %16504 = vst [vmem:[#allocation89_spill] sm:$0xff] %v10559_v14  ;;  %v8044_v47 = vsel %vm2177_vm14, 1.0, %v16480_v13  ;;  %v10568_v25 = vsel %vm1315_vm15, %v1312_v42, 0.0 }
 0x57c   : > { %v7920_v59 = vsel %vm1721_vm0, 1.0, %v16480_v13  ;;  %v8048_v30 = vsel %vm2181_vm3, 1.0, %v16480_v13  ;;  %16506 = vst [vmem:[#allocation91_spill] sm:$0xff] %v10568_v25  ;;  %v1787_v6 = vsel %vm1772_vm1, %v1768_v49, %v10559_v14  ;;  %vm10583_vm6 = vcmp.lt.f32.partialorder %v1698_v18, 0.5 }
 0x57d   : > { %v1769_v24 = vmul.f32 %v7920_v59, %v10294_v45  ;;  %v2229_v43 = vmul.f32 %v8048_v30, %v10294_v45  ;;  %v2225_v20 = vmul.f32 %v8044_v47, %v10264_v44  ;;  %v2224_v62 = vmul.f32 %v8043_v17, %v10255_v57 }
 0x57e   : > { %v10564_v38 = vpop.f32.mrf.mxu1  ;;  %v10598_v18 = vsel %vm2232_vm13, %v10518_v23, %v10515_v3  ;;  %vm1491_vm7 = vcmp.lt.f32.partialorder %v1475_v51, 0.5  ;;  %vm1490_vm8 = vcmp.lt.f32.partialorder %v1474_v21, 0.5  ;;  %v10613_v17 = vsel %vm2232_vm13, %v2220_v31, %v10523_v1 }
 0x57f   : > { %16505 = vst [vmem:[#allocation90_spill] sm:$0xff] %v10564_v38  ;;  %v1788_v35 = vsel %vm1772_vm1, %v1769_v24, %v10568_v25  ;;  %v2248_v59 = vsel %vm2232_vm13, %v2229_v43, %v10568_v25  ;;  %v7905_v30 = vadd.f32 -4.0, %v10564_v38  ;;  %v2228_v24 = vmul.f32 %v8047_v5, %v10285_v8 }
 0x580   : > { %v8861_v42 = vpack.i.bf16 %v1787_v6, %v1788_v35  ;;  %v8886_v34 = vpack.i.bf16 %v2248_v59, %v10421_v55  ;;  %v7837_v55 = vadd.f32 -2.0, %v10370_v7  ;;  %v10603_v43 = vsel %vm1772_vm1, %v1759_v2, %v10515_v3 }
 0x581   : > { %v1706_v0 = vand.u32 2147483647, %v7905_v30  ;;  %vm1265_vm9 = vcmp.lt.f32.partialorder %v10564_v38, 1.5  ;;  %vm1258_vm14 = vcmp.lt.f32.partialorder %v10318_v26, 1.5  ;;  %v7785_v51 = vsel %vm1257_vm5, 1.0, %v16480_v13 }
 0x582   : > { %8862 = vrot.lane.b32.xlu2 %v8861_v42, %s9556_s27  ;;  %8887 = vrot.lane.b32.xlu0 %v8886_v34, %s9556_s27  ;;  %v10608_v34 = vsel %vm2232_vm13, %v2221_v4, %v10527_v40  ;;  %v7913_v4 = vsel %vm10583_vm6, 1.0, %v16480_v13  ;;  %v2244_v23 = vsel %vm2232_vm13, %v2225_v20, %v10378_v19  ;;  %v2247_v2 = vsel %vm2232_vm13, %v2228_v24, %v10559_v14 }
 0x583   : > { %vm1722_vm0 = vcmp.lt.f32.partialorder %v1706_v0, 0.5  ;;  %v1699_v31 = vand.u32 2147483647, %v7898_v54  ;;  %v2243_v6 = vsel %vm2232_vm13, %v2224_v62, %v10374_v63  ;;  %v7856_v5 = vsel %vm1491_vm7, 1.0, %v16480_v13 }
 0x584   : > { %v7855_v21 = vsel %vm1490_vm8, 1.0, %v16480_v13  ;;  %v1472_v35 = vand.u32 2147483647, %v7837_v55  ;;  %v7793_v59 = vsel %vm1265_vm9, 1.0, %v16480_v13  ;;  %v8901_v54 = vpack.i.bf16 %v2243_v6, %v2244_v23 }
 0x585   : > { %v8891_v42 = vpack.i.bf16 %v2247_v2, %v10411_v58  ;;  %v7921_v20 = vsel %vm1722_vm0, 1.0, %v16480_v13  ;;  %v1539_v62 = vmul.f32 %v7856_v5, %v10294_v45  ;;  %v7835_v55 = vadd.f32 -2.0, %v10320_v11 }
 0x586   : > { %v10630_v47 = vpop.f32.mrf.mxu1  ;;  %v1313_v19 = vmul.f32 %v7793_v59, %v10301_v36  ;;  %v1538_v58 = vmul.f32 %v7855_v21, %v10285_v8  ;;  %vm1715_vm4 = vcmp.lt.f32.partialorder %v1699_v31, 0.5  ;;  %v1770_v2 = vmul.f32 %v7921_v20, %v10301_v36 }
 0x587   : > { %16509 = vst [vmem:[#allocation92_spill] sm:$0xff] %v10630_v47  ;;  %vm1266_vm3 = vcmp.lt.f32.partialorder %v10630_v47, 1.5  ;;  %v7906_v30 = vadd.f32 -4.0, %v10630_v47  ;;  %v8034_v0 = vadd.f32 -8.0, %v10630_v47  ;;  %vm1488_vm6 = vcmp.lt.f32.partialorder %v1472_v35, 0.5 }
 0x588   : > { %v7794_v49 = vsel %vm1266_vm3, 1.0, %v16480_v13  ;;  %v8033_v6 = vadd.f32 -8.0, %v10564_v38  ;;  %v7969_v59 = vadd.f32 -6.0, %v10564_v38  ;;  %v1558_v31 = vsel %vm1542_vm12, %v1539_v62, %v10568_v25 }
 0x589   : > { %v1707_v24 = vand.u32 2147483647, %v7906_v30  ;;  %v2167_v40 = vand.u32 2147483647, %v8034_v0  ;;  %v1314_v23 = vmul.f32 %v7794_v49, %v10308_v37  ;;  %v7786_v30 = vsel %vm1258_vm14, 1.0, %v16480_v13 }
 0x58a   : > { %8902 = vrot.lane.b32.xlu0 %v8901_v54, %s9556_s27  ;;  %8892 = vrot.lane.b32.xlu2 %v8891_v42, %s9556_s27  ;;  %v7914_v21 = vsel %vm1715_vm4, 1.0, %v16480_v13  ;;  %v1470_v35 = vand.u32 2147483647, %v7835_v55  ;;  %v10665_v54 = vsel %vm1315_vm15, %v1313_v19, 0.0  ;;  %v7853_v49 = vsel %vm1488_vm6, 1.0, %v16480_v13 }
 0x58b   : > { %vm1723_vm5 = vcmp.lt.f32.partialorder %v1707_v24, 0.5  ;;  %vm2183_vm7 = vcmp.lt.f32.partialorder %v2167_v40, 0.5  ;;  %16510 = vst [vmem:[#allocation93_spill] sm:$0xff] %v10665_v54  ;;  %v10669_v42 = vsel %vm1315_vm15, %v1314_v23, 0.0  ;;  %v1557_v40 = vsel %vm1542_vm12, %v1538_v58, %v10559_v14 }
 0x58c   : > { %v7922_v5 = vsel %vm1723_vm5, 1.0, %v16480_v13  ;;  %16511 = vst [vmem:[#allocation94_spill] sm:$0xff] %v10669_v42  ;;  %v1789_v20 = vsel %vm1772_vm1, %v1770_v2, %v10665_v54  ;;  %v8050_v19 = vsel %vm2183_vm7, 1.0, %v16480_v13  ;;  %v2166_v62 = vand.u32 2147483647, %v8033_v6 }
 0x58d   : > { %v1771_v0 = vmul.f32 %v7922_v5, %v10308_v37  ;;  %v8911_v23 = vpack.i.bf16 %v10608_v34, %v1558_v31  ;;  %v1306_v5 = vmul.f32 %v7786_v30, %v10248_v56  ;;  %v1936_v11 = vand.u32 2147483647, %v7969_v59 }
 0x58e   : > { %v8916_v58 = vpack.i.bf16 %v10613_v17, %v1557_v40  ;;  %v1305_v1 = vmul.f32 %v7785_v51, %v10241_v52  ;;  %v1763_v25 = vmul.f32 %v7914_v21, %v10248_v56  ;;  %v1536_v2 = vmul.f32 %v7853_v49, %v10271_v16 }
 0x58f   : > { %v1790_v24 = vsel %vm1772_vm1, %v1771_v0, %v10669_v42  ;;  %v1762_v6 = vmul.f32 %v7913_v4, %v10241_v52  ;;  %v2231_v0 = vmul.f32 %v8050_v19, %v10308_v37  ;;  %v7833_v34 = vadd.f32 -2.0, %v10316_v28 }
 0x590   : > { %v8866_v55 = vpack.i.bf16 %v1789_v20, %v1790_v24  ;;  %v10694_v30 = vadd.f32 -6.0, %v10289_v61  ;;  %vm2182_vm8 = vcmp.lt.f32.partialorder %v2166_v62, 0.5  ;;  %vm1486_vm9 = vcmp.lt.f32.partialorder %v1470_v35, 0.5 }
 0x591   : > { %v8030_v17 = vadd.f32 -8.0, %v10438_v27  ;;  %v7965_v51 = vadd.f32 -6.0, %v10370_v7  ;;  %v10701_v59 = vsel %vm1315_vm15, %v1306_v5, 0.0  ;;  %vm1952_vm14 = vcmp.lt.f32.partialorder %v1936_v11, 0.5 }
 0x592   : > { %8867 = vrot.lane.b32.xlu1 %v8866_v55, %s9556_s27  ;;  %8912 = vrot.lane.b32.xlu0 %v8911_v23, %s9556_s27  ;;  %16512 = vst [vmem:[#allocation95_spill] sm:$0xff] %v10701_v59  ;;  %v7842_v4 = vadd.f32 -2.0, %v10630_v47  ;;  %v8025_v31 = vadd.f32 -8.0, %v10316_v28  ;;  %v10707_v21 = vsel %vm1315_vm15, %v1305_v1, 0.0  ;;  %v1782_v35 = vsel %vm1772_vm1, %v1763_v25, %v10701_v59 }
 0x593   : > { %8917 = vrot.lane.b32.xlu2 %v8916_v58, %s9556_s27  ;;  %16513 = vst [vmem:[#allocation96_spill] sm:$0xff] %v10707_v21  ;;  %v1555_v40 = vsel %vm1542_vm12, %v1536_v2, %v10483_v39  ;;  %vm2002_vm0 = vcmp.gt.f32.partialorder %v10326_v29, 5.5  ;;  %v8029_v11 = vadd.f32 -8.0, %v10370_v7  ;;  %v2250_v49 = vsel %vm2232_vm13, %v2231_v0, %v10669_v42 }
 0x594   : > { %v8049_v20 = vsel %vm2182_vm8, 1.0, %v16480_v13  ;;  %v7851_v1 = vsel %vm1486_vm9, 1.0, %v16480_v13  ;;  %v8026_v24 = vadd.f32 -8.0, %v10318_v26  ;;  %v1781_v25 = vsel %vm1772_vm1, %v1762_v6, %v10707_v21 }
 0x595   : > { %v7985_v19 = vsel %vm1952_vm14, 1.0, %v16480_v13  ;;  %v2163_v62 = vand.u32 2147483647, %v8030_v17  ;;  %v1932_v55 = vand.u32 2147483647, %v7965_v51  ;;  %v8871_v23 = vpack.i.bf16 %v1781_v25, %v1782_v35 }
 0x596   : > { %v8921_v5 = vpack.i.bf16 %v1555_v40, %v10598_v18  ;;  %v1468_v58 = vand.u32 2147483647, %v7833_v34  ;;  %v1477_v2 = vand.u32 2147483647, %v7842_v4  ;;  %v8926_v0 = vpack.i.bf16 %v2250_v49, %v10603_v43 }
 0x597   : > { %v2230_v7 = vmul.f32 %v8049_v20, %v10301_v36  ;;  %v1534_v61 = vmul.f32 %v7851_v1, %v10255_v57  ;;  %v2162_v44 = vand.u32 2147483647, %v8029_v11  ;;  %v2000_v6 = vmul.f32 %v7985_v19, %v10301_v36 }
 0x598   : > { %v2237_v18 = vsel %vm2232_vm13, %v10447_v33, %v10436_v60  ;;  %v2159_v34 = vand.u32 2147483647, %v8026_v24  ;;  %v16514_v17 = vand.u32 2147483647, %v10450_v53  ;;  %vm2179_vm3 = vcmp.lt.f32.partialorder %v2163_v62, 0.5 }
 0x599   : > { %vm1948_vm4 = vcmp.lt.f32.partialorder %v1932_v55, 0.5  ;;  %v7841_v51 = vadd.f32 -2.0, %v10564_v38  ;;  %v7962_v4 = vadd.f32 -6.0, %v10318_v26  ;;  %vm1484_vm5 = vcmp.lt.f32.partialorder %v1468_v58, 0.5 }
 0x59a   : > { %8872 = vrot.lane.b32.xlu1 %v8871_v23, %s9556_s27  ;;  %8922 = vrot.lane.b32.xlu0 %v8921_v5, %s9556_s27  ;;  %vm10740_vm1 = vcmp.lt.f32.partialorder %v16514_v17, 0.5  ;;  %vm1493_vm6 = vcmp.lt.f32.partialorder %v1477_v2, 0.5  ;;  %v7967_v35 = vadd.f32 -6.0, %v10479_v48  ;;  %v1926_v33 = vand.u32 2147483647, %v10694_v30 }
 0x59b   : > { %8927 = vrot.lane.b32.xlu2 %v8926_v0, %s9556_s27  ;;  %v2249_v53 = vsel %vm2232_vm13, %v2230_v7, %v10665_v54  ;;  %v1553_v40 = vsel %vm1542_vm12, %v1534_v61, %v10374_v63  ;;  %vm2178_vm7 = vcmp.lt.f32.partialorder %v2162_v44, 0.5  ;;  %v2158_v11 = vand.u32 2147483647, %v8025_v31 }
 0x59c   : > { %v2019_v49 = vsel %vm2002_vm0, %v2000_v6, %v10665_v54  ;;  %v8046_v20 = vsel %vm2179_vm3, 1.0, %v16480_v13  ;;  %v7981_v1 = vsel %vm1948_vm4, 1.0, %v16480_v13  ;;  %vm2175_vm8 = vcmp.lt.f32.partialorder %v2159_v34, 0.5 }
 0x59d   : > { %v7849_v30 = vsel %vm1484_vm5, 1.0, %v16480_v13  ;;  %v7858_v24 = vsel %vm1493_vm6, 1.0, %v16480_v13  ;;  %v1476_v7 = vand.u32 2147483647, %v7841_v51  ;;  %v1929_v25 = vand.u32 2147483647, %v7962_v4 }
 0x59e   : > { %v8881_v19 = vpack.i.bf16 %v2249_v53, %v10444_v46  ;;  %v8941_v44 = vpack.i.bf16 %v1553_v40, %v10431_v9  ;;  %v8045_v61 = vsel %vm2178_vm7, 1.0, %v16480_v13  ;;  %v1934_v31 = vand.u32 2147483647, %v7967_v35 }
 0x59f   : > { %v8931_v62 = vpack.i.bf16 %v2237_v18, %v2019_v49  ;;  %v2227_v55 = vmul.f32 %v8046_v20, %v10278_v10  ;;  %v1996_v23 = vmul.f32 %v7981_v1, %v10271_v16  ;;  %v8042_v5 = vsel %vm2175_vm8, 1.0, %v16480_v13 }
 0x5a0   : > { %v1532_v58 = vmul.f32 %v7849_v30, %v10241_v52  ;;  %v1541_v46 = vmul.f32 %v7858_v24, %v10308_v37  ;;  %vm10772_vm9 = vcmp.lt.f32.partialorder %v2158_v11, 0.5  ;;  %v7846_v2 = vsel %vm10740_vm1, 1.0, %v16480_v13 }
 0x5a1   : > { %v2226_v0 = vmul.f32 %v8045_v61, %v10271_v16  ;;  %vm1492_vm14 = vcmp.lt.f32.partialorder %v1476_v7, 0.5  ;;  %vm1945_vm3 = vcmp.lt.f32.partialorder %v1929_v25, 0.5  ;;  %v7968_v6 = vadd.f32 -6.0, %v10535_v15 }
 0x5a2   : > { %8882 = vrot.lane.b32.xlu1 %v8881_v19, %s9556_s27  ;;  %8942 = vrot.lane.b32.xlu0 %v8941_v44, %s9556_s27  ;;  %v2223_v18 = vmul.f32 %v8042_v5, %v10248_v56  ;;  %vm1950_vm4 = vcmp.lt.f32.partialorder %v1934_v31, 0.5  ;;  %v7964_v34 = vadd.f32 -6.0, %v10339_v22  ;;  %vm10784_vm5 = vcmp.lt.f32.partialorder %v1926_v33, 0.5 }
 0x5a3   : > { %8932 = vrot.lane.b32.xlu2 %v8931_v62, %s9556_s27  ;;  %v2246_v43 = vsel %vm2232_vm13, %v2227_v55, %v10487_v50  ;;  %v2015_v51 = vsel %vm2002_vm0, %v1996_v23, %v10483_v39  ;;  %v7836_v4 = vadd.f32 -2.0, %v10339_v22  ;;  %v7832_v35 = vadd.f32 -2.0, %v10314_v32 }
 0x5a4   : > { %v1560_v53 = vsel %vm1542_vm12, %v1541_v46, %v10669_v42  ;;  %v7857_v33 = vsel %vm1492_vm14, 1.0, %v16480_v13  ;;  %v8041_v40 = vsel %vm10772_vm9, 1.0, %v16480_v13  ;;  %v7978_v11 = vsel %vm1945_vm3, 1.0, %v16480_v13 }
 0x5a5   : > { %v2245_v49 = vsel %vm2232_vm13, %v2226_v0, %v10483_v39  ;;  %v1551_v20 = vsel %vm1542_vm12, %v1532_v58, %v10707_v21  ;;  %v7983_v1 = vsel %vm1950_vm4, 1.0, %v16480_v13  ;;  %v1935_v30 = vand.u32 2147483647, %v7968_v6  ;;  %v16521_v58 = vld [vmem:[#allocation77_spill] sm:$0xff]  ;;  %v16522_v0 = vld [vmem:[#allocation76_spill] sm:$0xff]  ;;  %v16523_v6 = vld [vmem:[#allocation79_spill] sm:$0xff] }
 0x5a6   : > { %v8896_v24 = vpack.i.bf16 %v2245_v49, %v2246_v43  ;;  %v8966_v7 = vpack.i.bf16 %v2015_v51, %v1551_v20  ;;  %v2242_v25 = vsel %vm2232_vm13, %v2223_v18, %v10701_v59  ;;  %v1931_v19 = vand.u32 2147483647, %v7964_v34  ;;  %v16524_v43 = vld [vmem:[#allocation57_spill] sm:$0xff] }
 0x5a7   : > { %v8946_v44 = vpack.i.bf16 %v2242_v25, %v1560_v53  ;;  %v1540_v61 = vmul.f32 %v7857_v33, %v10301_v36  ;;  %v1993_v31 = vmul.f32 %v7978_v11, %v10248_v56  ;;  %v1471_v62 = vand.u32 2147483647, %v7836_v4 }
 0x5a8   : > { %v1529_v55 = vmul.f32 %v7846_v2, %v10220_v12  ;;  %v1998_v23 = vmul.f32 %v7983_v1, %v10285_v8  ;;  %v1467_v5 = vand.u32 2147483647, %v7832_v35  ;;  %v1526_v46 = vmul.f32 %v16521_v58, %v10197_v41  ;;  %v16525_v1 = vld [vmem:[#allocation56_spill] sm:$0xff] }
 0x5a9   : > { %v2222_v9 = vmul.f32 %v8041_v40, %v10241_v52  ;;  %v2235_v18 = vsel %vm2232_vm13, %v16523_v6, %v16522_v0  ;;  %vm1951_vm1 = vcmp.lt.f32.partialorder %v1935_v30, 0.5  ;;  %v7970_v34 = vadd.f32 -6.0, %v10630_v47 }
 0x5aa   : > { %8897 = vrot.lane.b32.xlu1 %v8896_v24, %s9556_s27  ;;  %8967 = vrot.lane.b32.xlu0 %v8966_v7, %s9556_s27  ;;  %vm1947_vm6 = vcmp.lt.f32.partialorder %v1931_v19, 0.5  ;;  %v7975_v2 = vsel %vm10784_vm5, 1.0, %v16480_v13  ;;  %v7829_v51 = vadd.f32 -2.0, %v16524_v43  ;;  %v7961_v4 = vadd.f32 -6.0, %v10316_v28 }
 0x5ab   : > { %8947 = vrot.lane.b32.xlu2 %v8946_v44, %s9556_s27  ;;  %v1559_v35 = vsel %vm1542_vm12, %v1540_v61, %v10665_v54  ;;  %v2012_v53 = vsel %vm2002_vm0, %v1993_v31, %v10701_v59  ;;  %vm1487_vm7 = vcmp.lt.f32.partialorder %v1471_v62, 0.5  ;;  %v7838_v33 = vadd.f32 -2.0, %v10438_v27 }
 0x5ac   : > { %v1548_v17 = vsel %vm1542_vm12, %v1529_v55, %v10515_v3  ;;  %v2017_v40 = vsel %vm2002_vm0, %v1998_v23, %v10559_v14  ;;  %v7984_v11 = vsel %vm1951_vm1, 1.0, %v16480_v13  ;;  %vm1483_vm8 = vcmp.lt.f32.partialorder %v1467_v5, 0.5  ;;  %v16526_v23 = vld [vmem:[#allocation63_spill] sm:$0xff] }
 0x5ad   : > { %v2241_v49 = vsel %vm2232_vm13, %v2222_v9, %v10707_v21  ;;  %v7980_v20 = vsel %vm1947_vm6, 1.0, %v16480_v13  ;;  %v1990_v30 = vmul.f32 %v7975_v2, %v16525_v1  ;;  %v1937_v24 = vand.u32 2147483647, %v7970_v34  ;;  %v16528_v2 = vld [vmem:[#allocation58_spill] sm:$0xff] }
 0x5ae   : > { %v8906_v7 = vpack.i.bf16 %v2241_v49, %v1559_v35  ;;  %v8981_v25 = vpack.i.bf16 %v2012_v53, %v1548_v17  ;;  %v7852_v19 = vsel %vm1487_vm7, 1.0, %v16480_v13  ;;  %v1928_v44 = vand.u32 2147483647, %v7961_v4  ;;  %v16529_v53 = vld [vmem:[#allocation91_spill] sm:$0xff] }
 0x5af   : > { %v8951_v61 = vpack.i.bf16 %v2235_v18, %v2017_v40  ;;  %v1999_v31 = vmul.f32 %v7984_v11, %v10294_v45  ;;  %v7848_v62 = vsel %vm1483_vm8, 1.0, %v16480_v13  ;;  %v1473_v55 = vand.u32 2147483647, %v7838_v33  ;;  %v16527_v18 = vld [vmem:[#allocation62_spill] sm:$0xff]  ;;  %v16531_v11 = vld [vmem:[#allocation75_spill] sm:$0xff] }
 0x5b0   : > { %v1995_v5 = vmul.f32 %v7980_v20, %v16526_v23  ;;  %v1464_v58 = vand.u32 2147483647, %v7829_v51  ;;  %v1535_v9 = vmul.f32 %v7852_v19, %v16526_v23  ;;  %vm1953_vm13 = vcmp.lt.f32.partialorder %v1937_v24, 0.5  ;;  %v16530_v33 = vld [vmem:[#allocation86_spill] sm:$0xff] }
 0x5b1   : > { %v7966_v6 = vadd.f32 -6.0, %v10438_v27  ;;  %v7958_v34 = vadd.f32 -6.0, %v16527_v18  ;;  %v1531_v4 = vmul.f32 %v7848_v62, %v16528_v2  ;;  %v1545_v35 = vsel %vm1542_vm12, %v1526_v46, %v16522_v0 }
 0x5b2   : > { %8907 = vrot.lane.b32.xlu1 %v8906_v7, %s9556_s27  ;;  %8982 = vrot.lane.b32.xlu0 %v8981_v25, %s9556_s27  ;;  %vm1944_vm9 = vcmp.lt.f32.partialorder %v1928_v44, 0.5  ;;  %v2018_v51 = vsel %vm2002_vm0, %v1999_v31, %v16529_v53  ;;  %v2009_v17 = vsel %vm2002_vm0, %v1990_v30, %v16530_v33  ;;  %vm1489_vm14 = vcmp.lt.f32.partialorder %v1473_v55, 0.5  ;;  %v16532_v44 = vld [vmem:[#allocation87_spill] sm:$0xff] }
 0x5b3   : > { %8952 = vrot.lane.b32.xlu2 %v8951_v61, %s9556_s27  ;;  %v7834_v40 = vadd.f32 -2.0, %v10318_v26  ;;  %v2014_v49 = vsel %vm2002_vm0, %v1995_v5, %v16531_v11  ;;  %v7986_v20 = vsel %vm1953_vm13, 1.0, %v16480_v13  ;;  %vm1480_vm3 = vcmp.lt.f32.partialorder %v1464_v58, 0.5 }
 0x5b4   : > { %v7957_v46 = vadd.f32 -6.0, %v16524_v43  ;;  %v1554_v24 = vsel %vm1542_vm12, %v1535_v9, %v16531_v11  ;;  %v7977_v7 = vsel %vm1944_vm9, 1.0, %v16480_v13  ;;  %v1933_v25 = vand.u32 2147483647, %v7966_v6 }
 0x5b5   : > { %v1925_v30 = vand.u32 2147483647, %v7958_v34  ;;  %v8936_v19 = vpack.i.bf16 %v2018_v51, %v1554_v24  ;;  %v1550_v61 = vsel %vm1542_vm12, %v1531_v4, %v16532_v44  ;;  %v8996_v31 = vpack.i.bf16 %v2009_v17, %v1545_v35  ;;  %v16533_v4 = vld [vmem:[#allocation71_spill] sm:$0xff]  ;;  %v16534_v51 = vld [vmem:[#allocation53_spill] sm:$0xff] }
 0x5b6   : > { %v7854_v62 = vsel %vm1489_vm14, 1.0, %v16480_v13  ;;  %v8971_v55 = vpack.i.bf16 %v2014_v49, %v1550_v61  ;;  %v2001_v5 = vmul.f32 %v7986_v20, %v10308_v37  ;;  %v7845_v58 = vsel %vm1480_vm3, 1.0, %v16480_v13  ;;  %v16535_v49 = vld [vmem:[#allocation67_spill] sm:$0xff] }
 0x5b7   : > { %v1469_v39 = vand.u32 2147483647, %v7834_v40  ;;  %v1992_v9 = vmul.f32 %v7977_v7, %v10241_v52  ;;  %v1924_v6 = vand.u32 2147483647, %v7957_v46  ;;  %v1537_v34 = vmul.f32 %v7854_v62, %v10278_v10 }
 0x5b8   : > { %vm1949_vm4 = vcmp.lt.f32.partialorder %v1933_v25, 0.5  ;;  %v7963_v35 = vadd.f32 -6.0, %v16533_v4  ;;  %v1528_v17 = vmul.f32 %v7845_v58, %v16534_v51  ;;  %vm1941_vm5 = vcmp.lt.f32.partialorder %v1925_v30, 0.5 }
 0x5b9   : > { %v2020_v40 = vsel %vm2002_vm0, %v2001_v5, %v10669_v42  ;;  %vm1485_vm1 = vcmp.lt.f32.partialorder %v1469_v39, 0.5  ;;  %v7831_v20 = vadd.f32 -2.0, %v16535_v49  ;;  %v2011_v46 = vsel %vm2002_vm0, %v1992_v9, %v10707_v21 }
 0x5ba   : > { %8937 = vrot.lane.b32.xlu1 %v8936_v19, %s9556_s27  ;;  %8997 = vrot.lane.b32.xlu0 %v8996_v31, %s9556_s27  ;;  %v7982_v24 = vsel %vm1949_vm4, 1.0, %v16480_v13  ;;  %vm1940_vm6 = vcmp.lt.f32.partialorder %v1924_v6, 0.5  ;;  %v1556_v7 = vsel %vm1542_vm12, %v1537_v34, %v10487_v50  ;;  %v7974_v25 = vsel %vm1941_vm5, 1.0, %v16480_v13 }
 0x5bb   : > { %8972 = vrot.lane.b32.xlu2 %v8971_v55, %s9556_s27  ;;  %v1930_v30 = vand.u32 2147483647, %v7963_v35  ;;  %v8956_v19 = vpack.i.bf16 %v2020_v40, %v1556_v7  ;;  %v1547_v39 = vsel %vm1542_vm12, %v1528_v17, %v10436_v60  ;;  %v7850_v61 = vsel %vm1485_vm1, 1.0, %v16480_v13  ;;  %v16536_v17 = vld [vmem:[#allocation54_spill] sm:$0xff] }
 0x5bc   : > { %v8986_v31 = vpack.i.bf16 %v2011_v46, %v1547_v39  ;;  %v1997_v62 = vmul.f32 %v7982_v24, %v10278_v10  ;;  %v7973_v55 = vsel %vm1940_vm6, 1.0, %v16480_v13  ;;  %v1466_v5 = vand.u32 2147483647, %v7831_v20  ;;  %v16537_v39 = vld [vmem:[#allocation50_spill] sm:$0xff] }
 0x5bd   : > { %v1989_v58 = vmul.f32 %v7974_v25, %v10220_v12  ;;  %v1533_v9 = vmul.f32 %v7850_v61, %v10248_v56  ;;  %vm1946_vm7 = vcmp.lt.f32.partialorder %v1930_v30, 0.5  ;;  %v7960_v6 = vadd.f32 -6.0, %v10314_v32 }
 0x5be   : > { %v1988_v34 = vmul.f32 %v7973_v55, %v16534_v51  ;;  %v2016_v35 = vsel %vm2002_vm0, %v1997_v62, %v10487_v50  ;;  %vm1482_vm8 = vcmp.lt.f32.partialorder %v1466_v5, 0.5  ;;  %v7828_v40 = vadd.f32 -2.0, %v16536_v17 }
 0x5bf   : > { %v2008_v20 = vsel %vm2002_vm0, %v1989_v58, %v10515_v3  ;;  %v7979_v46 = vsel %vm1946_vm7, 1.0, %v16480_v13  ;;  %v1552_v24 = vsel %vm1542_vm12, %v1533_v9, %v10701_v59  ;;  %v1927_v7 = vand.u32 2147483647, %v7960_v6 }
 0x5c0   : > { %v8961_v25 = vpack.i.bf16 %v2016_v35, %v1552_v24  ;;  %v2007_v30 = vsel %vm2002_vm0, %v1988_v34, %v10436_v60  ;;  %v7955_v61 = vadd.f32 -6.0, %v16537_v39  ;;  %v1994_v62 = vmul.f32 %v7979_v46, %v10255_v57 }
 0x5c1   : > { %v1463_v55 = vand.u32 2147483647, %v7828_v40  ;;  %v7956_v5 = vadd.f32 -6.0, %v16536_v17  ;;  %vm1943_vm13 = vcmp.lt.f32.partialorder %v1927_v7, 0.5  ;;  %v7810_v40 = vadd.f32 -1.0, %v10630_v47 }
 0x5c2   : > { %8957 = vrot.lane.b32.xlu1 %v8956_v19, %s9556_s27  ;;  %v7847_v19 = vsel %vm1482_vm8, 1.0, %v16480_v13  ;;  %v2013_v9 = vsel %vm2002_vm0, %v1994_v62, %v10374_v63  ;;  %v1922_v6 = vand.u32 2147483647, %v7955_v61  ;;  %v7976_v35 = vsel %vm1943_vm13, 1.0, %v16480_v13  ;;  %v16538_v62 = vld [vmem:[#allocation52_spill] sm:$0xff] }
 0x5c3   : > { %8987 = vrot.lane.b32.xlu2 %v8986_v31, %s9556_s27  ;;  %v9001_v31 = vpack.i.bf16 %v2007_v30, %v2008_v20  ;;  %v1530_v58 = vmul.f32 %v7847_v19, %v16525_v1  ;;  %vm1479_vm9 = vcmp.lt.f32.partialorder %v1463_v55, 0.5  ;;  %v1923_v34 = vand.u32 2147483647, %v7956_v5  ;;  %v10956_v5 = vpop.permute.xlu2 %8852 }
 0x5c4   : > { %v7873_v20 = vadd.f32 -3.0, %v10564_v38  ;;  %v7844_v7 = vsel %vm1479_vm9, 1.0, %v16480_v13  ;;  %vm1938_vm14 = vcmp.lt.f32.partialorder %v1922_v6, 0.5  ;;  %v7874_v30 = vadd.f32 -3.0, %v10630_v47  ;;  %16539 = vst [vmem:[#allocation77_spill] sm:$0xff] %v10956_v5 }
 0x5c5   : > { %v1549_v46 = vsel %vm1542_vm12, %v1530_v58, %v16530_v33  ;;  %vm1939_vm3 = vcmp.lt.f32.partialorder %v1923_v34, 0.5  ;;  %v1347_v19 = vand.u32 2147483647, %v7810_v40  ;;  %v1527_v55 = vmul.f32 %v7844_v7, %v16538_v62  ;;  %v16541_v7 = vld [vmem:[#allocation78_spill] sm:$0xff] }
 0x5c6   : > { %v8976_v24 = vpack.i.bf16 %v2013_v9, %v1549_v46  ;;  %v1591_v61 = vand.u32 2147483647, %v7873_v20  ;;  %v7971_v58 = vsel %vm1938_vm14, 1.0, %v16480_v13  ;;  %v7972_v9 = vsel %vm1939_vm3, 1.0, %v16480_v13  ;;  %v16540_v46 = vld [vmem:[#allocation73_spill] sm:$0xff] }
 0x5c7   : > { %v1592_v34 = vand.u32 2147483647, %v7874_v30  ;;  %v7870_v40 = vadd.f32 -3.0, %v10438_v27  ;;  %vm1363_vm4 = vcmp.lt.f32.partialorder %v1347_v19, 0.5  ;;  %v7868_v38 = vadd.f32 -3.0, %v10339_v22 }
 0x5c8   : > { %vm1607_vm5 = vcmp.lt.f32.partialorder %v1591_v61, 0.5  ;;  %v1986_v5 = vmul.f32 %v7971_v58, %v10197_v41  ;;  %v7826_v30 = vsel %vm1363_vm4, 1.0, %v16480_v13  ;;  %v7866_v58 = vadd.f32 -3.0, %v10318_v26 }
 0x5c9   : > { %vm10973_vm1 = vcmp.lt.f32.partialorder %v1592_v34, 0.5  ;;  %v7889_v19 = vsel %vm1607_vm5, 1.0, %v16480_v13 }
 0x5ca   : > { %8962 = vrot.lane.b32.xlu1 %v8961_v25, %s9556_s27  ;;  %v1991_v25 = vmul.f32 %v7976_v35, %v16528_v2  ;;  %v7871_v35 = vadd.f32 -3.0, %v10479_v48  ;;  %v2005_v34 = vsel %vm2002_vm0, %v1986_v5, %v16522_v0 }
 0x5cb   : > { %9002 = vrot.lane.b32.xlu2 %v9001_v31, %s9556_s27  ;;  %v7872_v31 = vadd.f32 -3.0, %v10535_v15  ;;  %v1546_v15 = vsel %vm1542_vm12, %v1527_v55, %v16541_v7  ;;  %vm1657_vm12 = vcmp.gt.f32.partialorder %v10326_v29, 2.5 }
 0x5cc   : > { %v2010_v6 = vsel %vm2002_vm0, %v1991_v25, %v16532_v44  ;;  %v1987_v25 = vmul.f32 %v7972_v9, %v16538_v62  ;;  %v1589_v61 = vand.u32 2147483647, %v7871_v35  ;;  %v7865_v9 = vadd.f32 -3.0, %v10316_v28 }
 0x5cd   : > { %v1590_v20 = vand.u32 2147483647, %v7872_v31  ;;  %v8991_v47 = vpack.i.bf16 %v2010_v6, %v1546_v15  ;;  %v1588_v31 = vand.u32 2147483647, %v7870_v40  ;;  %v7867_v15 = vadd.f32 -3.0, %v16533_v4 }
 0x5ce   : > { %v1586_v6 = vand.u32 2147483647, %v7868_v38  ;;  %v1655_v35 = vmul.f32 %v7889_v19, %v10301_v36  ;;  %v1411_v38 = vmul.f32 %v7826_v30, %v10308_v37  ;;  %v7890_v40 = vsel %vm10973_vm1, 1.0, %v16480_v13 }
 0x5cf   : > { %vm1606_vm6 = vcmp.lt.f32.partialorder %v1590_v20, 0.5  ;;  %vm1605_vm7 = vcmp.lt.f32.partialorder %v1589_v61, 0.5  ;;  %vm1604_vm8 = vcmp.lt.f32.partialorder %v1588_v31, 0.5  ;;  %v1583_v19 = vand.u32 2147483647, %v7865_v9 }
 0x5d0   : > { %v7888_v20 = vsel %vm1606_vm6, 1.0, %v16480_v13  ;;  %v7863_v30 = vadd.f32 -3.0, %v16535_v49  ;;  %v1656_v48 = vmul.f32 %v7890_v40, %v10308_v37  ;;  %v11007_v61 = vsel %vm1657_vm12, %v1655_v35, %v10665_v54 }
 0x5d1   : > { %v7862_v31 = vadd.f32 -3.0, %v16527_v18  ;;  %vm1599_vm3 = vcmp.lt.f32.partialorder %v1583_v19, 0.5  ;;  %v7860_v54 = vadd.f32 -3.0, %v16536_v17 }
 0x5d2   : > { %8977 = vrot.lane.b32.xlu1 %v8976_v24, %s9556_s27  ;;  %v7869_v24 = vadd.f32 -3.0, %v16540_v46  ;;  %v1584_v46 = vand.u32 2147483647, %v7866_v58  ;;  %v7886_v58 = vsel %vm1604_vm8, 1.0, %v16480_v13  ;;  %v1581_v35 = vand.u32 2147483647, %v7863_v30 }
 0x5d3   : > { %v1580_v5 = vand.u32 2147483647, %v7862_v31 }
 0x5d4   : > { %v1587_v55 = vand.u32 2147483647, %v7869_v24  ;;  %v1585_v24 = vand.u32 2147483647, %v7867_v15  ;;  %v1654_v15 = vmul.f32 %v7888_v20, %v10294_v45  ;;  %vm1600_vm14 = vcmp.lt.f32.partialorder %v1584_v46, 0.5 }
 0x5d5   : > { %v11028_v20 = vsel %vm1657_vm12, %v1656_v48, %v10669_v42  ;;  %v7882_v48 = vsel %vm1600_vm14, 1.0, %v16480_v13  ;;  %vm1597_vm5 = vcmp.lt.f32.partialorder %v1581_v35, 0.5  ;;  %v7859_v42 = vadd.f32 -3.0, %v16537_v39 }
 0x5d6   : > { %vm10997_vm13 = vcmp.lt.f32.partialorder %v1587_v55, 0.5  ;;  %v11012_v55 = vsel %vm1315_vm15, %v1411_v38, 0.0  ;;  %vm1601_vm9 = vcmp.lt.f32.partialorder %v1585_v24, 0.5  ;;  %v7861_v38 = vadd.f32 -3.0, %v16524_v43 }
 0x5d7   : > { %v7885_v9 = vsel %vm10997_vm13, 1.0, %v16480_v13  ;;  %v11035_v46 = vsel %vm1657_vm12, %v1654_v15, %v16529_v53  ;;  %v1652_v24 = vmul.f32 %v7886_v58, %v10278_v10  ;;  %v7883_v19 = vsel %vm1601_vm9, 1.0, %v16480_v13  ;;  %v16547_v10 = vld [vmem:[#allocation83_spill] sm:$0xff] }
 0x5d8   : > { %v1579_v31 = vand.u32 2147483647, %v7861_v38  ;;  %v7990_v15 = vadd.f32 -7.0, %v16527_v18  ;;  %v1649_v53 = vmul.f32 %v7883_v19, %v10255_v57  ;;  %vm1596_vm1 = vcmp.lt.f32.partialorder %v1580_v5, 0.5 }
 0x5d9   : > { %v1578_v58 = vand.u32 2147483647, %v7860_v54  ;;  %v1648_v35 = vmul.f32 %v7882_v48, %v10248_v56  ;;  %v7879_v19 = vsel %vm1597_vm5, 1.0, %v16480_v13  ;;  %v7878_v48 = vsel %vm1596_vm1, 1.0, %v16480_v13 }
 0x5da   : > { %8992 = vrot.lane.b32.xlu1 %v8991_v47, %s9556_s27  ;;  %v2006_v47 = vsel %vm2002_vm0, %v1987_v25, %v16541_v7  ;;  %v7864_v25 = vadd.f32 -3.0, %v10314_v32  ;;  %vm1602_vm0 = vcmp.lt.f32.partialorder %v1586_v6, 0.5  ;;  %v7887_v6 = vsel %vm1605_vm7, 1.0, %v16480_v13 }
 0x5db   : > { %v9006_v36 = vpack.i.bf16 %v2005_v34, %v2006_v47  ;;  %v7884_v34 = vsel %vm1602_vm0, 1.0, %v16480_v13  ;;  %vm1595_vm6 = vcmp.lt.f32.partialorder %v1579_v31, 0.5  ;;  %vm1594_vm7 = vcmp.lt.f32.partialorder %v1578_v58, 0.5 }
 0x5dc   : > { %v10982_v27 = vpop.permute.xlu2 %8862  ;;  %v1582_v47 = vand.u32 2147483647, %v7864_v25  ;;  %v1651_v25 = vmul.f32 %v7885_v9, %v10271_v16  ;;  %v1650_v30 = vmul.f32 %v7884_v34, %v16526_v23  ;;  %v7991_v9 = vadd.f32 -7.0, %v16535_v49 }
 0x5dd   : > { %v1644_v58 = vmul.f32 %v7878_v48, %v10220_v12  ;;  %v7800_v48 = vadd.f32 -1.0, %v10314_v32  ;;  %vm2117_vm9 = vcmp.gt.f32.partialorder %v10326_v29, 6.5 }
 0x5de   : > { %vm1598_vm4 = vcmp.lt.f32.partialorder %v1582_v47, 0.5  ;;  %v11055_v47 = vsel %vm1657_vm12, %v1652_v24, %v10487_v50  ;;  %v11062_v54 = vsel %vm1657_vm12, %v1651_v25, %v16547_v10  ;;  %v11067_v5 = vsel %vm1657_vm12, %v1650_v30, %v16531_v11  ;;  %v16548_v24 = vld [vmem:[#allocation17_spill] sm:$0xff] }
 0x5df   : > { %v2040_v50 = vand.u32 2147483647, %v7990_v15  ;;  %v11077_v25 = vsel %vm1657_vm12, %v1649_v53, %v10374_v63  ;;  %v2041_v30 = vand.u32 2147483647, %v7991_v9  ;;  %v7989_v11 = vadd.f32 -7.0, %v16524_v43 }
 0x5e0   : > { %v7988_v53 = vadd.f32 -7.0, %v16536_v17  ;;  %v1645_v15 = vmul.f32 %v7879_v19, %v16525_v1  ;;  %v7877_v9 = vsel %vm1595_vm6, 1.0, %v16480_v13  ;;  %v1337_v23 = vand.u32 2147483647, %v7800_v48 }
 0x5e1   : > { %vm11103_vm13 = vcmp.lt.f32.partialorder %v2040_v50, 0.5  ;;  %vm2057_vm0 = vcmp.lt.f32.partialorder %v2041_v30, 0.5  ;;  %v2039_v19 = vand.u32 2147483647, %v7989_v11  ;;  %v1643_v50 = vmul.f32 %v7877_v9, %v16534_v51 }
 0x5e2   : > { %9007 = vrot.lane.b32.xlu1 %v9006_v36, %s9556_s27  ;;  %v1653_v36 = vmul.f32 %v7887_v6, %v10285_v8  ;;  %v7881_v6 = vsel %vm1599_vm3, 1.0, %v16480_v13  ;;  %v7799_v8 = vadd.f32 -1.0, %v16535_v49  ;;  %v2038_v37 = vand.u32 2147483647, %v7988_v53 }
 0x5e3   : > { %v1647_v38 = vmul.f32 %v7881_v6, %v10241_v52  ;;  %v1577_v6 = vand.u32 2147483647, %v7859_v42  ;;  %v11123_v11 = vsel %vm1657_vm12, %v1645_v15, %v16530_v33  ;;  %v11128_v30 = vsel %vm1657_vm12, %v1644_v58, %v10515_v3 }
 0x5e4   : > { %v11023_v40 = vpop.permute.xlu2 %8892  ;;  %v11050_v34 = vsel %vm1657_vm12, %v1653_v36, %v10559_v14  ;;  %v7880_v36 = vsel %vm1598_vm4, 1.0, %v16480_v13  ;;  %v7992_v14 = vadd.f32 -7.0, %v10314_v32  ;;  %v11108_v45 = vpop.permute.xlu0 %8857  ;;  %16556 = vst [vmem:[#allocation97_spill] sm:$0xff] %v11123_v11  ;;  %v8007_v53 = vsel %vm2057_vm0, 1.0, %v16480_v13 }
 0x5e5   : > { %16546 = vst [vmem:[#allocation79_spill] sm:$0xff] %v11023_v40  ;;  %v11090_v42 = vsel %vm1657_vm12, %v1647_v38, %v10707_v21  ;;  %v1646_v31 = vmul.f32 %v7880_v36, %v16528_v2  ;;  %vm11099_vm8 = vcmp.lt.f32.partialorder %v1577_v6, 0.5  ;;  %v7987_v36 = vadd.f32 -7.0, %v16537_v39 }
 0x5e6   : > { %16550 = vst [vmem:[#allocation71_spill] sm:$0xff] %v11090_v42  ;;  %v7798_v40 = vadd.f32 -1.0, %v16527_v18  ;;  %v2042_v16 = vand.u32 2147483647, %v7992_v14  ;;  %v7875_v9 = vsel %vm11099_vm8, 1.0, %v16480_v13  ;;  %v7993_v11 = vadd.f32 -7.0, %v10316_v28 }
 0x5e7   : > { %v11115_v6 = vsel %vm1657_vm12, %v1646_v31, %v16532_v44  ;;  %16557 = vst [vmem:[#allocation98_spill] sm:$0xff] %v11128_v30  ;;  %v2037_v15 = vand.u32 2147483647, %v7987_v36  ;;  %vm2055_vm14 = vcmp.lt.f32.partialorder %v2039_v19, 0.5  ;;  %v1336_v58 = vand.u32 2147483647, %v7799_v8 }
 0x5e8   : > { %16555 = vst [vmem:[#allocation67_spill] sm:$0xff] %v11115_v6  ;;  %v8006_v6 = vsel %vm11103_vm13, 1.0, %v16480_v13  ;;  %v7801_v14 = vadd.f32 -1.0, %v10316_v28  ;;  %vm2054_vm3 = vcmp.lt.f32.partialorder %v2038_v37, 0.5  ;;  %v11146_v42 = vsel %vm1657_vm12, %v1643_v50, %v10436_v60 }
 0x5e9   : > { %v1641_v38 = vmul.f32 %v7875_v9, %v10197_v41  ;;  %vm2058_vm4 = vcmp.lt.f32.partialorder %v2042_v16, 0.5  ;;  %v2104_v36 = vmul.f32 %v8006_v6, %v10220_v12  ;;  %v2105_v37 = vmul.f32 %v8007_v53, %v16525_v1 }
 0x5ea   : > { %2651 = vrot.lane.b32.xlu1 %v16548_v24, %s9556_s27  ;;  %v11085_v24 = vsel %vm1657_vm12, %v1648_v35, %v10701_v59  ;;  %v7876_v35 = vsel %vm1594_vm7, 1.0, %v16480_v13  ;;  %vm2053_vm5 = vcmp.lt.f32.partialorder %v2037_v15, 0.5  ;;  %v2043_v19 = vand.u32 2147483647, %v7993_v11 }
 0x5eb   : > { %v1642_v31 = vmul.f32 %v7876_v35, %v16538_v62  ;;  %v1335_v35 = vand.u32 2147483647, %v7798_v40  ;;  %v8005_v40 = vsel %vm2055_vm14, 1.0, %v16480_v13  ;;  %v8004_v48 = vsel %vm2054_vm3, 1.0, %v16480_v13 }
 0x5ec   : > { %vm1353_vm1 = vcmp.lt.f32.partialorder %v1337_v23, 0.5  ;;  %vm1352_vm6 = vcmp.lt.f32.partialorder %v1336_v58, 0.5  ;;  %v8008_v50 = vsel %vm2058_vm4, 1.0, %v16480_v13  ;;  %v1338_v16 = vand.u32 2147483647, %v7801_v14  ;;  %v11159_v9 = vpop.permute.xlu0 %8877 }
 0x5ed   : > { %v11080_v10 = vpop.permute.xlu2 %8917  ;;  %v11153_v8 = vsel %vm1657_vm12, %v1642_v31, %v16541_v7  ;;  %vm1351_vm7 = vcmp.lt.f32.partialorder %v1335_v35, 0.5  ;;  %v11164_v31 = vsel %vm1657_vm12, %v1641_v38, %v16522_v0  ;;  %v11169_v11 = vsel %vm2117_vm9, %v2104_v36, %v10515_v3 }
 0x5ee   : > { %16549 = vst [vmem:[#allocation62_spill] sm:$0xff] %v11080_v10  ;;  %v7797_v10 = vadd.f32 -1.0, %v16524_v43  ;;  %v2103_v23 = vmul.f32 %v8005_v40, %v16534_v51  ;;  %v8003_v53 = vsel %vm2053_vm5, 1.0, %v16480_v13  ;;  %v11176_v15 = vsel %vm2117_vm9, %v2105_v37, %v16530_v33 }
 0x5ef   : > { %v2102_v58 = vmul.f32 %v8004_v48, %v16538_v62  ;;  %v7816_v14 = vsel %vm1353_vm1, 1.0, %v16480_v13  ;;  %v7815_v35 = vsel %vm1352_vm6, 1.0, %v16480_v13  ;;  %vm2059_vm12 = vcmp.lt.f32.partialorder %v2043_v19, 0.5 }
 0x5f0   : > { %v1334_v6 = vand.u32 2147483647, %v7797_v10  ;;  %v2106_v10 = vmul.f32 %v8008_v50, %v16528_v2  ;;  %v7814_v38 = vsel %vm1351_vm7, 1.0, %v16480_v13  ;;  %v7796_v36 = vadd.f32 -1.0, %v16536_v17 }
 0x5f1   : > { %v7994_v3 = vadd.f32 -7.0, %v10318_v26  ;;  %vm1354_vm8 = vcmp.lt.f32.partialorder %v1338_v16, 0.5  ;;  %v2101_v37 = vmul.f32 %v8003_v53, %v10197_v41  ;;  %v7802_v48 = vadd.f32 -1.0, %v10318_v26 }
 0x5f2   : > { %vm1350_vm13 = vcmp.lt.f32.partialorder %v1334_v6, 0.5  ;;  %v11192_v19 = vsel %vm2117_vm9, %v2103_v23, %v10436_v60  ;;  %v1401_v50 = vmul.f32 %v7816_v14, %v16528_v2  ;;  %v1400_v33 = vmul.f32 %v7815_v35, %v16525_v1 }
 0x5f3   : > { %16558 = vst [vmem:[#allocation99_spill] sm:$0xff] %v11192_v19  ;;  %v7995_v62 = vadd.f32 -7.0, %v16533_v4  ;;  %v8009_v17 = vsel %vm2059_vm12, 1.0, %v16480_v13  ;;  %v1399_v16 = vmul.f32 %v7814_v38, %v10220_v12  ;;  %v11200_v53 = vadd.f32 -1.0, %v16537_v39 }
 0x5f4   : > { %v7803_v6 = vadd.f32 -1.0, %v16533_v4  ;;  %v7817_v41 = vsel %vm1354_vm8, 1.0, %v16480_v13  ;;  %v7813_v23 = vsel %vm1350_vm13, 1.0, %v16480_v13  ;;  %v1333_v60 = vand.u32 2147483647, %v7796_v36 }
 0x5f5   : > { %v11139_v30 = vpop.permute.xlu2 %8927  ;;  %v2044_v43 = vand.u32 2147483647, %v7994_v3  ;;  %v11208_v14 = vsel %vm2117_vm9, %v2106_v10, %v16532_v44  ;;  %v11213_v35 = vsel %vm2117_vm9, %v2102_v58, %v16541_v7  ;;  %v11218_v38 = vsel %vm2117_vm9, %v2101_v37, %v16522_v0  ;;  %v11235_v0 = vpop.permute.xlu0 %8887  ;;  %v16622_v19 = vld [vmem:[#allocation62_spill] sm:$0xff] }
 0x5f6   : > { %16559 = vst [vmem:[#allocation100_spill] sm:$0xff] %v11213_v35  ;;  %v2107_v12 = vmul.f32 %v8009_v17, %v10241_v52  ;;  %v1339_v1 = vand.u32 2147483647, %v7802_v48  ;;  %v11223_v3 = vsel %vm1315_vm15, %v1401_v50, 0.0  ;;  %v11227_v10 = vsel %vm1315_vm15, %v1400_v33, 0.0 }
 0x5f7   : > { %16560 = vst [vmem:[#allocation101_spill] sm:$0xff] %v11218_v38  ;;  %v2045_v36 = vand.u32 2147483647, %v7995_v62  ;;  %v1402_v58 = vmul.f32 %v7817_v41, %v10241_v52  ;;  %v11232_v7 = vsel %vm1315_vm15, %v1399_v16, 0.0  ;;  %v1398_v37 = vmul.f32 %v7813_v23, %v16534_v51  ;;  %v16566_v41 = vld [vmem:[#allocation77_spill] sm:$0xff] }
 0x5f8   : > { %16561 = vst [vmem:[#allocation102_spill] sm:$0xff] %v11223_v3  ;;  %v1340_v48 = vand.u32 2147483647, %v7803_v6  ;;  %vm11237_vm0 = vcmp.lt.f32.partialorder %v1333_v60, 0.5  ;;  %v11242_v33 = vadd.f32 -5.0, %v10314_v32  ;;  %vm2060_vm14 = vcmp.lt.f32.partialorder %v2044_v43, 0.5 }
 0x5f9   : > { %16562 = vst [vmem:[#allocation103_spill] sm:$0xff] %v11227_v10  ;;  %v11253_v60 = vsel %vm2117_vm9, %v2107_v12, %v10707_v21  ;;  %vm1355_vm3 = vcmp.lt.f32.partialorder %v1339_v1, 0.5  ;;  %v8864_v32 = vunpack.i.l.bf16 %v10982_v27  ;;  %vm2061_vm4 = vcmp.lt.f32.partialorder %v2045_v36, 0.5  ;;  %v16589_v21 = vld [vmem:[#allocation82_spill] sm:$0xff]  ;;  %v16594_v3 = vld [vmem:[#allocation63_spill] sm:$0xff] }
 0x5fa   : > { %16563 = vst [vmem:[#allocation104_spill] sm:$0xff] %v11232_v7  ;;  %v11262_v43 = vsel %vm1315_vm15, %v1402_v58, 0.0  ;;  %v7996_v12 = vadd.f32 -7.0, %v10339_v22  ;;  %v8010_v1 = vsel %vm2060_vm14, 1.0, %v16480_v13  ;;  %vm1356_vm5 = vcmp.lt.f32.partialorder %v1340_v48, 0.5 }
 0x5fb   : > { %16568 = vst [vmem:[#allocation105_spill] sm:$0xff] %v11262_v43  ;;  %v8865_v44 = vunpack.i.h.bf16 %v10982_v27  ;;  %v7804_v36 = vadd.f32 -1.0, %v10339_v22  ;;  %v7818_v58 = vsel %vm1355_vm3, 1.0, %v16480_v13  ;;  %v11283_v27 = vadd.f32 -5.0, %v10316_v28  ;;  %v16573_v28 = vld [vmem:[#allocation73_spill] sm:$0xff] }
 0x5fc   : > { %v11293_v48 = vsel %vm1213_vm11, %v11035_v46, %v8864_v32  ;;  %v7997_v23 = vadd.f32 -7.0, %v16573_v28  ;;  %v2046_v51 = vand.u32 2147483647, %v7996_v12  ;;  %v1403_v50 = vmul.f32 %v7818_v58, %v10248_v56 }
 0x5fd   : > { %v11184_v40 = vpop.permute.xlu2 %8932  ;;  %16572 = vst [vmem:[#allocation109_spill] sm:$0xff] %v11293_v48  ;;  %v11308_v46 = vsel %vm1213_vm11, %v11050_v34, %v8865_v44  ;;  %v11316_v58 = vadd.f32 -5.0, %v10339_v22 }
 0x5fe   : > { %16574 = vst [vmem:[#allocation73_spill] sm:$0xff] %v11308_v46  ;;  %v2047_v22 = vand.u32 2147483647, %v7997_v23  ;;  %vm2062_vm1 = vcmp.lt.f32.partialorder %v2046_v51, 0.5  ;;  %v16585_v51 = vld [vmem:[#allocation90_spill] sm:$0xff] }
 0x5ff   : > { %v7809_v23 = vadd.f32 -1.0, %v16585_v51 }
 0x600   : > { %vm2063_vm7 = vcmp.lt.f32.partialorder %v2047_v22, 0.5  ;;  %v16590_v22 = vld [vmem:[#allocation88_spill] sm:$0xff] }
 0x601   : > { %v8013_v39 = vsel %vm2063_vm7, 1.0, %v16480_v13 }
 0x604   : > { %v8868_v17 = vpop.permute.xlu1 %8867 }
 0x605   : > { %v8870_v2 = vunpack.i.h.bf16 %v8868_v17  ;;  %v8869_v16 = vunpack.i.l.bf16 %v8868_v17  ;;  %v11246_v7 = vpop.permute.xlu2 %8947 }
 0x606   : > { %v8949_v6 = vunpack.i.l.bf16 %v11246_v7 }
 0x607   : > { %v11258_v62 = vsel %vm1213_vm11, %v11028_v20, %v8869_v16  ;;  %v11272_v20 = vsel %vm1213_vm11, %v11007_v61, %v8870_v2  ;;  %v11280_v16 = vsel %vm1315_vm15, %v1398_v37, 0.0  ;;  %v11288_v2 = vsel %vm11237_vm0, 1.0, %v16480_v13 }
 0x608   : > { %16567 = vst [vmem:[#allocation77_spill] sm:$0xff] %v11258_v62  ;;  %v2522_v17 = vsel %vm1213_vm11, %v11012_v55, %v8949_v6  ;;  %2591 = vmatpush.msra.mxu3 %v11258_v62  ;;  %v8011_v55 = vsel %vm2061_vm4, 1.0, %v16480_v13  ;;  %v8859_v61 = vunpack.i.l.bf16 %v11108_v45  ;;  %v2108_v6 = vmul.f32 %v8010_v1, %v10248_v56 }
 0x609   : > { %2571 = vmatpush.msrb.mxu0 %v2522_v17  ;;  %2659 = vmatpush.msra.mxu2 %v2522_v17  ;;  %16569 = vst [vmem:[#allocation106_spill] sm:$0xff] %v11272_v20  ;;  %v7819_v17 = vsel %vm1356_vm5, 1.0, %v16480_v13  ;;  %v2109_v32 = vmul.f32 %v8011_v55, %v10255_v57  ;;  %v1341_v1 = vand.u32 2147483647, %v7804_v36  ;;  %v11333_v55 = vadd.f32 -5.0, %v16535_v49 }
 0x60a   : > { %2592 = vmatpush.msra.mxu3 %v11272_v20  ;;  %16570 = vst [vmem:[#allocation107_spill] sm:$0xff] %v11280_v16  ;;  %v11303_v16 = vadd.f32 -5.0, %v10318_v26  ;;  %v1404_v12 = vmul.f32 %v7819_v17, %v10255_v57  ;;  %v11319_v26 = vadd.f32 -5.0, %v16533_v4  ;;  %v11324_v44 = vsel %vm1213_vm11, %v11055_v47, %v8859_v61  ;;  %v16632_v57 = vld [vmem:[#allocation14_spill] sm:$0xff] }
 0x60b   : > { %16571 = vst [vmem:[#allocation108_spill] sm:$0xff] %v11288_v2  ;;  %v8860_v2 = vunpack.i.h.bf16 %v11108_v45  ;;  %v11329_v34 = vsel %vm2117_vm9, %v2108_v6, %v10701_v59  ;;  %v11338_v4 = vsel %vm1315_vm15, %v1403_v50, 0.0  ;;  %v11341_v47 = vadd.f32 -5.0, %v16527_v18 }
 0x60c   : > { %2593 = vmatpush.msra.mxu3 %v11293_v48  ;;  %v11298_v37 = vpop.permute.xlu1 %8872  ;;  %v11311_v48 = vpop.permute.xlu0 %8902  ;;  %16575 = vst [vmem:[#allocation110_spill] sm:$0xff] %v11324_v44  ;;  %v11350_v49 = vsel %vm2117_vm9, %v2109_v32, %v10374_v63  ;;  %vm11352_vm6 = vcmp.lt.f32.partialorder %v1341_v1, 0.5  ;;  %v11359_v18 = vadd.f32 -1.0, %v16573_v28  ;;  %v16582_v50 = vunpack.i.l.bf16 %v16566_v41  ;;  %v16584_v1 = vld [vmem:[#allocation92_spill] sm:$0xff] }
 0x60d   : > { %16576 = vst [vmem:[#allocation111_spill] sm:$0xff] %v11333_v55  ;;  %v11345_v61 = vsel %vm1213_vm11, %v11062_v54, %v8860_v2  ;;  %v11363_v54 = vsel %vm1315_vm15, %v1404_v12, 0.0  ;;  %v8874_v17 = vunpack.i.l.bf16 %v11298_v37  ;;  %v8002_v45 = vadd.f32 -7.0, %v16584_v1  ;;  %v16595_v55 = vld [vmem:[#allocation67_spill] sm:$0xff] }
 0x60e   : > { %2594 = vmatpush.msra.mxu3 %v11308_v46  ;;  %16577 = vst [vmem:[#allocation112_spill] sm:$0xff] %v11338_v4  ;;  %v11372_v32 = vsel %vm1213_vm11, %v11067_v5, %v16582_v50  ;;  %v8012_v36 = vsel %vm2062_vm1, 1.0, %v16480_v13  ;;  %v8875_v5 = vunpack.i.h.bf16 %v11298_v37  ;;  %v16587_v50 = vunpack.i.h.bf16 %v16566_v41 }
 0x60f   : > { %16578 = vst [vmem:[#allocation113_spill] sm:$0xff] %v11341_v47  ;;  %v7807_v20 = vadd.f32 -1.0, %v16589_v21  ;;  %v7808_v59 = vadd.f32 -1.0, %v16590_v22  ;;  %v8000_v6 = vadd.f32 -7.0, %v16590_v22  ;;  %v1342_v10 = vand.u32 2147483647, %v11359_v18 }
 0x610   : > { %2595 = vmatpush.msra.mxu3 %v11324_v44  ;;  %16579 = vst [vmem:[#allocation114_spill] sm:$0xff] %v11345_v61  ;;  %v11384_v44 = vsel %vm11352_vm6, 1.0, %v16480_v13  ;;  %v11391_v46 = vsel %vm1213_vm11, %v11077_v25, %v16587_v50  ;;  %v11400_v37 = vadd.f32 -5.0, %v16573_v28  ;;  %v8879_v41 = vunpack.i.l.bf16 %v11159_v9  ;;  %v16592_v47 = vld [vmem:[#allocation71_spill] sm:$0xff] }
 0x611   : > { %16583 = vst [vmem:[#allocation115_spill] sm:$0xff] %v11372_v32  ;;  %v11405_v25 = vsel %vm1213_vm11, %v11085_v24, %v8874_v17  ;;  %v2052_v50 = vand.u32 2147483647, %v8002_v45  ;;  %v7999_v63 = vadd.f32 -7.0, %v16589_v21  ;;  %v8880_v62 = vunpack.i.h.bf16 %v11159_v9 }
 0x612   : > { %2596 = vmatpush.msra.mxu3 %v11345_v61  ;;  %v16586_v61 = vld [vmem:[#allocation81_spill] sm:$0xff]  ;;  %16588 = vst [vmem:[#allocation92_spill] sm:$0xff] %v11391_v46  ;;  %v11416_v56 = vsel %vm1213_vm11, %v16592_v47, %v8875_v5  ;;  %v1344_v45 = vand.u32 2147483647, %v7807_v20  ;;  %v1345_v17 = vand.u32 2147483647, %v7808_v59  ;;  %v11426_v9 = vsel %vm1213_vm11, %v16595_v55, %v8879_v41 }
 0x613   : > { %v7998_v2 = vadd.f32 -7.0, %v16586_v61  ;;  %16591 = vst [vmem:[#allocation90_spill] sm:$0xff] %v11405_v25  ;;  %v7806_v28 = vadd.f32 -1.0, %v16586_v61  ;;  %v2050_v38 = vand.u32 2147483647, %v8000_v6  ;;  %vm2068_vm12 = vcmp.lt.f32.partialorder %v2052_v50, 0.5 }
 0x614   : > { %2597 = vmatpush.msra.mxu3 %v11372_v32  ;;  %v11377_v12 = vpop.permute.xlu1 %8882  ;;  %v8001_v32 = vadd.f32 -7.0, %v16585_v51  ;;  %v11408_v52 = vpop.permute.xlu0 %8912  ;;  %16593 = vst [vmem:[#allocation81_spill] sm:$0xff] %v11416_v56  ;;  %v16597_v47 = vld [vmem:[#allocation64_spill] sm:$0xff]  ;;  %v2049_v59 = vand.u32 2147483647, %v7999_v63  ;;  %v16598_v6 = vld [vmem:[#allocation97_spill] sm:$0xff]  ;;  %v8889_v63 = vunpack.i.l.bf16 %v11235_v0  ;;  %v8919_v4 = vunpack.i.l.bf16 %v16622_v19 }
 0x615   : > { %v2048_v18 = vand.u32 2147483647, %v7998_v2  ;;  %v8929_v2 = vunpack.i.l.bf16 %v11139_v30  ;;  %16596 = vst [vmem:[#allocation82_spill] sm:$0xff] %v11426_v9  ;;  %v11429_v5 = vmul.f32 %v8013_v39, %v16597_v47  ;;  %vm1360_vm14 = vcmp.lt.f32.partialorder %v1344_v45, 0.5  ;;  %v16629_v45 = vld [vmem:[#allocation84_spill] sm:$0xff] }
 0x616   : > { %2598 = vmatpush.msra.mxu3 %v11391_v46  ;;  %v1346_v46 = vand.u32 2147483647, %v7809_v23  ;;  %v2051_v24 = vand.u32 2147483647, %v8001_v32  ;;  %v1817_v23 = vand.u32 2147483647, %v11400_v37  ;;  %v8884_v32 = vunpack.i.l.bf16 %v11377_v12 }
 0x617   : > { %vm2064_vm13 = vcmp.lt.f32.partialorder %v2048_v18, 0.5  ;;  %v11437_v37 = vsel %vm1213_vm11, %v16598_v6, %v8880_v62  ;;  %v8018_v39 = vsel %vm2068_vm12, 1.0, %v16480_v13  ;;  %vm1361_vm3 = vcmp.lt.f32.partialorder %v1345_v17, 0.5  ;;  %v16602_v18 = vld [vmem:[#allocation79_spill] sm:$0xff] }
 0x618   : > { %2599 = vmatpush.msra.mxu3 %v11405_v25  ;;  %v11420_v25 = vmul.f32 %v8012_v36, %v16594_v3  ;;  %vm1362_vm8 = vcmp.lt.f32.partialorder %v1346_v46, 0.5  ;;  %v1343_v36 = vand.u32 2147483647, %v7806_v28  ;;  %16599 = vst [vmem:[#allocation88_spill] sm:$0xff] %v11437_v37  ;;  %vm2067_vm0 = vcmp.lt.f32.partialorder %v2051_v24, 0.5  ;;  %v16600_v46 = vld [vmem:[#allocation98_spill] sm:$0xff] }
 0x619   : > { %vm2066_vm4 = vcmp.lt.f32.partialorder %v2050_v38, 0.5  ;;  %v11442_v55 = vadd.f32 -5.0, %v16586_v61  ;;  %v11447_v41 = vsel %vm1213_vm11, %v16600_v46, %v8929_v2  ;;  %v7825_v62 = vsel %vm1362_vm8, 1.0, %v16480_v13  ;;  %v16608_v2 = vld [vmem:[#allocation70_spill] sm:$0xff] }
 0x61a   : > { %2600 = vmatpush.msra.mxu3 %v11416_v56  ;;  %16601 = vst [vmem:[#allocation71_spill] sm:$0xff] %v11447_v41  ;;  %v8014_v50 = vsel %vm2064_vm13, 1.0, %v16480_v13  ;;  %v8894_v28 = vunpack.i.l.bf16 %v16602_v18  ;;  %v8017_v24 = vsel %vm2067_vm0, 1.0, %v16480_v13  ;;  %v7823_v38 = vsel %vm1360_vm14, 1.0, %v16480_v13  ;;  %v16620_v61 = vld [vmem:[#allocation94_spill] sm:$0xff] }
 0x61b   : > { %vm11455_vm5 = vcmp.lt.f32.partialorder %v2049_v59, 0.5  ;;  %vm11459_vm1 = vcmp.lt.f32.partialorder %v1343_v36, 0.5  ;;  %v11465_v17 = vsel %vm1213_vm11, %v11146_v42, %v8884_v32  ;;  %v2116_v6 = vmul.f32 %v8018_v39, %v16608_v2  ;;  %v16609_v36 = vld [vmem:[#allocation69_spill] sm:$0xff] }
 0x61c   : > { %2601 = vmatpush.msra.mxu3 %v11426_v9  ;;  %v11432_v20 = vpop.permute.xlu1 %8897  ;;  %16607 = vst [vmem:[#allocation63_spill] sm:$0xff] %v11465_v17  ;;  %v7824_v46 = vsel %vm1361_vm3, 1.0, %v16480_v13  ;;  %v8930_v59 = vunpack.i.h.bf16 %v11139_v30  ;;  %v11472_v9 = vpop.permute.xlu0 %8922  ;;  %v1410_v56 = vmul.f32 %v7825_v62, %v16609_v36  ;;  %vm11476_vm6 = vcmp.lt.f32.partialorder %v1342_v10, 0.5  ;;  %v16616_v62 = vld [vmem:[#allocation66_spill] sm:$0xff] }
 0x61d   : > { %v11481_v42 = vadd.f32 -5.0, %v16589_v21  ;;  %v16612_v32 = vand.u32 2147483647, %v11316_v58  ;;  %v11491_v30 = vsel %vm1213_vm11, %v11153_v8, %v8889_v63  ;;  %v1408_v10 = vmul.f32 %v7823_v38, %v16616_v62  ;;  %v16617_v58 = vld [vmem:[#allocation68_spill] sm:$0xff] }
 0x61e   : > { %2602 = vmatpush.msra.mxu3 %v11437_v37  ;;  %v8895_v37 = vunpack.i.h.bf16 %v16602_v18  ;;  %16615 = vst [vmem:[#allocation67_spill] sm:$0xff] %v11491_v30  ;;  %v2115_v18 = vmul.f32 %v8017_v24, %v16609_v36  ;;  %v8885_v21 = vunpack.i.h.bf16 %v11377_v12  ;;  %v7938_v8 = vadd.f32 -5.0, %v16584_v1 }
 0x61f   : > { %vm11485_vm7 = vcmp.lt.f32.partialorder %v16612_v32, 0.5  ;;  %v1409_v32 = vmul.f32 %v7824_v46, %v16617_v58  ;;  %vm11505_vm12 = vcmp.lt.f32.partialorder %v1817_v23, 0.5  ;;  %v8914_v24 = vunpack.i.l.bf16 %v11408_v52 }
 0x620   : > { %2603 = vmatpush.msra.mxu3 %v11447_v41  ;;  %v8016_v41 = vsel %vm2066_vm4, 1.0, %v16480_v13  ;;  %v11513_v12 = vsel %vm1213_vm11, %v11164_v31, %v8894_v28  ;;  %v2135_v46 = vsel %vm2117_vm9, %v2116_v6, %v16620_v61  ;;  %v1444_v23 = vsel %vm1315_vm15, %v1410_v56, 0.0  ;;  %v16623_v28 = vld [vmem:[#allocation93_spill] sm:$0xff] }
 0x621   : > { %v2114_v43 = vmul.f32 %v8016_v41, %v16617_v58  ;;  %v8890_v41 = vunpack.i.h.bf16 %v11235_v0  ;;  %v11521_v1 = vsel %vm1213_vm11, %v2135_v46, %v8930_v59  ;;  %v2134_v0 = vsel %vm2117_vm9, %v2115_v18, %v16623_v28 }
 0x622   : > { %2604 = vmatpush.msra.mxu3 %v11465_v17  ;;  %v8015_v17 = vsel %vm11455_vm5, 1.0, %v16480_v13  ;;  %16621 = vst [vmem:[#allocation64_spill] sm:$0xff] %v11521_v1  ;;  %v11534_v59 = vsel %vm1213_vm11, %v2134_v0, %v8885_v21  ;;  %v1443_v56 = vsel %vm1315_vm15, %v1409_v32, 0.0  ;;  %v7936_v46 = vadd.f32 -5.0, %v16590_v22 }
 0x623   : > { %v2113_v6 = vmul.f32 %v8015_v17, %v16616_v62  ;;  %v16625_v17 = vld [vmem:[#allocation65_spill] sm:$0xff]  ;;  %v8899_v21 = vunpack.i.l.bf16 %v11432_v20  ;;  %v1442_v22 = vsel %vm1315_vm15, %v1408_v10, 0.0  ;;  %v1818_v0 = vand.u32 2147483647, %v11442_v55 }
 0x624   : > { %v11499_v35 = vpop.permute.xlu1 %8907  ;;  %2605 = vmatpush.msra.mxu3 %v11491_v30  ;;  %v7937_v30 = vadd.f32 -5.0, %v16585_v51  ;;  %v1822_v51 = vand.u32 2147483647, %v7938_v8  ;;  %vm1887_vm13 = vcmp.gt.f32.partialorder %v10326_v29, 4.5  ;;  %v16706_v29 = vld [vmem:[#allocation88_spill] sm:$0xff] }
 0x625   : > { %v8909_v38 = vunpack.i.l.bf16 %v11499_v35  ;;  %vm1834_vm4 = vcmp.lt.f32.partialorder %v1818_v0, 0.5  ;;  %v8950_v0 = vunpack.i.h.bf16 %v11246_v7  ;;  %v8910_v7 = vunpack.i.h.bf16 %v11499_v35 }
 0x626   : > { %2606 = vmatpush.msra.mxu3 %v11513_v12  ;;  %v1821_v8 = vand.u32 2147483647, %v7937_v30  ;;  %vm11569_vm8 = vcmp.lt.f32.partialorder %v1822_v51, 0.5  ;;  %v11586_v51 = vsel %vm11485_vm7, 1.0, %v16480_v13 }
 0x627   : > { %v2521_v31 = vsel %vm1213_vm11, %v1444_v23, %v8909_v38  ;;  %v2520_v38 = vsel %vm1213_vm11, %v1443_v56, %v8914_v24  ;;  %v16624_v23 = vld [vmem:[#allocation91_spill] sm:$0xff]  ;;  %v2519_v24 = vsel %vm1213_vm11, %v1442_v22, %v8919_v4  ;;  %v8900_v56 = vunpack.i.h.bf16 %v11432_v20  ;;  %2607 = vmatmul.f32.vlgmr.msra.gmra.mxu3 %v16632_v57 }
 0x628   : > { %2631 = vmatpush.msrb.mxu3 %v11521_v1  ;;  %2572 = vmatpush.msrb.mxu0 %v2521_v31  ;;  %v2133_v18 = vsel %vm2117_vm9, %v2114_v43, %v16624_v23  ;;  %v2112_v1 = vmul.f32 %v8014_v50, %v16625_v17  ;;  %v16626_v43 = vld [vmem:[#allocation89_spill] sm:$0xff]  ;;  %v7821_v20 = vsel %vm11476_vm6, 1.0, %v16480_v13  ;;  %vm1837_vm0 = vcmp.lt.f32.partialorder %v1821_v8, 0.5 }
 0x629   : > { %2660 = vmatpush.msra.mxu2 %v2521_v31  ;;  %v1819_v31 = vand.u32 2147483647, %v11481_v42  ;;  %v11548_v32 = vsel %vm1213_vm11, %v2133_v18, %v8890_v41  ;;  %v2132_v50 = vsel %vm2117_vm9, %v2113_v6, %v16626_v43  ;;  %v7822_v42 = vsel %vm11459_vm1, 1.0, %v16480_v13  ;;  %v11561_v41 = vpop.permute.xlu0 %8942 }
 0x62a   : > { %2632 = vmatpush.msrb.mxu3 %v11534_v59  ;;  %2573 = vmatpush.msrb.mxu0 %v2520_v38  ;;  %v11567_v4 = vsel %vm1213_vm11, %v2132_v50, %v8895_v37  ;;  %v1820_v6 = vand.u32 2147483647, %v7936_v46  ;;  %v2131_v55 = vsel %vm2117_vm9, %v2112_v1, %v16629_v45  ;;  %v1405_v37 = vmul.f32 %v11384_v44, %v16594_v3  ;;  %v16633_v44 = vld [vmem:[#allocation83_spill] sm:$0xff] }
 0x62b   : > { %2661 = vmatpush.msra.mxu2 %v2520_v38  ;;  %v8904_v46 = vunpack.i.l.bf16 %v11311_v48  ;;  %v11589_v38 = vpop.permute.xlu2 %8952  ;;  %v11592_v1 = vsel %vm1213_vm11, %v2131_v55, %v8899_v21  ;;  %vm11594_vm14 = vcmp.lt.f32.partialorder %v1819_v31, 0.5  ;;  %v2130_v39 = vsel %vm2117_vm9, %v11429_v5, %v16633_v44 }
 0x62c   : > { %2633 = vmatpush.msrb.mxu3 %v11548_v32  ;;  %v11564_v10 = vpop.permute.xlu1 %8937  ;;  %2574 = vmatpush.msrb.mxu0 %v2519_v24  ;;  %v1407_v22 = vmul.f32 %v7822_v42, %v16625_v17  ;;  %v7954_v21 = vsel %vm11569_vm8, 1.0, %v16480_v13  ;;  %v7949_v31 = vsel %vm11505_vm12, 1.0, %v16480_v13  ;;  %v8905_v8 = vunpack.i.h.bf16 %v11311_v48  ;;  %v16637_v42 = vld [vmem:[#allocation75_spill] sm:$0xff] }
 0x62d   : > { %2662 = vmatpush.msra.mxu2 %v2519_v24  ;;  %v11613_v24 = vsel %vm1213_vm11, %v2130_v39, %v8900_v56  ;;  %vm1836_vm3 = vcmp.lt.f32.partialorder %v1820_v6, 0.5  ;;  %v16634_v50 = vand.u32 2147483647, %v11319_v26  ;;  %v2129_v63 = vsel %vm2117_vm9, %v11420_v25, %v16637_v42 }
 0x62e   : > { %2634 = vmatpush.msrb.mxu3 %v11567_v4  ;;  %v7953_v48 = vsel %vm1837_vm0, 1.0, %v16480_v13  ;;  %v1439_v56 = vsel %vm1315_vm15, %v1405_v37, 0.0  ;;  %v7951_v26 = vsel %vm11594_vm14, 1.0, %v16480_v13  ;;  %v11634_v30 = vsel %vm1213_vm11, %v2129_v63, %v8904_v46 }
 0x62f   : > { %vm11617_vm5 = vcmp.lt.f32.partialorder %v16634_v50, 0.5  ;;  %16638 = vst [vmem:[#allocation97_spill] sm:$0xff] %v11634_v30  ;;  %v1886_v6 = vmul.f32 %v7954_v21, %v16608_v2  ;;  %v1406_v55 = vmul.f32 %v7821_v20, %v16597_v47  ;;  %v1441_v25 = vsel %vm1315_vm15, %v1407_v22, 0.0 }
 0x630   : > { %2635 = vmatpush.msrb.mxu3 %v11592_v1  ;;  %v7952_v37 = vsel %vm1836_vm3, 1.0, %v16480_v13  ;;  %v7950_v39 = vsel %vm1834_vm4, 1.0, %v16480_v13  ;;  %v11644_v18 = vmul.f32 %v7949_v31, %v16597_v47  ;;  %v11649_v2 = vsel %vm1213_vm11, %v11350_v49, %v8905_v8  ;;  %v16657_v8 = vld [vmem:[#allocation111_spill] sm:$0xff] }
 0x631   : > { %v1885_v20 = vmul.f32 %v7953_v48, %v16609_v36  ;;  %v1883_v21 = vmul.f32 %v7951_v26, %v16616_v62  ;;  %v8934_v22 = vunpack.i.l.bf16 %v11184_v40  ;;  %v8925_v50 = vunpack.i.h.bf16 %v11472_v9  ;;  %v11657_v35 = vpop.permute.xlu0 %8967  ;;  %v16658_v48 = vld [vmem:[#allocation102_spill] sm:$0xff] }
 0x632   : > { %2636 = vmatpush.msrb.mxu3 %v11613_v24  ;;  %v8915_v47 = vunpack.i.h.bf16 %v11408_v52  ;;  %v11661_v49 = vsel %vm1213_vm11, %v11329_v34, %v8950_v0  ;;  %v1905_v36 = vsel %vm1887_vm13, %v1886_v6, %v16620_v61  ;;  %v1884_v62 = vmul.f32 %v7952_v37, %v16617_v58 }
 0x633   : > { %v16639_v31 = vand.u32 2147483647, %v11303_v16  ;;  %v16642_v52 = vand.u32 2147483647, %v11283_v27  ;;  %v8940_v34 = vunpack.i.h.bf16 %v11564_v10  ;;  %v8939_v26 = vunpack.i.l.bf16 %v11564_v10  ;;  %v11687_v0 = vpop.permute.xlu2 %8972 }
 0x634   : > { %2637 = vmatpush.msrb.mxu3 %v11634_v30  ;;  %v8958_v46 = vpop.permute.xlu1 %8957  ;;  %v8920_v61 = vunpack.i.h.bf16 %v16622_v19  ;;  %v11692_v27 = vsel %vm1213_vm11, %v11253_v60, %v8910_v7  ;;  %v1440_v10 = vsel %vm1315_vm15, %v1406_v55, 0.0  ;;  %v16645_v6 = vand.u32 2147483647, %v11242_v33 }
 0x635   : > { %v8960_v63 = vunpack.i.h.bf16 %v8958_v46  ;;  %v8959_v30 = vunpack.i.l.bf16 %v8958_v46  ;;  %vm11669_vm9 = vcmp.lt.f32.partialorder %v16639_v31, 0.5  ;;  %vm11675_vm1 = vcmp.lt.f32.partialorder %v16642_v52, 0.5 }
 0x636   : > { %2638 = vmatpush.msrb.mxu3 %v11649_v2  ;;  %vm11701_vm6 = vcmp.lt.f32.partialorder %v16645_v6, 0.5  ;;  %v8945_v37 = vunpack.i.h.bf16 %v11561_v41  ;;  %v2517_v60 = vsel %vm1213_vm11, %v1440_v10, %v8925_v50  ;;  %v11716_v33 = vsel %vm1213_vm11, %v11208_v14, %v8915_v47 }
 0x637   : > { %v2518_v58 = vsel %vm1213_vm11, %v1441_v25, %v8959_v30  ;;  %v11684_v16 = vsel %vm1213_vm11, %v1905_v36, %v8960_v63  ;;  %v1904_v30 = vsel %vm1887_vm13, %v1885_v20, %v16623_v28  ;;  %v8954_v25 = vunpack.i.l.bf16 %v11589_v38 }
 0x638   : > { %2639 = vmatpush.msrb.mxu3 %v11661_v49  ;;  %2575 = vmatpush.msrb.mxu0 %v2518_v58  ;;  %v11710_v55 = vsel %vm1213_vm11, %v1904_v30, %v8934_v22  ;;  %v8924_v28 = vunpack.i.l.bf16 %v11472_v9  ;;  %v1903_v7 = vsel %vm1887_vm13, %v1884_v62, %v16624_v23  ;;  %v1882_v46 = vmul.f32 %v7950_v39, %v16625_v17 }
 0x639   : > { %2611 = vmatpush.msrb.mxu1 %v11684_v16  ;;  %2663 = vmatpush.msra.mxu2 %v2518_v58  ;;  %v2516_v20 = vsel %vm1213_vm11, %v1439_v56, %v8939_v26  ;;  %v11725_v9 = vsel %vm1213_vm11, %v1903_v7, %v8940_v34  ;;  %v1902_v22 = vsel %vm1887_vm13, %v1883_v21, %v16626_v43  ;;  %v7947_v14 = vsel %vm11617_vm5, 1.0, %v16480_v13  ;;  %v8983_v34 = vpop.permute.xlu0 %8982  ;;  %v16653_v26 = vld [vmem:[#allocation57_spill] sm:$0xff] }
 0x63a   : > { %2640 = vmatpush.msrb.mxu3 %v11692_v27  ;;  %2576 = vmatpush.msrb.mxu0 %v2517_v60  ;;  %v8935_v23 = vunpack.i.h.bf16 %v11184_v40  ;;  %v8970_v17 = vunpack.i.h.bf16 %v11657_v35  ;;  %v8969_v39 = vunpack.i.l.bf16 %v11657_v35  ;;  %v11739_v56 = vsel %vm1213_vm11, %v11176_v15, %v8920_v61  ;;  %v16654_v61 = vld [vmem:[#allocation105_spill] sm:$0xff] }
 0x63b   : > { %2612 = vmatpush.msrb.mxu1 %v11710_v55  ;;  %2664 = vmatpush.msra.mxu2 %v2517_v60  ;;  %v2515_v40 = vsel %vm1213_vm11, %v11363_v54, %v8945_v37  ;;  %v11745_v5 = vsel %vm1213_vm11, %v1902_v22, %v8954_v25  ;;  %v16648_v21 = vand.u32 2147483647, %v11200_v53  ;;  %v8944_v15 = vunpack.i.l.bf16 %v11561_v41  ;;  %v16651_v41 = vld [vmem:[#allocation112_spill] sm:$0xff]  ;;  %v16656_v37 = vld [vmem:[#allocation61_spill] sm:$0xff]  ;;  %v16659_v22 = vld [vmem:[#allocation54_spill] sm:$0xff] }
 0x63c   : > { %2641 = vmatpush.msrb.mxu3 %v11716_v33  ;;  %v8963_v50 = vpop.permute.xlu1 %8962  ;;  %2577 = vmatpush.msrb.mxu0 %v2516_v20  ;;  %v11757_v35 = vsel %vm1213_vm11, %v11169_v11, %v8924_v28  ;;  %v1901_v54 = vsel %vm1887_vm13, %v1882_v46, %v16629_v45  ;;  %v1880_v53 = vmul.f32 %v11586_v51, %v16594_v3  ;;  %v8975_v36 = vunpack.i.h.bf16 %v11687_v0  ;;  %v16652_v3 = vld [vmem:[#allocation99_spill] sm:$0xff] }
 0x63d   : > { %2613 = vmatpush.msrb.mxu1 %v11725_v9  ;;  %v8965_v63 = vunpack.i.h.bf16 %v8963_v50  ;;  %v8964_v43 = vunpack.i.l.bf16 %v8963_v50  ;;  %2665 = vmatpush.msra.mxu2 %v2516_v20  ;;  %vm11749_vm7 = vcmp.lt.f32.partialorder %v16648_v21, 0.5  ;;  %v8974_v62 = vunpack.i.l.bf16 %v11687_v0 }
 0x63e   : > { %2642 = vmatpush.msrb.mxu3 %v11739_v56  ;;  %2578 = vmatpush.msrb.mxu0 %v2515_v40  ;;  %v8955_v52 = vunpack.i.h.bf16 %v11589_v38  ;;  %v11776_v45 = vsel %vm1213_vm11, %v16652_v3, %v8935_v23  ;;  %v1900_v51 = vsel %vm1887_vm13, %v11644_v18, %v16633_v44  ;;  %v7925_v58 = vadd.f32 -5.0, %v16653_v26  ;;  %v8988_v44 = vpop.permute.xlu2 %8987  ;;  %v16655_v18 = vld [vmem:[#allocation100_spill] sm:$0xff]  ;;  %v16668_v3 = vld [vmem:[#allocation50_spill] sm:$0xff] }
 0x63f   : > { %2614 = vmatpush.msrb.mxu1 %v11745_v5  ;;  %2666 = vmatpush.msra.mxu2 %v2515_v40  ;;  %v2514_v31 = vsel %vm1213_vm11, %v16651_v41, %v8964_v43  ;;  %v11770_v11 = vsel %vm1213_vm11, %v1901_v54, %v8965_v63  ;;  %v2513_v38 = vsel %vm1213_vm11, %v16654_v61, %v8969_v39  ;;  %v7946_v10 = vsel %vm11669_vm9, 1.0, %v16480_v13  ;;  %v16661_v39 = vld [vmem:[#allocation60_spill] sm:$0xff]  ;;  %v16662_v63 = vld [vmem:[#allocation113_spill] sm:$0xff]  ;;  %v16665_v41 = vld [vmem:[#allocation59_spill] sm:$0xff] }
 0x640   : > { %2643 = vmatpush.msrb.mxu3 %v11757_v35  ;;  %2579 = vmatpush.msrb.mxu0 %v2514_v31  ;;  %v11787_v0 = vsel %vm1213_vm11, %v1900_v51, %v8970_v17  ;;  %v7945_v30 = vsel %vm11675_vm1, 1.0, %v16480_v13  ;;  %v11798_v6 = vsel %vm1213_vm11, %v16655_v18, %v8944_v15  ;;  %v1899_v25 = vsel %vm1887_vm13, %v1880_v53, %v16637_v42  ;;  %v16663_v53 = vld [vmem:[#allocation77_spill] sm:$0xff] }
 0x641   : > { %2615 = vmatpush.msrb.mxu1 %v11770_v11  ;;  %2667 = vmatpush.msra.mxu2 %v2514_v31  ;;  %v1879_v60 = vmul.f32 %v7947_v14, %v16656_v37  ;;  %v1811_v28 = vand.u32 2147483647, %v16657_v8  ;;  %v2512_v7 = vsel %vm1213_vm11, %v16658_v48, %v8974_v62  ;;  %v11809_v46 = vsel %vm1213_vm11, %v1899_v25, %v8975_v36  ;;  %v16660_v14 = vld [vmem:[#allocation101_spill] sm:$0xff]  ;;  %v16664_v36 = vld [vmem:[#allocation74_spill] sm:$0xff] }
 0x642   : > { %2644 = vmatpush.msrb.mxu3 %v11776_v45  ;;  %2580 = vmatpush.msrb.mxu0 %v2513_v38  ;;  %v7944_v20 = vsel %vm11701_vm6, 1.0, %v16480_v13  ;;  %v7924_v23 = vadd.f32 -5.0, %v16659_v22  ;;  %v11818_v17 = vsel %vm1213_vm11, %v16660_v14, %v8955_v52  ;;  %v1878_v50 = vmul.f32 %v7946_v10, %v16661_v39  ;;  %v16670_v10 = vld [vmem:[#allocation95_spill] sm:$0xff]  ;;  %v16673_v37 = vld [vmem:[#allocation106_spill] sm:$0xff]  ;;  %v16677_v22 = vld [vmem:[#allocation96_spill] sm:$0xff] }
 0x643   : > { %2616 = vmatpush.msrb.mxu1 %v11787_v0  ;;  %2668 = vmatpush.msra.mxu2 %v2513_v38  ;;  %v1810_v43 = vand.u32 2147483647, %v16662_v63  ;;  %v1809_v40 = vand.u32 2147483647, %v7925_v58  ;;  %v8985_v21 = vunpack.i.h.bf16 %v8983_v34  ;;  %v8984_v15 = vunpack.i.l.bf16 %v8983_v34  ;;  %v16669_v58 = vld [vmem:[#allocation103_spill] sm:$0xff]  ;;  %v16679_v14 = vld [vmem:[#allocation108_spill] sm:$0xff] }
 0x644   : > { %2645 = vmatpush.msrb.mxu3 %v11798_v6  ;;  %v8978_v42 = vpop.permute.xlu1 %8977  ;;  %2581 = vmatpush.msrb.mxu0 %v2512_v7  ;;  %v1898_v62 = vsel %vm1887_vm13, %v1879_v60, %v16664_v36  ;;  %v1877_v31 = vmul.f32 %v7945_v30, %v16665_v41  ;;  %vm11828_vm12 = vcmp.lt.f32.partialorder %v1811_v28, 0.5  ;;  %v7923_v51 = vadd.f32 -5.0, %v16668_v3  ;;  %v16674_v60 = vld [vmem:[#allocation104_spill] sm:$0xff] }
 0x645   : > { %2617 = vmatpush.msrb.mxu1 %v11809_v46  ;;  %v8980_v54 = vunpack.i.h.bf16 %v8978_v42  ;;  %v8979_v19 = vunpack.i.l.bf16 %v8978_v42  ;;  %2669 = vmatpush.msra.mxu2 %v2512_v7  ;;  %v8990_v34 = vunpack.i.h.bf16 %v8988_v44  ;;  %v8989_v26 = vunpack.i.l.bf16 %v8988_v44  ;;  %v8998_v7 = vpop.permute.xlu0 %8997  ;;  %v16678_v42 = vld [vmem:[#allocation52_spill] sm:$0xff] }
 0x646   : > { %2646 = vmatpush.msrb.mxu3 %v11818_v17  ;;  %v1897_v30 = vsel %vm1887_vm13, %v1878_v50, %v16670_v10  ;;  %v7811_v18 = vsel %vm11749_vm7, 1.0, %v16480_v13  ;;  %vm11846_vm8 = vcmp.lt.f32.partialorder %v1810_v43, 0.5  ;;  %v1808_v25 = vand.u32 2147483647, %v7924_v23  ;;  %v16680_v50 = vld [vmem:[#allocation58_spill] sm:$0xff]  ;;  %v16684_v41 = vld [vmem:[#allocation56_spill] sm:$0xff] }
 0x647   : > { %v2511_v61 = vsel %vm1213_vm11, %v16669_v58, %v8979_v19  ;;  %v11836_v38 = vsel %vm1213_vm11, %v1898_v62, %v8980_v54  ;;  %2647 = vmatmul.f32.vlgmr.msrb.gmra.mxu3 %v16632_v57  ;;  %v2510_v8 = vsel %vm1213_vm11, %v16674_v60, %v8984_v15  ;;  %v11854_v28 = vsel %vm1213_vm11, %v1897_v30, %v8985_v21  ;;  %v16681_v21 = vld [vmem:[#allocation109_spill] sm:$0xff]  ;;  %v16686_v10 = vld [vmem:[#allocation87_spill] sm:$0xff]  ;;  %v16690_v60 = vld [vmem:[#allocation110_spill] sm:$0xff] }
 0x648   : > { %2679 = vmatpush.msra.mxu3 %v16663_v53  ;;  %2582 = vmatpush.msrb.mxu0 %v2511_v61  ;;  %v7943_v48 = vsel %vm11828_vm12, 1.0, %v16480_v13  ;;  %vm11859_vm0 = vcmp.lt.f32.partialorder %v1809_v40, 0.5  ;;  %v1896_v23 = vsel %vm1887_vm13, %v1877_v31, %v16677_v22  ;;  %v1397_v39 = vmul.f32 %v16679_v14, %v16678_v42  ;;  %v16682_v40 = vld [vmem:[#allocation107_spill] sm:$0xff]  ;;  %v9003_v53 = vpop.permute.xlu2 %9002  ;;  %v16685_v58 = vld [vmem:[#allocation73_spill] sm:$0xff] }
 0x649   : > { %2618 = vmatpush.msrb.mxu1 %v11836_v38  ;;  %2670 = vmatpush.msra.mxu2 %v2511_v61  ;;  %v1876_v63 = vmul.f32 %v7944_v20, %v16680_v50  ;;  %v1807_v43 = vand.u32 2147483647, %v7923_v51  ;;  %v2509_v15 = vsel %vm1213_vm11, %v16682_v40, %v8989_v26  ;;  %v11874_v54 = vsel %vm1213_vm11, %v1896_v23, %v8990_v34  ;;  %v16683_v20 = vld [vmem:[#allocation51_spill] sm:$0xff]  ;;  %v16692_v23 = vld [vmem:[#allocation86_spill] sm:$0xff] }
 0x64a   : > { %2680 = vmatpush.msra.mxu3 %v16673_v37  ;;  %2583 = vmatpush.msrb.mxu0 %v2510_v8  ;;  %v7942_v19 = vsel %vm11846_vm8, 1.0, %v16480_v13  ;;  %v1396_v62 = vmul.f32 %v7811_v18, %v16683_v20  ;;  %v1875_v31 = vmul.f32 %v7943_v48, %v16684_v41  ;;  %v7941_v52 = vsel %vm11859_vm0, 1.0, %v16480_v13  ;;  %v16687_v18 = vld [vmem:[#allocation55_spill] sm:$0xff]  ;;  %v16703_v37 = vld [vmem:[#allocation81_spill] sm:$0xff] }
 0x64b   : > { %2619 = vmatpush.msrb.mxu1 %v11854_v28  ;;  %2671 = vmatpush.msra.mxu2 %v2510_v8  ;;  %vm1824_vm14 = vcmp.lt.f32.partialorder %v1808_v25, 0.5  ;;  %v9000_v3 = vunpack.i.h.bf16 %v8998_v7  ;;  %v8999_v51 = vunpack.i.l.bf16 %v8998_v7  ;;  %v1431_v61 = vsel %vm1315_vm15, %v1397_v39, 0.0  ;;  %v16691_v7 = vld [vmem:[#allocation72_spill] sm:$0xff]  ;;  %v16693_v39 = vld [vmem:[#allocation53_spill] sm:$0xff] }
 0x64c   : > { %2681 = vmatpush.msra.mxu3 %v16681_v21  ;;  %v8993_v36 = vpop.permute.xlu1 %8992  ;;  %2584 = vmatpush.msrb.mxu0 %v2509_v15  ;;  %v1895_v30 = vsel %vm1887_vm13, %v1876_v63, %v16686_v10  ;;  %v1874_v44 = vmul.f32 %v7942_v19, %v16687_v18  ;;  %vm11892_vm3 = vcmp.lt.f32.partialorder %v1807_v43, 0.5  ;;  %v9004_v25 = vunpack.i.l.bf16 %v9003_v53  ;;  %v16694_v43 = vld [vmem:[#allocation114_spill] sm:$0xff]  ;;  %v16695_v19 = vld [vmem:[#allocation85_spill] sm:$0xff] }
 0x64d   : > { %2620 = vmatpush.msrb.mxu1 %v11874_v54  ;;  %v8995_v34 = vunpack.i.h.bf16 %v8993_v36  ;;  %v8994_v26 = vunpack.i.l.bf16 %v8993_v36  ;;  %2672 = vmatpush.msra.mxu2 %v2509_v15  ;;  %v7940_v47 = vsel %vm1824_vm14, 1.0, %v16480_v13  ;;  %v1430_v22 = vsel %vm1315_vm15, %v1396_v62, %v16691_v7 }
 0x64e   : > { %2682 = vmatpush.msra.mxu3 %v16685_v58  ;;  %v1894_v14 = vsel %vm1887_vm13, %v1875_v31, %v16692_v23  ;;  %v1873_v50 = vmul.f32 %v7941_v52, %v16693_v39  ;;  %v9005_v63 = vunpack.i.h.bf16 %v9003_v53  ;;  %v2507_v21 = vsel %vm1213_vm11, %v1430_v22, %v8999_v51  ;;  %v16696_v53 = vld [vmem:[#allocation115_spill] sm:$0xff]  ;;  %v16697_v52 = vld [vmem:[#allocation80_spill] sm:$0xff] }
 0x64f   : > { %v2508_v8 = vsel %vm1213_vm11, %v1431_v61, %v8994_v26  ;;  %v2544_v48 = vsel %vm1213_vm11, %v1895_v30, %v8995_v34  ;;  %v2543_v40 = vsel %vm1213_vm11, %v1894_v14, %v9000_v3  ;;  %v7939_v15 = vsel %vm11892_vm3, 1.0, %v16480_v13  ;;  %v16698_v58 = vld [vmem:[#allocation92_spill] sm:$0xff]  ;;  %v16699_v61 = vld [vmem:[#allocation15_spill] sm:$0xff]  ;;  %v16701_v30 = vld [vmem:[#allocation90_spill] sm:$0xff] }
 0x650   : > { %2683 = vmatpush.msra.mxu3 %v16690_v60  ;;  %2585 = vmatpush.msrb.mxu0 %v2508_v8  ;;  %v1893_v36 = vsel %vm1887_vm13, %v1874_v44, %v16695_v19  ;;  %v1872_v62 = vmul.f32 %v7940_v47, %v16678_v42  ;;  %v1892_v3 = vsel %vm1887_vm13, %v1873_v50, %v16697_v52  ;;  %v16705_v60 = vld [vmem:[#allocation82_spill] sm:$0xff]  ;;  %vm16714_vm15 = vcmask 1042432  }
 0x651   : > { %2621 = vmatpush.msrb.mxu1 %v2544_v48  ;;  %2673 = vmatpush.msra.mxu2 %v2508_v8  ;;  %v2542_v41 = vsel %vm1213_vm11, %v1893_v36, %v9004_v25  ;;  %v1871_v51 = vmul.f32 %v7939_v15, %v16683_v20  ;;  %v2541_v42 = vsel %vm1213_vm11, %v1892_v3, %v9005_v63  ;;  %v16702_v20 = vld [vmem:[#allocation76_spill] sm:$0xff]  ;;  %v11943_v25 = vld [vmem:[%s16704_s24] sm:$0xff]  ;;  %v16709_v8 = vld [vmem:[#allocation67_spill] sm:$0xff]  ;;  %vm16100_vm5 = vcmask 1043456  }
 0x652   : > { %2684 = vmatpush.msra.mxu3 %v16694_v43  ;;  %2586 = vmatpush.msrb.mxu0 %v2507_v21  ;;  %vm16099_vm9 = vcmask 31744   ;;  %vm16717_vm1 = vmmov %vm16714_vm15  ;;  %v2993_v3 = vld [vmem:[%s16727_s5] sm:$0xff] }
 0x653   : > { %2622 = vmatpush.msrb.mxu1 %v2543_v40  ;;  %2674 = vmatpush.msra.mxu2 %v2507_v21  ;;  %v1890_v44 = vsel %vm1887_vm13, %v1871_v51, %v16702_v20  ;;  %vm16721_vm12 = vmmov %vm16717_vm1 }
 0x654   : > { %2685 = vmatpush.msra.mxu3 %v16696_v53  ;;  %v9008_v31 = vpop.permute.xlu1 %9007  ;;  %2675 = vmatmul.f32.vlgmr.msra.gmra.mxu2 %v16699_v61  ;;  %vm16723_vm0 = vmmov %vm16717_vm1 }
 0x655   : > { %2699 = vmatpush.msrb.mxu2 %v11684_v16  ;;  %2623 = vmatpush.msrb.mxu1 %v2542_v41  ;;  %v9010_v34 = vunpack.i.h.bf16 %v9008_v31  ;;  %v9009_v26 = vunpack.i.l.bf16 %v9008_v31  ;;  %v16700_v16 = vld [vmem:[#allocation78_spill] sm:$0xff] }
 0x656   : > { %2686 = vmatpush.msra.mxu3 %v16698_v58  ;;  %v1891_v10 = vsel %vm1887_vm13, %v1872_v62, %v16700_v16  ;;  %2587 = vmatmul.f32.vlgmr.msrb.gmra.mxu0 %v16632_v57  ;;  %vm16715_vm13 = vcmask 23552  }
 0x657   : > { %2700 = vmatpush.msrb.mxu2 %v11710_v55  ;;  %2624 = vmatpush.msrb.mxu1 %v2541_v42  ;;  %v2540_v18 = vsel %vm1213_vm11, %v1891_v10, %v9009_v26  ;;  %v2539_v55 = vsel %vm1213_vm11, %v1890_v44, %v9010_v34  ;;  %vm16716_vm4 = vmmov %vm16715_vm13 }
 0x658   : > { %2687 = vmatpush.msra.mxu3 %v16701_v30  ;;  %2743 = vrot.lane.b32.xlu0 %v11943_v25, %s9557_s29  ;;  %vm16718_vm6 = vmmov %vm16716_vm4  ;;  %v2994_v30 = vld [vmem:[%s16727_s5 + $0x8] sm:$0xff] }
 0x659   : > { %2701 = vmatpush.msrb.mxu2 %v11725_v9  ;;  %2625 = vmatpush.msrb.mxu1 %v2540_v18  ;;  %v16707_v9 = vld [vmem:[#allocation71_spill] sm:$0xff]  ;;  %vm16720_vm7 = vmmov %vm16716_vm4 }
 0x65a   : > { %2688 = vmatpush.msra.mxu3 %v16703_v37  ;;  %vm16722_vm8 = vmmov %vm16716_vm4  ;;  %v2995_v37 = vld [vmem:[%s16727_s5 + $0x10] sm:$0xff] }
 0x65b   : > { %2702 = vmatpush.msrb.mxu2 %v11745_v5  ;;  %2626 = vmatpush.msrb.mxu1 %v2539_v55  ;;  %v16708_v5 = vld [vmem:[#allocation63_spill] sm:$0xff]  ;;  %vm16724_vm14 = vmmov %vm16716_vm4 }
 0x65c   : > { %2689 = vmatpush.msra.mxu3 %v16705_v60  ;;  %2627 = vmatmul.f32.vlgmr.msrb.gmra.mxu1 %v16632_v57  ;;  %vm16725_vm3 = vmmov %vm16716_vm4 }
 0x65d   : > { %2703 = vmatpush.msrb.mxu2 %v11770_v11  ;;  %v11965_v11 = vld [vmem:[%s16704_s24 + $0x8] sm:$0xff] }
 0x65e   : > { %2690 = vmatpush.msra.mxu3 %v16706_v29  ;;  %2745 = vrot.lane.b32.xlu2 %v11965_v11, %s9557_s29 }
 0x65f   : > { %2704 = vmatpush.msrb.mxu2 %v11787_v0  ;;  %v16710_v0 = vld [vmem:[#allocation64_spill] sm:$0xff] }
 0x660   : > { %2691 = vmatpush.msra.mxu3 %v16707_v9 }
 0x661   : > { %2705 = vmatpush.msrb.mxu2 %v11809_v46 }
 0x662   : > { %2692 = vmatpush.msra.mxu3 %v16708_v5 }
 0x663   : > { %2706 = vmatpush.msrb.mxu2 %v11836_v38 }
 0x664   : > { %2693 = vmatpush.msra.mxu3 %v16709_v8 }
 0x665   : > { %2707 = vmatpush.msrb.mxu2 %v11854_v28 }
 0x666   : > { %2694 = vmatpush.msra.mxu3 %v11513_v12  ;;  %v16711_v12 = vld [vmem:[#allocation97_spill] sm:$0xff] }
 0x667   : > { %2695 = vmatmul.f32.vlgmr.msra.gmra.mxu3 %v16699_v61  ;;  %2708 = vmatpush.msrb.mxu2 %v11874_v54 }
 0x668   : > { %2719 = vmatpush.msrb.mxu3 %v16710_v0 }
 0x669   : > { %2709 = vmatpush.msrb.mxu2 %v2544_v48 }
 0x66a   : > { %2720 = vmatpush.msrb.mxu3 %v11534_v59  ;;  %v2652_v59 = vpop.permute.xlu1 %2651 }
 0x66b   : > { %2710 = vmatpush.msrb.mxu2 %v2543_v40 }
 0x66c   : > { %2721 = vmatpush.msrb.mxu3 %v11548_v32  ;;  %v16712_v32 = vld [vmem:[#allocation17_spill] sm:$0xff] }
 0x66d   : > { %2711 = vmatpush.msrb.mxu2 %v2542_v41 }
 0x66e   : > { %2722 = vmatpush.msrb.mxu3 %v11567_v4  ;;  %v11989_v4 = vsel %vm1213_vm11, %v16712_v32, %v2652_v59 }
 0x66f   : > { %2712 = vmatpush.msrb.mxu2 %v2541_v42  ;;  %16713 = vst [vmem:[#allocation98_spill] sm:$0xff] %v11989_v4 }
 0x670   : > { %2723 = vmatpush.msrb.mxu3 %v11592_v1 }
 0x671   : > { %2713 = vmatpush.msrb.mxu2 %v2540_v18 }
 0x672   : > { %2724 = vmatpush.msrb.mxu3 %v11613_v24 }
 0x673   : > { %2714 = vmatpush.msrb.mxu2 %v2539_v55 }
 0x674   : > { %2725 = vmatpush.msrb.mxu3 %v16711_v12  ;;  %2715 = vmatmul.f32.vlgmr.msrb.gmra.mxu2 %v16699_v61  ;;  %v16728_v12 = vld [vmem:[#allocation18_spill] sm:$0xff] }
 0x676   : > { %2726 = vmatpush.msrb.mxu3 %v11649_v2 }
 0x678   : > { %2727 = vmatpush.msrb.mxu3 %v11661_v49 }
 0x67a   : > { %2728 = vmatpush.msrb.mxu3 %v11692_v27 }
 0x67c   : > { %2729 = vmatpush.msrb.mxu3 %v11716_v33 }
 0x67e   : > { %2730 = vmatpush.msrb.mxu3 %v11739_v56 }
 0x680   : > { %2731 = vmatpush.msrb.mxu3 %v11757_v35 }
 0x682   : > { %2732 = vmatpush.msrb.mxu3 %v11776_v45  ;;  %v2966_v45 = vld [vmem:[%s16719_s4 + $0x8] sm:$0xff] }
 0x683   : > { %2974 = vperm.xlu0 %9011, %v2966_v45   ;;  %v16733_v45 = vld [vmem:[#allocation22_spill] sm:$0xff] }
 0x684   : > { %2733 = vmatpush.msrb.mxu3 %v11798_v6 }
 0x686   : > { %2734 = vmatpush.msrb.mxu3 %v11818_v17  ;;  %v2965_v17 = vld [vmem:[%s16719_s4] sm:$0xff]  ;;  %s7511_s4 = scalar_lea.sflag [#allocation3], %s17418_s1 }
 0x687   : > { %2735 = vmatmul.f32.vlgmr.msrb.gmra.mxu3 %v16699_v61  ;;  %2969 = vperm.xlu2 %9012, %v2965_v17   ;;  %v16736_v17 = vld [vmem:[#allocation25_spill] sm:$0xff] }
 0x6aa   : > { %v2608_v1 = vpop.f32.mrf.mxu3 }
 0x6ab   : > { %v2656_v24 = vsub.f32 %v2608_v1, %v11989_v4  ;;  %v16729_v1 = vmov 1.0  }
 0x6ad   : > { %8066 = vmatpush.msk.msra.mxu3 %vm16714_vm15, %v2656_v24  ;;  %vm16726_vm15 = vmmov %vm16725_vm3  ;;  %v16730_v24 = vld [vmem:[#allocation19_spill] sm:$0xff] }
 0x6ae   : > { %8067 = vmatmul.msk.f32.vlgmr.msra.gmra.mxu3 %vm16715_vm13, %v11943_v25  ;;  %vm16109_vm13 = vcmask 130048  }
 0x6b6   : > { %8068 = vmatmul.msk.f32.gmra.mxu3 %vm16716_vm4, %v11965_v11  ;;  %vm16102_vm4 = vcmp.lt.f32.partialorder %v16728_v12, 1.0 }
 0x6b8   : > { %v2746_v35 = vpop.permute.xlu2 %2745 }
 0x6ca   : > { %v2744_v2 = vpop.permute.xlu0 %2743  ;;  %v2648_v56 = vpop.f32.mrf.mxu3 }
 0x6cb   : > { %v2658_v48 = vsub.f32 %v2648_v56, %v11989_v4  ;;  %v16732_v56 = vld [vmem:[#allocation21_spill] sm:$0xff] }
 0x6d3   : > { %v2588_v46 = vpop.f32.mrf.mxu0 }
 0x6d4   : > { %v2655_v38 = vsub.f32 %v2588_v46, %v11989_v4  ;;  %v16735_v46 = vld [vmem:[#allocation24_spill] sm:$0xff] }
 0x6d7   : > { %v2676_v49 = vpop.f32.mrf.mxu2 }
 0x6d8   : > { %8051 = vmatpush.msk.msra.mxu0 %vm16100_vm5, %v2676_v49 }
 0x6d9   : > { %8052 = vmatmul.msk.f32.vlgmr.msra.gmra.mxu0 %vm16099_vm9, %v2744_v2  ;;  %v2628_v27 = vpop.f32.mrf.mxu1 }
 0x6da   : > { %v2657_v33 = vsub.f32 %v2628_v27, %v11989_v4  ;;  %v16731_v27 = vld [vmem:[#allocation20_spill] sm:$0xff] }
 0x6dc   : > { %8069 = vmatpush.msk.msra.mxu1 %vm16717_vm1, %v2657_v33  ;;  %vm16103_vm1 = vcmp.lt.f32.partialorder %v16730_v24, 1.0 }
 0x6dd   : > { %8070 = vmatmul.msk.f32.vlgmr.msra.gmra.mxu1 %vm16718_vm6, %v11943_v25  ;;  %vm16104_vm6 = vcmp.lt.f32.partialorder %v16731_v27, 1.0 }
 0x6e1   : > { %8053 = vmatmul.msk.f32.gmra.mxu0 %vm16099_vm9, %v2746_v35  ;;  %v2970_v50 = vpop.permute.xlu2 %2969 }
 0x6e5   : > { %8071 = vmatmul.msk.f32.gmra.mxu1 %vm16720_vm7, %v11965_v11  ;;  %vm16105_vm7 = vcmp.lt.f32.partialorder %v16732_v56, 1.0 }
 0x6ea   : > { %v2696_v6 = vpop.f32.mrf.mxu3 }
 0x6eb   : > { %8054 = vmatpush.msk.msra.mxu2 %vm16100_vm5, %v2696_v6  ;;  %v16734_v6 = vld [vmem:[#allocation23_spill] sm:$0xff] }
 0x6ec   : > { %8055 = vmatmul.msk.f32.vlgmr.msra.gmra.mxu2 %vm16099_vm9, %v2744_v2 }
 0x6f4   : > { %8056 = vmatmul.msk.f32.gmra.mxu2 %vm16099_vm9, %v2746_v35 }
 0x6f5   : > { %v2975_v43 = vpop.permute.xlu0 %2974 }
 0x6f7   : > { %v2716_v28 = vpop.f32.mrf.mxu2 }
 0x6f8   : > { %8057 = vmatpush.msk.msrb.mxu2 %vm16100_vm5, %v2716_v28  ;;  %v16738_v28 = vld [vmem:[#allocation27_spill] sm:$0xff] }
 0x6fa   : > { %8063 = vmatpush.msk.msra.mxu2 %vm16721_vm12, %v2655_v38  ;;  %vm16106_vm12 = vcmp.lt.f32.partialorder %v16733_v45, 1.0  ;;  %v16737_v38 = vld [vmem:[#allocation26_spill] sm:$0xff] }
 0x6fc   : > { %8058 = vmatmul.msk.f32.vlgmr.msrb.gmra.mxu2 %vm16099_vm9, %v2744_v2 }
 0x704   : > { %8059 = vmatmul.msk.f32.gmra.mxu2 %vm16099_vm9, %v2746_v35 }
 0x70a   : > { %v2736_v54 = vpop.f32.mrf.mxu3 }
 0x70b   : > { %8060 = vmatpush.msk.msrb.mxu0 %vm16100_vm5, %v2736_v54  ;;  %v16739_v54 = vld [vmem:[#allocation28_spill] sm:$0xff] }
 0x70c   : > { %8061 = vmatmul.msk.f32.vlgmr.msrb.gmra.mxu0 %vm16099_vm9, %v2744_v2  ;;  %8064 = vmatmul.msk.f32.vlgmr.msra.gmra.mxu2 %vm16722_vm8, %v11943_v25  ;;  %vm16107_vm8 = vcmp.lt.f32.partialorder %v16734_v6, 1.0 }
 0x70d   : > { %8072 = vmatpush.msk.msra.mxu0 %vm16723_vm0, %v2658_v48  ;;  %vm16108_vm0 = vcmp.lt.f32.partialorder %v16735_v46, 1.0  ;;  %v16740_v48 = vld [vmem:[#allocation29_spill] sm:$0xff] }
 0x70e   : > { %vm3262_vm5 = vcmp.lt.f32.partialorder %v16740_v48, 1.0 }
 0x714   : > { %8062 = vmatmul.msk.f32.gmra.mxu0 %vm16099_vm9, %v2746_v35  ;;  %8065 = vmatmul.msk.f32.gmra.mxu2 %vm16724_vm14, %v11965_v11  ;;  %vm3266_vm14 = vcmp.lt.f32.partialorder %v16736_v17, 1.0  ;;  %vm3263_vm9 = vcmp.lt.f32.partialorder %v16739_v54, 1.0 }
 0x71c   : > { %8073 = vmatmul.msk.f32.vlgmr.msra.gmra.mxu0 %vm16725_vm3, %v11943_v25  ;;  %vm3265_vm3 = vcmp.lt.f32.partialorder %v16737_v38, 1.0 }
 0x724   : > { %8074 = vmatmul.msk.f32.gmra.mxu0 %vm16726_vm15, %v11965_v11  ;;  %v2996_v11 = vld [vmem:[%s16727_s5 + $0x18] sm:$0xff]  ;;  %vm3264_vm15 = vcmp.lt.f32.partialorder %v16738_v28, 1.0  ;;  %s9470_s5 = sshra.s32 %s7533_s20, 4  ;;  %s9471_s5 = int_to_ptr.hbm [resolvable:$true] %s9470_s5 }
 0x725   : > { %p9477_p1 = scmp.lt.s32.totalorder %s9471_s5, %s17417_s23 }
 0x731   : > { %v2913_v47 = vpop.f32.mrf.mxu3 }
 0x739   : > { %v2916_v23 = vpop.f32.mrf.mxu3 }
 0x756   : > { %v2782_v14 = vpop.f32.mrf.mxu0 }
 0x75a   : > { %v2936_v19 = vpop.f32.mrf.mxu1 }
 0x75e   : > { %v2785_v41 = vpop.f32.mrf.mxu0 }
 0x762   : > { %v2939_v31 = vpop.f32.mrf.mxu1 }
 0x76f   : > { %v2805_v22 = vpop.f32.mrf.mxu2 }
 0x770   : > { %v2914_v39 = vadd.f32 %v2913_v47, %v2805_v22  ;;  %v16741_v47 = vld [vmem:[#allocation30_spill] sm:$0xff]  ;;  %v16742_v22 = vld [vmem:[#allocation31_spill] sm:$0xff] }
 0x771   : > { %vm3261_vm2 = vcmp.lt.f32.partialorder %v16741_v47, 1.0  ;;  %v16784_v47 = vld [vmem:[#allocation48_spill] sm:$0xff] }
 0x772   : > { %v2978_v15 = vadd.f32 %v2970_v50, %v2914_v39  ;;  %v16745_v39 = vld [vmem:[#allocation16_spill] sm:$0xff] }
 0x774   : > { %v2986_v62 = vmax.f32 %v2978_v15, 0.0  ;;  %v16756_v15 = vld [vmem:[#allocation39_spill] sm:$0xff] }
 0x777   : > { %v2808_v63 = vpop.f32.mrf.mxu2 }
 0x778   : > { %v2917_v21 = vadd.f32 %v2916_v23, %v2808_v63  ;;  %v16743_v23 = vld [vmem:[#allocation32_spill] sm:$0xff]  ;;  %v16748_v63 = vld [vmem:[#allocation35_spill] sm:$0xff] }
 0x77a   : > { %v2982_v40 = vadd.f32 %v2975_v43, %v2917_v21  ;;  %v16752_v21 = vld [vmem:[#allocation37_spill] sm:$0xff] }
 0x77c   : > { %v2990_v36 = vmax.f32 %v2982_v40, 0.0  ;;  %v16754_v40 = vld [vmem:[#allocation38_spill] sm:$0xff] }
 0x77e   : > { %3077 = vmatpush.msrb.mxu3 %v2990_v36  ;;  %v16760_v36 = vld [vmem:[#allocation41_spill] sm:$0xff] }
 0x77f   : > { %v2828_v53 = vpop.f32.mrf.mxu2 }
 0x780   : > { %3078 = vmatpush.msrb.mxu3 %v2986_v62  ;;  %v2937_v52 = vadd.f32 %v2936_v19, %v2828_v53  ;;  %v16758_v19 = vld [vmem:[#allocation40_spill] sm:$0xff]  ;;  %v16762_v62 = vld [vmem:[#allocation42_spill] sm:$0xff]  ;;  %v16764_v53 = vld [vmem:[#allocation43_spill] sm:$0xff] }
 0x781   : > { %8079 = vmatmul.msk.f32.vlgmr.msrb.gmra.mxu3 %vm16109_vm13, %v2993_v3 }
 0x782   : > { %v2979_v58 = vadd.f32 %v2970_v50, %v2937_v52 }
 0x784   : > { %v2987_v10 = vmax.f32 %v2979_v58, 0.0 }
 0x787   : > { %v2831_v51 = vpop.f32.mrf.mxu2 }
 0x788   : > { %v2940_v34 = vadd.f32 %v2939_v31, %v2831_v51 }
 0x789   : > { %v2851_v26 = vpop.f32.mrf.mxu0  ;;  %8080 = vmatmul.msk.f32.gmra.mxu3 %vm16109_vm13, %v2994_v30 }
 0x78a   : > { %v2983_v42 = vadd.f32 %v2975_v43, %v2940_v34  ;;  %v16770_v34 = vld [vmem:[#allocation45_spill] sm:$0xff] }
 0x78c   : > { %v2991_v16 = vmax.f32 %v2983_v42, 0.0 }
 0x78e   : > { %3106 = vmatpush.msrb.mxu1 %v2991_v16  ;;  %v12193_v16 = vsel %vm3261_vm2, 1.0, %v16480_v13 }
 0x78f   : > { %v2890_v18 = vpop.f32.mrf.mxu2 }
 0x790   : > { %3107 = vmatpush.msrb.mxu1 %v2987_v10  ;;  %v2891_v44 = vadd.f32 %v2890_v18, %v2782_v14  ;;  %v16744_v14 = vld [vmem:[#allocation34_spill] sm:$0xff] }
 0x791   : > { %v2854_v20 = vpop.f32.mrf.mxu0  ;;  %8083 = vmatmul.msk.f32.vlgmr.msrb.gmra.mxu1 %vm16109_vm13, %v2993_v3  ;;  %8081 = vmatmul.msk.f32.gmra.mxu3 %vm16109_vm13, %v2995_v37  ;;  %v16772_v18 = vld [vmem:[#allocation46_spill] sm:$0xff] }
 0x792   : > { %v2977_v29 = vadd.f32 %v2970_v50, %v2891_v44 }
 0x794   : > { %v2985_v8 = vmax.f32 %v2977_v29, 0.0 }
 0x797   : > { %v2893_v55 = vpop.f32.mrf.mxu2 }
 0x798   : > { %v2894_v25 = vadd.f32 %v2893_v55, %v2785_v41  ;;  %v16766_v41 = vld [vmem:[#allocation44_spill] sm:$0xff] }
 0x799   : > { %v2959_v60 = vpop.f32.mrf.mxu0  ;;  %8084 = vmatmul.msk.f32.gmra.mxu1 %vm16109_vm13, %v2994_v30  ;;  %8082 = vmatmul.msk.f32.gmra.mxu3 %vm16109_vm13, %v2996_v11 }
 0x79a   : > { %v2981_v9 = vadd.f32 %v2975_v43, %v2894_v25  ;;  %v2960_v0 = vadd.f32 %v2959_v60, %v2851_v26  ;;  %v12218_v60 = vsel %vm3264_vm15, 1.0, %v16480_v13 }
 0x79b   : > { %16775 = vst [vmem:[#allocation66_spill] sm:$0xff] %v12218_v60 }
 0x79c   : > { %v2989_v5 = vmax.f32 %v2981_v9, 0.0  ;;  %v2980_v2 = vadd.f32 %v2970_v50, %v2960_v0  ;;  %v16746_v50 = vld [vmem:[#allocation33_spill] sm:$0xff]  ;;  %v12236_v0 = vsel %vm3266_vm14, 1.0, %v16480_v13 }
 0x79d   : > { %16777 = vst [vmem:[#allocation68_spill] sm:$0xff] %v12236_v0 }
 0x79e   : > { %3048 = vmatpush.msrb.mxu2 %v2989_v5  ;;  %v2988_v35 = vmax.f32 %v2980_v2, 0.0  ;;  %v12225_v5 = vsel %vm3265_vm3, 1.0, %v16480_v13 }
 0x7a0   : > { %3049 = vmatpush.msrb.mxu2 %v2985_v8  ;;  %v3382_v8 = vsel %vm1213_vm11, %v12218_v60, 0.0 }
 0x7a1   : > { %v2962_v59 = vpop.f32.mrf.mxu0  ;;  %8075 = vmatmul.msk.f32.vlgmr.msrb.gmra.mxu2 %vm16109_vm13, %v2993_v3  ;;  %8085 = vmatmul.msk.f32.gmra.mxu1 %vm16109_vm13, %v2995_v37 }
 0x7a2   : > { %v2963_v32 = vadd.f32 %v2962_v59, %v2854_v20  ;;  %8107 = vmatpush.msk.msra.mxu2 %vm16102_vm4, %v16729_v1  ;;  %vm3260_vm4 = vcmp.lt.f32.partialorder %v16742_v22, 1.0  ;;  %v12204_v20 = vsel %vm3262_vm5, 1.0, %v16480_v13 }
 0x7a3   : > { %v12186_v26 = vsel %vm3260_vm4, 1.0, %v16480_v13  ;;  %v3378_v25 = vsel %vm1213_vm11, %v12204_v20, 0.0 }
 0x7a4   : > { %v2984_v49 = vadd.f32 %v2975_v43, %v2963_v32  ;;  %8108 = vmatpush.msk.msra.mxu2 %vm16103_vm1, %v16729_v1  ;;  %vm3259_vm1 = vcmp.lt.f32.partialorder %v16743_v23, 1.0  ;;  %v16750_v43 = vld [vmem:[#allocation36_spill] sm:$0xff]  ;;  %v3374_v42 = vsel %vm1213_vm11, %v12186_v26, 0.0  ;;  %v3384_v32 = vsel %vm1213_vm11, %v12225_v5, 0.0 }
 0x7a5   : > { %v12173_v52 = vsel %vm3259_vm1, 1.0, %v16480_v13 }
 0x7a6   : > { %v2992_v33 = vmax.f32 %v2984_v49, 0.0  ;;  %8109 = vmatpush.msk.msra.mxu2 %vm16104_vm6, %v16729_v1  ;;  %vm3258_vm6 = vcmp.lt.f32.partialorder %v16744_v14, 1.0  ;;  %16769 = vst [vmem:[#allocation70_spill] sm:$0xff] %v12173_v52  ;;  %v3372_v51 = vsel %vm1213_vm11, %v12173_v52, 0.0 }
 0x7a7   : > { %v12168_v31 = vsel %vm3258_vm6, 1.0, %v16480_v13 }
 0x7a8   : > { %3135 = vmatpush.msrb.mxu0 %v2992_v33  ;;  %8110 = vmatpush.msk.msra.mxu2 %vm16105_vm7, %v16729_v1  ;;  %vm16747_vm7 = vcmp.le.s32.totalorder %v16745_v39, %v16746_v50  ;;  %16768 = vst [vmem:[#allocation79_spill] sm:$0xff] %v12168_v31 }
 0x7a9   : > { %8076 = vmatmul.msk.f32.gmra.mxu2 %vm16109_vm13, %v2994_v30  ;;  %8086 = vmatmul.msk.f32.gmra.mxu1 %vm16109_vm13, %v2996_v11 }
 0x7aa   : > { %3136 = vmatpush.msrb.mxu0 %v2988_v35  ;;  %8111 = vmatpush.msk.msra.mxu2 %vm16106_vm12, %v16729_v1  ;;  %vm16749_vm12 = vcmp.le.s32.totalorder %v16745_v39, %v16748_v63  ;;  %v3386_v35 = vsel %vm1213_vm11, %v12236_v0, 0.0 }
 0x7ab   : > { %8087 = vmatmul.msk.f32.vlgmr.msrb.gmra.mxu0 %vm16109_vm13, %v2993_v3  ;;  %v3371_v3 = vsel %vm1213_vm11, %v12168_v31, 0.0 }
 0x7ac   : > { %8112 = vmatpush.msk.msra.mxu2 %vm16107_vm8, %v16729_v1  ;;  %vm16751_vm8 = vcmp.le.s32.totalorder %v16745_v39, %v16750_v43  ;;  %v3373_v58 = vadd.f32 %v3372_v51, %v3371_v3 }
 0x7ae   : > { %8113 = vmatpush.msk.msra.mxu2 %vm16108_vm0, %v16729_v1  ;;  %vm16753_vm0 = vcmp.le.s32.totalorder %v16745_v39, %v16752_v21  ;;  %v3375_v10 = vadd.f32 %v3374_v42, %v3373_v58 }
 0x7b0   : > { %8114 = vmatpush.msk.msra.mxu2 %vm3266_vm14, %v16729_v1  ;;  %vm16791_vm14 = vcmp.lt.f32.partialorder %v16730_v24, 1.0 }
 0x7b1   : > { %8077 = vmatmul.msk.f32.gmra.mxu2 %vm16109_vm13, %v2995_v37 }
 0x7b2   : > { %8115 = vmatpush.msk.msra.mxu2 %vm3265_vm3, %v16729_v1  ;;  %vm16793_vm3 = vcmp.lt.f32.partialorder %v16728_v12, 1.0 }
 0x7b3   : > { %8088 = vmatmul.msk.f32.gmra.mxu0 %vm16109_vm13, %v2994_v30  ;;  %v3376_v30 = vsel %vm1213_vm11, %v12193_v16, 0.0 }
 0x7b4   : > { %8116 = vmatpush.msk.msra.mxu2 %vm3264_vm15, %v16729_v1  ;;  %v3377_v44 = vadd.f32 %v3376_v30, %v3375_v10 }
 0x7b6   : > { %8117 = vmatpush.msk.msra.mxu2 %vm3263_vm9, %v16729_v1  ;;  %v3379_v29 = vadd.f32 %v3378_v25, %v3377_v44 }
 0x7b8   : > { %8118 = vmatpush.msk.msra.mxu2 %vm3262_vm5, %v16729_v1  ;;  %vm16782_vm5 = vcmp.lt.f32.partialorder %v16733_v45, 1.0 }
 0x7b9   : > { %8078 = vmatmul.msk.f32.gmra.mxu2 %vm16109_vm13, %v2996_v11 }
 0x7ba   : > { %8119 = vmatpush.msk.msra.mxu2 %vm3261_vm2, %v16729_v1  ;;  %vm16778_vm2 = vcmp.lt.f32.partialorder %v16735_v46, 1.0  ;;  %v12259_v46 = vsel %vm16782_vm5, 1.0, %v16480_v13 }
 0x7bb   : > { %8089 = vmatmul.msk.f32.gmra.mxu0 %vm16109_vm13, %v2995_v37  ;;  %v12209_v37 = vsel %vm3263_vm9, 1.0, %v16480_v13  ;;  %v12243_v2 = vsel %vm16778_vm2, 1.0, %v16480_v13  ;;  %16783 = vst [vmem:[#allocation93_spill] sm:$0xff] %v12259_v46  ;;  %vm16785_vm9 = vcmp.le.s32.totalorder %v16745_v39, %v16784_v47  ;;  %v3392_v45 = vsel %vm1213_vm11, %v12259_v46, 0.0 }
 0x7bc   : > { %8120 = vmatpush.msk.msra.mxu2 %vm3260_vm4, %v16729_v1  ;;  %v3380_v9 = vsel %vm1213_vm11, %v12209_v37, 0.0  ;;  %v3388_v28 = vsel %vm1213_vm11, %v12243_v2, 0.0  ;;  %vm16786_vm4 = vcmp.lt.f32.partialorder %v16732_v56, 1.0  ;;  %v12286_v56 = vsel %vm16791_vm14, 1.0, %v16480_v13 }
 0x7bd   : > { %v3381_v59 = vadd.f32 %v3380_v9, %v3379_v29  ;;  %16792 = vst [vmem:[#allocation84_spill] sm:$0xff] %v12286_v56 }
 0x7be   : > { %8121 = vmatpush.msk.msra.mxu2 %vm3259_vm1, %v16729_v1  ;;  %vm16773_vm1 = vcmp.le.s32.totalorder %v16745_v39, %v16772_v18 }
 0x7bf   : > { %v3383_v49 = vadd.f32 %v3382_v8, %v3381_v59 }
 0x7c0   : > { %8122 = vmatpush.msk.msra.mxu2 %vm3258_vm6, %v16729_v1  ;;  %vm16788_vm6 = vcmp.lt.f32.partialorder %v16731_v27, 1.0  ;;  %v12293_v27 = vsel %vm16793_vm3, 1.0, %v16480_v13 }
 0x7c1   : > { %8123 = vmatmul.msk.f32.vlgmr.msra.gmra.mxu2 %vm16747_vm7, %v16729_v1  ;;  %vm16755_vm7 = vcmp.le.s32.totalorder %v16745_v39, %v16754_v40  ;;  %v3385_v38 = vadd.f32 %v3384_v32, %v3383_v49  ;;  %v12277_v23 = vsel %vm16788_vm6, 1.0, %v16480_v13  ;;  %16794 = vst [vmem:[#allocation83_spill] sm:$0xff] %v12293_v27 }
 0x7c2   : > { %16789 = vst [vmem:[#allocation65_spill] sm:$0xff] %v12277_v23  ;;  %v3396_v21 = vsel %vm1213_vm11, %v12277_v23, 0.0 }
 0x7c3   : > { %8090 = vmatmul.msk.f32.gmra.mxu0 %vm16109_vm13, %v2996_v11  ;;  %vm16757_vm13 = vcmp.le.s32.totalorder %v16745_v39, %v16756_v15  ;;  %v3387_v54 = vadd.f32 %v3386_v35, %v3385_v38  ;;  %v3398_v15 = vsel %vm1213_vm11, %v12286_v56, 0.0 }
 0x7c5   : > { %v3389_v22 = vadd.f32 %v3388_v28, %v3387_v54 }
 0x7c9   : > { %8124 = vmatmul.msk.f32.gmra.mxu2 %vm16749_vm12, %v16729_v1  ;;  %vm16759_vm12 = vcmp.le.s32.totalorder %v16745_v39, %v16758_v19  ;;  %v16795_v19 = vld [vmem:[#allocation49_spill] sm:$0xff] }
 0x7ca   : > { %vm16796_vm15 = vcmp.le.s32.totalorder %v16745_v39, %v16795_v19 }
 0x7d1   : > { %8125 = vmatmul.msk.f32.gmra.mxu2 %vm16751_vm8, %v16729_v1  ;;  %vm16761_vm8 = vcmp.le.s32.totalorder %v16745_v39, %v16760_v36  ;;  %v3400_v36 = vsel %vm1213_vm11, %v12293_v27, 0.0 }
 0x7d9   : > { %8126 = vmatmul.msk.f32.gmra.mxu2 %vm16753_vm0, %v16729_v1  ;;  %vm16763_vm0 = vcmp.le.s32.totalorder %v16745_v39, %v16762_v62 }
 0x7e1   : > { %8127 = vmatmul.msk.f32.gmra.mxu2 %vm16755_vm7, %v16729_v1  ;;  %vm16765_vm7 = vcmp.le.s32.totalorder %v16745_v39, %v16764_v53 }
 0x7e9   : > { %8128 = vmatmul.msk.f32.gmra.mxu2 %vm16757_vm13, %v16729_v1  ;;  %vm16767_vm13 = vcmp.le.s32.totalorder %v16745_v39, %v16766_v41 }
 0x7f1   : > { %8129 = vmatmul.msk.f32.gmra.mxu2 %vm16759_vm12, %v16729_v1  ;;  %vm16771_vm12 = vcmp.le.s32.totalorder %v16745_v39, %v16770_v34 }
 0x7f9   : > { %8130 = vmatmul.msk.f32.gmra.mxu2 %vm16761_vm8, %v16729_v1 }
 0x801   : > { %8131 = vmatmul.msk.f32.gmra.mxu2 %vm16763_vm0, %v16729_v1 }
 0x809   : > { %8132 = vmatmul.msk.f32.gmra.mxu2 %vm16765_vm7, %v16729_v1 }
 0x811   : > { %8133 = vmatmul.msk.f32.gmra.mxu2 %vm16767_vm13, %v16729_v1 }
 0x819   : > { %8134 = vmatmul.msk.f32.gmra.mxu2 %vm16771_vm12, %v16729_v1 }
 0x821   : > { %8135 = vmatmul.msk.f32.gmra.mxu2 %vm16773_vm1, %v16729_v1 }
 0x824   : > { %v12211_v55 = vpop.f32.mrf.mxu2 }
 0x825   : > { %16774 = vst [vmem:[#allocation69_spill] sm:$0xff] %v12211_v55 }
 0x829   : > { %8136 = vmatmul.msk.f32.gmra.mxu2 %vm1017_vm10, %v16729_v1  ;;  %vm16780_vm10 = vcmp.lt.f32.partialorder %v16734_v6, 1.0  ;;  %v12270_v6 = vsel %vm16786_vm4, 1.0, %v16480_v13 }
 0x82a   : > { %v12252_v17 = vsel %vm16780_vm10, 1.0, %v16480_v13  ;;  %16787 = vst [vmem:[#allocation91_spill] sm:$0xff] %v12270_v6  ;;  %v3394_v63 = vsel %vm1213_vm11, %v12270_v6, 0.0 }
 0x82b   : > { %16781 = vst [vmem:[#allocation62_spill] sm:$0xff] %v12252_v17  ;;  %v3390_v48 = vsel %vm1213_vm11, %v12252_v17, 0.0 }
 0x82c   : > { %v12245_v33 = vpop.f32.mrf.mxu2  ;;  %v3391_v14 = vadd.f32 %v3390_v48, %v3389_v22 }
 0x82d   : > { %16779 = vst [vmem:[#allocation94_spill] sm:$0xff] %v12245_v33 }
 0x82e   : > { %v3393_v43 = vadd.f32 %v3392_v45, %v3391_v14 }
 0x830   : > { %v3395_v40 = vadd.f32 %v3394_v63, %v3393_v43 }
 0x831   : > { %8137 = vmatmul.msk.f32.gmra.mxu2 %vm16785_vm9, %v16729_v1 }
 0x832   : > { %v3397_v24 = vadd.f32 %v3396_v21, %v3395_v40 }
 0x834   : > { %v12279_v50 = vpop.f32.mrf.mxu2  ;;  %v3399_v62 = vadd.f32 %v3398_v15, %v3397_v24 }
 0x835   : > { %16790 = vst [vmem:[#allocation89_spill] sm:$0xff] %v12279_v50 }
 0x836   : > { %v3401_v41 = vadd.f32 %v3400_v36, %v3399_v62 }
 0x838   : > { %v3402_v12 = vrot.slane %v3401_v41, 4 }
 0x839   : > { %8138 = vmatmul.msk.f32.gmra.mxu2 %vm16796_vm15, %v16729_v1 }
 0x83a   : > { %v3403_v51 = vadd.f32 %v3402_v12, %v3401_v41 }
 0x83c   : > { %v12303_v53 = vpop.f32.mrf.mxu2  ;;  %v3404_v34 = vrot.slane %v3403_v51, 2 }
 0x83d   : > { %16797 = vst [vmem:[#allocation75_spill] sm:$0xff] %v12303_v53 }
 0x83e   : > { %v3405_v10 = vadd.f32 %v3404_v34, %v3403_v51 }
 0x840   : > { %v3406_v30 = vrot.slane %v3405_v10, 1 }
 0x842   : > { %v12318_v8 = vadd.f32 %v3406_v30, %v3405_v10 }
 0x844   : > { %v12305_v3 = vpop.f32.mrf.mxu2  ;;  %vm3472_vm2 = vcmp.gt.f32.partialorder %v12318_v8, 0.5  ;;  %vm3929_vm10 = vcmp.gt.f32.partialorder %v12318_v8, 3.5  ;;  %vm4159_vm5 = vcmp.gt.f32.partialorder %v12318_v8, 5.5 }
 0x845   : > { %16798 = vst [vmem:[#allocation112_spill] sm:$0xff] %v12305_v3  ;;  %v8315_v58 = vadd.f32 -6.0, %v12305_v3  ;;  %vm3408_vm8 = vcmp.lt.f32.partialorder %v12305_v3, 1.5 }
 0x846   : > { %v8139_v44 = vsel %vm3408_vm8, 1.0, %v16480_v13 }
 0x847   : > { %v4079_v39 = vand.u32 2147483647, %v8315_v58  ;;  %v3456_v59 = vmul.f32 %v8139_v44, %v12168_v31 }
 0x849   : > { %vm4095_vm0 = vcmp.lt.f32.partialorder %v4079_v39, 0.5  ;;  %v12331_v54 = vsel %vm3472_vm2, %v3456_v59, %v16691_v7 }
 0x84a   : > { %v8331_v29 = vsel %vm4095_vm0, 1.0, %v16480_v13  ;;  %16800 = vst [vmem:[#allocation57_spill] sm:$0xff] %v12331_v54 }
 0x84b   : > { %v4143_v35 = vmul.f32 %v8331_v29, %v12168_v31 }
 0x84c   : > { %v12308_v42 = vpop.f32.mrf.mxu2 }
 0x84d   : > { %16799 = vst [vmem:[#allocation99_spill] sm:$0xff] %v12308_v42  ;;  %v8316_v1 = vadd.f32 -6.0, %v12308_v42  ;;  %vm3409_vm12 = vcmp.lt.f32.partialorder %v12308_v42, 1.5  ;;  %v4162_v45 = vsel %vm4159_vm5, %v4143_v35, %v12331_v54 }
 0x84e   : > { %v8140_v14 = vsel %vm3409_vm12, 1.0, %v16480_v13 }
 0x84f   : > { %v4080_v9 = vand.u32 2147483647, %v8316_v1  ;;  %v3457_v36 = vmul.f32 %v8140_v14, %v12173_v52 }
 0x851   : > { %vm4096_vm1 = vcmp.lt.f32.partialorder %v4080_v9, 0.5  ;;  %v12361_v58 = vsel %vm3472_vm2, %v3457_v36, 0.0 }
 0x852   : > { %v8332_v63 = vsel %vm4096_vm1, 1.0, %v16480_v13  ;;  %16803 = vst [vmem:[#allocation61_spill] sm:$0xff] %v12361_v58 }
 0x853   : > { %v4144_v51 = vmul.f32 %v8332_v63, %v12173_v52 }
 0x854   : > { %v12312_v18 = vpop.f32.mrf.mxu2 }
 0x855   : > { %vm3410_vm7 = vcmp.lt.f32.partialorder %v12312_v18, 1.5  ;;  %v8253_v25 = vadd.f32 -4.0, %v12312_v18  ;;  %v8317_v28 = vadd.f32 -6.0, %v12312_v18  ;;  %v4163_v44 = vsel %vm4159_vm5, %v4144_v51, %v12361_v58 }
 0x856   : > { %v8141_v11 = vsel %vm3410_vm7, 1.0, %v16480_v13  ;;  %vm4389_vm7 = vcmp.gt.f32.partialorder %v12318_v8, 7.5 }
 0x857   : > { %v3851_v32 = vand.u32 2147483647, %v8253_v25  ;;  %v3458_v49 = vmul.f32 %v8141_v11, %v12186_v26  ;;  %v4081_v24 = vand.u32 2147483647, %v8317_v28 }
 0x859   : > { %vm3867_vm13 = vcmp.lt.f32.partialorder %v3851_v32, 0.5  ;;  %v12340_v22 = vsel %vm3472_vm2, %v3458_v49, 0.0  ;;  %vm4097_vm6 = vcmp.lt.f32.partialorder %v4081_v24, 0.5 }
 0x85a   : > { %v8269_v38 = vsel %vm3867_vm13, 1.0, %v16480_v13  ;;  %16802 = vst [vmem:[#allocation100_spill] sm:$0xff] %v12340_v22  ;;  %v8333_v9 = vsel %vm4097_vm6, 1.0, %v16480_v13 }
 0x85b   : > { %v3915_v48 = vmul.f32 %v8269_v38, %v12186_v26 }
 0x85c   : > { %v12336_v47 = vpop.f32.mrf.mxu2 }
 0x85d   : > { %16801 = vst [vmem:[#allocation105_spill] sm:$0xff] %v12336_v47  ;;  %v3934_v43 = vsel %vm3929_vm10, %v3915_v48, %v12340_v22  ;;  %vm3411_vm9 = vcmp.lt.f32.partialorder %v12336_v47, 1.5  ;;  %v8254_v21 = vadd.f32 -4.0, %v12336_v47  ;;  %v8382_v40 = vadd.f32 -8.0, %v12336_v47 }
 0x85e   : > { %v9013_v15 = vpack.i.bf16 %v4162_v45, %v3934_v43  ;;  %v8142_v19 = vsel %vm3411_vm9, 1.0, %v16480_v13  ;;  %v8318_v39 = vadd.f32 -6.0, %v12336_v47  ;;  %v4145_v45 = vmul.f32 %v8333_v9, %v12186_v26 }
 0x85f   : > { %v3852_v62 = vand.u32 2147483647, %v8254_v21  ;;  %v4312_v41 = vand.u32 2147483647, %v8382_v40  ;;  %v3459_v12 = vmul.f32 %v8142_v19, %v12193_v16 }
 0x860   : > { %9014 = vrot.lane.b32.xlu1 %v9013_v15, %s9556_s27  ;;  %v4082_v38 = vand.u32 2147483647, %v8318_v39  ;;  %v4164_v24 = vsel %vm4159_vm5, %v4145_v45, %v12340_v22 }
 0x861   : > { %vm3868_vm4 = vcmp.lt.f32.partialorder %v3852_v62, 0.5  ;;  %vm4328_vm14 = vcmp.lt.f32.partialorder %v4312_v41, 0.5  ;;  %v12369_v30 = vsel %vm3472_vm2, %v3459_v12, 0.0 }
 0x862   : > { %v8270_v34 = vsel %vm3868_vm4, 1.0, %v16480_v13  ;;  %16805 = vst [vmem:[#allocation102_spill] sm:$0xff] %v12369_v30  ;;  %v8398_v32 = vsel %vm4328_vm14, 1.0, %v16480_v13  ;;  %vm4098_vm0 = vcmp.lt.f32.partialorder %v4082_v38, 0.5 }
 0x863   : > { %v3916_v10 = vmul.f32 %v8270_v34, %v12193_v16  ;;  %v4376_v14 = vmul.f32 %v8398_v32, %v12193_v16 }
 0x864   : > { %v12365_v1 = vpop.f32.mrf.mxu2 }
 0x865   : > { %16804 = vst [vmem:[#allocation111_spill] sm:$0xff] %v12365_v1  ;;  %v3935_v25 = vsel %vm3929_vm10, %v3916_v10, %v12369_v30  ;;  %vm3412_vm3 = vcmp.lt.f32.partialorder %v12365_v1, 1.5  ;;  %v8319_v29 = vadd.f32 -6.0, %v12365_v1  ;;  %v8255_v49 = vadd.f32 -4.0, %v12365_v1 }
 0x866   : > { %v9018_v11 = vpack.i.bf16 %v4163_v44, %v3935_v25  ;;  %v8143_v59 = vsel %vm3412_vm3, 1.0, %v16480_v13  ;;  %v4395_v62 = vsel %vm4389_vm7, %v4376_v14, %v12369_v30  ;;  %v8334_v10 = vsel %vm4098_vm0, 1.0, %v16480_v13 }
 0x867   : > { %v4083_v35 = vand.u32 2147483647, %v8319_v29  ;;  %v3460_v28 = vmul.f32 %v8143_v59, %v12204_v20  ;;  %v3853_v48 = vand.u32 2147483647, %v8255_v49  ;;  %v8252_v25 = vadd.f32 -4.0, %v12308_v42 }
 0x868   : > { %9019 = vrot.lane.b32.xlu1 %v9018_v11, %s9556_s27  ;;  %v4146_v9 = vmul.f32 %v8334_v10, %v12193_v16  ;;  %vm5079_vm3 = vcmp.gt.f32.partialorder %v12318_v8, 13.5 }
 0x869   : > { %vm4099_vm15 = vcmp.lt.f32.partialorder %v4083_v35, 0.5  ;;  %vm3869_vm8 = vcmp.lt.f32.partialorder %v3853_v48, 0.5  ;;  %v12394_v15 = vsel %vm3472_vm2, %v3460_v28, 0.0  ;;  %v3850_v49 = vand.u32 2147483647, %v8252_v25 }
 0x86a   : > { %v8335_v63 = vsel %vm4099_vm15, 1.0, %v16480_v13  ;;  %v8271_v21 = vsel %vm3869_vm8, 1.0, %v16480_v13  ;;  %16807 = vst [vmem:[#allocation101_spill] sm:$0xff] %v12394_v15  ;;  %v4165_v48 = vsel %vm4159_vm5, %v4146_v9, %v12369_v30 }
 0x86b   : > { %v4147_v43 = vmul.f32 %v8335_v63, %v12204_v20  ;;  %v3917_v19 = vmul.f32 %v8271_v21, %v12204_v20  ;;  %vm3866_vm1 = vcmp.lt.f32.partialorder %v3850_v49, 0.5 }
 0x86c   : > { %v12390_v40 = vpop.f32.mrf.mxu2 }
 0x86d   : > { %16806 = vst [vmem:[#allocation54_spill] sm:$0xff] %v12390_v40  ;;  %v4166_v36 = vsel %vm4159_vm5, %v4147_v43, %v12394_v15  ;;  %vm3413_vm13 = vcmp.lt.f32.partialorder %v12390_v40, 1.5  ;;  %v8256_v41 = vadd.f32 -4.0, %v12390_v40  ;;  %v3936_v51 = vsel %vm3929_vm10, %v3917_v19, %v12394_v15 }
 0x86e   : > { %v9023_v12 = vpack.i.bf16 %v4395_v62, %v4166_v36  ;;  %v8144_v34 = vsel %vm3413_vm13, 1.0, %v16480_v13  ;;  %v9028_v39 = vpack.i.bf16 %v4164_v24, %v3936_v51  ;;  %v8320_v11 = vadd.f32 -6.0, %v12390_v40 }
 0x86f   : > { %v3854_v44 = vand.u32 2147483647, %v8256_v41  ;;  %v3461_v29 = vmul.f32 %v8144_v34, %v12209_v37  ;;  %v8268_v43 = vsel %vm3866_vm1, 1.0, %v16480_v13  ;;  %vm3699_vm1 = vcmp.gt.f32.partialorder %v12318_v8, 1.5 }
 0x870   : > { %9024 = vrot.lane.b32.xlu0 %v9023_v12, %s9556_s27  ;;  %9029 = vrot.lane.b32.xlu1 %v9028_v39, %s9556_s27  ;;  %v4084_v45 = vand.u32 2147483647, %v8320_v11  ;;  %v3914_v36 = vmul.f32 %v8268_v43, %v12173_v52 }
 0x871   : > { %vm3870_vm12 = vcmp.lt.f32.partialorder %v3854_v44, 0.5  ;;  %v12426_v38 = vsel %vm3472_vm2, %v3461_v29, 0.0 }
 0x872   : > { %v8272_v59 = vsel %vm3870_vm12, 1.0, %v16480_v13  ;;  %16809 = vst [vmem:[#allocation113_spill] sm:$0xff] %v12426_v38  ;;  %vm4100_vm9 = vcmp.lt.f32.partialorder %v4084_v45, 0.5  ;;  %v3933_v11 = vsel %vm3929_vm10, %v3914_v36, %v12361_v58 }
 0x873   : > { %v3918_v32 = vmul.f32 %v8272_v59, %v12209_v37  ;;  %v8336_v24 = vsel %vm4100_vm9, 1.0, %v16480_v13 }
 0x874   : > { %v12422_v35 = vpop.f32.mrf.mxu2  ;;  %v4148_v39 = vmul.f32 %v8336_v24, %v12209_v37 }
 0x875   : > { %16808 = vst [vmem:[#allocation60_spill] sm:$0xff] %v12422_v35  ;;  %v3937_v28 = vsel %vm3929_vm10, %v3918_v32, %v12426_v38  ;;  %v8321_v63 = vadd.f32 -6.0, %v12422_v35  ;;  %vm3414_vm6 = vcmp.lt.f32.partialorder %v12422_v35, 1.5 }
 0x876   : > { %v9033_v14 = vpack.i.bf16 %v4165_v48, %v3937_v28  ;;  %v8145_v29 = vsel %vm3414_vm6, 1.0, %v16480_v13  ;;  %v4167_v48 = vsel %vm4159_vm5, %v4148_v39, %v12426_v38 }
 0x877   : > { %v4085_v21 = vand.u32 2147483647, %v8321_v63  ;;  %v3462_v43 = vmul.f32 %v8145_v29, %v12218_v60 }
 0x878   : > { %9034 = vrot.lane.b32.xlu1 %v9033_v14, %s9556_s27 }
 0x879   : > { %vm4101_vm14 = vcmp.lt.f32.partialorder %v4085_v21, 0.5  ;;  %v12488_v29 = vsel %vm3472_vm2, %v3462_v43, 0.0 }
 0x87a   : > { %v8337_v9 = vsel %vm4101_vm14, 1.0, %v16480_v13  ;;  %16812 = vst [vmem:[#allocation59_spill] sm:$0xff] %v12488_v29 }
 0x87b   : > { %v4149_v21 = vmul.f32 %v8337_v9, %v12218_v60 }
 0x87c   : > { %v12437_v19 = vpop.f32.mrf.mxu2 }
 0x87d   : > { %16810 = vst [vmem:[#allocation77_spill] sm:$0xff] %v12437_v19  ;;  %vm3415_vm4 = vcmp.lt.f32.partialorder %v12437_v19, 1.5  ;;  %v8578_v62 = vadd.f32 -14.0, %v12437_v19  ;;  %v8258_v41 = vadd.f32 -4.0, %v12437_v19  ;;  %v8322_v51 = vadd.f32 -6.0, %v12437_v19 }
 0x87e   : > { %v8146_v12 = vsel %vm3415_vm4, 1.0, %v16480_v13 }
 0x87f   : > { %v5006_v34 = vand.u32 2147483647, %v8578_v62  ;;  %v3856_v10 = vand.u32 2147483647, %v8258_v41  ;;  %v3463_v44 = vmul.f32 %v8146_v12, %v12225_v5  ;;  %v4086_v25 = vand.u32 2147483647, %v8322_v51 }
 0x881   : > { %vm5022_vm15 = vcmp.lt.f32.partialorder %v5006_v34, 0.5  ;;  %vm3872_vm8 = vcmp.lt.f32.partialorder %v3856_v10, 0.5  ;;  %vm4102_vm0 = vcmp.lt.f32.partialorder %v4086_v25, 0.5  ;;  %v12467_v63 = vsel %vm3472_vm2, %v3463_v44, 0.0 }
 0x882   : > { %v8594_v59 = vsel %vm5022_vm15, 1.0, %v16480_v13  ;;  %v8274_v32 = vsel %vm3872_vm8, 1.0, %v16480_v13  ;;  %v8338_v45 = vsel %vm4102_vm0, 1.0, %v16480_v13  ;;  %16811 = vst [vmem:[#allocation74_spill] sm:$0xff] %v12467_v63 }
 0x883   : > { %v5070_v49 = vmul.f32 %v8594_v59, %v12225_v5  ;;  %v3920_v28 = vmul.f32 %v8274_v32, %v12225_v5  ;;  %v4150_v24 = vmul.f32 %v8338_v45, %v12225_v5  ;;  %v4168_v59 = vsel %vm4159_vm5, %v4149_v21, %v12488_v29 }
 0x884   : > { %v12463_v14 = vpop.f32.mrf.mxu2 }
 0x885   : > { %v5089_v36 = vsel %vm5079_vm3, %v5070_v49, %v12467_v63  ;;  %v3939_v62 = vsel %vm3929_vm10, %v3920_v28, %v12467_v63  ;;  %vm3416_vm13 = vcmp.lt.f32.partialorder %v12463_v14, 1.5  ;;  %v8259_v41 = vadd.f32 -4.0, %v12463_v14 }
 0x886   : > { %v9043_v12 = vpack.i.bf16 %v3933_v11, %v5089_v36  ;;  %v9038_v51 = vpack.i.bf16 %v4167_v48, %v3939_v62  ;;  %v8147_v34 = vsel %vm3416_vm13, 1.0, %v16480_v13  ;;  %v8387_v10 = vadd.f32 -8.0, %v12463_v14 }
 0x887   : > { %v3464_v39 = vmul.f32 %v8147_v34, %v12236_v0  ;;  %v3857_v44 = vand.u32 2147483647, %v8259_v41  ;;  %v8195_v25 = vadd.f32 -2.0, %v12463_v14  ;;  %v8323_v11 = vadd.f32 -6.0, %v12463_v14 }
 0x888   : > { %9044 = vrot.lane.b32.xlu2 %v9043_v12, %s9556_s27  ;;  %9039 = vrot.lane.b32.xlu0 %v9038_v51, %s9556_s27  ;;  %v4317_v9 = vand.u32 2147483647, %v8387_v10  ;;  %v12499_v28 = vsel %vm4159_vm5, %v4150_v24, %v12467_v63  ;;  %v8379_v24 = vadd.f32 -8.0, %v12305_v3 }
 0x889   : > { %vm3873_vm12 = vcmp.lt.f32.partialorder %v3857_v44, 0.5  ;;  %v3627_v32 = vand.u32 2147483647, %v8195_v25  ;;  %v4087_v48 = vand.u32 2147483647, %v8323_v11  ;;  %v12503_v45 = vsel %vm3472_vm2, %v3464_v39, 0.0 }
 0x88a   : > { %v8275_v49 = vsel %vm3873_vm12, 1.0, %v16480_v13  ;;  %vm4333_vm9 = vcmp.lt.f32.partialorder %v4317_v9, 0.5  ;;  %16813 = vst [vmem:[#allocation50_spill] sm:$0xff] %v12503_v45 }
 0x88b   : > { %v3921_v43 = vmul.f32 %v8275_v49, %v12236_v0  ;;  %v8403_v21 = vsel %vm4333_vm9, 1.0, %v16480_v13  ;;  %vm3643_vm4 = vcmp.lt.f32.partialorder %v3627_v32, 0.5  ;;  %vm12511_vm6 = vcmp.lt.f32.partialorder %v4087_v48, 0.5 }
 0x88c   : > { %v12507_v36 = vpop.f32.mrf.mxu2  ;;  %v4381_v62 = vmul.f32 %v8403_v21, %v12236_v0  ;;  %v8211_v41 = vsel %vm3643_vm4, 1.0, %v16480_v13  ;;  %v8339_v21 = vsel %vm12511_vm6, 1.0, %v16480_v13 }
 0x88d   : > { %16814 = vst [vmem:[#allocation103_spill] sm:$0xff] %v12507_v36  ;;  %v3940_v51 = vsel %vm3929_vm10, %v3921_v43, %v12503_v45  ;;  %vm3417_vm14 = vcmp.lt.f32.partialorder %v12507_v36, 1.5  ;;  %v8324_v34 = vadd.f32 -6.0, %v12507_v36  ;;  %v8196_v10 = vadd.f32 -2.0, %v12507_v36 }
 0x88e   : > { %v9048_v39 = vpack.i.bf16 %v4168_v59, %v3940_v51  ;;  %v8148_v44 = vsel %vm3417_vm14, 1.0, %v16480_v13  ;;  %v4400_v25 = vsel %vm4389_vm7, %v4381_v62, %v12503_v45  ;;  %v3691_v9 = vmul.f32 %v8211_v41, %v12236_v0 }
 0x88f   : > { %v3465_v11 = vmul.f32 %v8148_v44, %v12243_v2  ;;  %v4088_v32 = vand.u32 2147483647, %v8324_v34  ;;  %v3628_v49 = vand.u32 2147483647, %v8196_v10  ;;  %v8260_v48 = vadd.f32 -4.0, %v12507_v36 }
 0x890   : > { %9049 = vrot.lane.b32.xlu2 %v9048_v39, %s9556_s27  ;;  %v3710_v59 = vsel %vm3699_vm1, %v3691_v9, %v12503_v45  ;;  %v8388_v43 = vadd.f32 -8.0, %v12507_v36  ;;  %v4309_v62 = vand.u32 2147483647, %v8379_v24  ;;  %v4151_v44 = vmul.f32 %v8339_v21, %v12236_v0 }
 0x891   : > { %v12539_v41 = vsel %vm3472_vm2, %v3465_v11, 0.0  ;;  %vm4104_vm15 = vcmp.lt.f32.partialorder %v4088_v32, 0.5  ;;  %vm3644_vm8 = vcmp.lt.f32.partialorder %v3628_v49, 0.5  ;;  %v3858_v51 = vand.u32 2147483647, %v8260_v48 }
 0x892   : > { %16817 = vst [vmem:[#allocation95_spill] sm:$0xff] %v12539_v41  ;;  %v8340_v34 = vsel %vm4104_vm15, 1.0, %v16480_v13  ;;  %v8212_v10 = vsel %vm3644_vm8, 1.0, %v16480_v13  ;;  %v4318_v39 = vand.u32 2147483647, %v8388_v43  ;;  %vm4325_vm13 = vcmp.lt.f32.partialorder %v4309_v62, 0.5 }
 0x893   : > { %v4152_v9 = vmul.f32 %v8340_v34, %v12243_v2  ;;  %v3692_v12 = vmul.f32 %v8212_v10, %v12243_v2  ;;  %vm3874_vm0 = vcmp.lt.f32.partialorder %v3858_v51, 0.5  ;;  %v12552_v32 = vsel %vm4159_vm5, %v4151_v44, %v12503_v45 }
 0x894   : > { %v12546_v24 = vpop.f32.mrf.mxu2  ;;  %v8276_v11 = vsel %vm3874_vm0, 1.0, %v16480_v13  ;;  %vm4334_vm12 = vcmp.lt.f32.partialorder %v4318_v39, 0.5  ;;  %v8395_v49 = vsel %vm4325_vm13, 1.0, %v16480_v13  ;;  %vm4619_vm0 = vcmp.gt.f32.partialorder %v12318_v8, 9.5 }
 0x895   : > { %16818 = vst [vmem:[#allocation106_spill] sm:$0xff] %v12546_v24  ;;  %v4171_v48 = vsel %vm4159_vm5, %v4152_v9, %v12539_v41  ;;  %v3711_v43 = vsel %vm3699_vm1, %v3692_v12, %v12539_v41  ;;  %v3922_v21 = vmul.f32 %v8276_v11, %v12243_v2  ;;  %vm3418_vm9 = vcmp.lt.f32.partialorder %v12546_v24, 1.5 }
 0x896   : > { %v9058_v62 = vpack.i.bf16 %v4400_v25, %v4171_v48  ;;  %v9053_v51 = vpack.i.bf16 %v3710_v59, %v3711_v43  ;;  %v8149_v34 = vsel %vm3418_vm9, 1.0, %v16480_v13  ;;  %v8325_v10 = vadd.f32 -6.0, %v12546_v24 }
 0x897   : > { %v3941_v39 = vsel %vm3929_vm10, %v3922_v21, %v12539_v41  ;;  %v3466_v44 = vmul.f32 %v8149_v34, %v12252_v17  ;;  %v8404_v9 = vsel %vm4334_vm12, 1.0, %v16480_v13  ;;  %v8261_v12 = vadd.f32 -4.0, %v12546_v24 }
 0x898   : > { %9059 = vrot.lane.b32.xlu1 %v9058_v62, %s9556_s27  ;;  %9054 = vrot.lane.b32.xlu0 %v9053_v51, %s9556_s27  ;;  %v9063_v25 = vpack.i.bf16 %v12499_v28, %v3941_v39  ;;  %v4089_v59 = vand.u32 2147483647, %v8325_v10  ;;  %v4382_v11 = vmul.f32 %v8404_v9, %v12243_v2  ;;  %v8389_v48 = vadd.f32 -8.0, %v12546_v24 }
 0x899   : > { %v12578_v43 = vsel %vm3472_vm2, %v3466_v44, 0.0  ;;  %v3859_v21 = vand.u32 2147483647, %v8261_v12  ;;  %v8197_v34 = vadd.f32 -2.0, %v12546_v24  ;;  %v4373_v50 = vmul.f32 %v8395_v49, %v12168_v31 }
 0x89a   : > { %16819 = vst [vmem:[#allocation104_spill] sm:$0xff] %v12578_v43  ;;  %vm4105_vm4 = vcmp.lt.f32.partialorder %v4089_v59, 0.5  ;;  %v4401_v62 = vsel %vm4389_vm7, %v4382_v11, %v12539_v41  ;;  %v4319_v28 = vand.u32 2147483647, %v8389_v48  ;;  %v8187_v51 = vadd.f32 -2.0, %v12305_v3 }
 0x89b   : > { %v8341_v10 = vsel %vm4105_vm4, 1.0, %v16480_v13  ;;  %vm3875_vm6 = vcmp.lt.f32.partialorder %v3859_v21, 0.5  ;;  %v3629_v39 = vand.u32 2147483647, %v8197_v34  ;;  %v12590_v44 = vsel %vm4389_vm7, %v4373_v50, %v12331_v54 }
 0x89c   : > { %v12592_v9 = vpop.f32.mrf.mxu2  ;;  %v4153_v49 = vmul.f32 %v8341_v10, %v12252_v17  ;;  %v8277_v12 = vsel %vm3875_vm6, 1.0, %v16480_v13  ;;  %vm4335_vm14 = vcmp.lt.f32.partialorder %v4319_v28, 0.5  ;;  %v3619_v59 = vand.u32 2147483647, %v8187_v51 }
 0x89d   : > { %16820 = vst [vmem:[#allocation96_spill] sm:$0xff] %v12592_v9  ;;  %v3923_v11 = vmul.f32 %v8277_v12, %v12252_v17  ;;  %vm3419_vm15 = vcmp.lt.f32.partialorder %v12592_v9, 1.5  ;;  %v8326_v48 = vadd.f32 -6.0, %v12592_v9  ;;  %v8405_v21 = vsel %vm4335_vm14, 1.0, %v16480_v13 }
 0x89e   : > { %v4172_v50 = vsel %vm4159_vm5, %v4153_v49, %v12578_v43  ;;  %v8150_v34 = vsel %vm3419_vm15, 1.0, %v16480_v13  ;;  %v4383_v10 = vmul.f32 %v8405_v21, %v12252_v17  ;;  %v8198_v53 = vadd.f32 -2.0, %v12592_v9 }
 0x89f   : > { %v9068_v28 = vpack.i.bf16 %v4401_v62, %v4172_v50  ;;  %v3942_v51 = vsel %vm3929_vm10, %v3923_v11, %v12578_v43  ;;  %v3467_v12 = vmul.f32 %v8150_v34, %v12259_v46  ;;  %v4090_v4 = vand.u32 2147483647, %v8326_v48 }
 0x8a0   : > { %9064 = vrot.lane.b32.xlu1 %v9063_v25, %s9556_s27  ;;  %v9073_v55 = vpack.i.bf16 %v12552_v32, %v3942_v51  ;;  %v4402_v49 = vsel %vm4389_vm7, %v4383_v10, %v12578_v43  ;;  %v3630_v33 = vand.u32 2147483647, %v8198_v53  ;;  %vm3645_vm8 = vcmp.lt.f32.partialorder %v3629_v39, 0.5 }
 0x8a1   : > { %9069 = vrot.lane.b32.xlu0 %v9068_v28, %s9556_s27  ;;  %v12619_v62 = vsel %vm3472_vm2, %v3467_v12, 0.0  ;;  %vm4106_vm13 = vcmp.lt.f32.partialorder %v4090_v4, 0.5  ;;  %v8213_v11 = vsel %vm3645_vm8, 1.0, %v16480_v13  ;;  %v8454_v25 = vadd.f32 -10.0, %v12592_v9 }
 0x8a2   : > { %16821 = vst [vmem:[#allocation52_spill] sm:$0xff] %v12619_v62  ;;  %v8342_v32 = vsel %vm4106_vm13, 1.0, %v16480_v13  ;;  %vm3646_vm12 = vcmp.lt.f32.partialorder %v3630_v33, 0.5  ;;  %v3693_v48 = vmul.f32 %v8213_v11, %v12252_v17  ;;  %vm3635_vm9 = vcmp.lt.f32.partialorder %v3619_v59, 0.5 }
 0x8a3   : > { %v4154_v53 = vmul.f32 %v8342_v32, %v12259_v46  ;;  %v8214_v39 = vsel %vm3646_vm12, 1.0, %v16480_v13  ;;  %v4550_v21 = vand.u32 2147483647, %v8454_v25  ;;  %v8203_v50 = vsel %vm3635_vm9, 1.0, %v16480_v13 }
 0x8a4   : > { %v12628_v34 = vpop.f32.mrf.mxu2  ;;  %v3694_v4 = vmul.f32 %v8214_v39, %v12259_v46  ;;  %v3712_v10 = vsel %vm3699_vm1, %v3693_v48, %v12578_v43  ;;  %v3683_v33 = vmul.f32 %v8203_v50, %v12168_v31  ;;  %v8262_v28 = vadd.f32 -4.0, %v12592_v9 }
 0x8a5   : > { %16822 = vst [vmem:[#allocation108_spill] sm:$0xff] %v12628_v34  ;;  %v4173_v59 = vsel %vm4159_vm5, %v4154_v53, %v12619_v62  ;;  %vm4566_vm4 = vcmp.lt.f32.partialorder %v4550_v21, 0.5  ;;  %vm3420_vm6 = vcmp.lt.f32.partialorder %v12628_v34, 1.5  ;;  %v8327_v51 = vadd.f32 -6.0, %v12628_v34 }
 0x8a6   : > { %v9083_v12 = vpack.i.bf16 %v4402_v49, %v4173_v59  ;;  %v3713_v11 = vsel %vm3699_vm1, %v3694_v4, %v12619_v62  ;;  %v8470_v25 = vsel %vm4566_vm4, 1.0, %v16480_v13  ;;  %v3702_v32 = vsel %vm3699_vm1, %v3683_v33, %v12331_v54 }
 0x8a7   : > { %v9078_v48 = vpack.i.bf16 %v3712_v10, %v3713_v11  ;;  %v4614_v39 = vmul.f32 %v8470_v25, %v12259_v46  ;;  %v3860_v53 = vand.u32 2147483647, %v8262_v28  ;;  %v8151_v21 = vsel %vm3420_vm6, 1.0, %v16480_v13 }
 0x8a8   : > { %9084 = vrot.lane.b32.xlu2 %v9083_v12, %s9556_s27  ;;  %v3468_v49 = vmul.f32 %v8151_v21, %v12270_v6  ;;  %v4091_v50 = vand.u32 2147483647, %v8327_v51  ;;  %v8390_v59 = vadd.f32 -8.0, %v12592_v9  ;;  %v8380_v4 = vadd.f32 -8.0, %v12308_v42 }
 0x8a9   : > { %9074 = vrot.lane.b32.xlu0 %v9073_v55, %s9556_s27  ;;  %9079 = vrot.lane.b32.xlu1 %v9078_v48, %s9556_s27  ;;  %v4633_v10 = vsel %vm4619_vm0, %v4614_v39, %v12619_v62  ;;  %vm3876_vm14 = vcmp.lt.f32.partialorder %v3860_v53, 0.5  ;;  %v8455_v33 = vadd.f32 -10.0, %v12628_v34  ;;  %v8188_v28 = vadd.f32 -2.0, %v12308_v42 }
 0x8aa   : > { %v9093_v12 = vpack.i.bf16 %v4633_v10, %v12590_v44  ;;  %v8278_v51 = vsel %vm3876_vm14, 1.0, %v16480_v13  ;;  %v12665_v11 = vsel %vm3472_vm2, %v3468_v49, 0.0  ;;  %vm4107_vm15 = vcmp.lt.f32.partialorder %v4091_v50, 0.5 }
 0x8ab   : > { %16823 = vst [vmem:[#allocation58_spill] sm:$0xff] %v12665_v11  ;;  %v3924_v55 = vmul.f32 %v8278_v51, %v12259_v46  ;;  %v8343_v25 = vsel %vm4107_vm15, 1.0, %v16480_v13  ;;  %v4320_v48 = vand.u32 2147483647, %v8390_v59  ;;  %v4310_v39 = vand.u32 2147483647, %v8380_v4 }
 0x8ac   : > { %v12669_v53 = vpop.f32.mrf.mxu2  ;;  %v4155_v21 = vmul.f32 %v8343_v25, %v12270_v6  ;;  %v4551_v61 = vand.u32 2147483647, %v8455_v33  ;;  %v3620_v57 = vand.u32 2147483647, %v8188_v28  ;;  %v8263_v44 = vadd.f32 -4.0, %v12628_v34 }
 0x8ad   : > { %16824 = vst [vmem:[#allocation109_spill] sm:$0xff] %v12669_v53  ;;  %v3943_v49 = vsel %vm3929_vm10, %v3924_v55, %v12619_v62  ;;  %vm4336_vm8 = vcmp.lt.f32.partialorder %v4320_v48, 0.5  ;;  %vm4326_vm13 = vcmp.lt.f32.partialorder %v4310_v39, 0.5  ;;  %vm3421_vm12 = vcmp.lt.f32.partialorder %v12669_v53, 1.5 }
 0x8ae   : > { %v9088_v50 = vpack.i.bf16 %v3943_v49, %v3702_v32  ;;  %v4174_v59 = vsel %vm4159_vm5, %v4155_v21, %v12665_v11  ;;  %v8406_v4 = vsel %vm4336_vm8, 1.0, %v16480_v13  ;;  %v8396_v10 = vsel %vm4326_vm13, 1.0, %v16480_v13 }
 0x8af   : > { %v4384_v33 = vmul.f32 %v8406_v4, %v12259_v46  ;;  %v4374_v28 = vmul.f32 %v8396_v10, %v12173_v52  ;;  %vm4567_vm9 = vcmp.lt.f32.partialorder %v4551_v61, 0.5  ;;  %vm3636_vm4 = vcmp.lt.f32.partialorder %v3620_v57, 0.5 }
 0x8b0   : > { %9089 = vrot.lane.b32.xlu2 %v9088_v50, %s9556_s27  ;;  %v8471_v51 = vsel %vm4567_vm9, 1.0, %v16480_v13  ;;  %v8204_v32 = vsel %vm3636_vm4, 1.0, %v16480_v13  ;;  %v3861_v55 = vand.u32 2147483647, %v8263_v44  ;;  %v8152_v25 = vsel %vm3421_vm12, 1.0, %v16480_v13 }
 0x8b1   : > { %9094 = vrot.lane.b32.xlu0 %v9093_v12, %s9556_s27  ;;  %v4403_v48 = vsel %vm4389_vm7, %v4384_v33, %v12619_v62  ;;  %v4393_v61 = vsel %vm4389_vm7, %v4374_v28, %v12361_v58  ;;  %v4615_v57 = vmul.f32 %v8471_v51, %v12270_v6  ;;  %v3684_v39 = vmul.f32 %v8204_v32, %v12173_v52 }
 0x8b2   : > { %v9098_v21 = vpack.i.bf16 %v4403_v48, %v4174_v59  ;;  %vm3877_vm6 = vcmp.lt.f32.partialorder %v3861_v55, 0.5  ;;  %v3469_v44 = vmul.f32 %v8152_v25, %v12277_v23  ;;  %v8199_v49 = vadd.f32 -2.0, %v12628_v34 }
 0x8b3   : > { %v4634_v12 = vsel %vm4619_vm0, %v4615_v57, %v12665_v11  ;;  %v3703_v50 = vsel %vm3699_vm1, %v3684_v39, %v12361_v58  ;;  %v8279_v4 = vsel %vm3877_vm6, 1.0, %v16480_v13  ;;  %v8200_v10 = vadd.f32 -2.0, %v12669_v53 }
 0x8b4   : > { %9099 = vrot.lane.b32.xlu1 %v9098_v21, %s9556_s27  ;;  %v9113_v59 = vpack.i.bf16 %v4634_v12, %v4393_v61  ;;  %v3925_v33 = vmul.f32 %v8279_v4, %v12270_v6  ;;  %v12711_v28 = vsel %vm3472_vm2, %v3469_v44, 0.0  ;;  %v3631_v51 = vand.u32 2147483647, %v8199_v49 }
 0x8b5   : > { %16825 = vst [vmem:[#allocation107_spill] sm:$0xff] %v12711_v28  ;;  %v3632_v32 = vand.u32 2147483647, %v8200_v10  ;;  %v8453_v55 = vadd.f32 -10.0, %v12546_v24  ;;  %v8519_v25 = vadd.f32 -12.0, %v12628_v34  ;;  %vm4849_vm14 = vcmp.gt.f32.partialorder %v12318_v8, 11.5 }
 0x8b6   : > { %v8257_v48 = vadd.f32 -4.0, %v12422_v35  ;;  %v3944_v61 = vsel %vm3929_vm10, %v3925_v33, %v12665_v11  ;;  %vm3647_vm15 = vcmp.lt.f32.partialorder %v3631_v51, 0.5  ;;  %v8583_v57 = vadd.f32 -14.0, %v12628_v34 }
 0x8b7   : > { %v8520_v39 = vadd.f32 -12.0, %v12669_v53  ;;  %v9103_v21 = vpack.i.bf16 %v3944_v61, %v3703_v50  ;;  %vm3648_vm8 = vcmp.lt.f32.partialorder %v3632_v32, 0.5  ;;  %v8215_v44 = vsel %vm3647_vm15, 1.0, %v16480_v13 }
 0x8b8   : > { %v4549_v49 = vand.u32 2147483647, %v8453_v55  ;;  %v8216_v12 = vsel %vm3648_vm8, 1.0, %v16480_v13  ;;  %v3695_v4 = vmul.f32 %v8215_v44, %v12270_v6  ;;  %v4781_v10 = vand.u32 2147483647, %v8519_v25 }
 0x8b9   : > { %v3855_v7 = vand.u32 2147483647, %v8257_v48  ;;  %9114 = vrot.lane.b32.xlu0 %v9113_v59, %s9556_s27  ;;  %v3696_v33 = vmul.f32 %v8216_v12, %v12277_v23  ;;  %v5011_v51 = vand.u32 2147483647, %v8583_v57  ;;  %v4782_v58 = vand.u32 2147483647, %v8520_v39 }
 0x8ba   : > { %vm4565_vm13 = vcmp.lt.f32.partialorder %v4549_v49, 0.5  ;;  %v3714_v50 = vsel %vm3699_vm1, %v3695_v4, %v12665_v11  ;;  %vm4797_vm12 = vcmp.lt.f32.partialorder %v4781_v10, 0.5  ;;  %v8579_v49 = vadd.f32 -14.0, %v12463_v14 }
 0x8bb   : > { %v8469_v32 = vsel %vm4565_vm13, 1.0, %v16480_v13  ;;  %vm3871_vm9 = vcmp.lt.f32.partialorder %v3855_v7, 0.5  ;;  %v3715_v55 = vsel %vm3699_vm1, %v3696_v33, %v12711_v28  ;;  %v8535_v59 = vsel %vm4797_vm12, 1.0, %v16480_v13  ;;  %v12754_v33 = vpop.f32.mrf.mxu2 }
 0x8bc   : > { %v4613_v25 = vmul.f32 %v8469_v32, %v12252_v17  ;;  %v8273_v48 = vsel %vm3871_vm9, 1.0, %v16480_v13  ;;  %9104 = vrot.lane.b32.xlu1 %v9103_v21, %s9556_s27  ;;  %v9123_v61 = vpack.i.bf16 %v3714_v50, %v3715_v55  ;;  %v4845_v57 = vmul.f32 %v8535_v59, %v12270_v6  ;;  %16826 = vst [vmem:[#allocation51_spill] sm:$0xff] %v12754_v33 }
 0x8bd   : > { %v3919_v39 = vmul.f32 %v8273_v48, %v12218_v60  ;;  %vm5027_vm4 = vcmp.lt.f32.partialorder %v5011_v51, 0.5  ;;  %vm4798_vm6 = vcmp.lt.f32.partialorder %v4782_v58, 0.5  ;;  %v5007_v50 = vand.u32 2147483647, %v8579_v49 }
 0x8be   : > { %v4632_v7 = vsel %vm4619_vm0, %v4613_v25, %v12578_v43  ;;  %v8599_v44 = vsel %vm5027_vm4, 1.0, %v16480_v13  ;;  %9124 = vrot.lane.b32.xlu2 %v9123_v61, %s9556_s27  ;;  %v4864_v21 = vsel %vm4849_vm14, %v4845_v57, %v12665_v11  ;;  %v8536_v10 = vsel %vm4798_vm6, 1.0, %v16480_v13 }
 0x8bf   : > { %v3938_v12 = vsel %vm3929_vm10, %v3919_v39, %v12488_v29  ;;  %v5075_v4 = vmul.f32 %v8599_v44, %v12270_v6  ;;  %v9118_v51 = vpack.i.bf16 %v4864_v21, %v4632_v7  ;;  %v4846_v58 = vmul.f32 %v8536_v10, %v12277_v23 }
 0x8c0   : > { %v8384_v32 = vadd.f32 -8.0, %v12390_v40  ;;  %v8584_v25 = vadd.f32 -14.0, %v12669_v53  ;;  %v8328_v59 = vadd.f32 -6.0, %v12669_v53  ;;  %v8391_v48 = vadd.f32 -8.0, %v12628_v34 }
 0x8c1   : > { %v5094_v55 = vsel %vm5079_vm3, %v5075_v4, %v12665_v11  ;;  %9119 = vrot.lane.b32.xlu0 %v9118_v51, %s9556_s27  ;;  %v4865_v57 = vsel %vm4849_vm14, %v4846_v58, %v12711_v28  ;;  %vm5023_vm15 = vcmp.lt.f32.partialorder %v5007_v50, 0.5  ;;  %vm3422_vm8 = vcmp.lt.f32.partialorder %v12754_v33, 1.5 }
 0x8c2   : > { %v9108_v61 = vpack.i.bf16 %v3938_v12, %v5094_v55  ;;  %v4314_v39 = vand.u32 2147483647, %v8384_v32  ;;  %v8595_v7 = vsel %vm5023_vm15, 1.0, %v16480_v13  ;;  %v5012_v44 = vand.u32 2147483647, %v8584_v25 }
 0x8c3   : > { %v4092_v49 = vand.u32 2147483647, %v8328_v59  ;;  %v5071_v21 = vmul.f32 %v8595_v7, %v12236_v0  ;;  %v4321_v4 = vand.u32 2147483647, %v8391_v48  ;;  %v8153_v10 = vsel %vm3422_vm8, 1.0, %v16480_v13  ;;  %v12810_v52 = vpop.f32.mrf.mxu2 }
 0x8c4   : > { %vm4330_vm13 = vcmp.lt.f32.partialorder %v4314_v39, 0.5  ;;  %9109 = vrot.lane.b32.xlu1 %v9108_v61, %s9556_s27  ;;  %vm5028_vm12 = vcmp.lt.f32.partialorder %v5012_v44, 0.5  ;;  %v3470_v51 = vmul.f32 %v8153_v10, %v12286_v56  ;;  %v8329_v44 = vadd.f32 -6.0, %v12754_v33  ;;  %16828 = vst [vmem:[#allocation73_spill] sm:$0xff] %v12810_v52 }
 0x8c5   : > { %v8400_v12 = vsel %vm4330_vm13, 1.0, %v16480_v13  ;;  %vm4108_vm9 = vcmp.lt.f32.partialorder %v4092_v49, 0.5  ;;  %v5090_v58 = vsel %vm5079_vm3, %v5071_v21, %v12503_v45  ;;  %v8600_v32 = vsel %vm5028_vm12, 1.0, %v16480_v13 }
 0x8c6   : > { %v4378_v50 = vmul.f32 %v8400_v12, %v12209_v37  ;;  %v8344_v55 = vsel %vm4108_vm9, 1.0, %v16480_v13  ;;  %v9148_v25 = vpack.i.bf16 %v5090_v58, %v4865_v57  ;;  %v5076_v59 = vmul.f32 %v8600_v32, %v12277_v23 }
 0x8c7   : > { %v4156_v48 = vmul.f32 %v8344_v55, %v12277_v23  ;;  %vm4337_vm4 = vcmp.lt.f32.partialorder %v4321_v4, 0.5  ;;  %v12789_v7 = vsel %vm3472_vm2, %v3470_v51, 0.0  ;;  %v8392_v4 = vadd.f32 -8.0, %v12669_v53 }
 0x8c8   : > { %v4397_v61 = vsel %vm4389_vm7, %v4378_v50, %v12426_v38  ;;  %v8407_v39 = vsel %vm4337_vm4, 1.0, %v16480_v13  ;;  %16827 = vst [vmem:[#allocation56_spill] sm:$0xff] %v12789_v7  ;;  %9149 = vrot.lane.b32.xlu2 %v9148_v25, %s9556_s27  ;;  %v5095_v57 = vsel %vm5079_vm3, %v5076_v59, %v12711_v28  ;;  %v4093_v12 = vand.u32 2147483647, %v8329_v44 }
 0x8c9   : > { %v4175_v49 = vsel %vm4159_vm5, %v4156_v48, %v12711_v28  ;;  %v4385_v21 = vmul.f32 %v8407_v39, %v12270_v6  ;;  %v9138_v10 = vpack.i.bf16 %v5095_v57, %v4397_v61  ;;  %v8189_v51 = vadd.f32 -2.0, %v12312_v18 }
 0x8ca   : > { %v8264_v58 = vadd.f32 -4.0, %v12669_v53  ;;  %v4322_v32 = vand.u32 2147483647, %v8392_v4  ;;  %v8190_v55 = vadd.f32 -2.0, %v12336_v47  ;;  %v8265_v25 = vadd.f32 -4.0, %v12754_v33 }
 0x8cb   : > { %v4404_v50 = vsel %vm4389_vm7, %v4385_v21, %v12665_v11  ;;  %vm4109_vm6 = vcmp.lt.f32.partialorder %v4093_v12, 0.5  ;;  %v3621_v48 = vand.u32 2147483647, %v8189_v51  ;;  %vm3423_vm4 = vcmp.lt.f32.partialorder %v12810_v52, 1.5 }
 0x8cc   : > { %v9128_v59 = vpack.i.bf16 %v4404_v50, %v4175_v49  ;;  %v3862_v39 = vand.u32 2147483647, %v8264_v58  ;;  %9139 = vrot.lane.b32.xlu1 %v9138_v10, %s9556_s27  ;;  %v8345_v61 = vsel %vm4109_vm6, 1.0, %v16480_v13  ;;  %vm4338_vm15 = vcmp.lt.f32.partialorder %v4322_v32, 0.5 }
 0x8cd   : > { %v3622_v44 = vand.u32 2147483647, %v8190_v55  ;;  %v3863_v57 = vand.u32 2147483647, %v8265_v25  ;;  %v4157_v21 = vmul.f32 %v8345_v61, %v12286_v56  ;;  %v8408_v4 = vsel %vm4338_vm15, 1.0, %v16480_v13 }
 0x8ce   : > { %9129 = vrot.lane.b32.xlu0 %v9128_v59, %s9556_s27  ;;  %vm3637_vm8 = vcmp.lt.f32.partialorder %v3621_v48, 0.5  ;;  %vm3878_vm13 = vcmp.lt.f32.partialorder %v3862_v39, 0.5  ;;  %v4386_v49 = vmul.f32 %v8408_v4, %v12277_v23  ;;  %v8518_v42 = vadd.f32 -12.0, %v12592_v9 }
 0x8cf   : > { %v8205_v12 = vsel %vm3637_vm8, 1.0, %v16480_v13  ;;  %v8280_v10 = vsel %vm3878_vm13, 1.0, %v16480_v13  ;;  %vm3638_vm12 = vcmp.lt.f32.partialorder %v3622_v44, 0.5  ;;  %v4176_v51 = vsel %vm4159_vm5, %v4157_v21, %v12789_v7 }
 0x8d0   : > { %v3685_v58 = vmul.f32 %v8205_v12, %v12186_v26  ;;  %v3926_v50 = vmul.f32 %v8280_v10, %v12277_v23  ;;  %v8206_v32 = vsel %vm3638_vm12, 1.0, %v16480_v13  ;;  %v4405_v55 = vsel %vm4389_vm7, %v4386_v49, %v12711_v28 }
 0x8d1   : > { %v3686_v25 = vmul.f32 %v8206_v32, %v12193_v16  ;;  %vm3879_vm9 = vcmp.lt.f32.partialorder %v3863_v57, 0.5  ;;  %v9158_v59 = vpack.i.bf16 %v4405_v55, %v4176_v51  ;;  %v8154_v21 = vsel %vm3423_vm4, 1.0, %v16480_v13 }
 0x8d2   : > { %v3945_v48 = vsel %vm3929_vm10, %v3926_v50, %v12711_v28  ;;  %v8281_v39 = vsel %vm3879_vm9, 1.0, %v16480_v13  ;;  %v3704_v61 = vsel %vm3699_vm1, %v3685_v58, %v12340_v22  ;;  %v3471_v4 = vmul.f32 %v8154_v21, %v12293_v27 }
 0x8d3   : > { %v3927_v44 = vmul.f32 %v8281_v39, %v12286_v56  ;;  %9159 = vrot.lane.b32.xlu2 %v9158_v59, %s9556_s27  ;;  %v9133_v57 = vpack.i.bf16 %v3945_v48, %v3704_v61  ;;  %v8201_v49 = vadd.f32 -2.0, %v12754_v33  ;;  %v8202_v12 = vadd.f32 -2.0, %v12810_v52 }
 0x8d4   : > { %v3705_v10 = vsel %vm3699_vm1, %v3686_v25, %v12369_v30  ;;  %v8381_v58 = vadd.f32 -8.0, %v12312_v18  ;;  %v8456_v50 = vadd.f32 -10.0, %v12669_v53  ;;  %v12853_v55 = vsel %vm3472_vm2, %v3471_v4, 0.0 }
 0x8d5   : > { %v3946_v51 = vsel %vm3929_vm10, %v3927_v44, %v12789_v7  ;;  %16829 = vst [vmem:[#allocation87_spill] sm:$0xff] %v12853_v55  ;;  %v3633_v59 = vand.u32 2147483647, %v8201_v49  ;;  %v3634_v48 = vand.u32 2147483647, %v8202_v12  ;;  %v8457_v25 = vadd.f32 -10.0, %v12754_v33 }
 0x8d6   : > { %9134 = vrot.lane.b32.xlu0 %v9133_v57, %s9556_s27  ;;  %v9163_v32 = vpack.i.bf16 %v3946_v51, %v3705_v10  ;;  %v4311_v39 = vand.u32 2147483647, %v8381_v58  ;;  %v4552_v61 = vand.u32 2147483647, %v8456_v50  ;;  %v8582_v21 = vadd.f32 -14.0, %v12592_v9 }
 0x8d7   : > { %vm3649_vm6 = vcmp.lt.f32.partialorder %v3633_v59, 0.5  ;;  %vm3650_vm15 = vcmp.lt.f32.partialorder %v3634_v48, 0.5  ;;  %v8452_v44 = vadd.f32 -10.0, %v12507_v36  ;;  %v4553_v59 = vand.u32 2147483647, %v8457_v25 }
 0x8d8   : > { %v8217_v57 = vsel %vm3649_vm6, 1.0, %v16480_v13  ;;  %v8218_v10 = vsel %vm3650_vm15, 1.0, %v16480_v13  ;;  %vm4327_vm8 = vcmp.lt.f32.partialorder %v4311_v39, 0.5  ;;  %vm4568_vm13 = vcmp.lt.f32.partialorder %v4552_v61, 0.5 }
 0x8d9   : > { %v3697_v4 = vmul.f32 %v8217_v57, %v12286_v56  ;;  %v3698_v49 = vmul.f32 %v8218_v10, %v12293_v27  ;;  %v8397_v12 = vsel %vm4327_vm8, 1.0, %v16480_v13  ;;  %v8472_v51 = vsel %vm4568_vm13, 1.0, %v16480_v13 }
 0x8da   : > { %v4375_v58 = vmul.f32 %v8397_v12, %v12186_v26  ;;  %v4616_v50 = vmul.f32 %v8472_v51, %v12277_v23  ;;  %v5010_v48 = vand.u32 2147483647, %v8582_v21  ;;  %v4548_v57 = vand.u32 2147483647, %v8452_v44 }
 0x8db   : > { %9164 = vrot.lane.b32.xlu2 %v9163_v32, %s9556_s27  ;;  %v3716_v39 = vsel %vm3699_vm1, %v3697_v4, %v12789_v7  ;;  %v3717_v61 = vsel %vm3699_vm1, %v3698_v49, %v12853_v55  ;;  %v4780_v10 = vand.u32 2147483647, %v8518_v42  ;;  %vm4569_vm12 = vcmp.lt.f32.partialorder %v4553_v59, 0.5 }
 0x8dc   : > { %v9183_v9 = vpack.i.bf16 %v3716_v39, %v3717_v61  ;;  %v4394_v12 = vsel %vm4389_vm7, %v4375_v58, %v12340_v22  ;;  %v4635_v25 = vsel %vm4619_vm0, %v4616_v50, %v12711_v28  ;;  %v8473_v21 = vsel %vm4569_vm12, 1.0, %v16480_v13 }
 0x8dd   : > { %v9143_v32 = vpack.i.bf16 %v4635_v25, %v4394_v12  ;;  %vm5026_vm9 = vcmp.lt.f32.partialorder %v5010_v48, 0.5  ;;  %vm4564_vm4 = vcmp.lt.f32.partialorder %v4548_v57, 0.5  ;;  %v4617_v44 = vmul.f32 %v8473_v21, %v12286_v56 }
 0x8de   : > { %9184 = vrot.lane.b32.xlu1 %v9183_v9, %s9556_s27  ;;  %v8598_v42 = vsel %vm5026_vm9, 1.0, %v16480_v13  ;;  %v8468_v4 = vsel %vm4564_vm4, 1.0, %v16480_v13  ;;  %vm4796_vm6 = vcmp.lt.f32.partialorder %v4780_v10, 0.5  ;;  %v8192_v59 = vadd.f32 -2.0, %v12390_v40 }
 0x8df   : > { %9144 = vrot.lane.b32.xlu0 %v9143_v32, %s9556_s27  ;;  %v5074_v49 = vmul.f32 %v8598_v42, %v12259_v46  ;;  %v4612_v51 = vmul.f32 %v8468_v4, %v12243_v2  ;;  %v8534_v58 = vsel %vm4796_vm6, 1.0, %v16480_v13  ;;  %v4636_v50 = vsel %vm4619_vm0, %v4617_v44, %v12789_v7 }
 0x8e0   : > { %v4844_v9 = vmul.f32 %v8534_v58, %v12259_v46  ;;  %v8393_v39 = vadd.f32 -8.0, %v12754_v33  ;;  %v8521_v61 = vadd.f32 -12.0, %v12754_v33  ;;  %v3624_v12 = vand.u32 2147483647, %v8192_v59 }
 0x8e1   : > { %v5093_v48 = vsel %vm5079_vm3, %v5074_v49, %v12619_v62  ;;  %v8580_v25 = vadd.f32 -14.0, %v12507_v36  ;;  %v4631_v32 = vsel %vm4619_vm0, %v4612_v51, %v12539_v41  ;;  %v8193_v42 = vadd.f32 -2.0, %v12422_v35 }
 0x8e2   : > { %v9173_v57 = vpack.i.bf16 %v5093_v48, %v4636_v50  ;;  %v4863_v10 = vsel %vm4849_vm14, %v4844_v9, %v12619_v62  ;;  %v4323_v21 = vand.u32 2147483647, %v8393_v39  ;;  %v4783_v44 = vand.u32 2147483647, %v8521_v61  ;;  %v12909_v50 = vpop.permute.xlu1 %9014 }
 0x8e3   : > { %v9188_v4 = vpack.i.bf16 %v4863_v10, %v4631_v32  ;;  %vm3640_vm15 = vcmp.lt.f32.partialorder %v3624_v12, 0.5  ;;  %v5008_v49 = vand.u32 2147483647, %v8580_v25  ;;  %v8330_v58 = vadd.f32 -6.0, %v12810_v52  ;;  %16830 = vst [vmem:[#allocation55_spill] sm:$0xff] %v12909_v50 }
 0x8e4   : > { %9174 = vrot.lane.b32.xlu2 %v9173_v57, %s9556_s27  ;;  %v8208_v9 = vsel %vm3640_vm15, 1.0, %v16480_v13  ;;  %vm4339_vm8 = vcmp.lt.f32.partialorder %v4323_v21, 0.5  ;;  %vm4799_vm13 = vcmp.lt.f32.partialorder %v4783_v44, 0.5  ;;  %v3625_v59 = vand.u32 2147483647, %v8193_v42 }
 0x8e5   : > { %v3688_v51 = vmul.f32 %v8208_v9, %v12209_v37  ;;  %v8409_v48 = vsel %vm4339_vm8, 1.0, %v16480_v13  ;;  %v8537_v39 = vsel %vm4799_vm13, 1.0, %v16480_v13  ;;  %vm5024_vm12 = vcmp.lt.f32.partialorder %v5008_v49, 0.5 }
 0x8e6   : > { %9189 = vrot.lane.b32.xlu1 %v9188_v4, %s9556_s27  ;;  %v4387_v61 = vmul.f32 %v8409_v48, %v12286_v56  ;;  %v4847_v57 = vmul.f32 %v8537_v39, %v12286_v56  ;;  %v8596_v10 = vsel %vm5024_vm12, 1.0, %v16480_v13  ;;  %vm3641_vm9 = vcmp.lt.f32.partialorder %v3625_v59, 0.5 }
 0x8e7   : > { %v5072_v12 = vmul.f32 %v8596_v10, %v12243_v2  ;;  %v8209_v25 = vsel %vm3641_vm9, 1.0, %v16480_v13  ;;  %v4094_v32 = vand.u32 2147483647, %v8330_v58  ;;  %v3707_v21 = vsel %vm3699_vm1, %v3688_v51, %v12426_v38 }
 0x8e8   : > { %v4406_v44 = vsel %vm4389_vm7, %v4387_v61, %v12789_v7  ;;  %v4866_v42 = vsel %vm4849_vm14, %v4847_v57, %v12789_v7  ;;  %v3689_v9 = vmul.f32 %v8209_v25, %v12218_v60  ;;  %v8385_v48 = vadd.f32 -8.0, %v12422_v35 }
 0x8e9   : > { %v9153_v4 = vpack.i.bf16 %v3707_v21, %v4406_v44  ;;  %v5091_v49 = vsel %vm5079_vm3, %v5072_v12, %v12539_v41  ;;  %vm4110_vm4 = vcmp.lt.f32.partialorder %v4094_v32, 0.5  ;;  %v8585_v39 = vadd.f32 -14.0, %v12754_v33 }
 0x8ea   : > { %v9178_v58 = vpack.i.bf16 %v5091_v49, %v4866_v42  ;;  %v8346_v59 = vsel %vm4110_vm4, 1.0, %v16480_v13  ;;  %v8451_v61 = vadd.f32 -10.0, %v12463_v14  ;;  %v8517_v57 = vadd.f32 -12.0, %v12546_v24  ;;  %v12950_v44 = vpop.permute.xlu1 %9019 }
 0x8eb   : > { %9154 = vrot.lane.b32.xlu0 %v9153_v4, %s9556_s27  ;;  %v4158_v51 = vmul.f32 %v8346_v59, %v12293_v27  ;;  %v8191_v10 = vadd.f32 -2.0, %v12365_v1  ;;  %v3708_v12 = vsel %vm3699_vm1, %v3689_v9, %v12488_v29  ;;  %v4315_v32 = vand.u32 2147483647, %v8385_v48  ;;  %16831 = vst [vmem:[#allocation110_spill] sm:$0xff] %v12950_v44 }
 0x8ec   : > { %9179 = vrot.lane.b32.xlu2 %v9178_v58, %s9556_s27  ;;  %v8266_v21 = vadd.f32 -4.0, %v12810_v52  ;;  %v5013_v4 = vand.u32 2147483647, %v8585_v39  ;;  %v4547_v49 = vand.u32 2147483647, %v8451_v61 }
 0x8ed   : > { %v4177_v25 = vsel %vm4159_vm5, %v4158_v51, %v12853_v55  ;;  %v4779_v58 = vand.u32 2147483647, %v8517_v57  ;;  %vm4331_vm6 = vcmp.lt.f32.partialorder %v4315_v32, 0.5  ;;  %v3623_v24 = vand.u32 2147483647, %v8191_v10 }
 0x8ee   : > { %v9208_v42 = vpack.i.bf16 %v4177_v25, %v3708_v12  ;;  %v3864_v62 = vand.u32 2147483647, %v8266_v21  ;;  %v8401_v9 = vsel %vm4331_vm6, 1.0, %v16480_v13  ;;  %vm5029_vm15 = vcmp.lt.f32.partialorder %v5013_v4, 0.5  ;;  %v12999_v25 = vpop.permute.xlu0 %9024 }
 0x8ef   : > { %vm4563_vm5 = vcmp.lt.f32.partialorder %v4547_v49, 0.5  ;;  %vm4795_vm8 = vcmp.lt.f32.partialorder %v4779_v58, 0.5  ;;  %v4379_v51 = vmul.f32 %v8401_v9, %v12218_v60  ;;  %v8601_v48 = vsel %vm5029_vm15, 1.0, %v16480_v13  ;;  %16834 = vst [vmem:[#allocation114_spill] sm:$0xff] %v12999_v25 }
 0x8f0   : > { %9209 = vrot.lane.b32.xlu1 %v9208_v42, %s9556_s27  ;;  %v8467_v39 = vsel %vm4563_vm5, 1.0, %v16480_v13  ;;  %v8533_v61 = vsel %vm4795_vm8, 1.0, %v16480_v13  ;;  %v5077_v57 = vmul.f32 %v8601_v48, %v12286_v56  ;;  %vm3639_vm13 = vcmp.lt.f32.partialorder %v3623_v24, 0.5  ;;  %v12967_v42 = vpop.permute.xlu2 %9044 }
 0x8f1   : > { %v4611_v10 = vmul.f32 %v8467_v39, %v12236_v0  ;;  %v4843_v12 = vmul.f32 %v8533_v61, %v12252_v17  ;;  %v4398_v32 = vsel %vm4389_vm7, %v4379_v51, %v12488_v29  ;;  %v8207_v21 = vsel %vm3639_vm13, 1.0, %v16480_v13  ;;  %16832 = vst [vmem:[#allocation86_spill] sm:$0xff] %v12967_v42 }
 0x8f2   : > { %vm3880_vm12 = vcmp.lt.f32.partialorder %v3864_v62, 0.5  ;;  %v5096_v4 = vsel %vm5079_vm3, %v5077_v57, %v12789_v7  ;;  %v3687_v58 = vmul.f32 %v8207_v21, %v12204_v20  ;;  %v8251_v57 = vadd.f32 -4.0, %v12305_v3 }
 0x8f3   : > { %v4630_v49 = vsel %vm4619_vm0, %v4611_v10, %v12503_v45  ;;  %v4862_v24 = vsel %vm4849_vm14, %v4843_v12, %v12578_v43  ;;  %v9168_v51 = vpack.i.bf16 %v5096_v4, %v4398_v32  ;;  %v8282_v48 = vsel %vm3880_vm12, 1.0, %v16480_v13 }
 0x8f4   : > { %v9198_v62 = vpack.i.bf16 %v4862_v24, %v4630_v49  ;;  %v3706_v39 = vsel %vm3699_vm1, %v3687_v58, %v12394_v15  ;;  %v3928_v61 = vmul.f32 %v8282_v48, %v12293_v27  ;;  %v8577_v10 = vadd.f32 -14.0, %v12422_v35  ;;  %v12993_v49 = vpop.permute.xlu1 %9029 }
 0x8f5   : > { %9169 = vrot.lane.b32.xlu0 %v9168_v51, %s9556_s27  ;;  %v8194_v12 = vadd.f32 -2.0, %v12437_v19  ;;  %v8394_v32 = vadd.f32 -8.0, %v12810_v52  ;;  %v8450_v21 = vadd.f32 -10.0, %v12437_v19  ;;  %v8576_v4 = vadd.f32 -14.0, %v12390_v40  ;;  %16833 = vst [vmem:[#allocation53_spill] sm:$0xff] %v12993_v49 }
 0x8f6   : > { %9199 = vrot.lane.b32.xlu2 %v9198_v62, %s9556_s27  ;;  %v3947_v24 = vsel %vm3929_vm10, %v3928_v61, %v12853_v55  ;;  %v3849_v58 = vand.u32 2147483647, %v8251_v57  ;;  %v5005_v48 = vand.u32 2147483647, %v8577_v10  ;;  %v8516_v51 = vadd.f32 -12.0, %v12507_v36 }
 0x8f7   : > { %v9213_v62 = vpack.i.bf16 %v3947_v24, %v3706_v39  ;;  %v3626_v59 = vand.u32 2147483647, %v8194_v12  ;;  %v4324_v9 = vand.u32 2147483647, %v8394_v32  ;;  %v4546_v50 = vand.u32 2147483647, %v8450_v21 }
 0x8f8   : > { %vm3865_vm9 = vcmp.lt.f32.partialorder %v3849_v58, 0.5  ;;  %vm5021_vm4 = vcmp.lt.f32.partialorder %v5005_v48, 0.5  ;;  %v5004_v43 = vand.u32 2147483647, %v8576_v4  ;;  %v4778_v17 = vand.u32 2147483647, %v8516_v51  ;;  %v13010_v4 = vpop.permute.xlu2 %9049 }
 0x8f9   : > { %9214 = vrot.lane.b32.xlu1 %v9213_v62, %s9556_s27  ;;  %v8267_v46 = vsel %vm3865_vm9, 1.0, %v16480_v13  ;;  %v8593_v61 = vsel %vm5021_vm4, 1.0, %v16480_v13  ;;  %vm3642_vm6 = vcmp.lt.f32.partialorder %v3626_v59, 0.5  ;;  %vm4340_vm15 = vcmp.lt.f32.partialorder %v4324_v9, 0.5  ;;  %16835 = vst [vmem:[#allocation85_spill] sm:$0xff] %v13010_v4 }
 0x8fa   : > { %v3913_v57 = vmul.f32 %v8267_v46, %v12168_v31  ;;  %v5069_v10 = vmul.f32 %v8593_v61, %v12218_v60  ;;  %v8210_v39 = vsel %vm3642_vm6, 1.0, %v16480_v13  ;;  %v8410_v12 = vsel %vm4340_vm15, 1.0, %v16480_v13 }
 0x8fb   : > { %v3690_v32 = vmul.f32 %v8210_v39, %v12225_v5  ;;  %v4388_v21 = vmul.f32 %v8410_v12, %v12293_v27  ;;  %vm4562_vm5 = vcmp.lt.f32.partialorder %v4546_v50, 0.5  ;;  %vm5020_vm8 = vcmp.lt.f32.partialorder %v5004_v43, 0.5 }
 0x8fc   : > { %v3932_v59 = vsel %vm3929_vm10, %v3913_v57, %v12331_v54  ;;  %v5088_v46 = vsel %vm5079_vm3, %v5069_v10, %v12488_v29  ;;  %v8466_v9 = vsel %vm4562_vm5, 1.0, %v16480_v13  ;;  %v8592_v24 = vsel %vm5020_vm8, 1.0, %v16480_v13 }
 0x8fd   : > { %v9193_v58 = vpack.i.bf16 %v3932_v59, %v5088_v46  ;;  %v3709_v50 = vsel %vm3699_vm1, %v3690_v32, %v12467_v63  ;;  %v4407_v43 = vsel %vm4389_vm7, %v4388_v21, %v12853_v55  ;;  %v4610_v48 = vmul.f32 %v8466_v9, %v12225_v5  ;;  %v13036_v32 = vpop.permute.xlu0 %9039  ;;  %v13038_v21 = vpop.permute.xlu1 %9034 }
 0x8fe   : > { %v9203_v51 = vpack.i.bf16 %v4407_v43, %v3709_v50  ;;  %v5068_v62 = vmul.f32 %v8592_v24, %v12209_v37  ;;  %vm4794_vm10 = vcmp.lt.f32.partialorder %v4778_v17, 0.5  ;;  %v8575_v61 = vadd.f32 -14.0, %v12365_v1  ;;  %16836 = vst [vmem:[#allocation115_spill] sm:$0xff] %v13036_v32 }
 0x8ff   : > { %9194 = vrot.lane.b32.xlu0 %v9193_v58, %s9556_s27  ;;  %v4629_v57 = vsel %vm4619_vm0, %v4610_v48, %v12467_v63  ;;  %v8532_v10 = vsel %vm4794_vm10, 1.0, %v16480_v13  ;;  %v8514_v39 = vadd.f32 -12.0, %v12437_v19  ;;  %v8573_v12 = vadd.f32 -14.0, %v12312_v18  ;;  %16837 = vst [vmem:[#allocation80_spill] sm:$0xff] %v13038_v21 }
 0x900   : > { %9204 = vrot.lane.b32.xlu2 %v9203_v51, %s9556_s27  ;;  %v5087_v17 = vsel %vm5079_vm3, %v5068_v62, %v12426_v38  ;;  %v4842_v59 = vmul.f32 %v8532_v10, %v12243_v2  ;;  %v5003_v46 = vand.u32 2147483647, %v8575_v61  ;;  %v8515_v9 = vadd.f32 -12.0, %v12463_v14 }
 0x901   : > { %v9218_v24 = vpack.i.bf16 %v4629_v57, %v5087_v17  ;;  %v4776_v58 = vand.u32 2147483647, %v8514_v39  ;;  %v5001_v50 = vand.u32 2147483647, %v8573_v12  ;;  %v8574_v43 = vadd.f32 -14.0, %v12336_v47 }
 0x902   : > { %v4861_v51 = vsel %vm4849_vm14, %v4842_v59, %v12539_v41  ;;  %vm5019_vm1 = vcmp.lt.f32.partialorder %v5003_v46, 0.5  ;;  %v4777_v36 = vand.u32 2147483647, %v8515_v9  ;;  %v13056_v12 = vpop.permute.xlu2 %9084  ;;  %vm5309_vm6 = vcmp.gt.f32.partialorder %v12318_v8, 15.5 }
 0x903   : > { %9219 = vrot.lane.b32.xlu1 %v9218_v24, %s9556_s27  ;;  %v8591_v62 = vsel %vm5019_vm1, 1.0, %v16480_v13  ;;  %vm4792_vm13 = vcmp.lt.f32.partialorder %v4776_v58, 0.5  ;;  %vm5017_vm12 = vcmp.lt.f32.partialorder %v5001_v50, 0.5  ;;  %v5002_v61 = vand.u32 2147483647, %v8574_v43  ;;  %16838 = vst [vmem:[#allocation92_spill] sm:$0xff] %v13056_v12 }
 0x904   : > { %v5067_v57 = vmul.f32 %v8591_v62, %v12204_v20  ;;  %v8530_v10 = vsel %vm4792_vm13, 1.0, %v16480_v13  ;;  %v8589_v39 = vsel %vm5017_vm12, 1.0, %v16480_v13  ;;  %vm4793_vm9 = vcmp.lt.f32.partialorder %v4777_v36, 0.5 }
 0x905   : > { %v4840_v17 = vmul.f32 %v8530_v10, %v12225_v5  ;;  %v5065_v59 = vmul.f32 %v8589_v39, %v12186_v26  ;;  %v8531_v46 = vsel %vm4793_vm9, 1.0, %v16480_v13  ;;  %vm5018_vm4 = vcmp.lt.f32.partialorder %v5002_v61, 0.5 }
 0x906   : > { %v5086_v24 = vsel %vm5079_vm3, %v5067_v57, %v12394_v15  ;;  %v4841_v58 = vmul.f32 %v8531_v46, %v12236_v0  ;;  %v8590_v50 = vsel %vm5018_vm4, 1.0, %v16480_v13  ;;  %v8649_v46 = vadd.f32 -16.0, %v12754_v33 }
 0x907   : > { %v9223_v36 = vpack.i.bf16 %v5086_v24, %v4861_v51  ;;  %v4859_v43 = vsel %vm4849_vm14, %v4840_v17, %v12467_v63  ;;  %v5084_v62 = vsel %vm5079_vm3, %v5065_v59, %v12340_v22  ;;  %v5066_v61 = vmul.f32 %v8590_v50, %v12193_v16 }
 0x908   : > { %v9238_v57 = vpack.i.bf16 %v5084_v62, %v4859_v43  ;;  %v4860_v39 = vsel %vm4849_vm14, %v4841_v58, %v12503_v45  ;;  %v8448_v51 = vadd.f32 -10.0, %v12390_v40  ;;  %v8446_v24 = vadd.f32 -10.0, %v12336_v47 }
 0x909   : > { %9224 = vrot.lane.b32.xlu0 %v9223_v36, %s9556_s27  ;;  %v5085_v59 = vsel %vm5079_vm3, %v5066_v61, %v12369_v30  ;;  %v8647_v50 = vadd.f32 -16.0, %v12628_v34  ;;  %v8447_v43 = vadd.f32 -10.0, %v12365_v1  ;;  %v5243_v9 = vand.u32 2147483647, %v8649_v46 }
 0x90a   : > { %v13075_v10 = vpop.permute.xlu0 %9054  ;;  %v13082_v17 = vpop.permute.xlu1 %9059  ;;  %9239 = vrot.lane.b32.xlu2 %v9238_v57, %s9556_s27  ;;  %v9228_v58 = vpack.i.bf16 %v5085_v59, %v4860_v39  ;;  %v4544_v62 = vand.u32 2147483647, %v8448_v51  ;;  %v8648_v48 = vadd.f32 -16.0, %v12669_v53  ;;  %v4542_v36 = vand.u32 2147483647, %v8446_v24 }
 0x90b   : > { %16839 = vst [vmem:[#allocation78_spill] sm:$0xff] %v13082_v17  ;;  %v5241_v33 = vand.u32 2147483647, %v8647_v50  ;;  %v4543_v45 = vand.u32 2147483647, %v8447_v43  ;;  %vm5259_vm5 = vcmp.lt.f32.partialorder %v5243_v9, 0.5  ;;  %v13102_v24 = vpop.permute.xlu2 %9089 }
 0x90c   : > { %9229 = vrot.lane.b32.xlu1 %v9228_v58, %s9556_s27  ;;  %vm4560_vm15 = vcmp.lt.f32.partialorder %v4544_v62, 0.5  ;;  %v5242_v34 = vand.u32 2147483647, %v8648_v48  ;;  %v8665_v57 = vsel %vm5259_vm5, 1.0, %v16480_v13  ;;  %vm4558_vm8 = vcmp.lt.f32.partialorder %v4542_v36, 0.5  ;;  %16840 = vst [vmem:[#allocation90_spill] sm:$0xff] %v13102_v24 }
 0x90d   : > { %v8464_v0 = vsel %vm4560_vm15, 1.0, %v16480_v13  ;;  %vm5257_vm10 = vcmp.lt.f32.partialorder %v5241_v33, 0.5  ;;  %v5307_v51 = vmul.f32 %v8665_v57, %v12286_v56  ;;  %v8462_v46 = vsel %vm4558_vm8, 1.0, %v16480_v13 }
 0x90e   : > { %v4608_v39 = vmul.f32 %v8464_v0, %v12209_v37  ;;  %v8663_v59 = vsel %vm5257_vm10, 1.0, %v16480_v13  ;;  %v4606_v50 = vmul.f32 %v8462_v46, %v12193_v16  ;;  %vm4559_vm1 = vcmp.lt.f32.partialorder %v4543_v45, 0.5  ;;  %v16842_v46 = vld [vmem:[#allocation99_spill] sm:$0xff] }
 0x90f   : > { %v5305_v48 = vmul.f32 %v8663_v59, %v12270_v6  ;;  %vm5258_vm13 = vcmp.lt.f32.partialorder %v5242_v34, 0.5  ;;  %v5326_v0 = vsel %vm5309_vm6, %v5307_v51, %v12789_v7  ;;  %v8463_v9 = vsel %vm4559_vm1, 1.0, %v16480_v13 }
 0x910   : > { %v4627_v33 = vsel %vm4619_vm0, %v4608_v39, %v12426_v38  ;;  %v8664_v43 = vsel %vm5258_vm13, 1.0, %v16480_v13  ;;  %v4625_v45 = vsel %vm4619_vm0, %v4606_v50, %v12369_v30  ;;  %v4607_v36 = vmul.f32 %v8463_v9, %v12204_v20 }
 0x911   : > { %v9233_v62 = vpack.i.bf16 %v4627_v33, %v5326_v0  ;;  %v5324_v34 = vsel %vm5309_vm6, %v5305_v48, %v12665_v11  ;;  %v5306_v39 = vmul.f32 %v8664_v43, %v12277_v23  ;;  %v8513_v51 = vadd.f32 -12.0, %v12422_v35 }
 0x912   : > { %v9253_v57 = vpack.i.bf16 %v4625_v45, %v5324_v34  ;;  %v8572_v59 = vadd.f32 -14.0, %v16842_v46  ;;  %v13126_v61 = vpop.permute.xlu1 %9064  ;;  %v4626_v50 = vsel %vm4619_vm0, %v4607_v36, %v12394_v15  ;;  %v8386_v33 = vadd.f32 -8.0, %v12437_v19 }
 0x913   : > { %v13114_v58 = vpop.permute.xlu0 %9069  ;;  %16843 = vst [vmem:[#allocation81_spill] sm:$0xff] %v13126_v61  ;;  %9234 = vrot.lane.b32.xlu0 %v9233_v62, %s9556_s27  ;;  %v8586_v48 = vadd.f32 -14.0, %v12810_v52  ;;  %v8512_v0 = vadd.f32 -12.0, %v12390_v40  ;;  %v5325_v9 = vsel %vm5309_vm6, %v5306_v39, %v12711_v28  ;;  %v4775_v43 = vand.u32 2147483647, %v8513_v51  ;;  %v16844_v51 = vld [vmem:[#allocation70_spill] sm:$0xff] }
 0x914   : > { %16841 = vst [vmem:[#allocation76_spill] sm:$0xff] %v13114_v58  ;;  %9254 = vrot.lane.b32.xlu2 %v9253_v57, %s9556_s27  ;;  %v5000_v45 = vand.u32 2147483647, %v8572_v59  ;;  %v8571_v62 = vadd.f32 -14.0, %v12305_v3  ;;  %v9243_v34 = vpack.i.bf16 %v4626_v50, %v5325_v9  ;;  %v4316_v44 = vand.u32 2147483647, %v8386_v33 }
 0x915   : > { %v5014_v25 = vand.u32 2147483647, %v8586_v48  ;;  %v4774_v36 = vand.u32 2147483647, %v8512_v0  ;;  %vm4791_vm12 = vcmp.lt.f32.partialorder %v4775_v43, 0.5 }
 0x916   : > { %vm5016_vm9 = vcmp.lt.f32.partialorder %v5000_v45, 0.5  ;;  %v4999_v7 = vand.u32 2147483647, %v8571_v62  ;;  %9244 = vrot.lane.b32.xlu1 %v9243_v34, %s9556_s27  ;;  %v8529_v57 = vsel %vm4791_vm12, 1.0, %v16480_v13  ;;  %vm4332_vm4 = vcmp.lt.f32.partialorder %v4316_v44, 0.5 }
 0x917   : > { %v8588_v6 = vsel %vm5016_vm9, 1.0, %v16480_v13  ;;  %vm5030_vm15 = vcmp.lt.f32.partialorder %v5014_v25, 0.5  ;;  %v4839_v39 = vmul.f32 %v8529_v57, %v12218_v60  ;;  %v8402_v50 = vsel %vm4332_vm4, 1.0, %v16480_v13  ;;  %v16846_v25 = vld [vmem:[#allocation61_spill] sm:$0xff] }
 0x918   : > { %v5064_v59 = vmul.f32 %v8588_v6, %v16844_v51  ;;  %v8602_v33 = vsel %vm5030_vm15, 1.0, %v16480_v13  ;;  %v13148_v48 = vpop.permute.xlu2 %9124  ;;  %v4380_v0 = vmul.f32 %v8402_v50, %v12225_v5  ;;  %vm4790_vm5 = vcmp.lt.f32.partialorder %v4774_v36, 0.5 }
 0x919   : > { %v5078_v9 = vmul.f32 %v8602_v33, %v12293_v27  ;;  %vm5015_vm8 = vcmp.lt.f32.partialorder %v4999_v7, 0.5  ;;  %v4858_v44 = vsel %vm4849_vm14, %v4839_v39, %v12488_v29  ;;  %v8528_v45 = vsel %vm4790_vm5, 1.0, %v16480_v13 }
 0x91a   : > { %v5083_v6 = vsel %vm5079_vm3, %v5064_v59, %v16846_v25  ;;  %v8587_v62 = vsel %vm5015_vm8, 1.0, %v16480_v13  ;;  %v4399_v36 = vsel %vm4389_vm7, %v4380_v0, %v12467_v63  ;;  %v4838_v57 = vmul.f32 %v8528_v45, %v12209_v37 }
 0x91b   : > { %v13152_v43 = vpop.permute.xlu0 %9074  ;;  %v9248_v34 = vpack.i.bf16 %v5083_v6, %v4858_v44  ;;  %v5097_v7 = vsel %vm5079_vm3, %v5078_v9, %v12853_v55  ;;  %v5063_v33 = vmul.f32 %v8587_v62, %v12168_v31  ;;  %v13172_v11 = vpop.permute.xlu1 %9079  ;;  %v8445_v62 = vadd.f32 -10.0, %v12312_v18 }
 0x91c   : > { %16845 = vst [vmem:[#allocation82_spill] sm:$0xff] %v13152_v43  ;;  %v9268_v59 = vpack.i.bf16 %v5097_v7, %v4399_v36  ;;  %v4857_v9 = vsel %vm4849_vm14, %v4838_v57, %v12426_v38  ;;  %v16847_v36 = vld [vmem:[#allocation96_spill] sm:$0xff]  ;;  %v8383_v50 = vadd.f32 -8.0, %v12365_v1  ;;  %v8458_v6 = vadd.f32 -10.0, %v12810_v52 }
 0x91d   : > { %9249 = vrot.lane.b32.xlu0 %v9248_v34, %s9556_s27  ;;  %v5082_v45 = vsel %vm5079_vm3, %v5063_v33, %v12331_v54  ;;  %v8646_v7 = vadd.f32 -16.0, %v16847_v36  ;;  %v8444_v34 = vadd.f32 -10.0, %v16842_v46  ;;  %v8510_v44 = vadd.f32 -12.0, %v12336_v47 }
 0x91e   : > { %9269 = vrot.lane.b32.xlu2 %v9268_v59, %s9556_s27  ;;  %v9258_v39 = vpack.i.bf16 %v5082_v45, %v4857_v9  ;;  %v4541_v59 = vand.u32 2147483647, %v8445_v62  ;;  %v4313_v42 = vand.u32 2147483647, %v8383_v50  ;;  %v4554_v49 = vand.u32 2147483647, %v8458_v6 }
 0x91f   : > { %v5240_v0 = vand.u32 2147483647, %v8646_v7  ;;  %v4540_v21 = vand.u32 2147483647, %v8444_v34  ;;  %v4772_v28 = vand.u32 2147483647, %v8510_v44 }
 0x920   : > { %9259 = vrot.lane.b32.xlu1 %v9258_v39, %s9556_s27  ;;  %vm4557_vm10 = vcmp.lt.f32.partialorder %v4541_v59, 0.5  ;;  %vm4329_vm13 = vcmp.lt.f32.partialorder %v4313_v42, 0.5  ;;  %vm4570_vm12 = vcmp.lt.f32.partialorder %v4554_v49, 0.5  ;;  %v16850_v6 = vld [vmem:[#allocation93_spill] sm:$0xff]  ;;  %v16851_v9 = vld [vmem:[#allocation52_spill] sm:$0xff] }
 0x921   : > { %vm5256_vm1 = vcmp.lt.f32.partialorder %v5240_v0, 0.5  ;;  %v8461_v23 = vsel %vm4557_vm10, 1.0, %v16480_v13  ;;  %v8399_v50 = vsel %vm4329_vm13, 1.0, %v16480_v13  ;;  %v8474_v0 = vsel %vm4570_vm12, 1.0, %v16480_v13 }
 0x922   : > { %v13195_v45 = vpop.permute.xlu2 %9149  ;;  %v8662_v62 = vsel %vm5256_vm1, 1.0, %v16480_v13  ;;  %v4605_v39 = vmul.f32 %v8461_v23, %v12186_v26  ;;  %v4377_v34 = vmul.f32 %v8399_v50, %v12204_v20  ;;  %v4618_v59 = vmul.f32 %v8474_v0, %v12293_v27 }
 0x923   : > { %16848 = vst [vmem:[#allocation88_spill] sm:$0xff] %v13195_v45  ;;  %v13200_v7 = vpop.permute.xlu0 %9094  ;;  %v5304_v44 = vmul.f32 %v8662_v62, %v16850_v6  ;;  %vm4556_vm9 = vcmp.lt.f32.partialorder %v4540_v21, 0.5  ;;  %vm4788_vm4 = vcmp.lt.f32.partialorder %v4772_v28, 0.5 }
 0x924   : > { %16849 = vst [vmem:[#allocation71_spill] sm:$0xff] %v13200_v7  ;;  %v4624_v49 = vsel %vm4619_vm0, %v4605_v39, %v12340_v22  ;;  %v4396_v62 = vsel %vm4389_vm7, %v4377_v34, %v12394_v15  ;;  %v8460_v50 = vsel %vm4556_vm9, 1.0, %v16480_v13  ;;  %v4637_v28 = vsel %vm4619_vm0, %v4618_v59, %v12853_v55  ;;  %v16852_v59 = vld [vmem:[#allocation103_spill] sm:$0xff] }
 0x925   : > { %v5323_v23 = vsel %vm5309_vm6, %v5304_v44, %v16851_v9  ;;  %v4604_v21 = vmul.f32 %v8460_v50, %v16844_v51  ;;  %v8526_v39 = vsel %vm4788_vm4, 1.0, %v16480_v13  ;;  %v9273_v33 = vpack.i.bf16 %v4637_v28, %v4396_v62  ;;  %v16853_v28 = vld [vmem:[#allocation106_spill] sm:$0xff] }
 0x926   : > { %v13218_v57 = vpop.permute.xlu1 %9099  ;;  %v9263_v42 = vpack.i.bf16 %v4624_v49, %v5323_v23  ;;  %v4836_v34 = vmul.f32 %v8526_v39, %v12193_v16  ;;  %v8443_v23 = vadd.f32 -10.0, %v12305_v3  ;;  %v8644_v32 = vadd.f32 -16.0, %v16852_v59 }
 0x927   : > { %v4623_v49 = vsel %vm4619_vm0, %v4604_v21, %v16846_v25  ;;  %v8522_v50 = vadd.f32 -12.0, %v12810_v52  ;;  %9274 = vrot.lane.b32.xlu2 %v9273_v33, %s9556_s27  ;;  %v8581_v39 = vadd.f32 -14.0, %v16853_v28  ;;  %v8642_v44 = vadd.f32 -16.0, %v12437_v19 }
 0x928   : > { %9264 = vrot.lane.b32.xlu0 %v9263_v42, %s9556_s27  ;;  %v4855_v62 = vsel %vm4849_vm14, %v4836_v34, %v12369_v30  ;;  %v8508_v42 = vadd.f32 -12.0, %v16842_v46  ;;  %v4539_v21 = vand.u32 2147483647, %v8443_v23  ;;  %v5238_v4 = vand.u32 2147483647, %v8644_v32 }
 0x929   : > { %v9293_v0 = vpack.i.bf16 %v4855_v62, %v4623_v49  ;;  %v4784_v12 = vand.u32 2147483647, %v8522_v50  ;;  %v5009_v6 = vand.u32 2147483647, %v8581_v39  ;;  %v5236_v59 = vand.u32 2147483647, %v8642_v44 }
 0x92a   : > { %v4770_v56 = vand.u32 2147483647, %v8508_v42  ;;  %vm4555_vm7 = vcmp.lt.f32.partialorder %v4539_v21, 0.5  ;;  %vm5254_vm15 = vcmp.lt.f32.partialorder %v5238_v4, 0.5  ;;  %v16855_v42 = vld [vmem:[#allocation62_spill] sm:$0xff] }
 0x92b   : > { %v13245_v38 = vpop.permute.xlu0 %9114  ;;  %9294 = vrot.lane.b32.xlu1 %v9293_v0, %s9556_s27  ;;  %vm4800_vm5 = vcmp.lt.f32.partialorder %v4784_v12, 0.5  ;;  %v8459_v49 = vsel %vm4555_vm7, 1.0, %v16480_v13  ;;  %v8660_v32 = vsel %vm5254_vm15, 1.0, %v16480_v13  ;;  %vm5025_vm8 = vcmp.lt.f32.partialorder %v5009_v6, 0.5 }
 0x92c   : > { %16854 = vst [vmem:[#allocation63_spill] sm:$0xff] %v13245_v38  ;;  %v8538_v23 = vsel %vm4800_vm5, 1.0, %v16480_v13  ;;  %v4603_v44 = vmul.f32 %v8459_v49, %v12168_v31  ;;  %v5302_v50 = vmul.f32 %v8660_v32, %v12243_v2  ;;  %v8597_v39 = vsel %vm5025_vm8, 1.0, %v16480_v13 }
 0x92d   : > { %v13243_v33 = vpop.permute.xlu2 %9159  ;;  %v4848_v62 = vmul.f32 %v8538_v23, %v12293_v27  ;;  %v5073_v4 = vmul.f32 %v8597_v39, %v16855_v42  ;;  %vm4786_vm10 = vcmp.lt.f32.partialorder %v4770_v56, 0.5  ;;  %vm5252_vm1 = vcmp.lt.f32.partialorder %v5236_v59, 0.5  ;;  %v16857_v39 = vld [vmem:[#allocation104_spill] sm:$0xff] }
 0x92e   : > { %v13258_v12 = vpop.permute.xlu1 %9104  ;;  %v4622_v6 = vsel %vm4619_vm0, %v4603_v44, %v12331_v54  ;;  %v5321_v21 = vsel %vm5309_vm6, %v5302_v50, %v12539_v41  ;;  %v8524_v32 = vsel %vm4786_vm10, 1.0, %v16480_v13  ;;  %v8658_v9 = vsel %vm5252_vm1, 1.0, %v16480_v13 }
 0x92f   : > { %16856 = vst [vmem:[#allocation67_spill] sm:$0xff] %v13258_v12  ;;  %v4867_v49 = vsel %vm4849_vm14, %v4848_v62, %v12853_v55  ;;  %v9298_v23 = vpack.i.bf16 %v4622_v6, %v5321_v21  ;;  %v5092_v56 = vsel %vm5079_vm3, %v5073_v4, %v16857_v39  ;;  %v4834_v59 = vmul.f32 %v8524_v32, %v16844_v51 }
 0x930   : > { %v9278_v50 = vpack.i.bf16 %v5092_v56, %v4867_v49  ;;  %v5300_v0 = vmul.f32 %v8658_v9, %v12225_v5  ;;  %v8507_v4 = vadd.f32 -12.0, %v12305_v3  ;;  %v8641_v21 = vadd.f32 -16.0, %v12422_v35 }
 0x931   : > { %9299 = vrot.lane.b32.xlu0 %v9298_v23, %s9556_s27  ;;  %v4853_v6 = vsel %vm4849_vm14, %v4834_v59, %v16846_v25  ;;  %v8449_v9 = vadd.f32 -10.0, %v12422_v35  ;;  %v8650_v32 = vadd.f32 -16.0, %v12810_v52  ;;  %v8637_v23 = vadd.f32 -16.0, %v12312_v18 }
 0x932   : > { %9279 = vrot.lane.b32.xlu2 %v9278_v50, %s9556_s27  ;;  %v5319_v49 = vsel %vm5309_vm6, %v5300_v0, %v12467_v63  ;;  %v4769_v62 = vand.u32 2147483647, %v8507_v4  ;;  %v5235_v44 = vand.u32 2147483647, %v8641_v21  ;;  %v8638_v59 = vadd.f32 -16.0, %v12336_v47 }
 0x933   : > { %v9308_v56 = vpack.i.bf16 %v5319_v49, %v4853_v6  ;;  %v13295_v24 = vpop.permute.xlu0 %9119  ;;  %v4545_v17 = vand.u32 2147483647, %v8449_v9  ;;  %v5244_v41 = vand.u32 2147483647, %v8650_v32  ;;  %v5231_v0 = vand.u32 2147483647, %v8637_v23 }
 0x934   : > { %16858 = vst [vmem:[#allocation64_spill] sm:$0xff] %v13295_v24  ;;  %vm4785_vm3 = vcmp.lt.f32.partialorder %v4769_v62, 0.5  ;;  %vm5251_vm13 = vcmp.lt.f32.partialorder %v5235_v44, 0.5  ;;  %v5232_v6 = vand.u32 2147483647, %v8638_v59  ;;  %v16865_v24 = vld [vmem:[#allocation51_spill] sm:$0xff] }
 0x935   : > { %v13293_v34 = vpop.permute.xlu2 %9164  ;;  %9309 = vrot.lane.b32.xlu1 %v9308_v56, %s9556_s27  ;;  %v8523_v4 = vsel %vm4785_vm3, 1.0, %v16480_v13  ;;  %v8657_v21 = vsel %vm5251_vm13, 1.0, %v16480_v13  ;;  %vm4561_vm12 = vcmp.lt.f32.partialorder %v4545_v17, 0.5  ;;  %vm5260_vm9 = vcmp.lt.f32.partialorder %v5244_v41, 0.5 }
 0x936   : > { %v4833_v49 = vmul.f32 %v8523_v4, %v12168_v31  ;;  %v5299_v50 = vmul.f32 %v8657_v21, %v12218_v60  ;;  %v8465_v9 = vsel %vm4561_vm12, 1.0, %v16480_v13  ;;  %v8666_v32 = vsel %vm5260_vm9, 1.0, %v16480_v13  ;;  %v13306_v23 = vpop.permute.xlu1 %9109 }
 0x937   : > { %16859 = vst [vmem:[#allocation97_spill] sm:$0xff] %v13306_v23  ;;  %v4609_v62 = vmul.f32 %v8465_v9, %v12218_v60  ;;  %v5308_v44 = vmul.f32 %v8666_v32, %v12293_v27  ;;  %vm5247_vm4 = vcmp.lt.f32.partialorder %v5231_v0, 0.5  ;;  %vm5248_vm7 = vcmp.lt.f32.partialorder %v5232_v6, 0.5 }
 0x938   : > { %v4852_v41 = vsel %vm4849_vm14, %v4833_v49, %v12331_v54  ;;  %v5318_v17 = vsel %vm5309_vm6, %v5299_v50, %v12488_v29  ;;  %v8653_v56 = vsel %vm5247_vm4, 1.0, %v16480_v13  ;;  %v8654_v59 = vsel %vm5248_vm7, 1.0, %v16480_v13 }
 0x939   : > { %v9313_v4 = vpack.i.bf16 %v5318_v17, %v4852_v41  ;;  %v4628_v21 = vsel %vm4619_vm0, %v4609_v62, %v12488_v29  ;;  %v5327_v0 = vsel %vm5309_vm6, %v5308_v44, %v12853_v55  ;;  %v5295_v6 = vmul.f32 %v8653_v56, %v12186_v26 }
 0x93a   : > { %v9283_v50 = vpack.i.bf16 %v4628_v21, %v5327_v0  ;;  %v5296_v32 = vmul.f32 %v8654_v59, %v12193_v16  ;;  %v8635_v44 = vadd.f32 -16.0, %v12305_v3  ;;  %v8636_v56 = vadd.f32 -16.0, %v16842_v46 }
 0x93b   : > { %9314 = vrot.lane.b32.xlu0 %v9313_v4, %s9556_s27  ;;  %v5314_v62 = vsel %vm5309_vm6, %v5295_v6, %v12340_v22  ;;  %v8511_v59 = vadd.f32 -12.0, %v12365_v1  ;;  %v8645_v21 = vadd.f32 -16.0, %v16853_v28  ;;  %v8643_v29 = vadd.f32 -16.0, %v12463_v14 }
 0x93c   : > { %9284 = vrot.lane.b32.xlu2 %v9283_v50, %s9556_s27  ;;  %v5315_v17 = vsel %vm5309_vm6, %v5296_v32, %v12369_v30  ;;  %v5229_v50 = vand.u32 2147483647, %v8635_v44  ;;  %v5230_v63 = vand.u32 2147483647, %v8636_v56  ;;  %v8169_v38 = vadd.f32 -1.0, %v16865_v24 }
 0x93d   : > { %v9323_v49 = vpack.i.bf16 %v5314_v62, %v5315_v17  ;;  %v4773_v32 = vand.u32 2147483647, %v8511_v59  ;;  %v5239_v30 = vand.u32 2147483647, %v8645_v21  ;;  %v5237_v41 = vand.u32 2147483647, %v8643_v29 }
 0x93e   : > { %v13342_v0 = vpop.permute.xlu2 %9174  ;;  %vm5245_vm0 = vcmp.lt.f32.partialorder %v5229_v50, 0.5  ;;  %vm5246_vm15 = vcmp.lt.f32.partialorder %v5230_v63, 0.5  ;;  %v13354_v62 = vpop.permute.xlu1 %9139  ;;  %v8509_v50 = vadd.f32 -12.0, %v12312_v18  ;;  %v8639_v29 = vadd.f32 -16.0, %v12365_v1 }
 0x93f   : > { %16860 = vst [vmem:[#allocation17_spill] sm:$0xff] %v13342_v0  ;;  %9324 = vrot.lane.b32.xlu1 %v9323_v49, %s9556_s27  ;;  %v8651_v6 = vsel %vm5245_vm0, 1.0, %v16480_v13  ;;  %vm4789_vm5 = vcmp.lt.f32.partialorder %v4773_v32, 0.5  ;;  %vm5255_vm8 = vcmp.lt.f32.partialorder %v5239_v30, 0.5  ;;  %v8652_v44 = vsel %vm5246_vm15, 1.0, %v16480_v13 }
 0x940   : > { %v13344_v4 = vpop.permute.xlu0 %9129  ;;  %16861 = vst [vmem:[#allocation18_spill] sm:$0xff] %v13354_v62  ;;  %v5293_v17 = vmul.f32 %v8651_v6, %v12168_v31  ;;  %v8527_v56 = vsel %vm4789_vm5, 1.0, %v16480_v13  ;;  %v8661_v59 = vsel %vm5255_vm8, 1.0, %v16480_v13  ;;  %v5294_v49 = vmul.f32 %v8652_v44, %v16844_v51 }
 0x941   : > { %v4837_v21 = vmul.f32 %v8527_v56, %v12204_v20  ;;  %v5303_v63 = vmul.f32 %v8661_v59, %v16855_v42  ;;  %v4771_v30 = vand.u32 2147483647, %v8509_v50  ;;  %vm5253_vm1 = vcmp.lt.f32.partialorder %v5237_v41, 0.5 }
 0x942   : > { %v5312_v6 = vsel %vm5309_vm6, %v5293_v17, %v12331_v54  ;;  %v5313_v44 = vsel %vm5309_vm6, %v5294_v49, %v16846_v25  ;;  %v6297_v17 = vld [vmem:[%s15880_s7 + $0x8] sm:$0xff]  ;;  %v5233_v49 = vand.u32 2147483647, %v8639_v29  ;;  %v3503_v54 = vand.u32 2147483647, %v8169_v38 }
 0x943   : > { %v4856_v56 = vsel %vm4849_vm14, %v4837_v21, %v12394_v15  ;;  %v5322_v59 = vsel %vm5309_vm6, %v5303_v63, %v16857_v39  ;;  %v9328_v3 = vpack.i.bf16 %v5312_v6, %v5313_v44  ;;  %vm4787_vm10 = vcmp.lt.f32.partialorder %v4771_v30, 0.5  ;;  %v16864_v30 = vld [vmem:[#allocation50_spill] sm:$0xff]  ;;  %v6729_v29 = vld [vmem:[%s15881_s8 + $0x8] sm:$0xff] }
 0x944   : > { %v9288_v32 = vpack.i.bf16 %v5322_v59, %v4856_v56  ;;  %v8525_v50 = vsel %vm4787_vm10, 1.0, %v16480_v13  ;;  %v8640_v6 = vadd.f32 -16.0, %v12390_v40  ;;  %v8659_v59 = vsel %vm5253_vm1, 1.0, %v16480_v13  ;;  %v16870_v38 = vld [vmem:[#allocation103_spill] sm:$0xff] }
 0x945   : > { %9329 = vrot.lane.b32.xlu0 %v9328_v3, %s9556_s27  ;;  %v4835_v56 = vmul.f32 %v8525_v50, %v12186_v26  ;;  %vm5249_vm3 = vcmp.lt.f32.partialorder %v5233_v49, 0.5  ;;  %v6779_v49 = vld [vmem:[%s15883_s10 + $0x18] sm:$0xff]  ;;  %vm3519_vm12 = vcmp.lt.f32.partialorder %v3503_v54, 0.5  ;;  %vm4044_vm15 = vcmp.gt.f32.partialorder %v12318_v8, 4.5 }
 0x946   : > { %v13386_v45 = vpop.permute.xlu2 %9179  ;;  %9289 = vrot.lane.b32.xlu2 %v9288_v32, %s9556_s27  ;;  %v16863_v32 = vld [vmem:[#allocation68_spill] sm:$0xff]  ;;  %v5234_v41 = vand.u32 2147483647, %v8640_v6 }
 0x947   : > { %16862 = vst [vmem:[#allocation19_spill] sm:$0xff] %v13386_v45  ;;  %6302 = vrot.lane.b32.xlu1 %v6297_v17, %s9557_s29  ;;  %v5301_v21 = vmul.f32 %v8659_v59, %v16863_v32  ;;  %v4854_v6 = vsel %vm4849_vm14, %v4835_v56, %v12340_v22  ;;  %v8655_v17 = vsel %vm5249_vm3, 1.0, %v16480_v13  ;;  %v8170_v59 = vadd.f32 -1.0, %v12810_v52 }
 0x948   : > { %v13388_v63 = vpop.permute.xlu0 %9134  ;;  %vm5250_vm13 = vcmp.lt.f32.partialorder %v5234_v41, 0.5  ;;  %v5297_v3 = vmul.f32 %v8655_v17, %v12204_v20  ;;  %v16869_v41 = vld [vmem:[#allocation113_spill] sm:$0xff]  ;;  %v8185_v22 = vsel %vm3519_vm12, 1.0, %v16480_v13 }
 0x949   : > { %v5320_v50 = vsel %vm5309_vm6, %v5301_v21, %v16864_v30  ;;  %v8656_v44 = vsel %vm5250_vm13, 1.0, %v16480_v13  ;;  %v3504_v56 = vand.u32 2147483647, %v8170_v59  ;;  %v8166_v21 = vadd.f32 -1.0, %v16847_v36  ;;  %v16871_v30 = vld [vmem:[#allocation84_spill] sm:$0xff] }
 0x94a   : > { %v9303_v61 = vpack.i.bf16 %v5320_v50, %v4854_v6  ;;  %v5298_v9 = vmul.f32 %v8656_v44, %v12209_v37  ;;  %v16868_v50 = vld [vmem:[#allocation108_spill] sm:$0xff]  ;;  %v8164_v59 = vadd.f32 -1.0, %v16870_v38  ;;  %v3567_v31 = vmul.f32 %v8185_v22, %v16871_v30 }
 0x94b   : > { %v8167_v6 = vadd.f32 -1.0, %v16868_v50  ;;  %vm3520_vm14 = vcmp.lt.f32.partialorder %v3504_v56, 0.5 }
 0x94c   : > { %v5317_v62 = vsel %vm5309_vm6, %v5298_v9, %v16869_v41  ;;  %v8186_v0 = vsel %vm3520_vm14, 1.0, %v16480_v13  ;;  %v3500_v9 = vand.u32 2147483647, %v8166_v21  ;;  %v6776_v41 = vld [vmem:[%s15883_s10] sm:$0xff]  ;;  %v8163_v21 = vadd.f32 -1.0, %v12463_v14 }
 0x94d   : > { %6737 = vperm.xlu0 %9011, %v6729_v29   ;;  %v8168_v29 = vadd.f32 -1.0, %v12669_v53  ;;  %v3568_v43 = vmul.f32 %v8186_v0, %v12293_v27  ;;  %vm3814_vm14 = vcmp.gt.f32.partialorder %v12318_v8, 2.5 }
 0x94e   : > { %9304 = vrot.lane.b32.xlu2 %v9303_v61, %s9556_s27  ;;  %v5316_v61 = vsel %vm5309_vm6, %v5297_v3, %v12394_v15  ;;  %v3501_v3 = vand.u32 2147483647, %v8167_v6  ;;  %v6778_v15 = vld [vmem:[%s15883_s10 + $0x10] sm:$0xff]  ;;  %vm3516_vm4 = vcmp.lt.f32.partialorder %v3500_v9, 0.5  ;;  %v16877_v9 = vld [vmem:[#allocation93_spill] sm:$0xff] }
 0x94f   : > { %6797 = vperm.xlu1 %9333, %v6779_v49   ;;  %v8165_v49 = vadd.f32 -1.0, %v16853_v28  ;;  %v3502_v23 = vand.u32 2147483647, %v8168_v29  ;;  %v9318_v56 = vpack.i.bf16 %v5316_v61, %v5317_v62  ;;  %v3602_v0 = vsel %vm3472_vm2, %v3568_v43, 0.0  ;;  %v16874_v43 = vld [vmem:[#allocation65_spill] sm:$0xff] }
 0x950   : > { %v13406_v7 = vpop.permute.xlu1 %9184  ;;  %v13436_v17 = vpop.permute.xlu2 %9199  ;;  %vm3517_vm9 = vcmp.lt.f32.partialorder %v3501_v3, 0.5 }
 0x951   : > { %16866 = vst [vmem:[#allocation20_spill] sm:$0xff] %v13436_v17  ;;  %v9186_v44 = vunpack.i.l.bf16 %v13406_v7  ;;  %v13439_v25 = vpop.permute.xlu0 %9144  ;;  %v3499_v54 = vand.u32 2147483647, %v8165_v49  ;;  %v9187_v29 = vunpack.i.h.bf16 %v13406_v7  ;;  %vm3518_vm6 = vcmp.lt.f32.partialorder %v3502_v23, 0.5  ;;  %v16875_v49 = vld [vmem:[#allocation91_spill] sm:$0xff] }
 0x952   : > { %16867 = vst [vmem:[#allocation21_spill] sm:$0xff] %v13439_v25  ;;  %v8184_v22 = vsel %vm3518_vm6, 1.0, %v16480_v13  ;;  %v8183_v51 = vsel %vm3517_vm9, 1.0, %v16480_v13  ;;  %v3601_v7 = vsel %vm3472_vm2, %v3567_v31, 0.0  ;;  %v3498_v23 = vand.u32 2147483647, %v8164_v59 }
 0x953   : > { %v13472_v62 = vsel %vm1213_vm11, %v3602_v0, %v9186_v44  ;;  %v3566_v61 = vmul.f32 %v8184_v22, %v16874_v43  ;;  %v3565_v3 = vmul.f32 %v8183_v51, %v16875_v49  ;;  %vm3515_vm7 = vcmp.lt.f32.partialorder %v3499_v54, 0.5 }
 0x954   : > { %16873 = vst [vmem:[#allocation23_spill] sm:$0xff] %v13472_v62  ;;  %5968 = vmatpush.msra.mxu3 %v13472_v62  ;;  %v13482_v44 = vsel %vm1213_vm11, %v3601_v7, %v9187_v29  ;;  %v8181_v31 = vsel %vm3515_vm7, 1.0, %v16480_v13  ;;  %v16878_v29 = vunpack.i.l.bf16 %v13148_v48  ;;  %vm3514_vm0 = vcmp.lt.f32.partialorder %v3498_v23, 0.5 }
 0x955   : > { %6792 = vperm.xlu0 %9011, %v6778_v15   ;;  %16876 = vst [vmem:[#allocation24_spill] sm:$0xff] %v13482_v44  ;;  %v3600_v51 = vsel %vm3472_vm2, %v3566_v61, 0.0  ;;  %v3599_v6 = vsel %vm3472_vm2, %v3565_v3, 0.0  ;;  %v3000_v15 = vld [vmem:[%s16880_s6 + $0x18] sm:$0xff]  ;;  %v6296_v61 = vld [vmem:[%s15880_s7] sm:$0xff]  ;;  %v8162_v23 = vadd.f32 -1.0, %v12437_v19  ;;  %v16881_v59 = vunpack.i.h.bf16 %v13148_v48 }
 0x956   : > { %9319 = vrot.lane.b32.xlu2 %v9318_v56, %s9556_s27  ;;  %v8182_v56 = vsel %vm3516_vm4, 1.0, %v16480_v13  ;;  %5969 = vmatpush.msra.mxu3 %v13482_v44  ;;  %v13499_v7 = vsel %vm1213_vm11, %v3600_v51, %v16878_v29  ;;  %v3563_v51 = vmul.f32 %v8181_v31, %v16855_v42  ;;  %v8180_v29 = vsel %vm3514_vm0, 1.0, %v16480_v13 }
 0x957   : > { %6782 = vperm.xlu1 %9333, %v6776_v41   ;;  %v3564_v54 = vmul.f32 %v8182_v56, %v16877_v9  ;;  %16879 = vst [vmem:[#allocation25_spill] sm:$0xff] %v13499_v7  ;;  %v3497_v41 = vand.u32 2147483647, %v8163_v21  ;;  %v2998_v21 = vld [vmem:[%s16880_s6 + $0x8] sm:$0xff]  ;;  %v13522_v44 = vsel %vm1213_vm11, %v3599_v6, %v16881_v59  ;;  %v3562_v45 = vmul.f32 %v8180_v29, %v12243_v2 }
 0x958   : > { %v13459_v12 = vpop.permute.xlu1 %9189  ;;  %5970 = vmatpush.msra.mxu3 %v13499_v7  ;;  %16882 = vst [vmem:[#allocation26_spill] sm:$0xff] %v13522_v44  ;;  %v16883_v7 = vunpack.i.l.bf16 %v13172_v11  ;;  %v3496_v19 = vand.u32 2147483647, %v8162_v23  ;;  %v8298_v48 = vadd.f32 -5.0, %v12810_v52  ;;  %v8161_v59 = vadd.f32 -1.0, %v12422_v35 }
 0x959   : > { %16872 = vst [vmem:[#allocation22_spill] sm:$0xff] %v13459_v12  ;;  %v3598_v56 = vsel %vm3472_vm2, %v3564_v54, 0.0  ;;  %vm3513_vm5 = vcmp.lt.f32.partialorder %v3497_v41, 0.5  ;;  %v3597_v41 = vsel %vm3472_vm2, %v3563_v51, 0.0 }
 0x95a   : > { %v13489_v0 = vpop.permute.xlu2 %9204  ;;  %v13527_v54 = vsel %vm1213_vm11, %v3598_v56, %v16883_v7  ;;  %5971 = vmatpush.msra.mxu3 %v13522_v44  ;;  %v8179_v6 = vsel %vm3513_vm5, 1.0, %v16480_v13  ;;  %v8297_v7 = vadd.f32 -5.0, %v16865_v24  ;;  %v8160_v56 = vadd.f32 -1.0, %v12390_v40 }
 0x95b   : > { %v9206_v3 = vunpack.i.l.bf16 %v13489_v0  ;;  %16884 = vst [vmem:[#allocation27_spill] sm:$0xff] %v13527_v54  ;;  %v3561_v29 = vmul.f32 %v8179_v6, %v16863_v32  ;;  %vm3512_vm8 = vcmp.lt.f32.partialorder %v3496_v19, 0.5  ;;  %v3495_v6 = vand.u32 2147483647, %v8161_v59 }
 0x95c   : > { %5972 = vmatpush.msra.mxu3 %v13527_v54  ;;  %v8178_v35 = vsel %vm3512_vm8, 1.0, %v16480_v13  ;;  %v16887_v19 = vunpack.i.l.bf16 %v13075_v10  ;;  %v16903_v54 = vld [vmem:[#allocation58_spill] sm:$0xff] }
 0x95d   : > { %v13494_v22 = vpop.permute.xlu0 %9154  ;;  %3018 = vperm.xlu0 %9011, %v3000_v15   ;;  %v3979_v15 = vand.u32 2147483647, %v8298_v48  ;;  %v3560_v51 = vmul.f32 %v8178_v35, %v12225_v5  ;;  %v3595_v35 = vsel %vm3472_vm2, %v3561_v29, 0.0  ;;  %vm3511_vm1 = vcmp.lt.f32.partialorder %v3495_v6, 0.5 }
 0x95e   : > { %6300 = vrot.lane.b32.xlu2 %v6296_v61, %s9557_s29  ;;  %v16885_v61 = vunpack.i.h.bf16 %v13172_v11 }
 0x95f   : > { %3008 = vperm.xlu1 %9333, %v2998_v21   ;;  %v3596_v21 = vsel %vm3472_vm2, %v3562_v45, 0.0  ;;  %vm3995_vm10 = vcmp.lt.f32.partialorder %v3979_v15, 0.5  ;;  %v6728_v45 = vld [vmem:[%s15881_s8] sm:$0xff]  ;;  %v3594_v59 = vsel %vm3472_vm2, %v3560_v51, 0.0 }
 0x960   : > { %v13546_v23 = vsel %vm1213_vm11, %v3597_v41, %v16885_v61  ;;  %v13556_v11 = vsel %vm1213_vm11, %v3596_v21, %v16887_v19  ;;  %v8314_v48 = vsel %vm3995_vm10, 1.0, %v16480_v13  ;;  %v3978_v41 = vand.u32 2147483647, %v8297_v7  ;;  %v2997_v61 = vld [vmem:[%s16880_s6] sm:$0xff] }
 0x961   : > { %16886 = vst [vmem:[#allocation28_spill] sm:$0xff] %v13546_v23  ;;  %5973 = vmatpush.msra.mxu3 %v13546_v23  ;;  %v4043_v15 = vmul.f32 %v8314_v48, %v12293_v27  ;;  %v16889_v7 = vunpack.i.h.bf16 %v13075_v10  ;;  %v13577_v21 = vsel %vm1213_vm11, %v3594_v59, %v9206_v3  ;;  %v8177_v19 = vsel %vm3511_vm1, 1.0, %v16480_v13 }
 0x962   : > { %v9210_v62 = vpop.permute.xlu1 %9209  ;;  %16888 = vst [vmem:[#allocation29_spill] sm:$0xff] %v13556_v11  ;;  %vm3994_vm3 = vcmp.lt.f32.partialorder %v3978_v41, 0.5  ;;  %v3559_v51 = vmul.f32 %v8177_v19, %v12218_v60  ;;  %v8296_v41 = vadd.f32 -5.0, %v12669_v53 }
 0x963   : > { %v9212_v31 = vunpack.i.h.bf16 %v9210_v62  ;;  %v9211_v44 = vunpack.i.l.bf16 %v9210_v62  ;;  %v3494_v62 = vand.u32 2147483647, %v8160_v56  ;;  %5974 = vmatpush.msra.mxu3 %v13556_v11  ;;  %v13574_v56 = vsel %vm1213_vm11, %v3595_v35, %v16889_v7  ;;  %16891 = vst [vmem:[#allocation31_spill] sm:$0xff] %v13577_v21 }
 0x964   : > { %16890 = vst [vmem:[#allocation30_spill] sm:$0xff] %v13574_v56  ;;  %v4062_v29 = vsel %vm4044_vm15, %v4043_v15, %v12853_v55  ;;  %v8313_v6 = vsel %vm3994_vm3, 1.0, %v16480_v13  ;;  %v16894_v15 = vld [vmem:[#allocation56_spill] sm:$0xff]  ;;  %v3977_v19 = vand.u32 2147483647, %v8296_v41  ;;  %v8233_v11 = vadd.f32 -3.0, %v16865_v24 }
 0x965   : > { %5975 = vmatpush.msra.mxu3 %v13574_v56  ;;  %vm3510_vm13 = vcmp.lt.f32.partialorder %v3494_v62, 0.5  ;;  %3003 = vperm.xlu0 %9011, %v2997_v61   ;;  %v13587_v10 = vsel %vm1213_vm11, %v4062_v29, %v9212_v31  ;;  %v4042_v3 = vmul.f32 %v8313_v6, %v16871_v30  ;;  %v3593_v62 = vsel %vm3472_vm2, %v3559_v51, 0.0 }
 0x966   : > { %6732 = vperm.xlu2 %9012, %v6728_v45   ;;  %16892 = vst [vmem:[#allocation32_spill] sm:$0xff] %v13587_v10  ;;  %v8176_v48 = vsel %vm3510_vm13, 1.0, %v16480_v13  ;;  %6008 = vmatpush.msra.mxu0 %v13587_v10  ;;  %v13600_v45 = vsel %vm1213_vm11, %v3593_v62, %v9211_v44  ;;  %v8295_v29 = vadd.f32 -5.0, %v16868_v50  ;;  %v16895_v6 = vunpack.i.l.bf16 %v13243_v33 }
 0x967   : > { %5976 = vmatpush.msra.mxu3 %v13577_v21  ;;  %v3558_v31 = vmul.f32 %v8176_v48, %v12209_v37  ;;  %16893 = vst [vmem:[#allocation34_spill] sm:$0xff] %v13600_v45  ;;  %v4061_v7 = vsel %vm4044_vm15, %v4042_v3, %v16894_v15  ;;  %v8159_v44 = vadd.f32 -1.0, %v12365_v1  ;;  %v8234_v48 = vadd.f32 -3.0, %v12810_v52  ;;  %v6777_v3 = vld [vmem:[%s15883_s10 + $0x8] sm:$0xff]  ;;  %v13629_v21 = vpop.permute.xlu2 %9239 }
 0x968   : > { %v13610_v35 = vsel %vm1213_vm11, %v4061_v7, %v16895_v6  ;;  %v16897_v7 = vunpack.i.h.bf16 %v13494_v22  ;;  %vm3993_vm12 = vcmp.lt.f32.partialorder %v3977_v19, 0.5  ;;  %v3976_v59 = vand.u32 2147483647, %v8295_v29  ;;  %16899 = vst [vmem:[#allocation35_spill] sm:$0xff] %v13629_v21  ;;  %v16940_v21 = vld [vmem:[#allocation72_spill] sm:$0xff] }
 0x969   : > { %5977 = vmatpush.msra.mxu3 %v13600_v45  ;;  %16896 = vst [vmem:[#allocation16_spill] sm:$0xff] %v13610_v35  ;;  %v3592_v51 = vsel %vm3472_vm2, %v3558_v31, 0.0  ;;  %6009 = vmatpush.msra.mxu0 %v13610_v35  ;;  %v8312_v31 = vsel %vm3993_vm12, 1.0, %v16480_v13  ;;  %v3493_v10 = vand.u32 2147483647, %v8159_v44  ;;  %v8294_v45 = vadd.f32 -5.0, %v16847_v36 }
 0x96a   : > { %v13624_v6 = vsel %vm1213_vm11, %v3592_v51, %v16897_v7  ;;  %v4041_v35 = vmul.f32 %v8312_v31, %v16874_v43  ;;  %v3749_v56 = vand.u32 2147483647, %v8234_v48  ;;  %vm3992_vm6 = vcmp.lt.f32.partialorder %v3976_v59, 0.5  ;;  %v16900_v7 = vld [vmem:[#allocation107_spill] sm:$0xff] }
 0x96b   : > { %v9215_v61 = vpop.permute.xlu1 %9214  ;;  %16898 = vst [vmem:[#allocation33_spill] sm:$0xff] %v13624_v6  ;;  %5978 = vmatpush.msra.mxu3 %v13624_v6  ;;  %vm3509_vm9 = vcmp.lt.f32.partialorder %v3493_v10, 0.5  ;;  %v3975_v19 = vand.u32 2147483647, %v8294_v45  ;;  %v8293_v51 = vadd.f32 -5.0, %v16853_v28  ;;  %v8311_v44 = vsel %vm3992_vm6, 1.0, %v16480_v13 }
 0x96c   : > { %v9217_v41 = vunpack.i.h.bf16 %v9215_v61  ;;  %v9216_v62 = vunpack.i.l.bf16 %v9215_v61  ;;  %v8158_v61 = vadd.f32 -1.0, %v12336_v47  ;;  %v4060_v29 = vsel %vm4044_vm15, %v4041_v35, %v16900_v7 }
 0x96d   : > { %v8175_v6 = vsel %vm3509_vm9, 1.0, %v16480_v13  ;;  %vm3765_vm4 = vcmp.lt.f32.partialorder %v3749_v56, 0.5  ;;  %v16901_v48 = vunpack.i.l.bf16 %v13344_v4  ;;  %v4040_v10 = vmul.f32 %v8311_v44, %v16875_v49 }
 0x96e   : > { %6787 = vperm.xlu2 %9012, %v6777_v3   ;;  %v3557_v59 = vmul.f32 %v8175_v6, %v12204_v20  ;;  %v8250_v45 = vsel %vm3765_vm4, 1.0, %v16480_v13  ;;  %vm3991_vm7 = vcmp.lt.f32.partialorder %v3975_v19, 0.5  ;;  %v3492_v3 = vand.u32 2147483647, %v8158_v61  ;;  %v2999_v19 = vld [vmem:[%s16880_s6 + $0x10] sm:$0xff]  ;;  %s9472_s6 = scalar_lea.hbm %s9471_s5, 64 }
 0x96f   : > { %v13643_v31 = vsel %vm1213_vm11, %v4060_v29, %v16901_v48  ;;  %v3813_v35 = vmul.f32 %v8250_v45, %v12293_v27  ;;  %v3748_v23 = vand.u32 2147483647, %v8233_v11  ;;  %v4059_v56 = vsel %vm4044_vm15, %v4040_v10, %v16903_v54  ;;  %p9473_p12 = scmp.ne.s32.totalorder %s9471_s5, %s9472_s6  ;;  %p9478_p2 = scmp.lt.s32.totalorder %s9476_s21, %s9472_s6 }
 0x970   : > { %16902 = vst [vmem:[#allocation36_spill] sm:$0xff] %v13643_v31  ;;  %6010 = vmatpush.msra.mxu0 %v13643_v31  ;;  %v3591_v29 = vsel %vm3472_vm2, %v3557_v59, 0.0  ;;  %v8310_v44 = vsel %vm3991_vm7, 1.0, %v16480_v13  ;;  %v3974_v48 = vand.u32 2147483647, %v8293_v51  ;;  %v16904_v6 = vunpack.i.l.bf16 %v13218_v57  ;;  %v13695_v31 = vpop.permute.xlu2 %9254 }
 0x971   : > { %v13662_v45 = vsel %vm1213_vm11, %v3591_v29, %v9216_v62  ;;  %v3832_v11 = vsel %vm3814_vm14, %v3813_v35, %v12853_v55  ;;  %v4039_v61 = vmul.f32 %v8310_v44, %v16877_v9  ;;  %vm3508_vm0 = vcmp.lt.f32.partialorder %v3492_v3, 0.5  ;;  %v16908_v62 = vld [vmem:[#allocation52_spill] sm:$0xff]  ;;  %16912 = vst [vmem:[#allocation41_spill] sm:$0xff] %v13695_v31  ;;  %p9474_p13 = pnand %p9473_p12, %p9698_p5  ;;  %p9479_p3 = por %p9478_p2, %p9477_p1 }
 0x972   : > { %v13659_v17 = vsel %vm1213_vm11, %v4059_v56, %v16904_v6  ;;  %16906 = vst [vmem:[#allocation38_spill] sm:$0xff] %v13662_v45  ;;  %5979 = vmatpush.msra.mxu3 %v13662_v45  ;;  %v13674_v51 = vsel %vm1213_vm11, %v3832_v11, %v9217_v41  ;;  %vm3764_vm5 = vcmp.lt.f32.partialorder %v3748_v23, 0.5  ;;  %vm3990_vm8 = vcmp.lt.f32.partialorder %v3974_v48, 0.5  ;;  %v16909_v29 = vld [vmem:[#allocation92_spill] sm:$0xff]  ;;  %v16935_v11 = vld [vmem:[#allocation77_spill] sm:$0xff] }
 0x973   : > { %16905 = vst [vmem:[#allocation37_spill] sm:$0xff] %v13659_v17  ;;  %6011 = vmatpush.msra.mxu0 %v13659_v17  ;;  %5988 = vmatpush.msra.mxu1 %v13674_v51  ;;  %v4058_v10 = vsel %vm4044_vm15, %v4039_v61, %v16908_v62  ;;  %v8174_v59 = vsel %vm3508_vm0, 1.0, %v16480_v13  ;;  %v8249_v35 = vsel %vm3764_vm5, 1.0, %v16480_v13  ;;  %v8309_v56 = vsel %vm3990_vm8, 1.0, %v16480_v13  ;;  %p9475_p0 = pneg %p9474_p13 }
 0x974   : > { %16907 = vst [vmem:[#allocation39_spill] sm:$0xff] %v13674_v51  ;;  %v16910_v44 = vunpack.i.l.bf16 %v16909_v29  ;;  %v3556_v23 = vmul.f32 %v8174_v59, %v12193_v16  ;;  %v3812_v3 = vmul.f32 %v8249_v35, %v16871_v30  ;;  %v4038_v48 = vmul.f32 %v8309_v56, %v16855_v42 }
 0x975   : > { %v16915_v61 = vunpack.i.h.bf16 %v13293_v34  ;;  %vm4274_vm4 = vcmp.gt.f32.partialorder %v12318_v8, 6.5  ;;  %p9480_p4 = pnand %p9479_p3, %p9475_p0 }
 0x976   : > { %v13686_v41 = vsel %vm1213_vm11, %v4058_v10, %v16910_v44  ;;  %3013 = vperm.xlu2 %9012, %v2999_v19   ;;  %v3590_v59 = vsel %vm3472_vm2, %v3556_v23, 0.0  ;;  %v3831_v35 = vsel %vm3814_vm14, %v3812_v3, %v16894_v15  ;;  %v4057_v56 = vsel %vm4044_vm15, %v4038_v48, %v16857_v39  ;;  %v13723_v10 = vpop.permute.xlu0 %9169 }
 0x977   : > { %16911 = vst [vmem:[#allocation40_spill] sm:$0xff] %v13686_v41  ;;  %6012 = vmatpush.msra.mxu0 %v13686_v41  ;;  %v16913_v19 = vunpack.i.l.bf16 %v13293_v34  ;;  %v13716_v17 = vsel %vm1213_vm11, %v3831_v35, %v16915_v61  ;;  %v16917_v23 = vunpack.i.l.bf16 %v13114_v58  ;;  %v8157_v48 = vadd.f32 -1.0, %v12312_v18 }
 0x978   : > { %16916 = vst [vmem:[#allocation43_spill] sm:$0xff] %v13716_v17  ;;  %5989 = vmatpush.msra.mxu1 %v13716_v17  ;;  %v8292_v34 = vadd.f32 -5.0, %v16870_v38  ;;  %v8156_v61 = vadd.f32 -1.0, %v16842_v46  ;;  %v8231_v35 = vadd.f32 -3.0, %v16868_v50  ;;  %v8230_v44 = vadd.f32 -3.0, %v16847_v36 }
 0x979   : > { %v13711_v6 = vsel %vm1213_vm11, %v3590_v59, %v16913_v19  ;;  %v13721_v3 = vsel %vm1213_vm11, %v4057_v56, %v16917_v23  ;;  %16919 = vst [vmem:[#allocation45_spill] sm:$0xff] %v13723_v10  ;;  %v8232_v59 = vadd.f32 -3.0, %v12669_v53  ;;  %v8291_v56 = vadd.f32 -5.0, %v12463_v14  ;;  %v16920_v19 = vld [vmem:[#allocation112_spill] sm:$0xff] }
 0x97a   : > { %16914 = vst [vmem:[#allocation42_spill] sm:$0xff] %v13711_v6  ;;  %5980 = vmatpush.msra.mxu3 %v13711_v6  ;;  %6013 = vmatpush.msra.mxu0 %v13721_v3  ;;  %v8155_v23 = vadd.f32 -1.0, %v16920_v19  ;;  %v3491_v41 = vand.u32 2147483647, %v8157_v48  ;;  %v3973_v17 = vand.u32 2147483647, %v8292_v34 }
 0x97b   : > { %16918 = vst [vmem:[#allocation44_spill] sm:$0xff] %v13721_v3  ;;  %v3747_v6 = vand.u32 2147483647, %v8232_v59  ;;  %v3490_v51 = vand.u32 2147483647, %v8156_v61 }
 0x97c   : > { %v3746_v12 = vand.u32 2147483647, %v8231_v35  ;;  %v3972_v58 = vand.u32 2147483647, %v8291_v56  ;;  %vm3507_vm10 = vcmp.lt.f32.partialorder %v3491_v41, 0.5  ;;  %vm3989_vm3 = vcmp.lt.f32.partialorder %v3973_v17, 0.5  ;;  %v13745_v35 = vpop.permute.xlu2 %9269 }
 0x97d   : > { %vm3763_vm1 = vcmp.lt.f32.partialorder %v3747_v6, 0.5  ;;  %v3489_v3 = vand.u32 2147483647, %v8155_v23  ;;  %v8173_v25 = vsel %vm3507_vm10, 1.0, %v16480_v13  ;;  %v8308_v29 = vsel %vm3989_vm3, 1.0, %v16480_v13  ;;  %16921 = vst [vmem:[#allocation46_spill] sm:$0xff] %v13745_v35 }
 0x97e   : > { %v8248_v19 = vsel %vm3763_vm1, 1.0, %v16480_v13  ;;  %vm3506_vm13 = vcmp.lt.f32.partialorder %v3490_v51, 0.5  ;;  %v3555_v48 = vmul.f32 %v8173_v25, %v12186_v26  ;;  %v4037_v34 = vmul.f32 %v8308_v29, %v12243_v2  ;;  %v16922_v41 = vld [vmem:[#allocation70_spill] sm:$0xff]  ;;  %v16923_v51 = vld [vmem:[#allocation95_spill] sm:$0xff] }
 0x97f   : > { %v3811_v59 = vmul.f32 %v8248_v19, %v16874_v43  ;;  %v8172_v61 = vsel %vm3506_vm13, 1.0, %v16480_v13  ;;  %vm3762_vm12 = vcmp.lt.f32.partialorder %v3746_v12, 0.5  ;;  %vm3988_vm6 = vcmp.lt.f32.partialorder %v3972_v58, 0.5  ;;  %v16947_v35 = vld [vmem:[#allocation14_spill] sm:$0xff] }
 0x980   : > { %v3554_v17 = vmul.f32 %v8172_v61, %v16922_v41  ;;  %vm3505_vm9 = vcmp.lt.f32.partialorder %v3489_v3, 0.5  ;;  %v3589_v6 = vsel %vm3472_vm2, %v3555_v48, 0.0  ;;  %v4056_v29 = vsel %vm4044_vm15, %v4037_v34, %v16923_v51  ;;  %v16928_v3 = vld [vmem:[#allocation78_spill] sm:$0xff]  ;;  %v16931_v61 = vld [vmem:[#allocation67_spill] sm:$0xff] }
 0x981   : > { %v3830_v25 = vsel %vm3814_vm14, %v3811_v59, %v16900_v7  ;;  %v8247_v56 = vsel %vm3762_vm12, 1.0, %v16480_v13  ;;  %v16924_v19 = vunpack.i.l.bf16 %v13388_v63  ;;  %v16926_v58 = vunpack.i.h.bf16 %v13388_v63 }
 0x982   : > { %v16929_v48 = vunpack.i.l.bf16 %v16928_v3  ;;  %v3588_v34 = vsel %vm3472_vm2, %v3554_v17, 0.0  ;;  %v3810_v63 = vmul.f32 %v8247_v56, %v16875_v49  ;;  %v16934_v17 = vld [vmem:[#allocation79_spill] sm:$0xff]  ;;  %v3745_v45 = vand.u32 2147483647, %v8230_v44  ;;  %v16941_v3 = vld [vmem:[#allocation82_spill] sm:$0xff] }
 0x983   : > { %v13760_v23 = vsel %vm1213_vm11, %v3589_v6, %v16924_v19  ;;  %v13765_v12 = vsel %vm1213_vm11, %v3830_v25, %v16926_v58  ;;  %v16932_v6 = vunpack.i.l.bf16 %v16931_v61  ;;  %v8307_v25 = vsel %vm3988_vm6, 1.0, %v16480_v13 }
 0x984   : > { %16925 = vst [vmem:[#allocation47_spill] sm:$0xff] %v13760_v23  ;;  %v13770_v59 = vsel %vm1213_vm11, %v4056_v29, %v16929_v48  ;;  %5981 = vmatpush.msra.mxu3 %v13760_v23  ;;  %5990 = vmatpush.msra.mxu1 %v13765_v12  ;;  %v8171_v58 = vsel %vm3505_vm9, 1.0, %v16480_v13  ;;  %v4036_v29 = vmul.f32 %v8307_v25, %v16863_v32  ;;  %v8290_v23 = vadd.f32 -5.0, %v16935_v11 }
 0x985   : > { %16927 = vst [vmem:[#allocation48_spill] sm:$0xff] %v13765_v12  ;;  %v13779_v19 = vsel %vm1213_vm11, %v3588_v34, %v16932_v6  ;;  %6014 = vmatpush.msra.mxu0 %v13770_v59  ;;  %v3553_v48 = vmul.f32 %v8171_v58, %v16934_v17  ;;  %v3829_v34 = vsel %vm3814_vm14, %v3810_v63, %v16903_v54  ;;  %v8362_v56 = vadd.f32 -7.0, %v12810_v52  ;;  %v16939_v58 = vld [vmem:[#allocation50_spill] sm:$0xff] }
 0x986   : > { %16930 = vst [vmem:[#allocation49_spill] sm:$0xff] %v13770_v59  ;;  %5982 = vmatpush.msra.mxu3 %v13779_v19  ;;  %v8229_v6 = vadd.f32 -3.0, %v16853_v28  ;;  %v16936_v59 = vld [vmem:[#allocation60_spill] sm:$0xff]  ;;  %v16937_v25 = vunpack.i.h.bf16 %v16931_v61  ;;  %vm3761_vm7 = vcmp.lt.f32.partialorder %v3745_v45, 0.5  ;;  %v16942_v17 = vunpack.i.h.bf16 %v16941_v3  ;;  %v16944_v61 = vld [vmem:[#allocation90_spill] sm:$0xff] }
 0x987   : > { %16933 = vst [vmem:[#allocation62_spill] sm:$0xff] %v13779_v19  ;;  %v8289_v12 = vadd.f32 -5.0, %v16936_v59  ;;  %v4055_v19 = vsel %vm4044_vm15, %v4036_v29, %v16939_v58  ;;  %v3587_v63 = vsel %vm3472_vm2, %v3553_v48, %v16940_v21  ;;  %v16945_v46 = vunpack.i.l.bf16 %v16944_v61 }
 0x988   : > { %v13799_v44 = vsel %vm1213_vm11, %v3829_v34, %v16937_v25  ;;  %v13811_v41 = vsel %vm1213_vm11, %v4055_v19, %v16942_v17  ;;  %v8246_v25 = vsel %vm3761_vm7, 1.0, %v16480_v13  ;;  %v3971_v29 = vand.u32 2147483647, %v8290_v23 }
 0x989   : > { %16938 = vst [vmem:[#allocation104_spill] sm:$0xff] %v13799_v44  ;;  %5991 = vmatpush.msra.mxu1 %v13799_v44  ;;  %v13816_v34 = vsel %vm1213_vm11, %v3587_v63, %v16945_v46  ;;  %6015 = vmatpush.msra.mxu0 %v13811_v41  ;;  %v3809_v21 = vmul.f32 %v8246_v25, %v16877_v9  ;;  %v4209_v45 = vand.u32 2147483647, %v8362_v56  ;;  %v3744_v48 = vand.u32 2147483647, %v8229_v6  ;;  %v13830_v56 = vpop.permute.xlu2 %9274 }
 0x98a   : > { %16943 = vst [vmem:[#allocation68_spill] sm:$0xff] %v13811_v41  ;;  %5983 = vmatpush.msra.mxu3 %v13816_v34  ;;  %v3970_v44 = vand.u32 2147483647, %v8289_v12  ;;  %vm3987_vm2 = vcmp.lt.f32.partialorder %v3971_v29, 0.5  ;;  %v8361_v46 = vadd.f32 -7.0, %v16865_v24  ;;  %v16948_v12 = vunpack.i.h.bf16 %v16944_v61  ;;  %v16950_v61 = vld [vmem:[#allocation74_spill] sm:$0xff] }
 0x98b   : > { %16946 = vst [vmem:[#allocation103_spill] sm:$0xff] %v13816_v34  ;;  %5984 = vmatmul.f32.vlgmr.msra.gmra.mxu3 %v16947_v35  ;;  %v3828_v23 = vsel %vm3814_vm14, %v3809_v21, %v16908_v62  ;;  %v8306_v63 = vsel %vm3987_vm2, 1.0, %v16480_v13  ;;  %vm4225_vm0 = vcmp.lt.f32.partialorder %v4209_v45, 0.5  ;;  %vm3760_vm5 = vcmp.lt.f32.partialorder %v3744_v48, 0.5  ;;  %v16951_v41 = vld [vmem:[#allocation81_spill] sm:$0xff] }
 0x98c   : > { %v13835_v6 = vsel %vm1213_vm11, %v3828_v23, %v16948_v12  ;;  %v4035_v25 = vmul.f32 %v8306_v63, %v12225_v5  ;;  %v8378_v29 = vsel %vm4225_vm0, 1.0, %v16480_v13  ;;  %v8245_v17 = vsel %vm3760_vm5, 1.0, %v16480_v13 }
 0x98d   : > { %16949 = vst [vmem:[#allocation91_spill] sm:$0xff] %v13835_v6  ;;  %5992 = vmatpush.msra.mxu1 %v13835_v6  ;;  %v4273_v21 = vmul.f32 %v8378_v29, %v12293_v27  ;;  %v3808_v45 = vmul.f32 %v8245_v17, %v16855_v42  ;;  %vm3986_vm8 = vcmp.lt.f32.partialorder %v3970_v44, 0.5  ;;  %v4208_v48 = vand.u32 2147483647, %v8361_v46 }
 0x98e   : > { %v4054_v23 = vsel %vm4044_vm15, %v4035_v25, %v16950_v61  ;;  %v8305_v63 = vsel %vm3986_vm8, 1.0, %v16480_v13  ;;  %v16952_v34 = vunpack.i.h.bf16 %v16951_v41  ;;  %v16954_v25 = vunpack.i.h.bf16 %v13489_v0 }
 0x98f   : > { %v4292_v44 = vsel %vm4274_vm4, %v4273_v21, %v12853_v55  ;;  %v3827_v17 = vsel %vm3814_vm14, %v3808_v45, %v16857_v39  ;;  %v4034_v46 = vmul.f32 %v8305_v63, %v12218_v60  ;;  %vm4224_vm10 = vcmp.lt.f32.partialorder %v4208_v48, 0.5  ;;  %v16958_v45 = vld [vmem:[#allocation59_spill] sm:$0xff] }
 0x990   : > { %v13852_v6 = vsel %vm1213_vm11, %v4054_v23, %v16952_v34  ;;  %v13865_v29 = vsel %vm1213_vm11, %v4292_v44, %v16954_v25  ;;  %v16956_v34 = vunpack.i.l.bf16 %v16941_v3  ;;  %v8228_v21 = vadd.f32 -3.0, %v16870_v38  ;;  %v16959_v25 = vld [vmem:[#allocation85_spill] sm:$0xff] }
 0x991   : > { %16953 = vst [vmem:[#allocation93_spill] sm:$0xff] %v13852_v6  ;;  %6016 = vmatpush.msra.mxu0 %v13852_v6  ;;  %6028 = vmatpush.msrb.mxu3 %v13865_v29  ;;  %v4053_v63 = vsel %vm4044_vm15, %v4034_v46, %v16958_v45  ;;  %v8377_v0 = vsel %vm4224_vm10, 1.0, %v16480_v13  ;;  %v8288_v44 = vadd.f32 -5.0, %v12390_v40  ;;  %v8360_v3 = vadd.f32 -7.0, %v12669_v53 }
 0x992   : > { %16955 = vst [vmem:[#allocation52_spill] sm:$0xff] %v13865_v29  ;;  %v13870_v23 = vsel %vm1213_vm11, %v3827_v17, %v16956_v34  ;;  %v16960_v17 = vunpack.i.h.bf16 %v16959_v25  ;;  %v4272_v34 = vmul.f32 %v8377_v0, %v16871_v30  ;;  %v3743_v19 = vand.u32 2147483647, %v8228_v21 }
 0x993   : > { %16957 = vst [vmem:[#allocation95_spill] sm:$0xff] %v13870_v23  ;;  %5993 = vmatpush.msra.mxu1 %v13870_v23  ;;  %v8227_v12 = vadd.f32 -3.0, %v12463_v14  ;;  %v3969_v6 = vand.u32 2147483647, %v8288_v44  ;;  %v4207_v46 = vand.u32 2147483647, %v8360_v3  ;;  %v16962_v21 = vunpack.i.l.bf16 %v13494_v22 }
 0x994   : > { %v13884_v48 = vsel %vm1213_vm11, %v4053_v63, %v16960_v17  ;;  %v8287_v29 = vadd.f32 -5.0, %v12365_v1  ;;  %v8359_v23 = vadd.f32 -7.0, %v16868_v50  ;;  %v4291_v31 = vsel %vm4274_vm4, %v4272_v34, %v16894_v15 }
 0x995   : > { %16961 = vst [vmem:[#allocation67_spill] sm:$0xff] %v13884_v48  ;;  %6017 = vmatpush.msra.mxu0 %v13884_v48  ;;  %vm3759_vm1 = vcmp.lt.f32.partialorder %v3743_v19, 0.5  ;;  %v3742_v63 = vand.u32 2147483647, %v8227_v12  ;;  %v8226_v17 = vadd.f32 -3.0, %v16935_v11  ;;  %v13898_v0 = vsel %vm1213_vm11, %v4291_v31, %v16962_v21 }
 0x996   : > { %16963 = vst [vmem:[#allocation77_spill] sm:$0xff] %v13898_v0  ;;  %v8244_v44 = vsel %vm3759_vm1, 1.0, %v16480_v13  ;;  %vm3985_vm3 = vcmp.lt.f32.partialorder %v3969_v6, 0.5  ;;  %vm4223_vm13 = vcmp.lt.f32.partialorder %v4207_v46, 0.5  ;;  %6029 = vmatpush.msrb.mxu3 %v13898_v0  ;;  %v3968_v34 = vand.u32 2147483647, %v8287_v29 }
 0x997   : > { %v3807_v3 = vmul.f32 %v8244_v44, %v12243_v2  ;;  %v8304_v48 = vsel %vm3985_vm3, 1.0, %v16480_v13  ;;  %v8376_v19 = vsel %vm4223_vm13, 1.0, %v16480_v13  ;;  %vm3758_vm12 = vcmp.lt.f32.partialorder %v3742_v63, 0.5  ;;  %v16966_v63 = vld [vmem:[#allocation113_spill] sm:$0xff] }
 0x998   : > { %v4033_v12 = vmul.f32 %v8304_v48, %v12209_v37  ;;  %v4271_v22 = vmul.f32 %v8376_v19, %v16874_v43  ;;  %v8243_v31 = vsel %vm3758_vm12, 1.0, %v16480_v13  ;;  %v4206_v21 = vand.u32 2147483647, %v8359_v23 }
 0x999   : > { %v3826_v6 = vsel %vm3814_vm14, %v3807_v3, %v16923_v51  ;;  %v3806_v46 = vmul.f32 %v8243_v31, %v16863_v32  ;;  %v3741_v44 = vand.u32 2147483647, %v8226_v17  ;;  %v16964_v0 = vunpack.i.l.bf16 %v16951_v41  ;;  %v16967_v3 = vld [vmem:[#allocation115_spill] sm:$0xff] }
 0x99a   : > { %v4052_v48 = vsel %vm4044_vm15, %v4033_v12, %v16966_v63  ;;  %v4290_v29 = vsel %vm4274_vm4, %v4271_v22, %v16900_v7  ;;  %vm3984_vm6 = vcmp.lt.f32.partialorder %v3968_v34, 0.5  ;;  %v16968_v19 = vunpack.i.h.bf16 %v16967_v3 }
 0x99b   : > { %v13915_v10 = vsel %vm1213_vm11, %v3826_v6, %v16964_v0  ;;  %v16970_v41 = vunpack.i.h.bf16 %v13243_v33  ;;  %v3825_v0 = vsel %vm3814_vm14, %v3806_v46, %v16939_v58  ;;  %v8303_v12 = vsel %vm3984_vm6, 1.0, %v16480_v13 }
 0x99c   : > { %16965 = vst [vmem:[#allocation60_spill] sm:$0xff] %v13915_v10  ;;  %5994 = vmatpush.msra.mxu1 %v13915_v10  ;;  %v13927_v23 = vsel %vm1213_vm11, %v4052_v48, %v16968_v19  ;;  %v16972_v22 = vunpack.i.l.bf16 %v16959_v25  ;;  %v4032_v33 = vmul.f32 %v8303_v12, %v12204_v20  ;;  %vm4222_vm9 = vcmp.lt.f32.partialorder %v4206_v21, 0.5  ;;  %v16974_v25 = vld [vmem:[#allocation101_spill] sm:$0xff] }
 0x99d   : > { %16969 = vst [vmem:[#allocation50_spill] sm:$0xff] %v13927_v23  ;;  %v13932_v17 = vsel %vm1213_vm11, %v4290_v29, %v16970_v41  ;;  %6018 = vmatpush.msra.mxu0 %v13927_v23  ;;  %vm3757_vm7 = vcmp.lt.f32.partialorder %v3741_v44, 0.5  ;;  %vm4504_vm2 = vcmp.gt.f32.partialorder %v12318_v8, 8.5  ;;  %v8375_v34 = vsel %vm4222_vm9, 1.0, %v16480_v13  ;;  %v16975_v41 = vld [vmem:[#allocation114_spill] sm:$0xff]  ;;  %v17001_v10 = vld [vmem:[#allocation17_spill] sm:$0xff] }
 0x99e   : > { %16971 = vst [vmem:[#allocation72_spill] sm:$0xff] %v13932_v17  ;;  %6030 = vmatpush.msrb.mxu3 %v13932_v17  ;;  %v13943_v31 = vsel %vm1213_vm11, %v3825_v0, %v16972_v22  ;;  %v8242_v6 = vsel %vm3757_vm7, 1.0, %v16480_v13  ;;  %v8286_v46 = vadd.f32 -5.0, %v12336_v47  ;;  %v8426_v48 = vadd.f32 -9.0, %v12810_v52 }
 0x99f   : > { %16973 = vst [vmem:[#allocation82_spill] sm:$0xff] %v13943_v31  ;;  %5995 = vmatpush.msra.mxu1 %v13943_v31  ;;  %v4051_v29 = vsel %vm4044_vm15, %v4032_v33, %v16974_v25  ;;  %v4270_v19 = vmul.f32 %v8375_v34, %v16875_v49  ;;  %v3805_v21 = vmul.f32 %v8242_v6, %v12225_v5  ;;  %v8358_v44 = vadd.f32 -7.0, %v16847_v36 }
 0x9a0   : > { %v16976_v0 = vunpack.i.l.bf16 %v16975_v41  ;;  %v3967_v22 = vand.u32 2147483647, %v8286_v46  ;;  %v4439_v23 = vand.u32 2147483647, %v8426_v48  ;;  %v8225_v17 = vadd.f32 -3.0, %v16936_v59 }
 0x9a1   : > { %v4289_v33 = vsel %vm4274_vm4, %v4270_v19, %v16903_v54  ;;  %v3824_v34 = vsel %vm3814_vm14, %v3805_v21, %v16950_v61  ;;  %v4205_v6 = vand.u32 2147483647, %v8358_v44  ;;  %v8285_v31 = vadd.f32 -5.0, %v12312_v18 }
 0x9a2   : > { %v13961_v12 = vsel %vm1213_vm11, %v4051_v29, %v16976_v0  ;;  %v16978_v29 = vunpack.i.h.bf16 %v13344_v4  ;;  %v16980_v48 = vunpack.i.l.bf16 %v16967_v3  ;;  %vm3983_vm0 = vcmp.lt.f32.partialorder %v3967_v22, 0.5 }
 0x9a3   : > { %16977 = vst [vmem:[#allocation90_spill] sm:$0xff] %v13961_v12  ;;  %6019 = vmatpush.msra.mxu0 %v13961_v12  ;;  %vm4455_vm5 = vcmp.lt.f32.partialorder %v4439_v23, 0.5  ;;  %v8302_v19 = vsel %vm3983_vm0, 1.0, %v16480_v13  ;;  %vm4221_vm8 = vcmp.lt.f32.partialorder %v4205_v6, 0.5  ;;  %v3740_v4 = vand.u32 2147483647, %v8225_v17 }
 0x9a4   : > { %v13975_v46 = vsel %vm1213_vm11, %v4289_v33, %v16978_v29  ;;  %v13980_v0 = vsel %vm1213_vm11, %v3824_v34, %v16980_v48  ;;  %v8442_v21 = vsel %vm4455_vm5, 1.0, %v16480_v13  ;;  %v4031_v44 = vmul.f32 %v8302_v19, %v12193_v16  ;;  %v13992_v48 = vpop.permute.xlu0 %9194  ;;  %v16983_v12 = vld [vmem:[#allocation102_spill] sm:$0xff] }
 0x9a5   : > { %16979 = vst [vmem:[#allocation14_spill] sm:$0xff] %v13975_v46  ;;  %6031 = vmatpush.msrb.mxu3 %v13975_v46  ;;  %5996 = vmatpush.msra.mxu1 %v13980_v0  ;;  %v4503_v33 = vmul.f32 %v8442_v21, %v12293_v27  ;;  %v8374_v3 = vsel %vm4221_vm8, 1.0, %v16480_v13  ;;  %v3966_v34 = vand.u32 2147483647, %v8285_v31  ;;  %vm3756_vm10 = vcmp.lt.f32.partialorder %v3740_v4, 0.5  ;;  %v16984_v31 = vld [vmem:[#allocation80_spill] sm:$0xff] }
 0x9a6   : > { %16981 = vst [vmem:[#allocation81_spill] sm:$0xff] %v13980_v0  ;;  %v4269_v22 = vmul.f32 %v8374_v3, %v16877_v9  ;;  %v8425_v23 = vadd.f32 -9.0, %v16865_v24  ;;  %v8357_v29 = vadd.f32 -7.0, %v16853_v28  ;;  %v4050_v17 = vsel %vm4044_vm15, %v4031_v44, %v16983_v12 }
 0x9a7   : > { %16982 = vst [vmem:[#allocation85_spill] sm:$0xff] %v13992_v48  ;;  %v4522_v6 = vsel %vm4504_vm2, %v4503_v33, %v12853_v55  ;;  %v8241_v19 = vsel %vm3756_vm10, 1.0, %v16480_v13  ;;  %vm3982_vm1 = vcmp.lt.f32.partialorder %v3966_v34, 0.5  ;;  %v16985_v21 = vunpack.i.h.bf16 %v16984_v31 }
 0x9a8   : > { %v16987_v3 = vunpack.i.h.bf16 %v13830_v56  ;;  %v4288_v44 = vsel %vm4274_vm4, %v4269_v22, %v16908_v62  ;;  %v3804_v0 = vmul.f32 %v8241_v19, %v12218_v60  ;;  %v16989_v33 = vunpack.i.h.bf16 %v13218_v57  ;;  %v16991_v57 = vld [vmem:[#allocation46_spill] sm:$0xff] }
 0x9a9   : > { %v14004_v4 = vsel %vm1213_vm11, %v4050_v17, %v16985_v21  ;;  %v8301_v17 = vsel %vm3982_vm1, 1.0, %v16480_v13  ;;  %v4438_v21 = vand.u32 2147483647, %v8425_v23  ;;  %vm4734_vm10 = vcmp.gt.f32.partialorder %v12318_v8, 10.5 }
 0x9aa   : > { %16986 = vst [vmem:[#allocation113_spill] sm:$0xff] %v14004_v4  ;;  %v14009_v46 = vsel %vm1213_vm11, %v4522_v6, %v16987_v3  ;;  %6020 = vmatpush.msra.mxu0 %v14004_v4  ;;  %v14020_v34 = vsel %vm1213_vm11, %v4288_v44, %v16989_v33  ;;  %v4204_v6 = vand.u32 2147483647, %v8357_v29  ;;  %v3823_v22 = vsel %vm3814_vm14, %v3804_v0, %v16958_v45  ;;  %v14031_v44 = vpop.permute.xlu1 %9219  ;;  %v16993_v33 = vld [vmem:[#allocation97_spill] sm:$0xff]  ;;  %v14038_v29 = vpop.permute.xlu2 %9279  ;;  %v16996_v0 = vld [vmem:[#allocation100_spill] sm:$0xff] }
 0x9ab   : > { %16988 = vst [vmem:[#allocation115_spill] sm:$0xff] %v14009_v46  ;;  %6216 = vmatpush.msrb.mxu2 %v14009_v46  ;;  %6032 = vmatpush.msrb.mxu3 %v14020_v34  ;;  %v4030_v19 = vmul.f32 %v8301_v17, %v12186_v26  ;;  %v16994_v41 = vunpack.i.h.bf16 %v16993_v33  ;;  %vm4454_vm3 = vcmp.lt.f32.partialorder %v4438_v21, 0.5  ;;  %v17000_v46 = vld [vmem:[#allocation99_spill] sm:$0xff]  ;;  %v17002_v45 = vunpack.i.l.bf16 %v17001_v10 }
 0x9ac   : > { %16990 = vst [vmem:[#allocation101_spill] sm:$0xff] %v14020_v34  ;;  %vm4220_vm13 = vcmp.lt.f32.partialorder %v4204_v6, 0.5  ;;  %v8441_v4 = vsel %vm4454_vm3, 1.0, %v16480_v13  ;;  %v16997_v34 = vld [vmem:[#allocation53_spill] sm:$0xff]  ;;  %v8284_v48 = vadd.f32 -5.0, %v17000_v46 }
 0x9ad   : > { %16992 = vst [vmem:[#allocation102_spill] sm:$0xff] %v14031_v44  ;;  %v14036_v23 = vsel %vm1213_vm11, %v3823_v22, %v16994_v41  ;;  %v4049_v17 = vsel %vm4044_vm15, %v4030_v19, %v16996_v0  ;;  %v8373_v3 = vsel %vm4220_vm13, 1.0, %v16480_v13  ;;  %v16998_v33 = vunpack.i.h.bf16 %v16997_v34  ;;  %v17004_v19 = vld [vmem:[#allocation92_spill] sm:$0xff] }
 0x9ae   : > { %16995 = vst [vmem:[#allocation80_spill] sm:$0xff] %v14036_v23  ;;  %5997 = vmatpush.msra.mxu1 %v14036_v23  ;;  %v4502_v21 = vmul.f32 %v8441_v4, %v16871_v30  ;;  %v4268_v6 = vmul.f32 %v8373_v3, %v16855_v42  ;;  %v8424_v22 = vadd.f32 -9.0, %v12669_v53  ;;  %v8224_v23 = vadd.f32 -3.0, %v12390_v40 }
 0x9af   : > { %v14050_v41 = vsel %vm1213_vm11, %v4049_v17, %v16998_v33  ;;  %v8356_v17 = vadd.f32 -7.0, %v16870_v38  ;;  %v17005_v40 = vunpack.i.h.bf16 %v17004_v19  ;;  %v3965_v60 = vand.u32 2147483647, %v8284_v48 }
 0x9b0   : > { %16999 = vst [vmem:[#allocation53_spill] sm:$0xff] %v14050_v41  ;;  %6021 = vmatpush.msra.mxu0 %v14050_v41  ;;  %v4521_v33 = vsel %vm4504_vm2, %v4502_v21, %v16894_v15  ;;  %v4287_v4 = vsel %vm4274_vm4, %v4268_v6, %v16857_v39  ;;  %v4437_v3 = vand.u32 2147483647, %v8424_v22  ;;  %v3739_v46 = vand.u32 2147483647, %v8224_v23  ;;  %v17007_v22 = vld [vmem:[#allocation112_spill] sm:$0xff] }
 0x9b1   : > { %v14070_v41 = vsel %vm1213_vm11, %v4521_v33, %v17002_v45  ;;  %v14075_v53 = vsel %vm1213_vm11, %v4287_v4, %v17005_v40  ;;  %v4203_v21 = vand.u32 2147483647, %v8356_v17  ;;  %v8223_v6 = vadd.f32 -3.0, %v12365_v1  ;;  %v17008_v4 = vld [vmem:[#allocation70_spill] sm:$0xff]  ;;  %v17009_v1 = vld [vmem:[#allocation21_spill] sm:$0xff] }
 0x9b2   : > { %17003 = vst [vmem:[#allocation116_spill] sm:$0xff] %v14070_v41  ;;  %6217 = vmatpush.msrb.mxu2 %v14070_v41  ;;  %6033 = vmatpush.msrb.mxu3 %v14075_v53  ;;  %vm4453_vm12 = vcmp.lt.f32.partialorder %v4437_v3, 0.5  ;;  %v8283_v10 = vadd.f32 -5.0, %v17007_v22  ;;  %vm3755_vm6 = vcmp.lt.f32.partialorder %v3739_v46, 0.5  ;;  %vm3981_vm9 = vcmp.lt.f32.partialorder %v3965_v60, 0.5 }
 0x9b3   : > { %17006 = vst [vmem:[#allocation92_spill] sm:$0xff] %v14075_v53  ;;  %v8440_v45 = vsel %vm4453_vm12, 1.0, %v16480_v13  ;;  %v8423_v19 = vadd.f32 -9.0, %v16868_v50  ;;  %v8240_v48 = vsel %vm3755_vm6, 1.0, %v16480_v13  ;;  %v8300_v23 = vsel %vm3981_vm9, 1.0, %v16480_v13 }
 0x9b4   : > { %v4501_v40 = vmul.f32 %v8440_v45, %v16874_v43  ;;  %vm4219_vm7 = vcmp.lt.f32.partialorder %v4203_v21, 0.5  ;;  %v3803_v33 = vmul.f32 %v8240_v48, %v12209_v37  ;;  %v4029_v3 = vmul.f32 %v8300_v23, %v17008_v4  ;;  %v17011_v48 = vld [vmem:[#allocation61_spill] sm:$0xff] }
 0x9b5   : > { %v8372_v17 = vsel %vm4219_vm7, 1.0, %v16480_v13  ;;  %v3738_v53 = vand.u32 2147483647, %v8223_v6  ;;  %v3964_v41 = vand.u32 2147483647, %v8283_v10  ;;  %v17010_v43 = vunpack.i.h.bf16 %v17009_v1  ;;  %v17023_v1 = vld [vmem:[#allocation57_spill] sm:$0xff] }
 0x9b6   : > { %v4520_v60 = vsel %vm4504_vm2, %v4501_v40, %v16900_v7  ;;  %v4267_v46 = vmul.f32 %v8372_v17, %v12243_v2  ;;  %v4436_v45 = vand.u32 2147483647, %v8423_v19  ;;  %v3822_v21 = vsel %vm3814_vm14, %v3803_v33, %v16966_v63  ;;  %v17014_v19 = vld [vmem:[#allocation110_spill] sm:$0xff] }
 0x9b7   : > { %v14096_v50 = vsel %vm1213_vm11, %v4520_v60, %v17010_v43  ;;  %v4048_v6 = vsel %vm4044_vm15, %v4029_v3, %v17011_v48  ;;  %vm3754_vm0 = vcmp.lt.f32.partialorder %v3738_v53, 0.5  ;;  %v17012_v40 = vunpack.i.l.bf16 %v16984_v31  ;;  %v17017_v53 = vld [vmem:[#allocation76_spill] sm:$0xff] }
 0x9b8   : > { %6218 = vmatpush.msrb.mxu2 %v14096_v50  ;;  %v17015_v23 = vunpack.i.h.bf16 %v17014_v19  ;;  %v4286_v33 = vsel %vm4274_vm4, %v4267_v46, %v16923_v51  ;;  %v8239_v17 = vsel %vm3754_vm0, 1.0, %v16480_v13  ;;  %v17018_v31 = vunpack.i.h.bf16 %v17017_v53 }
 0x9b9   : > { %v14108_v10 = vsel %vm1213_vm11, %v3822_v21, %v17012_v40  ;;  %v3802_v60 = vmul.f32 %v8239_v17, %v12204_v20  ;;  %vm3980_vm5 = vcmp.lt.f32.partialorder %v3964_v41, 0.5  ;;  %vm4452_vm8 = vcmp.lt.f32.partialorder %v4436_v45, 0.5 }
 0x9ba   : > { %17013 = vst [vmem:[#allocation112_spill] sm:$0xff] %v14108_v10  ;;  %v14113_v43 = vsel %vm1213_vm11, %v4048_v6, %v17015_v23  ;;  %5998 = vmatpush.msra.mxu1 %v14108_v10  ;;  %v14124_v3 = vsel %vm1213_vm11, %v4286_v33, %v17018_v31  ;;  %v8299_v21 = vsel %vm3980_vm5, 1.0, %v16480_v13  ;;  %v8439_v46 = vsel %vm4452_vm8, 1.0, %v16480_v13  ;;  %v17020_v33 = vld [vmem:[#allocation79_spill] sm:$0xff] }
 0x9bb   : > { %17016 = vst [vmem:[#allocation61_spill] sm:$0xff] %v14113_v43  ;;  %6022 = vmatpush.msra.mxu0 %v14113_v43  ;;  %6034 = vmatpush.msrb.mxu3 %v14124_v3  ;;  %v8355_v6 = vadd.f32 -7.0, %v12463_v14  ;;  %v8222_v40 = vadd.f32 -3.0, %v12336_v47  ;;  %v3821_v23 = vsel %vm3814_vm14, %v3802_v60, %v16974_v25  ;;  %v4028_v17 = vmul.f32 %v8299_v21, %v17020_v33 }
 0x9bc   : > { %17019 = vst [vmem:[#allocation110_spill] sm:$0xff] %v14124_v3  ;;  %v4500_v41 = vmul.f32 %v8439_v46, %v16875_v49  ;;  %v8490_v45 = vadd.f32 -11.0, %v12810_v52  ;;  %v17021_v53 = vunpack.i.l.bf16 %v16997_v34  ;;  %v8422_v10 = vadd.f32 -9.0, %v16847_v36  ;;  %v17024_v52 = vld [vmem:[#allocation55_spill] sm:$0xff] }
 0x9bd   : > { %v4202_v43 = vand.u32 2147483647, %v8355_v6  ;;  %v3737_v3 = vand.u32 2147483647, %v8222_v40  ;;  %v4047_v60 = vsel %vm4044_vm15, %v4028_v17, %v17023_v1  ;;  %v8354_v34 = vadd.f32 -7.0, %v16935_v11  ;;  %v17027_v40 = vld [vmem:[#allocation63_spill] sm:$0xff] }
 0x9be   : > { %v14142_v31 = vsel %vm1213_vm11, %v3821_v23, %v17021_v53  ;;  %v4519_v21 = vsel %vm4504_vm2, %v4500_v41, %v16903_v54  ;;  %v4669_v46 = vand.u32 2147483647, %v8490_v45  ;;  %v17025_v23 = vunpack.i.h.bf16 %v17024_v52 }
 0x9bf   : > { %17022 = vst [vmem:[#allocation76_spill] sm:$0xff] %v14142_v31  ;;  %5999 = vmatpush.msra.mxu1 %v14142_v31  ;;  %v17028_v53 = vunpack.i.h.bf16 %v17027_v40  ;;  %vm4218_vm1 = vcmp.lt.f32.partialorder %v4202_v43, 0.5  ;;  %vm3753_vm3 = vcmp.lt.f32.partialorder %v3737_v3, 0.5  ;;  %v4435_v45 = vand.u32 2147483647, %v8422_v10 }
 0x9c0   : > { %v14156_v6 = vsel %vm1213_vm11, %v4047_v60, %v17025_v23  ;;  %v8371_v17 = vsel %vm4218_vm1, 1.0, %v16480_v13  ;;  %v8238_v41 = vsel %vm3753_vm3, 1.0, %v16480_v13  ;;  %vm4685_vm15 = vcmp.lt.f32.partialorder %v4669_v46, 0.5 }
 0x9c1   : > { %17026 = vst [vmem:[#allocation79_spill] sm:$0xff] %v14156_v6  ;;  %v14161_v31 = vsel %vm1213_vm11, %v4519_v21, %v17028_v53  ;;  %6023 = vmatpush.msra.mxu0 %v14156_v6  ;;  %v4266_v60 = vmul.f32 %v8371_v17, %v16863_v32  ;;  %v3801_v23 = vmul.f32 %v8238_v41, %v12193_v16  ;;  %v8506_v21 = vsel %vm4685_vm15, 1.0, %v16480_v13  ;;  %v17029_v41 = vld [vmem:[#allocation78_spill] sm:$0xff] }
 0x9c2   : > { %6219 = vmatpush.msrb.mxu2 %v14161_v31  ;;  %6024 = vmatmul.f32.vlgmr.msra.gmra.mxu0 %v16947_v35  ;;  %v4201_v43 = vand.u32 2147483647, %v8354_v34  ;;  %v4733_v3 = vmul.f32 %v8506_v21, %v12293_v27  ;;  %vm4451_vm13 = vcmp.lt.f32.partialorder %v4435_v45, 0.5  ;;  %v8221_v53 = vadd.f32 -3.0, %v12312_v18 }
 0x9c3   : > { %v8489_v6 = vadd.f32 -11.0, %v16865_v24  ;;  %v4285_v10 = vsel %vm4274_vm4, %v4266_v60, %v16939_v58  ;;  %v3820_v46 = vsel %vm3814_vm14, %v3801_v23, %v16983_v12  ;;  %v8438_v17 = vsel %vm4451_vm13, 1.0, %v16480_v13 }
 0x9c4   : > { %vm4217_vm12 = vcmp.lt.f32.partialorder %v4201_v43, 0.5  ;;  %v17030_v34 = vunpack.i.h.bf16 %v17029_v41  ;;  %v17032_v45 = vunpack.i.l.bf16 %v17014_v19  ;;  %v4752_v60 = vsel %vm4734_vm10, %v4733_v3, %v12853_v55 }
 0x9c5   : > { %v4499_v24 = vmul.f32 %v8438_v17, %v16877_v9  ;;  %v17034_v23 = vunpack.i.l.bf16 %v14038_v29  ;;  %v8370_v19 = vsel %vm4217_vm12, 1.0, %v16480_v13  ;;  %v8421_v41 = vadd.f32 -9.0, %v16853_v28 }
 0x9c6   : > { %v14184_v21 = vsel %vm1213_vm11, %v4285_v10, %v17030_v34  ;;  %v14189_v27 = vsel %vm1213_vm11, %v3820_v46, %v17032_v45  ;;  %v3736_v10 = vand.u32 2147483647, %v8221_v53  ;;  %v4668_v46 = vand.u32 2147483647, %v8489_v6 }
 0x9c7   : > { %17031 = vst [vmem:[#allocation57_spill] sm:$0xff] %v14184_v21  ;;  %6035 = vmatpush.msrb.mxu3 %v14184_v21  ;;  %6000 = vmatpush.msra.mxu1 %v14189_v27  ;;  %v14200_v43 = vsel %vm1213_vm11, %v4752_v60, %v17034_v23  ;;  %v4518_v3 = vsel %vm4504_vm2, %v4499_v24, %v16908_v62  ;;  %v8353_v34 = vadd.f32 -7.0, %v16936_v59  ;;  %v14211_v60 = vpop.permute.xlu0 %9224  ;;  %v17037_v23 = vld [vmem:[#allocation71_spill] sm:$0xff]  ;;  %v4434_v45 = vand.u32 2147483647, %v8421_v41 }
 0x9c8   : > { %17033 = vst [vmem:[#allocation55_spill] sm:$0xff] %v14189_v27  ;;  %6068 = vmatpush.msrb.mxu0 %v14200_v43  ;;  %v4265_v17 = vmul.f32 %v8370_v19, %v12225_v5  ;;  %v17038_v21 = vunpack.i.h.bf16 %v17037_v23  ;;  %vm3752_vm6 = vcmp.lt.f32.partialorder %v3736_v10, 0.5  ;;  %vm4684_vm9 = vcmp.lt.f32.partialorder %v4668_v46, 0.5  ;;  %v14234_v23 = vpop.permute.xlu1 %9229 }
 0x9c9   : > { %17035 = vst [vmem:[#allocation78_spill] sm:$0xff] %v14200_v43  ;;  %v8237_v53 = vsel %vm3752_vm6, 1.0, %v16480_v13  ;;  %v8505_v19 = vsel %vm4684_vm9, 1.0, %v16480_v13  ;;  %v17039_v43 = vunpack.i.l.bf16 %v16991_v57  ;;  %v4200_v46 = vand.u32 2147483647, %v8353_v34 }
 0x9ca   : > { %17036 = vst [vmem:[#allocation117_spill] sm:$0xff] %v14211_v60  ;;  %v14216_v6 = vsel %vm1213_vm11, %v4518_v3, %v17038_v21  ;;  %v4284_v24 = vsel %vm4274_vm4, %v4265_v17, %v16950_v61  ;;  %v3800_v21 = vmul.f32 %v8237_v53, %v12186_v26  ;;  %v4732_v10 = vmul.f32 %v8505_v19, %v16871_v30  ;;  %v17044_v19 = vld [vmem:[#allocation19_spill] sm:$0xff] }
 0x9cb   : > { %6220 = vmatpush.msrb.mxu2 %v14216_v6  ;;  %v14227_v27 = vsel %vm1213_vm11, %v4284_v24, %v17039_v43  ;;  %17041 = vst [vmem:[#allocation119_spill] sm:$0xff] %v14234_v23  ;;  %vm4450_vm7 = vcmp.lt.f32.partialorder %v4434_v45, 0.5  ;;  %vm4216_vm0 = vcmp.lt.f32.partialorder %v4200_v46, 0.5  ;;  %v17042_v24 = vunpack.i.l.bf16 %v17024_v52  ;;  %v17047_v52 = vld [vmem:[#allocation66_spill] sm:$0xff] }
 0x9cc   : > { %17040 = vst [vmem:[#allocation118_spill] sm:$0xff] %v14227_v27  ;;  %6036 = vmatpush.msrb.mxu3 %v14227_v27  ;;  %v3819_v43 = vsel %vm3814_vm14, %v3800_v21, %v16996_v0  ;;  %v4751_v41 = vsel %vm4734_vm10, %v4732_v10, %v16894_v15  ;;  %v8437_v34 = vsel %vm4450_vm7, 1.0, %v16480_v13  ;;  %v17045_v3 = vunpack.i.l.bf16 %v17044_v19  ;;  %v17050_v19 = vld [vmem:[#allocation54_spill] sm:$0xff]  ;;  %v17051_v15 = vld [vmem:[#allocation64_spill] sm:$0xff] }
 0x9cd   : > { %v14247_v53 = vsel %vm1213_vm11, %v3819_v43, %v17042_v24  ;;  %v4498_v55 = vmul.f32 %v8437_v34, %v16855_v42  ;;  %v8369_v21 = vsel %vm4216_vm0, 1.0, %v16480_v13  ;;  %v17048_v43 = vld [vmem:[#allocation99_spill] sm:$0xff]  ;;  %v8420_v27 = vadd.f32 -9.0, %v16870_v38 }
 0x9ce   : > { %17043 = vst [vmem:[#allocation120_spill] sm:$0xff] %v14247_v53  ;;  %v14252_v45 = vsel %vm1213_vm11, %v4751_v41, %v17045_v3  ;;  %6001 = vmatpush.msra.mxu1 %v14247_v53  ;;  %v4264_v46 = vmul.f32 %v8369_v21, %v17047_v52  ;;  %v8220_v24 = vadd.f32 -3.0, %v17048_v43  ;;  %v17049_v41 = vld [vmem:[#allocation109_spill] sm:$0xff]  ;;  %v8352_v17 = vadd.f32 -7.0, %v17050_v19 }
 0x9cf   : > { %17046 = vst [vmem:[#allocation121_spill] sm:$0xff] %v14252_v45  ;;  %6069 = vmatpush.msrb.mxu0 %v14252_v45  ;;  %v4517_v3 = vsel %vm4504_vm2, %v4498_v55, %v16857_v39  ;;  %v8488_v34 = vadd.f32 -11.0, %v17049_v41  ;;  %v17052_v10 = vunpack.i.l.bf16 %v17051_v15  ;;  %v17053_v45 = vld [vmem:[#allocation59_spill] sm:$0xff]  ;;  %v8219_v30 = vadd.f32 -3.0, %v17007_v22  ;;  %v17054_v55 = vld [vmem:[#allocation45_spill] sm:$0xff] }
 0x9d0   : > { %v4283_v21 = vsel %vm4274_vm4, %v4264_v46, %v17053_v45  ;;  %v3735_v57 = vand.u32 2147483647, %v8220_v24  ;;  %v17055_v41 = vunpack.i.l.bf16 %v17054_v55  ;;  %v4433_v60 = vand.u32 2147483647, %v8420_v27 }
 0x9d1   : > { %v14271_v53 = vsel %vm1213_vm11, %v4517_v3, %v17052_v10  ;;  %v4667_v40 = vand.u32 2147483647, %v8488_v34  ;;  %v4199_v0 = vand.u32 2147483647, %v8352_v17  ;;  %v3734_v10 = vand.u32 2147483647, %v8219_v30 }
 0x9d2   : > { %6221 = vmatpush.msrb.mxu2 %v14271_v53  ;;  %v14281_v23 = vsel %vm1213_vm11, %v4283_v21, %v17055_v41  ;;  %vm3751_vm5 = vcmp.lt.f32.partialorder %v3735_v57, 0.5  ;;  %v17057_v3 = vld [vmem:[#allocation108_spill] sm:$0xff]  ;;  %v8419_v46 = vadd.f32 -9.0, %v12463_v14  ;;  %vm4449_vm1 = vcmp.lt.f32.partialorder %v4433_v60, 0.5  ;;  %v17058_v34 = vld [vmem:[#allocation65_spill] sm:$0xff] }
 0x9d3   : > { %17056 = vst [vmem:[#allocation54_spill] sm:$0xff] %v14281_v23  ;;  %6037 = vmatpush.msrb.mxu3 %v14281_v23  ;;  %v8487_v43 = vadd.f32 -11.0, %v17057_v3  ;;  %v8236_v24 = vsel %vm3751_vm5, 1.0, %v16480_v13  ;;  %vm4683_vm8 = vcmp.lt.f32.partialorder %v4667_v40, 0.5  ;;  %vm4215_vm3 = vcmp.lt.f32.partialorder %v4199_v0, 0.5  ;;  %v17059_v23 = vld [vmem:[#allocation86_spill] sm:$0xff] }
 0x9d4   : > { %v3799_v55 = vmul.f32 %v8236_v24, %v17008_v4  ;;  %v8504_v41 = vsel %vm4683_vm8, 1.0, %v16480_v13  ;;  %v8436_v27 = vsel %vm4449_vm1, 1.0, %v16480_v13  ;;  %v8368_v17 = vsel %vm4215_vm3, 1.0, %v16480_v13 }
 0x9d5   : > { %v4731_v57 = vmul.f32 %v8504_v41, %v17058_v34  ;;  %v4497_v30 = vmul.f32 %v8436_v27, %v12243_v2  ;;  %v4263_v21 = vmul.f32 %v8368_v17, %v12209_v37  ;;  %vm3750_vm15 = vcmp.lt.f32.partialorder %v3734_v10, 0.5 }
 0x9d6   : > { %v3818_v40 = vsel %vm3814_vm14, %v3799_v55, %v17011_v48  ;;  %v8235_v0 = vsel %vm3750_vm15, 1.0, %v16480_v13  ;;  %v4666_v60 = vand.u32 2147483647, %v8487_v43  ;;  %v4432_v24 = vand.u32 2147483647, %v8419_v46  ;;  %v17062_v43 = vld [vmem:[#allocation88_spill] sm:$0xff] }
 0x9d7   : > { %v17060_v3 = vunpack.i.h.bf16 %v17059_v23  ;;  %v4750_v41 = vsel %vm4734_vm10, %v4731_v57, %v16900_v7  ;;  %v4516_v10 = vsel %vm4504_vm2, %v4497_v30, %v16923_v51  ;;  %v4282_v55 = vsel %vm4274_vm4, %v4263_v21, %v16966_v63  ;;  %v17067_v57 = vld [vmem:[#allocation18_spill] sm:$0xff]  ;;  %v17070_v21 = vld [vmem:[#allocation111_spill] sm:$0xff] }
 0x9d8   : > { %v17063_v46 = vunpack.i.l.bf16 %v17062_v43  ;;  %v17068_v23 = vunpack.i.l.bf16 %v17067_v57  ;;  %v3798_v7 = vmul.f32 %v8235_v0, %v17020_v33  ;;  %vm4682_vm13 = vcmp.lt.f32.partialorder %v4666_v60, 0.5 }
 0x9d9   : > { %v14301_v4 = vsel %vm1213_vm11, %v3818_v40, %v17060_v3  ;;  %v17065_v3 = vld [vmem:[#allocation22_spill] sm:$0xff]  ;;  %vm4448_vm12 = vcmp.lt.f32.partialorder %v4432_v24, 0.5  ;;  %v8350_v57 = vadd.f32 -7.0, %v12336_v47  ;;  %v8485_v34 = vadd.f32 -11.0, %v16853_v28  ;;  %v14384_v28 = vpop.permute.xlu2 %9284 }
 0x9da   : > { %17061 = vst [vmem:[#allocation64_spill] sm:$0xff] %v14301_v4  ;;  %6002 = vmatpush.msra.mxu1 %v14301_v4  ;;  %v14316_v27 = vsel %vm1213_vm11, %v4750_v41, %v17063_v46  ;;  %v17066_v17 = vunpack.i.l.bf16 %v17065_v3  ;;  %v14326_v30 = vsel %vm1213_vm11, %v4282_v55, %v17068_v23  ;;  %v8351_v41 = vadd.f32 -7.0, %v17070_v21 }
 0x9db   : > { %17064 = vst [vmem:[#allocation122_spill] sm:$0xff] %v14316_v27  ;;  %6070 = vmatpush.msrb.mxu0 %v14316_v27  ;;  %v8486_v46 = vadd.f32 -11.0, %v16847_v36  ;;  %6038 = vmatpush.msrb.mxu3 %v14326_v30  ;;  %v8503_v23 = vsel %vm4682_vm13, 1.0, %v16480_v13  ;;  %v8435_v0 = vsel %vm4448_vm12, 1.0, %v16480_v13  ;;  %v8418_v55 = vadd.f32 -9.0, %v16935_v11 }
 0x9dc   : > { %v14321_v40 = vsel %vm1213_vm11, %v4516_v10, %v17066_v17  ;;  %17069 = vst [vmem:[#allocation22_spill] sm:$0xff] %v14326_v30  ;;  %v3817_v10 = vsel %vm3814_vm14, %v3798_v7, %v17023_v1  ;;  %v17071_v17 = vld [vmem:[#allocation85_spill] sm:$0xff]  ;;  %v4730_v24 = vmul.f32 %v8503_v23, %v16875_v49  ;;  %v4496_v4 = vmul.f32 %v8435_v0, %v16863_v32  ;;  %v17076_v23 = vld [vmem:[#allocation20_spill] sm:$0xff] }
 0x9dd   : > { %6222 = vmatpush.msrb.mxu2 %v14321_v40  ;;  %v17072_v27 = vunpack.i.h.bf16 %v17071_v17  ;;  %v4198_v30 = vand.u32 2147483647, %v8351_v41  ;;  %v4665_v43 = vand.u32 2147483647, %v8486_v46  ;;  %v4431_v7 = vand.u32 2147483647, %v8418_v55 }
 0x9de   : > { %v4749_v17 = vsel %vm4734_vm10, %v4730_v24, %v16903_v54  ;;  %v8417_v41 = vadd.f32 -9.0, %v16936_v59  ;;  %v17074_v46 = vunpack.i.h.bf16 %v17051_v15  ;;  %v17077_v0 = vunpack.i.l.bf16 %v17076_v23 }
 0x9df   : > { %v14343_v60 = vsel %vm1213_vm11, %v3817_v10, %v17072_v27  ;;  %v4515_v27 = vsel %vm4504_vm2, %v4496_v4, %v16939_v58  ;;  %vm4214_vm14 = vcmp.lt.f32.partialorder %v4198_v30, 0.5  ;;  %vm4681_vm6 = vcmp.lt.f32.partialorder %v4665_v43, 0.5  ;;  %v14370_v4 = vpop.permute.xlu0 %9234 }
 0x9e0   : > { %17073 = vst [vmem:[#allocation123_spill] sm:$0xff] %v14343_v60  ;;  %6003 = vmatpush.msra.mxu1 %v14343_v60  ;;  %v14361_v10 = vsel %vm1213_vm11, %v4749_v17, %v17074_v46  ;;  %v14366_v55 = vsel %vm1213_vm11, %v4515_v27, %v17077_v0  ;;  %v8367_v24 = vsel %vm4214_vm14, 1.0, %v16480_v13  ;;  %v17078_v60 = vld [vmem:[#allocation115_spill] sm:$0xff]  ;;  %v8502_v30 = vsel %vm4681_vm6, 1.0, %v16480_v13  ;;  %v17080_v0 = vld [vmem:[#allocation116_spill] sm:$0xff] }
 0x9e1   : > { %6004 = vmatmul.f32.vlgmr.msra.gmra.mxu1 %v16947_v35  ;;  %17075 = vst [vmem:[#allocation124_spill] sm:$0xff] %v14361_v10  ;;  %6071 = vmatpush.msrb.mxu0 %v14361_v10  ;;  %v4262_v15 = vmul.f32 %v8367_v24, %v12204_v20  ;;  %vm4447_vm9 = vcmp.lt.f32.partialorder %v4431_v7, 0.5  ;;  %v4197_v17 = vand.u32 2147483647, %v8350_v57  ;;  %v4729_v27 = vmul.f32 %v8502_v30, %v16877_v9 }
 0x9e2   : > { %6048 = vmatpush.msrb.mxu1 %v17078_v60  ;;  %17079 = vst [vmem:[#allocation20_spill] sm:$0xff] %v14370_v4  ;;  %6223 = vmatpush.msrb.mxu2 %v14366_v55  ;;  %v8434_v46 = vsel %vm4447_vm9, 1.0, %v16480_v13  ;;  %v4664_v60 = vand.u32 2147483647, %v8485_v34  ;;  %v4430_v43 = vand.u32 2147483647, %v8417_v41  ;;  %v17081_v57 = vunpack.i.l.bf16 %v13830_v56 }
 0x9e3   : > { %v4281_v10 = vsel %vm4274_vm4, %v4262_v15, %v16974_v25  ;;  %v4495_v54 = vmul.f32 %v8434_v46, %v12225_v5  ;;  %vm4213_vm7 = vcmp.lt.f32.partialorder %v4197_v17, 0.5  ;;  %v8349_v24 = vadd.f32 -7.0, %v12312_v18 }
 0x9e4   : > { %6049 = vmatpush.msrb.mxu1 %v17080_v0  ;;  %v14389_v7 = vsel %vm1213_vm11, %v4281_v10, %v17081_v57  ;;  %v4748_v34 = vsel %vm4734_vm10, %v4729_v27, %v16908_v62  ;;  %v8366_v41 = vsel %vm4213_vm7, 1.0, %v16480_v13  ;;  %vm4680_vm0 = vcmp.lt.f32.partialorder %v4664_v60, 0.5  ;;  %v14414_v60 = vpop.permute.xlu1 %9244 }
 0x9e5   : > { %17082 = vst [vmem:[#allocation115_spill] sm:$0xff] %v14389_v7  ;;  %6039 = vmatpush.msrb.mxu3 %v14389_v7  ;;  %v17083_v15 = vunpack.i.h.bf16 %v17065_v3  ;;  %v4514_v56 = vsel %vm4504_vm2, %v4495_v54, %v16950_v61  ;;  %v4261_v10 = vmul.f32 %v8366_v41, %v12193_v16  ;;  %v8501_v17 = vsel %vm4680_vm0, 1.0, %v16480_v13  ;;  %v17087_v41 = vld [vmem:[#allocation114_spill] sm:$0xff] }
 0x9e6   : > { %6050 = vmatpush.msrb.mxu1 %v14096_v50  ;;  %v17085_v27 = vunpack.i.h.bf16 %v14031_v44  ;;  %v4728_v46 = vmul.f32 %v8501_v17, %v16855_v42  ;;  %vm4446_vm5 = vcmp.lt.f32.partialorder %v4430_v43, 0.5  ;;  %v4196_v3 = vand.u32 2147483647, %v8349_v24  ;;  %17086 = vst [vmem:[#allocation125_spill] sm:$0xff] %v14414_v60 }
 0x9e7   : > { %v14400_v30 = vsel %vm1213_vm11, %v4748_v34, %v17083_v15  ;;  %v9287_v54 = vunpack.i.h.bf16 %v14384_v28  ;;  %v4280_v57 = vsel %vm4274_vm4, %v4261_v10, %v16983_v12  ;;  %v8433_v34 = vsel %vm4446_vm5, 1.0, %v16480_v13 }
 0x9e8   : > { %17084 = vst [vmem:[#allocation116_spill] sm:$0xff] %v14400_v30  ;;  %6072 = vmatpush.msrb.mxu0 %v14400_v30  ;;  %v5911_v50 = vsel %vm1213_vm11, %v4514_v56, %v17085_v27  ;;  %6051 = vmatpush.msrb.mxu1 %v14161_v31  ;;  %v17088_v15 = vunpack.i.h.bf16 %v17087_v41  ;;  %v4747_v31 = vsel %vm4734_vm10, %v4728_v46, %v16857_v39  ;;  %vm4212_vm8 = vcmp.lt.f32.partialorder %v4196_v3, 0.5  ;;  %v17094_v56 = vld [vmem:[#allocation100_spill] sm:$0xff] }
 0x9e9   : > { %6224 = vmatpush.msrb.mxu2 %v5911_v50  ;;  %v4494_v24 = vmul.f32 %v8433_v34, %v17047_v52  ;;  %v17090_v17 = vunpack.i.h.bf16 %v17076_v23  ;;  %v14448_v23 = vpop.permute.xlu0 %9249  ;;  %vm4964_vm9 = vcmp.gt.f32.partialorder %v12318_v8, 12.5 }
 0x9ea   : > { %v14424_v43 = vsel %vm1213_vm11, %v4280_v57, %v17088_v15  ;;  %6052 = vmatpush.msrb.mxu1 %v14216_v6  ;;  %v8365_v57 = vsel %vm4212_vm8, 1.0, %v16480_v13  ;;  %17092 = vst [vmem:[#allocation127_spill] sm:$0xff] %v14448_v23  ;;  %v8484_v15 = vadd.f32 -11.0, %v16870_v38 }
 0x9eb   : > { %17089 = vst [vmem:[#allocation114_spill] sm:$0xff] %v14424_v43  ;;  %6040 = vmatpush.msrb.mxu3 %v14424_v43  ;;  %v14437_v27 = vsel %vm1213_vm11, %v4747_v31, %v17090_v17  ;;  %v4513_v6 = vsel %vm4504_vm2, %v4494_v24, %v17053_v45  ;;  %v4260_v3 = vmul.f32 %v8365_v57, %v12186_v26  ;;  %v8416_v31 = vadd.f32 -9.0, %v17050_v19  ;;  %v17093_v17 = vld [vmem:[#allocation99_spill] sm:$0xff] }
 0x9ec   : > { %17091 = vst [vmem:[#allocation126_spill] sm:$0xff] %v14437_v27  ;;  %6073 = vmatpush.msrb.mxu0 %v14437_v27  ;;  %6053 = vmatpush.msrb.mxu1 %v14271_v53  ;;  %v5910_v41 = vsel %vm1213_vm11, %v4513_v6, %v9287_v54  ;;  %v8348_v34 = vadd.f32 -7.0, %v17093_v17  ;;  %v8483_v24 = vadd.f32 -11.0, %v12463_v14  ;;  %v8415_v57 = vadd.f32 -9.0, %v17070_v21  ;;  %v17095_v54 = vld [vmem:[#allocation21_spill] sm:$0xff] }
 0x9ed   : > { %6225 = vmatpush.msrb.mxu2 %v5910_v41  ;;  %v4279_v10 = vsel %vm4274_vm4, %v4260_v3, %v17094_v56  ;;  %v8347_v53 = vadd.f32 -7.0, %v17007_v22  ;;  %v17096_v6 = vunpack.i.l.bf16 %v17095_v54  ;;  %v4663_v0 = vand.u32 2147483647, %v8484_v15 }
 0x9ee   : > { %6054 = vmatpush.msrb.mxu1 %v14321_v40  ;;  %v4429_v27 = vand.u32 2147483647, %v8416_v31  ;;  %v4195_v30 = vand.u32 2147483647, %v8348_v34  ;;  %v4662_v3 = vand.u32 2147483647, %v8483_v24 }
 0x9ef   : > { %v14464_v46 = vsel %vm1213_vm11, %v4279_v10, %v17096_v6  ;;  %v4428_v7 = vand.u32 2147483647, %v8415_v57  ;;  %v4194_v44 = vand.u32 2147483647, %v8347_v53  ;;  %vm4679_vm1 = vcmp.lt.f32.partialorder %v4663_v0, 0.5  ;;  %v17098_v57 = vld [vmem:[#allocation70_spill] sm:$0xff]  ;;  %v14477_v0 = vpop.permute.xlu1 %9259 }
 0x9f0   : > { %17097 = vst [vmem:[#allocation99_spill] sm:$0xff] %v14464_v46  ;;  %6041 = vmatpush.msrb.mxu3 %v14464_v46  ;;  %6055 = vmatpush.msrb.mxu1 %v14366_v55  ;;  %vm4445_vm3 = vcmp.lt.f32.partialorder %v4429_v27, 0.5  ;;  %vm4211_vm15 = vcmp.lt.f32.partialorder %v4195_v30, 0.5  ;;  %v8482_v40 = vadd.f32 -11.0, %v16935_v11  ;;  %v8500_v10 = vsel %vm4679_vm1, 1.0, %v16480_v13  ;;  %v17112_v46 = vld [vmem:[#allocation71_spill] sm:$0xff] }
 0x9f1   : > { %v8432_v15 = vsel %vm4445_vm3, 1.0, %v16480_v13  ;;  %v8364_v34 = vsel %vm4211_vm15, 1.0, %v16480_v13  ;;  %vm4678_vm13 = vcmp.lt.f32.partialorder %v4662_v3, 0.5  ;;  %v4727_v31 = vmul.f32 %v8500_v10, %v12243_v2  ;;  %v17099_v10 = vld [vmem:[#allocation117_spill] sm:$0xff] }
 0x9f2   : > { %6056 = vmatpush.msrb.mxu1 %v5911_v50  ;;  %v4493_v24 = vmul.f32 %v8432_v15, %v12209_v37  ;;  %v4259_v53 = vmul.f32 %v8364_v34, %v17098_v57  ;;  %v8499_v55 = vsel %vm4678_vm13, 1.0, %v16480_v13  ;;  %vm4444_vm12 = vcmp.lt.f32.partialorder %v4428_v7, 0.5 }
 0x9f3   : > { %v4726_v30 = vmul.f32 %v8499_v55, %v16863_v32  ;;  %vm4210_vm14 = vcmp.lt.f32.partialorder %v4194_v44, 0.5  ;;  %v4661_v27 = vand.u32 2147483647, %v8482_v40  ;;  %v4746_v50 = vsel %vm4734_vm10, %v4727_v31, %v16923_v51  ;;  %v17103_v40 = vld [vmem:[#allocation63_spill] sm:$0xff] }
 0x9f4   : > { %6057 = vmatpush.msrb.mxu1 %v5910_v41  ;;  %v4512_v54 = vsel %vm4504_vm2, %v4493_v24, %v16966_v63  ;;  %v4278_v6 = vsel %vm4274_vm4, %v4259_v53, %v17011_v48  ;;  %v8431_v3 = vsel %vm4444_vm12, 1.0, %v16480_v13  ;;  %v17100_v15 = vunpack.i.l.bf16 %v17099_v10  ;;  %v17106_v53 = vld [vmem:[#allocation119_spill] sm:$0xff] }
 0x9f5   : > { %v17102_v7 = vunpack.i.h.bf16 %v14370_v4  ;;  %v17104_v34 = vunpack.i.l.bf16 %v17103_v40  ;;  %v4745_v24 = vsel %vm4734_vm10, %v4726_v30, %v16939_v58  ;;  %v17107_v55 = vunpack.i.l.bf16 %v17106_v53  ;;  %v17120_v10 = vld [vmem:[#allocation87_spill] sm:$0xff] }
 0x9f6   : > { %v14493_v44 = vsel %vm1213_vm11, %v4746_v50, %v17100_v15  ;;  %v4492_v15 = vmul.f32 %v8431_v3, %v12204_v20  ;;  %vm4677_vm6 = vcmp.lt.f32.partialorder %v4661_v27, 0.5  ;;  %v17113_v4 = vunpack.i.l.bf16 %v17112_v46 }
 0x9f7   : > { %17101 = vst [vmem:[#allocation100_spill] sm:$0xff] %v14493_v44  ;;  %v5909_v41 = vsel %vm1213_vm11, %v4512_v54, %v17102_v7  ;;  %v14501_v31 = vsel %vm1213_vm11, %v4278_v6, %v17104_v34  ;;  %6074 = vmatpush.msrb.mxu0 %v14493_v44  ;;  %v14510_v50 = vsel %vm1213_vm11, %v4745_v24, %v17107_v55  ;;  %v8363_v54 = vsel %vm4210_vm14, 1.0, %v16480_v13  ;;  %v17109_v7 = vld [vmem:[#allocation73_spill] sm:$0xff]  ;;  %v17110_v55 = vld [vmem:[#allocation51_spill] sm:$0xff] }
 0x9f8   : > { %17105 = vst [vmem:[#allocation21_spill] sm:$0xff] %v14501_v31  ;;  %6226 = vmatpush.msrb.mxu2 %v5909_v41  ;;  %6042 = vmatpush.msrb.mxu3 %v14501_v31  ;;  %v4258_v6 = vmul.f32 %v8363_v54, %v17020_v33  ;;  %v8498_v30 = vsel %vm4677_vm6, 1.0, %v16480_v13  ;;  %v8554_v40 = vadd.f32 -13.0, %v17109_v7  ;;  %v8414_v34 = vadd.f32 -9.0, %v12336_v47 }
 0x9f9   : > { %17108 = vst [vmem:[#allocation70_spill] sm:$0xff] %v14510_v50  ;;  %6058 = vmatpush.msrb.mxu1 %v5909_v41  ;;  %6075 = vmatpush.msrb.mxu0 %v14510_v50  ;;  %v4511_v3 = vsel %vm4504_vm2, %v4492_v15, %v16974_v25  ;;  %v4725_v27 = vmul.f32 %v8498_v30, %v12225_v5  ;;  %v8481_v24 = vadd.f32 -11.0, %v16936_v59  ;;  %v8553_v43 = vadd.f32 -13.0, %v17110_v55  ;;  %v17121_v55 = vld [vmem:[#allocation46_spill] sm:$0xff] }
 0x9fa   : > { %v17111_v54 = vunpack.i.h.bf16 %v14414_v60  ;;  %v4277_v41 = vsel %vm4274_vm4, %v4258_v6, %v17023_v1  ;;  %v4899_v31 = vand.u32 2147483647, %v8554_v40  ;;  %v4427_v50 = vand.u32 2147483647, %v8414_v34  ;;  %v14550_v40 = vpop.permute.xlu2 %9289  ;;  %v14556_v34 = vpop.permute.xlu1 %9294 }
 0x9fb   : > { %v14536_v15 = vsel %vm1213_vm11, %v4277_v41, %v17113_v4  ;;  %v4744_v30 = vsel %vm4734_vm10, %v4725_v27, %v16950_v61  ;;  %v4660_v53 = vand.u32 2147483647, %v8481_v24  ;;  %v4898_v60 = vand.u32 2147483647, %v8553_v43  ;;  %v14548_v4 = vpop.permute.xlu0 %9264 }
 0x9fc   : > { %v5908_v44 = vsel %vm1213_vm11, %v4511_v3, %v17111_v54  ;;  %17114 = vst [vmem:[#allocation63_spill] sm:$0xff] %v14536_v15  ;;  %6043 = vmatpush.msrb.mxu3 %v14536_v15  ;;  %v17115_v3 = vld [vmem:[#allocation35_spill] sm:$0xff]  ;;  %vm4915_vm4 = vcmp.lt.f32.partialorder %v4899_v31, 0.5  ;;  %vm4443_vm7 = vcmp.lt.f32.partialorder %v4427_v50, 0.5  ;;  %v8413_v46 = vadd.f32 -9.0, %v12312_v18 }
 0x9fd   : > { %6227 = vmatpush.msrb.mxu2 %v5908_v44  ;;  %6059 = vmatpush.msrb.mxu1 %v5908_v44  ;;  %v17116_v54 = vunpack.i.l.bf16 %v17115_v3  ;;  %v8570_v43 = vsel %vm4915_vm4, 1.0, %v16480_v13  ;;  %v8430_v44 = vsel %vm4443_vm7, 1.0, %v16480_v13  ;;  %vm4676_vm0 = vcmp.lt.f32.partialorder %v4660_v53, 0.5  ;;  %v17118_v31 = vld [vmem:[#allocation83_spill] sm:$0xff] }
 0x9fe   : > { %6044 = vmatmul.f32.vlgmr.msrb.gmra.mxu3 %v16947_v35  ;;  %vm4914_vm5 = vcmp.lt.f32.partialorder %v4898_v60, 0.5  ;;  %v4963_v50 = vmul.f32 %v8570_v43, %v17118_v31  ;;  %v4491_v27 = vmul.f32 %v8430_v44, %v12193_v16  ;;  %v8497_v24 = vsel %vm4676_vm0, 1.0, %v16480_v13 }
 0x9ff   : > { %v14545_v6 = vsel %vm1213_vm11, %v4744_v30, %v17116_v54  ;;  %v8569_v41 = vsel %vm4914_vm5, 1.0, %v16480_v13  ;;  %v9261_v30 = vunpack.i.l.bf16 %v14477_v0  ;;  %v4724_v54 = vmul.f32 %v8497_v24, %v17047_v52 }
 0xa00   : > { %17117 = vst [vmem:[#allocation73_spill] sm:$0xff] %v14545_v6  ;;  %6076 = vmatpush.msrb.mxu0 %v14545_v6  ;;  %v17119_v6 = vld [vmem:[#allocation84_spill] sm:$0xff]  ;;  %v4426_v3 = vand.u32 2147483647, %v8413_v46  ;;  %v9267_v53 = vunpack.i.h.bf16 %v14548_v4  ;;  %v4982_v43 = vsel %vm4964_vm9, %v4963_v50, %v17120_v10  ;;  %v4510_v44 = vsel %vm4504_vm2, %v4491_v27, %v16983_v12  ;;  %v17124_v46 = vld [vmem:[#allocation41_spill] sm:$0xff] }
 0xa01   : > { %v4962_v15 = vmul.f32 %v8569_v41, %v17119_v6  ;;  %v17122_v61 = vunpack.i.h.bf16 %v17121_v55  ;;  %v17125_v41 = vunpack.i.h.bf16 %v17124_v46  ;;  %v4743_v60 = vsel %vm4734_vm10, %v4724_v54, %v17053_v45  ;;  %v17132_v46 = vld [vmem:[#allocation109_spill] sm:$0xff] }
 0xa02   : > { %v9296_v50 = vunpack.i.l.bf16 %v14556_v34  ;;  %v17126_v27 = vunpack.i.l.bf16 %v14448_v23  ;;  %vm4442_vm8 = vcmp.lt.f32.partialorder %v4426_v3, 0.5  ;;  %v8552_v10 = vadd.f32 -13.0, %v17132_v46 }
 0xa03   : > { %v14577_v24 = vsel %vm1213_vm11, %v4982_v43, %v17122_v61  ;;  %v5907_v6 = vsel %vm1213_vm11, %v4510_v44, %v17125_v41  ;;  %v17128_v61 = vld [vmem:[#allocation56_spill] sm:$0xff]  ;;  %v17129_v44 = vld [vmem:[#allocation45_spill] sm:$0xff]  ;;  %v8429_v31 = vsel %vm4442_vm8, 1.0, %v16480_v13  ;;  %v8479_v3 = vadd.f32 -11.0, %v17070_v21 }
 0xa04   : > { %17123 = vst [vmem:[#allocation71_spill] sm:$0xff] %v14577_v24  ;;  %6088 = vmatpush.msra.mxu3 %v14577_v24  ;;  %6228 = vmatpush.msrb.mxu2 %v5907_v6  ;;  %v14590_v55 = vsel %vm1213_vm11, %v4743_v60, %v17126_v27  ;;  %v4981_v43 = vsel %vm4964_vm9, %v4962_v15, %v17128_v61  ;;  %v17130_v41 = vunpack.i.h.bf16 %v17129_v44  ;;  %v8480_v24 = vadd.f32 -11.0, %v17050_v19  ;;  %v17133_v27 = vld [vmem:[#allocation108_spill] sm:$0xff] }
 0xa05   : > { %17127 = vst [vmem:[#allocation46_spill] sm:$0xff] %v14590_v55  ;;  %6077 = vmatpush.msrb.mxu0 %v14590_v55  ;;  %6060 = vmatpush.msrb.mxu1 %v5907_v6  ;;  %v4490_v60 = vmul.f32 %v8429_v31, %v12186_v26  ;;  %v8412_v15 = vadd.f32 -9.0, %v17093_v17  ;;  %v8551_v44 = vadd.f32 -13.0, %v17133_v27  ;;  %v8550_v61 = vadd.f32 -13.0, %v16847_v36  ;;  %v17134_v27 = vld [vmem:[#allocation65_spill] sm:$0xff] }
 0xa06   : > { %v14599_v54 = vsel %vm1213_vm11, %v4981_v43, %v17130_v41  ;;  %v4659_v55 = vand.u32 2147483647, %v8480_v24  ;;  %v4897_v43 = vand.u32 2147483647, %v8552_v10  ;;  %v8478_v41 = vadd.f32 -11.0, %v12336_v47 }
 0xa07   : > { %17131 = vst [vmem:[#allocation45_spill] sm:$0xff] %v14599_v54  ;;  %6089 = vmatpush.msra.mxu3 %v14599_v54  ;;  %v4509_v6 = vsel %vm4504_vm2, %v4490_v60, %v17094_v56  ;;  %v4425_v46 = vand.u32 2147483647, %v8412_v15  ;;  %v4658_v54 = vand.u32 2147483647, %v8479_v3 }
 0xa08   : > { %v4896_v45 = vand.u32 2147483647, %v8551_v44  ;;  %v5906_v31 = vsel %vm1213_vm11, %v4509_v6, %v9267_v53  ;;  %vm4675_vm1 = vcmp.lt.f32.partialorder %v4659_v55, 0.5  ;;  %vm4913_vm3 = vcmp.lt.f32.partialorder %v4897_v43, 0.5  ;;  %v14621_v53 = vpop.permute.xlu0 %9299 }
 0xa09   : > { %v4657_v52 = vand.u32 2147483647, %v8478_v41  ;;  %6229 = vmatpush.msrb.mxu2 %v5906_v31  ;;  %v8496_v24 = vsel %vm4675_vm1, 1.0, %v16480_v13  ;;  %v8568_v10 = vsel %vm4913_vm3, 1.0, %v16480_v13  ;;  %vm4441_vm15 = vcmp.lt.f32.partialorder %v4425_v46, 0.5  ;;  %6061 = vmatpush.msrb.mxu1 %v5906_v31  ;;  %17135 = vst [vmem:[#allocation65_spill] sm:$0xff] %v14621_v53  ;;  %v14633_v31 = vpop.permute.xlu1 %9309 }
 0xa0a   : > { %vm4674_vm13 = vcmp.lt.f32.partialorder %v4658_v54, 0.5  ;;  %v4723_v36 = vmul.f32 %v8496_v24, %v12209_v37  ;;  %v4961_v60 = vmul.f32 %v8568_v10, %v17134_v27  ;;  %v8428_v15 = vsel %vm4441_vm15, 1.0, %v16480_v13  ;;  %v17136_v54 = vld [vmem:[#allocation107_spill] sm:$0xff]  ;;  %v17139_v10 = vld [vmem:[#allocation18_spill] sm:$0xff] }
 0xa0b   : > { %v8495_v3 = vsel %vm4674_vm13, 1.0, %v16480_v13  ;;  %v4489_v55 = vmul.f32 %v8428_v15, %v17098_v57  ;;  %vm4912_vm12 = vcmp.lt.f32.partialorder %v4896_v45, 0.5  ;;  %vm4673_vm14 = vcmp.lt.f32.partialorder %v4657_v52, 0.5  ;;  %17137 = vst [vmem:[#allocation107_spill] sm:$0xff] %v14633_v31 }
 0xa0c   : > { %v4722_v44 = vmul.f32 %v8495_v3, %v12204_v20  ;;  %v4742_v46 = vsel %vm4734_vm10, %v4723_v36, %v16966_v63  ;;  %v4980_v43 = vsel %vm4964_vm9, %v4961_v60, %v17136_v54  ;;  %v8567_v41 = vsel %vm4912_vm12, 1.0, %v16480_v13 }
 0xa0d   : > { %v8494_v6 = vsel %vm4673_vm14, 1.0, %v16480_v13  ;;  %v14636_v24 = vsel %vm1213_vm11, %v4742_v46, %v9261_v30  ;;  %v17140_v45 = vunpack.i.h.bf16 %v17139_v10  ;;  %v4508_v36 = vsel %vm4504_vm2, %v4489_v55, %v17011_v48 }
 0xa0e   : > { %17138 = vst [vmem:[#allocation128_spill] sm:$0xff] %v14636_v24  ;;  %v4741_v60 = vsel %vm4734_vm10, %v4722_v44, %v16974_v25  ;;  %6078 = vmatpush.msrb.mxu0 %v14636_v24  ;;  %v5905_v30 = vsel %vm1213_vm11, %v4508_v36, %v9296_v50  ;;  %v17142_v15 = vunpack.i.l.bf16 %v14550_v40  ;;  %v4960_v46 = vmul.f32 %v8567_v41, %v16875_v49  ;;  %v17146_v41 = vld [vmem:[#allocation58_spill] sm:$0xff] }
 0xa0f   : > { %v14641_v52 = vsel %vm1213_vm11, %v4980_v43, %v17140_v45  ;;  %v4895_v43 = vand.u32 2147483647, %v8550_v61  ;;  %6230 = vmatpush.msrb.mxu2 %v5905_v30  ;;  %v4721_v55 = vmul.f32 %v8494_v6, %v12193_v16  ;;  %v8411_v10 = vadd.f32 -9.0, %v17007_v22  ;;  %v17144_v45 = vld [vmem:[#allocation106_spill] sm:$0xff]  ;;  %6062 = vmatpush.msrb.mxu1 %v5905_v30  ;;  %v17147_v6 = vld [vmem:[#allocation97_spill] sm:$0xff] }
 0xa10   : > { %17141 = vst [vmem:[#allocation18_spill] sm:$0xff] %v14641_v52  ;;  %6090 = vmatpush.msra.mxu3 %v14641_v52  ;;  %v14655_v3 = vsel %vm1213_vm11, %v4741_v60, %v17142_v15  ;;  %v8477_v44 = vadd.f32 -11.0, %v12312_v18  ;;  %v8549_v24 = vadd.f32 -13.0, %v17144_v45  ;;  %v14664_v52 = vpop.permute.xlu2 %9304  ;;  %v4979_v61 = vsel %vm4964_vm9, %v4960_v46, %v17146_v41 }
 0xa11   : > { %17143 = vst [vmem:[#allocation129_spill] sm:$0xff] %v14655_v3  ;;  %6079 = vmatpush.msrb.mxu0 %v14655_v3  ;;  %vm4911_vm6 = vcmp.lt.f32.partialorder %v4895_v43, 0.5  ;;  %v17148_v60 = vunpack.i.l.bf16 %v17147_v6  ;;  %v4740_v30 = vsel %vm4734_vm10, %v4721_v55, %v16983_v12  ;;  %v4424_v36 = vand.u32 2147483647, %v8411_v10  ;;  %v17152_v10 = vld [vmem:[#allocation17_spill] sm:$0xff] }
 0xa12   : > { %17145 = vst [vmem:[#allocation106_spill] sm:$0xff] %v14664_v52  ;;  %v8566_v50 = vsel %vm4911_vm6, 1.0, %v16480_v13  ;;  %v17150_v3 = vunpack.i.h.bf16 %v14556_v34  ;;  %v4656_v43 = vand.u32 2147483647, %v8477_v44  ;;  %v4894_v6 = vand.u32 2147483647, %v8549_v24 }
 0xa13   : > { %v14673_v15 = vsel %vm1213_vm11, %v4979_v61, %v17148_v60  ;;  %v4959_v46 = vmul.f32 %v8566_v50, %v16877_v9  ;;  %v9302_v60 = vunpack.i.h.bf16 %v14621_v53  ;;  %v9306_v55 = vunpack.i.l.bf16 %v14664_v52 }
 0xa14   : > { %17149 = vst [vmem:[#allocation58_spill] sm:$0xff] %v14673_v15  ;;  %6091 = vmatpush.msra.mxu3 %v14673_v15  ;;  %v14683_v23 = vsel %vm1213_vm11, %v4740_v30, %v17150_v3  ;;  %vm4440_vm4 = vcmp.lt.f32.partialorder %v4424_v36, 0.5  ;;  %vm4672_vm7 = vcmp.lt.f32.partialorder %v4656_v43, 0.5  ;;  %vm4910_vm0 = vcmp.lt.f32.partialorder %v4894_v6, 0.5  ;;  %v14702_v36 = vpop.permute.xlu0 %9314 }
 0xa15   : > { %17151 = vst [vmem:[#allocation97_spill] sm:$0xff] %v14683_v23  ;;  %6080 = vmatpush.msrb.mxu0 %v14683_v23  ;;  %v4978_v34 = vsel %vm4964_vm9, %v4959_v46, %v16908_v62  ;;  %v8427_v3 = vsel %vm4440_vm4, 1.0, %v16480_v13  ;;  %v17153_v44 = vunpack.i.h.bf16 %v17152_v10  ;;  %v8493_v30 = vsel %vm4672_vm7, 1.0, %v16480_v13 }
 0xa16   : > { %v4488_v50 = vmul.f32 %v8427_v3, %v17020_v33  ;;  %v8565_v61 = vsel %vm4910_vm0, 1.0, %v16480_v13  ;;  %v9311_v15 = vunpack.i.l.bf16 %v14633_v31  ;;  %v4720_v46 = vmul.f32 %v8493_v30, %v12186_v26  ;;  %v14712_v3 = vpop.permute.xlu1 %9324 }
 0xa17   : > { %v14697_v24 = vsel %vm1213_vm11, %v4978_v34, %v17153_v44  ;;  %v4958_v43 = vmul.f32 %v8565_v61, %v16855_v42  ;;  %v8476_v6 = vadd.f32 -11.0, %v17093_v17  ;;  %17155 = vst [vmem:[#allocation130_spill] sm:$0xff] %v14712_v3  ;;  %v8548_v10 = vadd.f32 -13.0, %v16870_v38 }
 0xa18   : > { %17154 = vst [vmem:[#allocation17_spill] sm:$0xff] %v14697_v24  ;;  %6092 = vmatpush.msra.mxu3 %v14697_v24  ;;  %v4507_v34 = vsel %vm4504_vm2, %v4488_v50, %v17023_v1  ;;  %v8547_v44 = vadd.f32 -13.0, %v12463_v14  ;;  %v8475_v23 = vadd.f32 -11.0, %v17007_v22  ;;  %v4739_v61 = vsel %vm4734_vm10, %v4720_v46, %v17094_v56 }
 0xa19   : > { %v5904_v24 = vsel %vm1213_vm11, %v4507_v34, %v9302_v60  ;;  %v4977_v30 = vsel %vm4964_vm9, %v4958_v43, %v16857_v39  ;;  %v4655_v31 = vand.u32 2147483647, %v8476_v6  ;;  %v14725_v50 = vsel %vm1213_vm11, %v4739_v61, %v9306_v55  ;;  %v17159_v34 = vld [vmem:[#allocation15_spill] sm:$0xff] }
 0xa1a   : > { %6231 = vmatpush.msrb.mxu2 %v5904_v24  ;;  %17156 = vst [vmem:[#allocation131_spill] sm:$0xff] %v14725_v50  ;;  %v17157_v3 = vunpack.i.h.bf16 %v14038_v29  ;;  %v4893_v53 = vand.u32 2147483647, %v8548_v10  ;;  %v4892_v60 = vand.u32 2147483647, %v8547_v44  ;;  %6063 = vmatpush.msrb.mxu1 %v5904_v24  ;;  %v8546_v43 = vadd.f32 -13.0, %v16935_v11 }
 0xa1b   : > { %6081 = vmatpush.msrb.mxu0 %v14725_v50  ;;  %vm4671_vm2 = vcmp.lt.f32.partialorder %v4655_v31, 0.5  ;;  %v4654_v46 = vand.u32 2147483647, %v8475_v23  ;;  %v8545_v6 = vadd.f32 -13.0, %v16936_v59  ;;  %v9316_v55 = vunpack.i.l.bf16 %v14702_v36  ;;  %6064 = vmatmul.f32.vlgmr.msrb.gmra.mxu1 %v16947_v35 }
 0xa1c   : > { %v14730_v52 = vsel %vm1213_vm11, %v4977_v30, %v17157_v3  ;;  %v8492_v29 = vsel %vm4671_vm2, 1.0, %v16480_v13  ;;  %vm4909_vm5 = vcmp.lt.f32.partialorder %v4893_v53, 0.5  ;;  %vm4908_vm8 = vcmp.lt.f32.partialorder %v4892_v60, 0.5  ;;  %6232 = vmatmul.f32.vlgmr.msrb.gmra.mxu2 %v17159_v34 }
 0xa1d   : > { %17158 = vst [vmem:[#allocation132_spill] sm:$0xff] %v14730_v52  ;;  %6093 = vmatpush.msra.mxu3 %v14730_v52  ;;  %v4719_v24 = vmul.f32 %v8492_v29, %v17098_v57  ;;  %v8564_v3 = vsel %vm4909_vm5, 1.0, %v16480_v13  ;;  %v8563_v23 = vsel %vm4908_vm8, 1.0, %v16480_v13  ;;  %vm4670_vm1 = vcmp.lt.f32.partialorder %v4654_v46, 0.5  ;;  %v14751_v52 = vpop.permute.xlu2 %9319 }
 0xa1e   : > { %v4957_v31 = vmul.f32 %v8564_v3, %v12243_v2  ;;  %v4956_v10 = vmul.f32 %v8563_v23, %v16863_v32  ;;  %v8491_v44 = vsel %vm4670_vm1, 1.0, %v16480_v13  ;;  %v4891_v61 = vand.u32 2147483647, %v8546_v43  ;;  %v14762_v23 = vpop.permute.xlu0 %9329 }
 0xa1f   : > { %v4738_v30 = vsel %vm4734_vm10, %v4719_v24, %v17011_v48  ;;  %v4718_v60 = vmul.f32 %v8491_v44, %v17020_v33  ;;  %v4890_v29 = vand.u32 2147483647, %v8545_v6  ;;  %17161 = vst [vmem:[#allocation134_spill] sm:$0xff] %v14762_v23  ;;  %v17162_v24 = vld [vmem:[#allocation19_spill] sm:$0xff]  ;;  %vm5194_vm13 = vcmp.gt.f32.partialorder %v12318_v8, 14.5  ;;  %v17265_v8 = vld [vmem:[#allocation54_spill] sm:$0xff] }
 0xa20   : > { %v14754_v46 = vsel %vm1213_vm11, %v4738_v30, %v9311_v15  ;;  %v4976_v3 = vsel %vm4964_vm9, %v4957_v31, %v16923_v51  ;;  %v4975_v43 = vsel %vm4964_vm9, %v4956_v10, %v16939_v58  ;;  %vm4907_vm3 = vcmp.lt.f32.partialorder %v4891_v61, 0.5  ;;  %v17165_v15 = vld [vmem:[#allocation88_spill] sm:$0xff] }
 0xa21   : > { %17160 = vst [vmem:[#allocation133_spill] sm:$0xff] %v14754_v46  ;;  %6082 = vmatpush.msrb.mxu0 %v14754_v46  ;;  %v17163_v6 = vunpack.i.h.bf16 %v17162_v24  ;;  %v17166_v30 = vunpack.i.h.bf16 %v17165_v15  ;;  %v4737_v31 = vsel %vm4734_vm10, %v4718_v60, %v17023_v1  ;;  %v8562_v10 = vsel %vm4907_vm3, 1.0, %v16480_v13  ;;  %v17174_v46 = vld [vmem:[#allocation86_spill] sm:$0xff] }
 0xa22   : > { %v14781_v61 = vsel %vm1213_vm11, %v4737_v31, %v9316_v55  ;;  %v4955_v24 = vmul.f32 %v8562_v10, %v12225_v5  ;;  %vm4906_vm15 = vcmp.lt.f32.partialorder %v4890_v29, 0.5  ;;  %v8543_v15 = vadd.f32 -13.0, %v17070_v21  ;;  %v17171_v29 = vld [vmem:[#allocation74_spill] sm:$0xff] }
 0xa23   : > { %v14768_v44 = vsel %vm1213_vm11, %v4976_v3, %v17163_v6  ;;  %v14773_v53 = vsel %vm1213_vm11, %v4975_v43, %v17166_v30  ;;  %17168 = vst [vmem:[#allocation135_spill] sm:$0xff] %v14781_v61  ;;  %v14784_v3 = vpop.f32.mrf.mxu3  ;;  %v14786_v6 = vpop.permute.xlu1 %6302  ;;  %v8544_v43 = vadd.f32 -13.0, %v17050_v19  ;;  %6083 = vmatpush.msrb.mxu0 %v14781_v61  ;;  %v8561_v60 = vsel %vm4906_vm15, 1.0, %v16480_v13  ;;  %v17172_v10 = vld [vmem:[#allocation66_spill] sm:$0xff] }
 0xa24   : > { %17164 = vst [vmem:[#allocation19_spill] sm:$0xff] %v14768_v44  ;;  %6094 = vmatpush.msra.mxu3 %v14768_v44  ;;  %v8618_v55 = vadd.f32 -15.0, %v17109_v7  ;;  %v8542_v30 = vadd.f32 -13.0, %v12336_v47  ;;  %v4974_v31 = vsel %vm4964_vm9, %v4955_v24, %v17171_v29  ;;  %6084 = vmatmul.f32.vlgmr.msrb.gmra.mxu0 %v16947_v35  ;;  %v17173_v44 = vld [vmem:[#allocation51_spill] sm:$0xff]  ;;  %v17175_v50 = vunpack.i.l.bf16 %v17174_v46 }
 0xa25   : > { %17167 = vst [vmem:[#allocation88_spill] sm:$0xff] %v14773_v53  ;;  %v8617_v61 = vadd.f32 -15.0, %v17173_v44  ;;  %v17177_v7 = vld [vmem:[#allocation23_spill] sm:$0xff]  ;;  %v4888_v34 = vand.u32 2147483647, %v8543_v15  ;;  %v8541_v44 = vadd.f32 -13.0, %v12312_v18 }
 0xa26   : > { %17169 = vst [vmem:[#allocation136_spill] sm:$0xff] %v14784_v3  ;;  %6095 = vmatpush.msra.mxu3 %v14773_v53  ;;  %v4954_v3 = vmul.f32 %v8561_v60, %v17172_v10  ;;  %v14805_v23 = vsel %vm1213_vm11, %v4974_v31, %v17175_v50  ;;  %6136 = vmatpush.msra.mxu0 %v17177_v7  ;;  %v5129_v53 = vand.u32 2147483647, %v8618_v55  ;;  %v4887_v47 = vand.u32 2147483647, %v8542_v30  ;;  %v17178_v24 = vld [vmem:[#allocation59_spill] sm:$0xff] }
 0xa27   : > { %17170 = vst [vmem:[#allocation137_spill] sm:$0xff] %v14786_v6  ;;  %v4889_v6 = vand.u32 2147483647, %v8544_v43  ;;  %v5128_v43 = vand.u32 2147483647, %v8617_v61  ;;  %v17179_v60 = vld [vmem:[#allocation85_spill] sm:$0xff] }
 0xa28   : > { %17176 = vst [vmem:[#allocation74_spill] sm:$0xff] %v14805_v23  ;;  %6096 = vmatpush.msra.mxu3 %v14805_v23  ;;  %v4973_v21 = vsel %vm4964_vm9, %v4954_v3, %v17178_v24  ;;  %v17180_v46 = vunpack.i.l.bf16 %v17179_v60  ;;  %v17182_v31 = vld [vmem:[#allocation24_spill] sm:$0xff]  ;;  %vm4904_vm12 = vcmp.lt.f32.partialorder %v4888_v34, 0.5  ;;  %vm5145_vm14 = vcmp.lt.f32.partialorder %v5129_v53, 0.5  ;;  %v17184_v30 = vld [vmem:[#allocation83_spill] sm:$0xff]  ;;  %v14828_v34 = vpop.permute.xlu2 %6300  ;;  %v17212_v23 = vld [vmem:[#allocation29_spill] sm:$0xff] }
 0xa29   : > { %vm4905_vm10 = vcmp.lt.f32.partialorder %v4889_v6, 0.5  ;;  %6137 = vmatpush.msra.mxu0 %v17182_v31  ;;  %v8559_v3 = vsel %vm4904_vm12, 1.0, %v16480_v13  ;;  %v8634_v61 = vsel %vm5145_vm14, 1.0, %v16480_v13  ;;  %vm4903_vm6 = vcmp.lt.f32.partialorder %v4887_v47, 0.5  ;;  %v17183_v6 = vld [vmem:[#allocation25_spill] sm:$0xff]  ;;  %17185 = vst [vmem:[#allocation51_spill] sm:$0xff] %v14828_v34 }
 0xa2a   : > { %v14816_v50 = vsel %vm1213_vm11, %v4973_v21, %v17180_v46  ;;  %v8560_v15 = vsel %vm4905_vm10, 1.0, %v16480_v13  ;;  %v4952_v21 = vmul.f32 %v8559_v3, %v12204_v20  ;;  %v5193_v7 = vmul.f32 %v8634_v61, %v17184_v30  ;;  %v17190_v30 = vld [vmem:[#allocation87_spill] sm:$0xff]  ;;  %v17191_v34 = vld [vmem:[#allocation26_spill] sm:$0xff] }
 0xa2b   : > { %17181 = vst [vmem:[#allocation66_spill] sm:$0xff] %v14816_v50  ;;  %6097 = vmatpush.msra.mxu3 %v14816_v50  ;;  %v4953_v55 = vmul.f32 %v8560_v15, %v12209_v37  ;;  %6138 = vmatpush.msra.mxu0 %v17183_v6  ;;  %v8558_v60 = vsel %vm4903_vm6, 1.0, %v16480_v13  ;;  %vm5144_vm4 = vcmp.lt.f32.partialorder %v5128_v43, 0.5  ;;  %v4886_v47 = vand.u32 2147483647, %v8541_v44  ;;  %v14835_v15 = vpop.permute.xlu0 %6737  ;;  %v17187_v6 = vld [vmem:[#allocation102_spill] sm:$0xff] }
 0xa2c   : > { %v4951_v46 = vmul.f32 %v8558_v60, %v12193_v16  ;;  %v8633_v31 = vsel %vm5144_vm4, 1.0, %v16480_v13  ;;  %17186 = vst [vmem:[#allocation86_spill] sm:$0xff] %v14835_v15  ;;  %v17188_v3 = vunpack.i.l.bf16 %v17187_v6  ;;  %v4971_v43 = vsel %vm4964_vm9, %v4952_v21, %v16974_v25  ;;  %v17192_v60 = vld [vmem:[#allocation84_spill] sm:$0xff]  ;;  %v17193_v44 = vld [vmem:[#allocation117_spill] sm:$0xff] }
 0xa2d   : > { %v4972_v53 = vsel %vm4964_vm9, %v4953_v55, %v16966_v63  ;;  %v5212_v55 = vsel %vm5194_vm13, %v5193_v7, %v17190_v30  ;;  %6139 = vmatpush.msra.mxu0 %v17191_v34  ;;  %v5192_v50 = vmul.f32 %v8633_v31, %v17192_v60  ;;  %v17194_v15 = vunpack.i.h.bf16 %v17193_v44  ;;  %v14864_v7 = vpop.f32.mrf.mxu3  ;;  %v14866_v34 = vpop.permute.xlu1 %6797  ;;  %v17199_v31 = vld [vmem:[#allocation119_spill] sm:$0xff]  ;;  %v17205_v44 = vld [vmem:[#allocation20_spill] sm:$0xff] }
 0xa2e   : > { %v14840_v61 = vsel %vm1213_vm11, %v4972_v53, %v17188_v3  ;;  %v17196_v53 = vunpack.i.l.bf16 %v14384_v28  ;;  %v4970_v21 = vsel %vm4964_vm9, %v4951_v46, %v16983_v12  ;;  %vm4902_vm7 = vcmp.lt.f32.partialorder %v4886_v47, 0.5  ;;  %17197 = vst [vmem:[#allocation85_spill] sm:$0xff] %v14864_v7  ;;  %v17202_v28 = vld [vmem:[#allocation56_spill] sm:$0xff]  ;;  %v17204_v47 = vld [vmem:[#allocation109_spill] sm:$0xff] }
 0xa2f   : > { %17189 = vst [vmem:[#allocation23_spill] sm:$0xff] %v14840_v61  ;;  %6098 = vmatpush.msra.mxu3 %v14840_v61  ;;  %v14854_v6 = vsel %vm1213_vm11, %v4971_v43, %v17194_v15  ;;  %v17200_v30 = vunpack.i.h.bf16 %v17199_v31  ;;  %v5211_v43 = vsel %vm5194_vm13, %v5192_v50, %v17202_v28  ;;  %v8557_v46 = vsel %vm4902_vm7, 1.0, %v16480_v13  ;;  %v17208_v28 = vld [vmem:[#allocation28_spill] sm:$0xff]  ;;  %v17210_v61 = vld [vmem:[#allocation35_spill] sm:$0xff] }
 0xa30   : > { %17195 = vst [vmem:[#allocation59_spill] sm:$0xff] %v14854_v6  ;;  %v14859_v3 = vsel %vm1213_vm11, %v5212_v55, %v17196_v53  ;;  %v17203_v55 = vld [vmem:[#allocation27_spill] sm:$0xff]  ;;  %v8616_v60 = vadd.f32 -15.0, %v17204_v47  ;;  %v17206_v53 = vunpack.i.l.bf16 %v17205_v44  ;;  %v8540_v31 = vadd.f32 -13.0, %v17093_v17  ;;  %v17209_v47 = vld [vmem:[#allocation96_spill] sm:$0xff] }
 0xa31   : > { %17198 = vst [vmem:[#allocation24_spill] sm:$0xff] %v14866_v34  ;;  %6108 = vmatpush.msra.mxu1 %v14859_v3  ;;  %v14872_v15 = vsel %vm1213_vm11, %v4970_v21, %v17200_v30  ;;  %6140 = vmatpush.msra.mxu0 %v17203_v55  ;;  %v4950_v21 = vmul.f32 %v8557_v46, %v12186_v26  ;;  %v17207_v30 = vld [vmem:[#allocation108_spill] sm:$0xff]  ;;  %v8539_v55 = vadd.f32 -13.0, %v17007_v22  ;;  %v8613_v44 = vadd.f32 -15.0, %v17144_v45 }
 0xa32   : > { %17201 = vst [vmem:[#allocation25_spill] sm:$0xff] %v14872_v15  ;;  %6099 = vmatpush.msra.mxu3 %v14854_v6  ;;  %v14884_v7 = vsel %vm1213_vm11, %v5211_v43, %v17206_v53  ;;  %v8615_v34 = vadd.f32 -15.0, %v17207_v30  ;;  %v5127_v50 = vand.u32 2147483647, %v8616_v60  ;;  %v8614_v6 = vadd.f32 -15.0, %v17209_v47 }
 0xa33   : > { %6109 = vmatpush.msra.mxu1 %v14884_v7  ;;  %6141 = vmatpush.msra.mxu0 %v17208_v28  ;;  %v4969_v43 = vsel %vm4964_vm9, %v4950_v21, %v17094_v56  ;;  %v4885_v46 = vand.u32 2147483647, %v8540_v31  ;;  %v8612_v30 = vadd.f32 -15.0, %v16870_v38  ;;  %v17211_v60 = vunpack.i.h.bf16 %v17210_v61  ;;  %v17213_v31 = vld [vmem:[#allocation30_spill] sm:$0xff] }
 0xa34   : > { %6100 = vmatpush.msra.mxu3 %v14872_v15  ;;  %v5126_v53 = vand.u32 2147483647, %v8615_v34  ;;  %vm5143_vm0 = vcmp.lt.f32.partialorder %v5127_v50, 0.5  ;;  %v4884_v47 = vand.u32 2147483647, %v8539_v55  ;;  %v14911_v50 = vpop.permute.xlu2 %6732 }
 0xa35   : > { %v14902_v28 = vsel %vm1213_vm11, %v4969_v43, %v17211_v60  ;;  %6142 = vmatpush.msra.mxu0 %v17212_v23  ;;  %v5125_v45 = vand.u32 2147483647, %v8614_v6  ;;  %v8632_v15 = vsel %vm5143_vm0, 1.0, %v16480_v13  ;;  %vm4901_vm2 = vcmp.lt.f32.partialorder %v4885_v46, 0.5  ;;  %v14916_v43 = vpop.permute.xlu0 %6792  ;;  %v17214_v46 = vld [vmem:[#allocation31_spill] sm:$0xff]  ;;  %v17215_v60 = vld [vmem:[#allocation125_spill] sm:$0xff] }
 0xa36   : > { %6101 = vmatpush.msra.mxu3 %v14902_v28  ;;  %vm5142_vm5 = vcmp.lt.f32.partialorder %v5126_v53, 0.5  ;;  %v5124_v21 = vand.u32 2147483647, %v8613_v44  ;;  %v5191_v34 = vmul.f32 %v8632_v15, %v17134_v27  ;;  %v8556_v38 = vsel %vm4901_vm2, 1.0, %v16480_v13 }
 0xa37   : > { %v8631_v61 = vsel %vm5142_vm5, 1.0, %v16480_v13  ;;  %vm4900_vm8 = vcmp.lt.f32.partialorder %v4884_v47, 0.5  ;;  %6143 = vmatpush.msra.mxu0 %v17213_v31  ;;  %v4949_v23 = vmul.f32 %v8556_v38, %v17098_v57  ;;  %vm5141_vm1 = vcmp.lt.f32.partialorder %v5125_v45, 0.5  ;;  %v14936_v38 = vpop.permute.xlu1 %6782 }
 0xa38   : > { %v5190_v6 = vmul.f32 %v8631_v61, %v16875_v49  ;;  %v8555_v55 = vsel %vm4900_vm8, 1.0, %v16480_v13  ;;  %v5210_v27 = vsel %vm5194_vm13, %v5191_v34, %v17136_v54  ;;  %v8630_v44 = vsel %vm5141_vm1, 1.0, %v16480_v13  ;;  %v14934_v34 = vpop.f32.mrf.mxu3 }
 0xa39   : > { %v4948_v15 = vmul.f32 %v8555_v55, %v17020_v33  ;;  %vm5140_vm3 = vcmp.lt.f32.partialorder %v5124_v21, 0.5  ;;  %6144 = vmatpush.msra.mxu0 %v17214_v46  ;;  %v9292_v53 = vunpack.i.h.bf16 %v14550_v40  ;;  %v17216_v49 = vunpack.i.l.bf16 %v17215_v60  ;;  %v17217_v21 = vld [vmem:[#allocation127_spill] sm:$0xff]  ;;  %v17219_v55 = vld [vmem:[#allocation34_spill] sm:$0xff] }
 0xa3a   : > { %v4968_v45 = vsel %vm4964_vm9, %v4949_v23, %v17011_v48  ;;  %v5189_v54 = vmul.f32 %v8630_v44, %v16877_v9  ;;  %v17218_v61 = vunpack.i.h.bf16 %v17217_v21  ;;  %v5209_v31 = vsel %vm5194_vm13, %v5190_v6, %v17146_v41  ;;  %v17223_v21 = vld [vmem:[#allocation33_spill] sm:$0xff] }
 0xa3b   : > { %v14928_v47 = vsel %vm1213_vm11, %v5210_v27, %v17216_v49  ;;  %v4967_v23 = vsel %vm4964_vm9, %v4948_v15, %v17023_v1  ;;  %v8629_v9 = vsel %vm5140_vm3, 1.0, %v16480_v13  ;;  %6145 = vmatpush.msra.mxu0 %v17219_v55  ;;  %v17220_v27 = vld [vmem:[#allocation41_spill] sm:$0xff]  ;;  %v17222_v60 = vunpack.i.h.bf16 %v14477_v0 }
 0xa3c   : > { %6110 = vmatpush.msra.mxu1 %v14928_v47  ;;  %v14942_v40 = vsel %vm1213_vm11, %v4968_v45, %v17218_v61  ;;  %v17221_v44 = vunpack.i.l.bf16 %v17220_v27  ;;  %v5188_v41 = vmul.f32 %v8629_v9, %v16855_v42  ;;  %v5123_v6 = vand.u32 2147483647, %v8612_v30  ;;  %v17226_v9 = vld [vmem:[#allocation39_spill] sm:$0xff] }
 0xa3d   : > { %6102 = vmatpush.msra.mxu3 %v14942_v40  ;;  %v14961_v49 = vsel %vm1213_vm11, %v4967_v23, %v17222_v60  ;;  %v5208_v15 = vsel %vm5194_vm13, %v5189_v54, %v16908_v62  ;;  %v8611_v45 = vadd.f32 -15.0, %v12463_v14  ;;  %6146 = vmatpush.msra.mxu0 %v17223_v21  ;;  %v8610_v61 = vadd.f32 -15.0, %v16935_v11  ;;  %v17228_v60 = vld [vmem:[#allocation106_spill] sm:$0xff]  ;;  %v15003_v21 = vpop.permute.xlu0 %3018 }
 0xa3e   : > { %v14956_v46 = vsel %vm1213_vm11, %v5209_v31, %v17221_v44  ;;  %v8609_v0 = vadd.f32 -15.0, %v16936_v59  ;;  %v17224_v31 = vld [vmem:[#allocation65_spill] sm:$0xff]  ;;  %v17225_v42 = vunpack.i.l.bf16 %v14548_v4  ;;  %vm5139_vm9 = vcmp.lt.f32.partialorder %v5123_v6, 0.5 }
 0xa3f   : > { %6111 = vmatpush.msra.mxu1 %v14956_v46  ;;  %v9301_v23 = vunpack.i.l.bf16 %v17224_v31  ;;  %6103 = vmatpush.msra.mxu3 %v14961_v49  ;;  %v8608_v62 = vadd.f32 -15.0, %v17050_v19  ;;  %v5207_v14 = vsel %vm5194_vm13, %v5188_v41, %v16857_v39  ;;  %v8628_v11 = vsel %vm5139_vm9, 1.0, %v16480_v13  ;;  %v17227_v19 = vld [vmem:[#allocation38_spill] sm:$0xff]  ;;  %v17229_v39 = vld [vmem:[#allocation43_spill] sm:$0xff] }
 0xa40   : > { %v14977_v30 = vsel %vm1213_vm11, %v5208_v15, %v17225_v42  ;;  %6104 = vmatmul.f32.vlgmr.msra.gmra.mxu3 %v16947_v35  ;;  %v5122_v59 = vand.u32 2147483647, %v8611_v45  ;;  %v5121_v54 = vand.u32 2147483647, %v8610_v61  ;;  %v14988_v4 = vsel %vm1213_vm11, %v5207_v14, %v9292_v53  ;;  %6147 = vmatpush.msra.mxu0 %v17227_v19  ;;  %v14998_v53 = vpop.permute.xlu2 %6787  ;;  %v17230_v45 = vld [vmem:[#allocation42_spill] sm:$0xff]  ;;  %v17231_v42 = vld [vmem:[#allocation107_spill] sm:$0xff] }
 0xa41   : > { %6112 = vmatpush.msra.mxu1 %v14977_v30  ;;  %6156 = vmatpush.msrb.mxu3 %v17226_v9  ;;  %v5187_v55 = vmul.f32 %v8628_v11, %v12243_v2  ;;  %v5120_v27 = vand.u32 2147483647, %v8609_v0  ;;  %v5119_v44 = vand.u32 2147483647, %v8608_v62  ;;  %v9307_v6 = vunpack.i.h.bf16 %v17228_v60  ;;  %v17232_v14 = vld [vmem:[#allocation48_spill] sm:$0xff]  ;;  %v3089_v11 = vpop.f32.mrf.mxu3 }
 0xa42   : > { %vm5138_vm15 = vcmp.lt.f32.partialorder %v5122_v59, 0.5  ;;  %vm5137_vm10 = vcmp.lt.f32.partialorder %v5121_v54, 0.5  ;;  %6148 = vmatpush.msra.mxu0 %v17230_v45  ;;  %v9312_v62 = vunpack.i.h.bf16 %v17231_v42  ;;  %v15014_v59 = vpop.permute.xlu1 %3008  ;;  %v17233_v54 = vld [vmem:[#allocation47_spill] sm:$0xff]  ;;  %v9317_v9 = vunpack.i.h.bf16 %v14702_v36  ;;  %v17234_v19 = vld [vmem:[#allocation104_spill] sm:$0xff]  ;;  %v17236_v36 = vld [vmem:[#allocation62_spill] sm:$0xff] }
 0xa43   : > { %6113 = vmatpush.msra.mxu1 %v14988_v4  ;;  %6157 = vmatpush.msrb.mxu3 %v17229_v39  ;;  %v5206_v41 = vsel %vm5194_vm13, %v5187_v55, %v16923_v51  ;;  %v8627_v2 = vsel %vm5138_vm15, 1.0, %v16480_v13  ;;  %v8626_v15 = vsel %vm5137_vm10, 1.0, %v16480_v13  ;;  %vm5136_vm12 = vcmp.lt.f32.partialorder %v5120_v27, 0.5  ;;  %v17239_v45 = vld [vmem:[#allocation105_spill] sm:$0xff] }
 0xa44   : > { %v15006_v61 = vsel %vm1213_vm11, %v5206_v41, %v9301_v23  ;;  %v5186_v0 = vmul.f32 %v8627_v2, %v16863_v32  ;;  %v5185_v31 = vmul.f32 %v8626_v15, %v12225_v5  ;;  %v8625_v51 = vsel %vm5136_vm12, 1.0, %v16480_v13  ;;  %6149 = vmatpush.msra.mxu0 %v17233_v54  ;;  %v17238_v41 = vld [vmem:[#allocation111_spill] sm:$0xff] }
 0xa45   : > { %6114 = vmatpush.msra.mxu1 %v15006_v61  ;;  %6158 = vmatpush.msrb.mxu3 %v17232_v14  ;;  %vm5135_vm14 = vcmp.lt.f32.partialorder %v5119_v44, 0.5  ;;  %v5184_v32 = vmul.f32 %v8625_v51, %v17172_v10  ;;  %v15033_v10 = vadd.f32 %v3089_v11, %v15003_v21  ;;  %v17235_v44 = vld [vmem:[#allocation94_spill] sm:$0xff]  ;;  %v8607_v2 = vadd.f32 -15.0, %v17238_v41  ;;  %v17242_v11 = vld [vmem:[#allocation15_spill] sm:$0xff] }
 0xa46   : > { %v5205_v23 = vsel %vm5194_vm13, %v5186_v0, %v16939_v58  ;;  %v8624_v5 = vsel %vm5135_vm14, 1.0, %v16480_v13  ;;  %v5204_v58 = vsel %vm5194_vm13, %v5185_v31, %v17171_v29  ;;  %v15037_v60 = vadd.f32 %v17235_v44, %v15014_v59  ;;  %6150 = vmatpush.msra.mxu0 %v17236_v36  ;;  %v17240_v31 = vld [vmem:[#allocation103_spill] sm:$0xff]  ;;  %v15074_v44 = vpop.permute.xlu0 %3003 }
 0xa47   : > { %v15024_v55 = vsel %vm1213_vm11, %v5205_v23, %v9307_v6  ;;  %6159 = vmatpush.msrb.mxu3 %v17234_v19  ;;  %v5183_v27 = vmul.f32 %v8624_v5, %v12209_v37  ;;  %v9321_v6 = vunpack.i.l.bf16 %v14751_v52  ;;  %v15042_v39 = vsel %vm1213_vm11, %v5204_v58, %v9312_v62  ;;  %v17237_v37 = vld [vmem:[#allocation91_spill] sm:$0xff]  ;;  %v17243_v5 = vld [vmem:[#allocation52_spill] sm:$0xff] }
 0xa48   : > { %6115 = vmatpush.msra.mxu1 %v15024_v55  ;;  %v9322_v29 = vunpack.i.h.bf16 %v14751_v52  ;;  %v5203_v15 = vsel %vm5194_vm13, %v5184_v32, %v17178_v24  ;;  %v8606_v0 = vadd.f32 -15.0, %v17239_v45  ;;  %6151 = vmatpush.msra.mxu0 %v17240_v31  ;;  %v8605_v51 = vadd.f32 -15.0, %v12312_v18  ;;  %v17241_v62 = vld [vmem:[#allocation95_spill] sm:$0xff] }
 0xa49   : > { %6160 = vmatpush.msrb.mxu3 %v17237_v37  ;;  %v15055_v42 = vsel %vm1213_vm11, %v5203_v15, %v9317_v9  ;;  %v5202_v52 = vsel %vm5194_vm13, %v5183_v27, %v16966_v63  ;;  %v5118_v14 = vand.u32 2147483647, %v8607_v2  ;;  %6152 = vmatmul.f32.vlgmr.msra.gmra.mxu0 %v17242_v11  ;;  %v8604_v24 = vadd.f32 -15.0, %v17093_v17  ;;  %v17244_v9 = vld [vmem:[#allocation130_spill] sm:$0xff]  ;;  %v17245_v63 = vld [vmem:[#allocation60_spill] sm:$0xff]  ;;  %v15072_v27 = vpop.permute.xlu2 %3013  ;;  %v17246_v37 = vld [vmem:[#allocation77_spill] sm:$0xff] }
 0xa4a   : > { %6116 = vmatpush.msra.mxu1 %v15042_v39  ;;  %v5117_v23 = vand.u32 2147483647, %v8606_v0  ;;  %v5116_v32 = vand.u32 2147483647, %v8605_v51  ;;  %6196 = vmatpush.msrb.mxu0 %v17243_v5  ;;  %v3154_v18 = vmax.f32 %v15037_v60, 0.0  ;;  %v3163_v54 = vmax.f32 %v15033_v10, 0.0 }
 0xa4b   : > { %6161 = vmatpush.msrb.mxu3 %v17241_v62  ;;  %v9326_v19 = vunpack.i.l.bf16 %v17244_v9  ;;  %v15069_v58 = vsel %vm1213_vm11, %v5202_v52, %v9321_v6  ;;  %vm5134_vm6 = vcmp.lt.f32.partialorder %v5118_v14, 0.5  ;;  %v5115_v17 = vand.u32 2147483647, %v8604_v24  ;;  %v17247_v2 = vld [vmem:[#allocation82_spill] sm:$0xff]  ;;  %v17248_v62 = vld [vmem:[#allocation69_spill] sm:$0xff]  ;;  %v17249_v52 = vld [vmem:[#allocation72_spill] sm:$0xff] }
 0xa4c   : > { %6117 = vmatpush.msra.mxu1 %v15055_v42  ;;  %v8623_v36 = vsel %vm5134_vm6, 1.0, %v16480_v13  ;;  %vm5133_vm4 = vcmp.lt.f32.partialorder %v5117_v23, 0.5  ;;  %vm5132_vm7 = vcmp.lt.f32.partialorder %v5116_v32, 0.5  ;;  %6197 = vmatpush.msrb.mxu0 %v17246_v37  ;;  %v9334_v6 = vpack.i.bf16 %v3163_v54, %v3154_v18  ;;  %v17250_v24 = vld [vmem:[#allocation81_spill] sm:$0xff]  ;;  %v17251_v5 = vld [vmem:[#allocation14_spill] sm:$0xff] }
 0xa4d   : > { %6162 = vmatpush.msrb.mxu3 %v17245_v63  ;;  %v5182_v41 = vmul.f32 %v8623_v36, %v12204_v20  ;;  %v8622_v15 = vsel %vm5133_vm4, 1.0, %v16480_v13  ;;  %v8621_v45 = vsel %vm5132_vm7, 1.0, %v16480_v13  ;;  %vm5131_vm0 = vcmp.lt.f32.partialorder %v5115_v17, 0.5  ;;  %v17253_v36 = vld [vmem:[#allocation134_spill] sm:$0xff] }
 0xa4e   : > { %6118 = vmatpush.msra.mxu1 %v15069_v58  ;;  %v15089_v0 = vadd.f32 %v14934_v34, %v15072_v27  ;;  %v5181_v31 = vmul.f32 %v8622_v15, %v12193_v16  ;;  %v8620_v51 = vsel %vm5131_vm0, 1.0, %v16480_v13  ;;  %9335 = vrot.lane.b32.xlu0 %v9334_v6, %s9556_s27  ;;  %v15096_v20 = vadd.f32 %v17248_v62, %v15074_v44  ;;  %v17256_v15 = vld [vmem:[#allocation92_spill] sm:$0xff] }
 0xa4f   : > { %6163 = vmatpush.msrb.mxu3 %v17247_v2  ;;  %6198 = vmatpush.msrb.mxu0 %v17249_v52  ;;  %v5201_v14 = vsel %vm5194_vm13, %v5182_v41, %v16974_v25  ;;  %v5180_v34 = vmul.f32 %v8621_v45, %v12186_v26  ;;  %v8603_v16 = vadd.f32 -15.0, %v17007_v22  ;;  %v9327_v23 = vunpack.i.h.bf16 %v17244_v9  ;;  %v17252_v25 = vld [vmem:[#allocation80_spill] sm:$0xff] }
 0xa50   : > { %v15107_v32 = vsel %vm1213_vm11, %v5201_v14, %v9322_v29  ;;  %v5200_v63 = vsel %vm5194_vm13, %v5181_v31, %v16983_v12  ;;  %v5179_v17 = vmul.f32 %v8620_v51, %v17098_v57  ;;  %v9331_v22 = vunpack.i.l.bf16 %v17253_v36  ;;  %v17254_v29 = vld [vmem:[#allocation101_spill] sm:$0xff]  ;;  %v17255_v41 = vld [vmem:[#allocation112_spill] sm:$0xff]  ;;  %v17259_v14 = vld [vmem:[#allocation55_spill] sm:$0xff] }
 0xa51   : > { %6164 = vmatpush.msrb.mxu3 %v17250_v24  ;;  %6199 = vmatpush.msrb.mxu0 %v17251_v5  ;;  %v5114_v26 = vand.u32 2147483647, %v8603_v16  ;;  %v15118_v9 = vsel %vm1213_vm11, %v5200_v63, %v9326_v19  ;;  %v16386_v37 = vmax.f32 %v15096_v20, 0.0  ;;  %v3159_v6 = vmax.f32 %v15089_v0, 0.0  ;;  %v17257_v51 = vld [vmem:[#allocation76_spill] sm:$0xff]  ;;  %v17267_v5 = vld [vmem:[#allocation123_spill] sm:$0xff] }
 0xa52   : > { %6119 = vmatpush.msra.mxu1 %v15107_v32  ;;  %v5199_v12 = vsel %vm5194_vm13, %v5180_v34, %v17094_v56  ;;  %v9332_v57 = vunpack.i.h.bf16 %v17253_v36  ;;  %v5198_v56 = vsel %vm5194_vm13, %v5179_v17, %v17011_v48  ;;  %v17261_v24 = vld [vmem:[#allocation120_spill] sm:$0xff]  ;;  %v17262_v34 = vld [vmem:[#allocation118_spill] sm:$0xff]  ;;  %v17273_v36 = vld [vmem:[#allocation37_spill] sm:$0xff]  ;;  %vm17320_vm5 = vcmask 31744  }
 0xa53   : > { %6165 = vmatpush.msrb.mxu3 %v17252_v25  ;;  %6200 = vmatpush.msrb.mxu0 %v17254_v29  ;;  %vm5130_vm2 = vcmp.lt.f32.partialorder %v5114_v26, 0.5  ;;  %v15130_v19 = vsel %vm1213_vm11, %v5199_v12, %v9327_v23  ;;  %v9339_v45 = vpack.i.bf16 %v3159_v6, %v16386_v37  ;;  %v15145_v62 = vsel %vm1213_vm11, %v5198_v56, %v9331_v22  ;;  %v17263_v16 = vld [vmem:[#allocation32_spill] sm:$0xff]  ;;  %v17268_v63 = vld [vmem:[#allocation78_spill] sm:$0xff]  ;;  %v17272_v26 = vld [vmem:[#allocation115_spill] sm:$0xff] }
 0xa54   : > { %6120 = vmatpush.msra.mxu1 %v15118_v9  ;;  %v8619_v2 = vsel %vm5130_vm2, 1.0, %v16480_v13  ;;  %v17258_v13 = vld [vmem:[#allocation110_spill] sm:$0xff]  ;;  %v17264_v23 = vld [vmem:[#allocation64_spill] sm:$0xff]  ;;  %v17282_v56 = vld [vmem:[#allocation49_spill] sm:$0xff]  ;;  %vm17322_vm1 = vcmask 1042432   ;;  %vm17330_vm6 = vcmask 23552  }
 0xa55   : > { %6166 = vmatpush.msrb.mxu3 %v17255_v41  ;;  %6201 = vmatpush.msrb.mxu0 %v17256_v15  ;;  %v5178_v31 = vmul.f32 %v8619_v2, %v17020_v33  ;;  %v17260_v33 = vld [vmem:[#allocation57_spill] sm:$0xff]  ;;  %v17269_v25 = vld [vmem:[#allocation22_spill] sm:$0xff]  ;;  %v17270_v17 = vld [vmem:[#allocation36_spill] sm:$0xff]  ;;  %v17405_v0 = vmax.f32 %v15096_v20, 0.0 }
 0xa56   : > { %6121 = vmatpush.msra.mxu1 %v15130_v19  ;;  %9340 = vrot.lane.b32.xlu1 %v9339_v45, %s9556_s27  ;;  %v17274_v22 = vld [vmem:[#allocation122_spill] sm:$0xff]  ;;  %v17276_v12 = vld [vmem:[#allocation40_spill] sm:$0xff]  ;;  %v17281_v45 = vld [vmem:[#allocation21_spill] sm:$0xff] }
 0xa57   : > { %6167 = vmatpush.msrb.mxu3 %v17257_v51  ;;  %6202 = vmatpush.msrb.mxu0 %v17258_v13  ;;  %v5197_v52 = vsel %vm5194_vm13, %v5178_v31, %v17023_v1  ;;  %v17266_v1 = vld [vmem:[#allocation16_spill] sm:$0xff]  ;;  %v17275_v29 = vld [vmem:[#allocation114_spill] sm:$0xff]  ;;  %v17284_v51 = vld [vmem:[#allocation63_spill] sm:$0xff]  ;;  %vm17317_vm13 = vcmask 1043456  }
 0xa58   : > { %6122 = vmatpush.msra.mxu1 %v15145_v62  ;;  %v15155_v48 = vsel %vm1213_vm11, %v5197_v52, %v9332_v57  ;;  %v17277_v41 = vld [vmem:[#allocation124_spill] sm:$0xff]  ;;  %v17278_v57 = vld [vmem:[#allocation99_spill] sm:$0xff]  ;;  %v17283_v31 = vld [vmem:[#allocation126_spill] sm:$0xff] }
 0xa59   : > { %6168 = vmatpush.msrb.mxu3 %v17259_v14  ;;  %6203 = vmatpush.msrb.mxu0 %v17260_v33  ;;  %v17279_v2 = vld [vmem:[#allocation44_spill] sm:$0xff]  ;;  %v17287_v14 = vld [vmem:[#allocation93_spill] sm:$0xff]  ;;  %v17288_v33 = vld [vmem:[#allocation70_spill] sm:$0xff] }
 0xa5a   : > { %6123 = vmatpush.msra.mxu1 %v15155_v48  ;;  %v17280_v15 = vld [vmem:[#allocation116_spill] sm:$0xff]  ;;  %vm17321_vm8 = vmmov %vm17317_vm13 }
 0xa5b   : > { %6169 = vmatpush.msrb.mxu3 %v17261_v24  ;;  %6124 = vmatmul.f32.vlgmr.msra.gmra.mxu1 %v16947_v35  ;;  %v17271_v35 = vld [vmem:[#allocation121_spill] sm:$0xff]  ;;  %v17285_v13 = vld [vmem:[#allocation68_spill] sm:$0xff]  ;;  %v17289_v24 = vld [vmem:[#allocation67_spill] sm:$0xff] }
 0xa5c   : > { %6204 = vmatpush.msrb.mxu0 %v17262_v34  ;;  %6176 = vmatpush.msrb.mxu1 %v17263_v16  ;;  %v17286_v52 = vld [vmem:[#allocation100_spill] sm:$0xff]  ;;  %v17290_v34 = vld [vmem:[#allocation73_spill] sm:$0xff]  ;;  %v17291_v16 = vld [vmem:[#allocation50_spill] sm:$0xff] }
 0xa5d   : > { %6170 = vmatpush.msrb.mxu3 %v17264_v23  ;;  %v17293_v23 = vld [vmem:[#allocation90_spill] sm:$0xff]  ;;  %vm17324_vm3 = vmmov %vm17320_vm5 }
 0xa5e   : > { %6205 = vmatpush.msrb.mxu0 %v17265_v8  ;;  %6177 = vmatpush.msrb.mxu1 %v17266_v1  ;;  %v17294_v8 = vld [vmem:[#allocation128_spill] sm:$0xff]  ;;  %v17296_v1 = vld [vmem:[#allocation129_spill] sm:$0xff]  ;;  %vm17325_vm9 = vmmov %vm17324_vm3 }
 0xa5f   : > { %6171 = vmatpush.msrb.mxu3 %v17267_v5  ;;  %v17298_v5 = vld [vmem:[#allocation97_spill] sm:$0xff]  ;;  %vm17326_vm15 = vmmov %vm17322_vm1 }
 0xa60   : > { %6206 = vmatpush.msrb.mxu0 %v17269_v25  ;;  %6178 = vmatpush.msrb.mxu1 %v17270_v17  ;;  %v17302_v25 = vld [vmem:[#allocation71_spill] sm:$0xff]  ;;  %vm17327_vm10 = vmmov %vm17324_vm3 }
 0xa61   : > { %6236 = vmatpush.msra.mxu3 %v17268_v63  ;;  %v17300_v63 = vld [vmem:[#allocation131_spill] sm:$0xff]  ;;  %vm17328_vm12 = vmmov %vm17321_vm8 }
 0xa62   : > { %6172 = vmatmul.f32.vlgmr.msrb.gmra.mxu3 %v17242_v11  ;;  %6207 = vmatpush.msrb.mxu0 %v17272_v26  ;;  %v17305_v17 = vld [vmem:[#allocation135_spill] sm:$0xff]  ;;  %vm17329_vm14 = vmmov %vm17324_vm3 }
 0xa63   : > { %6237 = vmatpush.msra.mxu3 %v17271_v35  ;;  %6179 = vmatpush.msrb.mxu1 %v17273_v36  ;;  %v17308_v35 = vld [vmem:[#allocation17_spill] sm:$0xff]  ;;  %v17310_v26 = vld [vmem:[#allocation19_spill] sm:$0xff]  ;;  %v17313_v36 = vld [vmem:[#allocation66_spill] sm:$0xff] }
 0xa64   : > { %6208 = vmatpush.msrb.mxu0 %v17275_v29  ;;  %v17316_v29 = vld [vmem:[#allocation25_spill] sm:$0xff]  ;;  %vm17331_vm4 = vmmov %vm17321_vm8 }
 0xa65   : > { %6238 = vmatpush.msra.mxu3 %v17274_v22  ;;  %6180 = vmatpush.msrb.mxu1 %v17276_v12  ;;  %v15235_v22 = vpop.f32.mrf.mxu0  ;;  %v15247_v12 = vpop.f32.mrf.mxu1  ;;  %vm17332_vm7 = vmmov %vm17324_vm3 }
 0xa66   : > { %6209 = vmatpush.msrb.mxu0 %v17278_v57  ;;  %vm17333_vm0 = vmmov %vm17324_vm3 }
 0xa67   : > { %6239 = vmatpush.msra.mxu3 %v17277_v41  ;;  %6181 = vmatpush.msrb.mxu1 %v17279_v2  ;;  %vm17334_vm2 = vmmov %vm17330_vm6 }
 0xa68   : > { %6210 = vmatpush.msrb.mxu0 %v17281_v45 }
 0xa69   : > { %6240 = vmatpush.msra.mxu3 %v17280_v15  ;;  %6182 = vmatpush.msrb.mxu1 %v17282_v56  ;;  %v17318_v56 = vld [vmem:[#allocation98_spill] sm:$0xff] }
 0xa6a   : > { %6211 = vmatpush.msrb.mxu0 %v17284_v51  ;;  %v17319_v51 = vld [vmem:[#allocation51_spill] sm:$0xff] }
 0xa6b   : > { %6241 = vmatpush.msra.mxu3 %v17283_v31  ;;  %6183 = vmatpush.msrb.mxu1 %v17285_v13 }
 0xa6c   : > { %6276 = vmatpush.msra.mxu0 %v14859_v3  ;;  %v17292_v3 = vld [vmem:[#allocation46_spill] sm:$0xff] }
 0xa6d   : > { %6242 = vmatpush.msra.mxu3 %v17286_v52  ;;  %6212 = vmatmul.f32.vlgmr.msrb.gmra.mxu0 %v17242_v11  ;;  %v15251_v57 = vpop.f32.mrf.mxu1  ;;  %v17323_v52 = vld [vmem:[#allocation137_spill] sm:$0xff] }
 0xa6e   : > { %6184 = vmatpush.msrb.mxu1 %v17287_v14  ;;  %6277 = vmatpush.msra.mxu0 %v14884_v7  ;;  %v17295_v7 = vld [vmem:[#allocation113_spill] sm:$0xff] }
 0xa6f   : > { %6243 = vmatpush.msra.mxu3 %v17288_v33 }
 0xa70   : > { %6185 = vmatpush.msrb.mxu1 %v17289_v24  ;;  %6278 = vmatpush.msra.mxu0 %v14928_v47  ;;  %v17297_v47 = vld [vmem:[#allocation53_spill] sm:$0xff] }
 0xa71   : > { %6244 = vmatpush.msra.mxu3 %v17290_v34 }
 0xa72   : > { %6186 = vmatpush.msrb.mxu1 %v17291_v16  ;;  %6279 = vmatpush.msra.mxu0 %v14956_v46  ;;  %v17299_v46 = vld [vmem:[#allocation61_spill] sm:$0xff] }
 0xa73   : > { %6245 = vmatpush.msra.mxu3 %v17292_v3 }
 0xa74   : > { %6187 = vmatpush.msrb.mxu1 %v17293_v23  ;;  %6280 = vmatpush.msra.mxu0 %v14977_v30  ;;  %v17301_v30 = vld [vmem:[#allocation79_spill] sm:$0xff]  ;;  %v9454_v23 = vld [vmem:[%s15880_s7] sm:$0xff] }
 0xa75   : > { %6246 = vmatpush.msra.mxu3 %v17294_v8  ;;  %v15255_v15 = vpop.f32.mrf.mxu1 }
 0xa76   : > { %6188 = vmatpush.msrb.mxu1 %v17295_v7  ;;  %6281 = vmatpush.msra.mxu0 %v14988_v4  ;;  %v17303_v4 = vld [vmem:[#allocation133_spill] sm:$0xff]  ;;  %v9455_v7 = vld [vmem:[%s15880_s7 + $0x8] sm:$0xff] }
 0xa77   : > { %6247 = vmatpush.msra.mxu3 %v17296_v1 }
 0xa78   : > { %6189 = vmatpush.msrb.mxu1 %v17297_v47  ;;  %6282 = vmatpush.msra.mxu0 %v15006_v61  ;;  %v17304_v61 = vld [vmem:[#allocation45_spill] sm:$0xff] }
 0xa79   : > { %6248 = vmatpush.msra.mxu3 %v17298_v5 }
 0xa7a   : > { %6190 = vmatpush.msrb.mxu1 %v17299_v46  ;;  %6283 = vmatpush.msra.mxu0 %v15024_v55  ;;  %v17306_v55 = vld [vmem:[#allocation18_spill] sm:$0xff] }
 0xa7b   : > { %6249 = vmatpush.msra.mxu3 %v17300_v63 }
 0xa7c   : > { %6191 = vmatpush.msrb.mxu1 %v17301_v30  ;;  %6284 = vmatpush.msra.mxu0 %v15042_v39  ;;  %v17307_v39 = vld [vmem:[#allocation58_spill] sm:$0xff] }
 0xa7d   : > { %6250 = vmatpush.msra.mxu3 %v17303_v4  ;;  %6192 = vmatmul.f32.vlgmr.msrb.gmra.mxu1 %v17242_v11 }
 0xa7e   : > { %6256 = vmatpush.msra.mxu1 %v17302_v25  ;;  %6285 = vmatpush.msra.mxu0 %v15055_v42  ;;  %v17309_v42 = vld [vmem:[#allocation132_spill] sm:$0xff] }
 0xa7f   : > { %6251 = vmatpush.msra.mxu3 %v17305_v17 }
 0xa80   : > { %6257 = vmatpush.msra.mxu1 %v17304_v61  ;;  %6252 = vmatmul.f32.vlgmr.msra.gmra.mxu3 %v17242_v11 }
 0xa81   : > { %6286 = vmatpush.msra.mxu0 %v15069_v58  ;;  %v17311_v58 = vld [vmem:[#allocation88_spill] sm:$0xff] }
 0xa82   : > { %6258 = vmatpush.msra.mxu1 %v17306_v55 }
 0xa83   : > { %6287 = vmatpush.msra.mxu0 %v15107_v32  ;;  %v17312_v32 = vld [vmem:[#allocation74_spill] sm:$0xff] }
 0xa84   : > { %6259 = vmatpush.msra.mxu1 %v17307_v39 }
 0xa85   : > { %6288 = vmatpush.msra.mxu0 %v15118_v9  ;;  %v17314_v9 = vld [vmem:[#allocation23_spill] sm:$0xff] }
 0xa86   : > { %6260 = vmatpush.msra.mxu1 %v17308_v35 }
 0xa87   : > { %6289 = vmatpush.msra.mxu0 %v15130_v19  ;;  %v17315_v19 = vld [vmem:[#allocation59_spill] sm:$0xff] }
 0xa88   : > { %6261 = vmatpush.msra.mxu1 %v17309_v42 }
 0xa89   : > { %6290 = vmatpush.msra.mxu0 %v15145_v62  ;;  %v15243_v62 = vpop.f32.mrf.mxu0 }
 0xa8a   : > { %6262 = vmatpush.msra.mxu1 %v17310_v26 }
 0xa8b   : > { %6291 = vmatpush.msra.mxu0 %v15155_v48 }
 0xa8c   : > { %6263 = vmatpush.msra.mxu1 %v17311_v58  ;;  %6292 = vmatmul.f32.vlgmr.msra.gmra.mxu0 %v17242_v11 }
 0xa8e   : > { %6264 = vmatpush.msra.mxu1 %v17312_v32 }
 0xa90   : > { %6265 = vmatpush.msra.mxu1 %v17313_v36 }
 0xa91   : > { %v15245_v48 = vpop.f32.mrf.mxu0 }
 0xa92   : > { %6266 = vmatpush.msra.mxu1 %v17314_v9 }
 0xa94   : > { %6267 = vmatpush.msra.mxu1 %v17315_v19 }
 0xa96   : > { %6268 = vmatpush.msra.mxu1 %v17316_v29 }
 0xa98   : > { %6269 = vmatpush.msra.mxu1 %v14902_v28 }
 0xa99   : > { %v15249_v41 = vpop.f32.mrf.mxu0 }
 0xa9a   : > { %6270 = vmatpush.msra.mxu1 %v14942_v40  ;;  %v15257_v40 = vpop.f32.mrf.mxu1 }
 0xa9c   : > { %6271 = vmatpush.msra.mxu1 %v14961_v49  ;;  %v5985_v49 = vpop.f32.mrf.mxu3 }
 0xa9d   : > { %6272 = vmatmul.f32.vlgmr.msra.gmra.mxu1 %v17242_v11  ;;  %v6128_v31 = vsub.f32 %v5985_v49, %v17318_v56 }
 0xa9f   : > { %v6233_v11 = vpop.f32.mrf.mxu2 }
 0xaa1   : > { %v15253_v2 = vpop.f32.mrf.mxu0 }
 0xaa2   : > { %v6005_v13 = vpop.f32.mrf.mxu1  ;;  %v6130_v61 = vsub.f32 %v15253_v2, %v17318_v56  ;;  %v17368_v2 = vld [vmem:[#allocation86_spill] sm:$0xff] }
 0xaa3   : > { %v6129_v5 = vsub.f32 %v6005_v13, %v17318_v56 }
 0xaa4   : > { %v6045_v14 = vpop.f32.mrf.mxu3 }
 0xaa5   : > { %v6131_v30 = vsub.f32 %v6045_v14, %v17318_v56 }
 0xaa9   : > { %v6085_v28 = vpop.f32.mrf.mxu0 }
 0xaaa   : > { %v6065_v33 = vpop.f32.mrf.mxu1  ;;  %v6133_v46 = vsub.f32 %v6085_v28, %v17318_v56 }
 0xaab   : > { %v6132_v24 = vsub.f32 %v6065_v33, %v17318_v56 }
 0xac3   : > { %v6105_v34 = vpop.f32.mrf.mxu3 }
 0xac4   : > { %v6134_v17 = vsub.f32 %v6105_v34, %v17318_v56 }
 0xac6   : > { %v6153_v45 = vpop.f32.mrf.mxu0 }
 0xac7   : > { %8667 = vmatpush.msk.msra.mxu2 %vm17317_vm13, %v6153_v45  ;;  %vm17335_vm13 = vmmov %vm17333_vm0 }
 0xac8   : > { %8668 = vmatmul.msk.f32.vlgmr.msra.gmra.mxu2 %vm17320_vm5, %v17319_v51  ;;  %vm17336_vm5 = vmmov %vm17334_vm2 }
 0xac9   : > { %8679 = vmatpush.msk.msrb.mxu2 %vm17321_vm8, %v6233_v11  ;;  %vm17337_vm8 = vmmov %vm17331_vm4  ;;  %v15343_v11 = vld [vmem:[%s15882_s9] sm:$0xff] }
 0xacb   : > { %8691 = vmatpush.msk.msra.mxu2 %vm17322_vm1, %v6128_v31  ;;  %vm17338_vm1 = vmmov %vm17333_vm0 }
 0xad0   : > { %8669 = vmatmul.msk.f32.gmra.mxu2 %vm17324_vm3, %v17323_v52  ;;  %vm17339_vm3 = vmmov %vm17334_vm2 }
 0xad8   : > { %8680 = vmatmul.msk.f32.vlgmr.msrb.gmra.mxu2 %vm17325_vm9, %v17319_v51  ;;  %v6125_v8 = vpop.f32.mrf.mxu1  ;;  %vm17340_vm9 = vmmov %vm17331_vm4 }
 0xad9   : > { %8703 = vmatpush.msk.msrb.mxu2 %vm17326_vm15, %v6132_v24  ;;  %vm17341_vm15 = vmmov %vm17333_vm0  ;;  %v6135_v25 = vsub.f32 %v6125_v8, %v17318_v56 }
 0xae0   : > { %8681 = vmatmul.msk.f32.gmra.mxu2 %vm17327_vm10, %v17323_v52  ;;  %vm17342_vm10 = vmmov %vm17333_vm0 }
 0xae5   : > { %v6173_v16 = vpop.f32.mrf.mxu3 }
 0xae6   : > { %8670 = vmatpush.msk.msrb.mxu3 %vm17328_vm12, %v6173_v16  ;;  %vm17343_vm12 = vcmask 1042432  }
 0xae7   : > { %8671 = vmatmul.msk.f32.vlgmr.msrb.gmra.mxu3 %vm17329_vm14, %v17319_v51  ;;  %vm17344_vm14 = vmmov %vm17343_vm12 }
 0xae8   : > { %8692 = vmatmul.msk.f32.vlgmr.msra.gmra.mxu2 %vm17330_vm6, %v9454_v23  ;;  %vm17345_vm6 = vmmov %vm17331_vm4 }
 0xaea   : > { %v6213_v3 = vpop.f32.mrf.mxu0 }
 0xaeb   : > { %8676 = vmatpush.msk.msrb.mxu0 %vm17331_vm4, %v6213_v3  ;;  %vm17346_vm4 = vmmov %vm17333_vm0 }
 0xaec   : > { %8677 = vmatmul.msk.f32.vlgmr.msrb.gmra.mxu0 %vm17332_vm7, %v17319_v51  ;;  %vm17347_vm7 = vmmov %vm17343_vm12 }
 0xaef   : > { %8672 = vmatmul.msk.f32.gmra.mxu3 %vm17333_vm0, %v17323_v52  ;;  %vm17348_vm0 = vmmov %vm17347_vm7 }
 0xaf0   : > { %8693 = vmatmul.msk.f32.gmra.mxu2 %vm17334_vm2, %v9455_v7  ;;  %vm17349_vm2 = vmmov %vm17338_vm1 }
 0xaf4   : > { %8678 = vmatmul.msk.f32.gmra.mxu0 %vm17335_vm13, %v17323_v52  ;;  %vm17350_vm13 = vmmov %vm17338_vm1 }
 0xaf8   : > { %8704 = vmatmul.msk.f32.vlgmr.msrb.gmra.mxu2 %vm17336_vm5, %v9454_v23  ;;  %vm17351_vm5 = vmmov %vm17339_vm3 }
 0xafa   : > { %v6193_v1 = vpop.f32.mrf.mxu1 }
 0xafb   : > { %8673 = vmatpush.msk.msrb.mxu1 %vm17337_vm8, %v6193_v1  ;;  %vm17352_vm8 = vmmov %vm17345_vm6  ;;  %v15359_v1 = vld [vmem:[%s15882_s9 + $0x10] sm:$0xff] }
 0xafc   : > { %8674 = vmatmul.msk.f32.vlgmr.msrb.gmra.mxu1 %vm17338_vm1, %v17319_v51  ;;  %vm17353_vm1 = vmmov %vm17339_vm3 }
 0xb00   : > { %8705 = vmatmul.msk.f32.gmra.mxu2 %vm17339_vm3, %v9455_v7  ;;  %vm17354_vm3 = vmmov %vm17349_vm2 }
 0xb03   : > { %v6253_v47 = vpop.f32.mrf.mxu3 }
 0xb04   : > { %8682 = vmatpush.msk.msra.mxu3 %vm17340_vm9, %v6253_v47  ;;  %8675 = vmatmul.msk.f32.gmra.mxu1 %vm17341_vm15, %v17323_v52  ;;  %vm17355_vm9 = vmmov %vm17348_vm0 }
 0xb05   : > { %8683 = vmatmul.msk.f32.vlgmr.msra.gmra.mxu3 %vm17342_vm10, %v17319_v51  ;;  %vm17356_vm15 = vmmov %vm17348_vm0 }
 0xb06   : > { %8694 = vmatpush.msk.msrb.mxu3 %vm17343_vm12, %v6129_v5  ;;  %vm17357_vm10 = vmmov %vm17353_vm1 }
 0xb07   : > { %vm17358_vm12 = vmmov %vm17353_vm1 }
 0xb08   : > { %8706 = vmatpush.msk.msra.mxu3 %vm17344_vm14, %v6133_v46  ;;  %vm17359_vm14 = vmmov %vm17349_vm2 }
 0xb09   : > { %v6293_v63 = vpop.f32.mrf.mxu0 }
 0xb0a   : > { %8688 = vmatpush.msk.msra.mxu0 %vm17345_vm6, %v6293_v63  ;;  %vm17360_vm6 = vmmov %vm17353_vm1  ;;  %v15366_v63 = vld [vmem:[%s15882_s9 + $0x18] sm:$0xff] }
 0xb0b   : > { %8689 = vmatmul.msk.f32.vlgmr.msra.gmra.mxu0 %vm17346_vm4, %v17319_v51  ;;  %vm17361_vm4 = vmmov %vm17353_vm1 }
 0xb0c   : > { %8700 = vmatpush.msk.msrb.mxu0 %vm17347_vm7, %v6131_v30  ;;  %vm17362_vm7 = vmmov %vm17353_vm1 }
 0xb0d   : > { %8684 = vmatmul.msk.f32.gmra.mxu3 %vm17349_vm2, %v17323_v52 }
 0xb0e   : > { %8712 = vmatpush.msk.msra.mxu0 %vm17348_vm0, %v6135_v25  ;;  %vm17363_vm0 = vmmov %vm17353_vm1 }
 0xb0f   : > { %vm17364_vm2 = vmmov %vm17363_vm0 }
 0xb13   : > { %8690 = vmatmul.msk.f32.gmra.mxu0 %vm17350_vm13, %v17323_v52  ;;  %vm17365_vm13 = vmmov %vm17363_vm0 }
 0xb15   : > { %8695 = vmatmul.msk.f32.vlgmr.msrb.gmra.mxu3 %vm17351_vm5, %v9454_v23  ;;  %vm17366_vm5 = vmmov %vm17363_vm0 }
 0xb1a   : > { %v6273_v4 = vpop.f32.mrf.mxu1 }
 0xb1b   : > { %8685 = vmatpush.msk.msra.mxu1 %vm17352_vm8, %v6273_v4  ;;  %8701 = vmatmul.msk.f32.vlgmr.msrb.gmra.mxu0 %vm17353_vm1, %v9454_v23  ;;  %vm17367_vm8 = vmmov %vm17363_vm0  ;;  %vm17369_vm1 = vcmask 130048  }
 0xb1c   : > { %8686 = vmatmul.msk.f32.vlgmr.msra.gmra.mxu1 %vm17354_vm3, %v17319_v51  ;;  %vm17370_vm3 = vmmov %vm17369_vm1 }
 0xb1d   : > { %8697 = vmatpush.msk.msrb.mxu1 %vm17355_vm9, %v6130_v61  ;;  %8696 = vmatmul.msk.f32.gmra.mxu3 %vm17357_vm10, %v9455_v7  ;;  %vm17371_vm9 = vmmov %vm17369_vm1 }
 0xb1e   : > { %vm17373_vm10 = vmmov %vm17369_vm1 }
 0xb1f   : > { %8709 = vmatpush.msk.msra.mxu1 %vm17356_vm15, %v6134_v17  ;;  %vm17372_vm15 = vmmov %vm17369_vm1 }
 0xb23   : > { %8702 = vmatmul.msk.f32.gmra.mxu0 %vm17358_vm12, %v9455_v7  ;;  %vm17374_vm12 = vmmov %vm17369_vm1 }
 0xb24   : > { %8687 = vmatmul.msk.f32.gmra.mxu1 %vm17359_vm14, %v17323_v52  ;;  %v15350_v52 = vld [vmem:[%s15882_s9 + $0x8] sm:$0xff]  ;;  %vm17375_vm14 = vmmov %vm17369_vm1 }
 0xb25   : > { %8707 = vmatmul.msk.f32.vlgmr.msra.gmra.mxu3 %vm17360_vm6, %v9454_v23  ;;  %vm17376_vm6 = vmmov %vm17369_vm1 }
 0xb2b   : > { %8713 = vmatmul.msk.f32.vlgmr.msra.gmra.mxu0 %vm17361_vm4, %v9454_v23  ;;  %vm17377_vm4 = vmmov %vm17369_vm1 }
 0xb2c   : > { %8698 = vmatmul.msk.f32.vlgmr.msrb.gmra.mxu1 %vm17362_vm7, %v9454_v23  ;;  %vm17378_vm7 = vmmov %vm17369_vm1 }
 0xb2d   : > { %8708 = vmatmul.msk.f32.gmra.mxu3 %vm17363_vm0, %v9455_v7  ;;  %vm17379_vm0 = vmmov %vm17369_vm1 }
 0xb33   : > { %8714 = vmatmul.msk.f32.gmra.mxu0 %vm17364_vm2, %v9455_v7  ;;  %vm17380_vm2 = vmmov %vm17379_vm0 }
 0xb34   : > { %8699 = vmatmul.msk.f32.gmra.mxu1 %vm17365_vm13, %v9455_v7  ;;  %vm17381_vm13 = vmmov %vm17379_vm0 }
 0xb3c   : > { %8710 = vmatmul.msk.f32.vlgmr.msra.gmra.mxu1 %vm17366_vm5, %v9454_v23  ;;  %vm17382_vm5 = vmmov %vm17379_vm0 }
 0xb44   : > { %8711 = vmatmul.msk.f32.gmra.mxu1 %vm17367_vm8, %v9455_v7  ;;  %vm17383_vm8 = vmmov %vm17379_vm0 }
 0xb4b   : > { %v6349_v55 = vpop.f32.mrf.mxu2 }
 0xb53   : > { %v6352_v39 = vpop.f32.mrf.mxu2 }
 0xb5b   : > { %v6441_v35 = vpop.f32.mrf.mxu2 }
 0xb63   : > { %v6444_v42 = vpop.f32.mrf.mxu2 }
 0xb69   : > { %v6418_v36 = vpop.f32.mrf.mxu0 }
 0xb6a   : > { %v6372_v58 = vpop.f32.mrf.mxu3 }
 0xb6b   : > { %v6561_v26 = vpop.f32.mrf.mxu2 }
 0xb6c   : > { %v6562_v32 = vadd.f32 %v6561_v26, %v6349_v55 }
 0xb6e   : > { %v6740_v29 = vadd.f32 %v14911_v50, %v6562_v32 }
 0xb70   : > { %v6756_v45 = vmax.f32 %v6740_v29, 0.0 }
 0xb71   : > { %v6421_v51 = vpop.f32.mrf.mxu0 }
 0xb72   : > { %v6375_v56 = vpop.f32.mrf.mxu3 }
 0xb73   : > { %v6564_v9 = vpop.f32.mrf.mxu2 }
 0xb74   : > { %v6565_v19 = vadd.f32 %v6564_v9, %v6352_v39 }
 0xb76   : > { %v6748_v28 = vadd.f32 %v17368_v2, %v6565_v19 }
 0xb78   : > { %v6764_v49 = vmax.f32 %v6748_v28, 0.0 }
 0xb79   : > { %v6395_v14 = vpop.f32.mrf.mxu1 }
 0xb7a   : > { %6826 = vmatpush.msra.mxu2 %v6764_v49 }
 0xb7b   : > { %v6653_v31 = vpop.f32.mrf.mxu2 }
 0xb7c   : > { %6827 = vmatpush.msra.mxu2 %v6756_v45  ;;  %v6654_v13 = vadd.f32 %v6653_v31, %v6441_v35 }
 0xb7d   : > { %8715 = vmatmul.msk.f32.vlgmr.msra.gmra.mxu2 %vm17369_vm1, %v15343_v11  ;;  %vm17384_vm1 = vmmov %vm17379_vm0 }
 0xb7e   : > { %v6744_v3 = vadd.f32 %v14911_v50, %v6654_v13 }
 0xb80   : > { %v6760_v7 = vmax.f32 %v6744_v3, 0.0 }
 0xb81   : > { %v6398_v5 = vpop.f32.mrf.mxu1 }
 0xb83   : > { %v6656_v33 = vpop.f32.mrf.mxu2 }
 0xb84   : > { %v6657_v34 = vadd.f32 %v6656_v33, %v6444_v42 }
 0xb85   : > { %8716 = vmatmul.msk.f32.gmra.mxu2 %vm17370_vm3, %v15350_v52  ;;  %vm17385_vm3 = vmmov %vm17379_vm0 }
 0xb86   : > { %v6752_v23 = vadd.f32 %v17368_v2, %v6657_v34 }
 0xb88   : > { %v6510_v24 = vpop.f32.mrf.mxu0  ;;  %v6464_v16 = vpop.f32.mrf.mxu3  ;;  %v6768_v8 = vmax.f32 %v6752_v23, 0.0 }
 0xb8a   : > { %6942 = vmatpush.msrb.mxu2 %v6768_v8 }
 0xb8c   : > { %6943 = vmatpush.msrb.mxu2 %v6760_v7 }
 0xb8d   : > { %8717 = vmatmul.msk.f32.gmra.mxu2 %vm17371_vm9, %v15359_v1  ;;  %vm17386_vm9 = vmmov %vm17379_vm0 }
 0xb90   : > { %v6513_v47 = vpop.f32.mrf.mxu0  ;;  %v6467_v46 = vpop.f32.mrf.mxu3 }
 0xb95   : > { %8718 = vmatmul.msk.f32.gmra.mxu2 %vm17372_vm15, %v15366_v63  ;;  %vm17387_vm15 = vmmov %vm17379_vm0 }
 0xb98   : > { %v6630_v30 = vpop.f32.mrf.mxu0  ;;  %v6584_v4 = vpop.f32.mrf.mxu3 }
 0xb99   : > { %v15368_v25 = vpop.f32.mrf.mxu1  ;;  %v6631_v61 = vadd.f32 %v6630_v30, %v6418_v36  ;;  %v6585_v17 = vadd.f32 %v6584_v4, %v6372_v58 }
 0xb9b   : > { %v6743_v32 = vadd.f32 %v14911_v50, %v6631_v61  ;;  %v6741_v19 = vadd.f32 %v14911_v50, %v6585_v17 }
 0xb9d   : > { %8731 = vmatmul.msk.f32.vlgmr.msrb.gmra.mxu2 %vm17373_vm10, %v15343_v11  ;;  %v6759_v36 = vmax.f32 %v6743_v32, 0.0  ;;  %v6757_v58 = vmax.f32 %v6741_v19, 0.0  ;;  %vm17388_vm10 = vmmov %vm17379_vm0 }
 0xba0   : > { %v6633_v55 = vpop.f32.mrf.mxu0  ;;  %v6587_v35 = vpop.f32.mrf.mxu3 }
 0xba1   : > { %v6490_v39 = vpop.f32.mrf.mxu1  ;;  %v6634_v42 = vadd.f32 %v6633_v55, %v6421_v51  ;;  %v6588_v26 = vadd.f32 %v6587_v35, %v6375_v56 }
 0xba3   : > { %v6751_v9 = vadd.f32 %v17368_v2, %v6634_v42  ;;  %v6749_v29 = vadd.f32 %v17368_v2, %v6588_v26 }
 0xba5   : > { %v6767_v28 = vmax.f32 %v6751_v9, 0.0  ;;  %v6765_v49 = vmax.f32 %v6749_v29, 0.0  ;;  %8732 = vmatmul.msk.f32.gmra.mxu2 %vm17374_vm12, %v15350_v52  ;;  %vm17389_vm12 = vmmov %vm17379_vm0 }
 0xba7   : > { %6913 = vmatpush.msrb.mxu0 %v6767_v28  ;;  %6855 = vmatpush.msrb.mxu3 %v6765_v49 }
 0xba8   : > { %v6722_v45 = vpop.f32.mrf.mxu0  ;;  %v6676_v51 = vpop.f32.mrf.mxu3 }
 0xba9   : > { %v6607_v31 = vpop.f32.mrf.mxu1  ;;  %6914 = vmatpush.msrb.mxu0 %v6759_v36  ;;  %6856 = vmatpush.msrb.mxu3 %v6757_v58  ;;  %v6723_v56 = vadd.f32 %v6722_v45, %v6510_v24  ;;  %v6677_v33 = vadd.f32 %v6676_v51, %v6464_v16 }
 0xbaa   : > { %8727 = vmatmul.msk.f32.vlgmr.msrb.gmra.mxu0 %vm17375_vm14, %v15343_v11  ;;  %8719 = vmatmul.msk.f32.vlgmr.msrb.gmra.mxu3 %vm17376_vm6, %v15343_v11  ;;  %v6608_v13 = vadd.f32 %v6607_v31, %v6395_v14  ;;  %vm17390_vm14 = vmmov %vm17379_vm0 }
 0xbab   : > { %v6747_v4 = vadd.f32 %v14911_v50, %v6723_v56  ;;  %v6745_v16 = vadd.f32 %v14911_v50, %v6677_v33  ;;  %vm17391_vm6 = vmmov %vm17379_vm0 }
 0xbac   : > { %v6742_v24 = vadd.f32 %v14911_v50, %v6608_v13 }
 0xbad   : > { %8733 = vmatmul.msk.f32.gmra.mxu2 %vm17377_vm4, %v15359_v1  ;;  %v6763_v55 = vmax.f32 %v6747_v4, 0.0  ;;  %v6761_v42 = vmax.f32 %v6745_v16, 0.0  ;;  %vm17392_vm4 = vmmov %vm17379_vm0 }
 0xbae   : > { %v6758_v35 = vmax.f32 %v6742_v24, 0.0 }
 0xbb0   : > { %v6725_v34 = vpop.f32.mrf.mxu0  ;;  %v6679_v23 = vpop.f32.mrf.mxu3 }
 0xbb1   : > { %v6610_v3 = vpop.f32.mrf.mxu1  ;;  %v6726_v8 = vadd.f32 %v6725_v34, %v6513_v47  ;;  %v6680_v30 = vadd.f32 %v6679_v23, %v6467_v46 }
 0xbb2   : > { %v6611_v7 = vadd.f32 %v6610_v3, %v6398_v5  ;;  %8728 = vmatmul.msk.f32.gmra.mxu0 %vm17378_vm7, %v15350_v52  ;;  %8720 = vmatmul.msk.f32.gmra.mxu3 %vm17379_vm0, %v15350_v52  ;;  %vm17393_vm7 = vmmov %vm17379_vm0 }
 0xbb3   : > { %v6755_v14 = vadd.f32 %v17368_v2, %v6726_v8  ;;  %v6753_v61 = vadd.f32 %v17368_v2, %v6680_v30 }
 0xbb4   : > { %v6750_v47 = vadd.f32 %v17368_v2, %v6611_v7 }
 0xbb5   : > { %v6771_v5 = vmax.f32 %v6755_v14, 0.0  ;;  %v6769_v17 = vmax.f32 %v6753_v61, 0.0  ;;  %8734 = vmatmul.msk.f32.gmra.mxu2 %vm17380_vm2, %v15366_v63  ;;  %vm17394_vm2 = vmmov %vm17379_vm0 }
 0xbb6   : > { %v6766_v46 = vmax.f32 %v6750_v47, 0.0 }
 0xbb7   : > { %7029 = vmatpush.msra.mxu0 %v6771_v5  ;;  %6971 = vmatpush.msra.mxu3 %v6769_v17 }
 0xbb8   : > { %6884 = vmatpush.msrb.mxu1 %v6766_v46 }
 0xbb9   : > { %v6699_v26 = vpop.f32.mrf.mxu1  ;;  %7030 = vmatpush.msra.mxu0 %v6763_v55  ;;  %6972 = vmatpush.msra.mxu3 %v6761_v42 }
 0xbba   : > { %6885 = vmatpush.msrb.mxu1 %v6758_v35  ;;  %8721 = vmatmul.msk.f32.gmra.mxu3 %vm17382_vm5, %v15359_v1  ;;  %v6700_v32 = vadd.f32 %v6699_v26, %v15368_v25  ;;  %vm17396_vm5 = vmmov %vm17379_vm0 }
 0xbbb   : > { %8723 = vmatmul.msk.f32.vlgmr.msrb.gmra.mxu1 %vm17381_vm13, %v15343_v11  ;;  %8729 = vmatmul.msk.f32.gmra.mxu0 %vm17383_vm8, %v15359_v1  ;;  %vm17395_vm13 = vmmov %vm17379_vm0 }
 0xbbc   : > { %v6746_v29 = vadd.f32 %v14911_v50, %v6700_v32  ;;  %vm17397_vm8 = vmmov %vm17379_vm0 }
 0xbbe   : > { %v6762_v36 = vmax.f32 %v6746_v29, 0.0 }
 0xbc1   : > { %v6702_v9 = vpop.f32.mrf.mxu1 }
 0xbc2   : > { %v6703_v19 = vadd.f32 %v6702_v9, %v6490_v39  ;;  %8722 = vmatmul.msk.f32.gmra.mxu3 %vm17385_vm3, %v15366_v63  ;;  %vm17399_vm3 = vmmov %vm17379_vm0 }
 0xbc3   : > { %8724 = vmatmul.msk.f32.gmra.mxu1 %vm17384_vm1, %v15350_v52  ;;  %8730 = vmatmul.msk.f32.gmra.mxu0 %vm17386_vm9, %v15366_v63  ;;  %vm17398_vm1 = vmmov %vm17379_vm0 }
 0xbc4   : > { %v6754_v28 = vadd.f32 %v17368_v2, %v6703_v19 }
 0xbc6   : > { %v6770_v49 = vmax.f32 %v6754_v28, 0.0 }
 0xbc8   : > { %7000 = vmatpush.msra.mxu1 %v6770_v49 }
 0xbca   : > { %7001 = vmatpush.msra.mxu1 %v6762_v36  ;;  %8735 = vmatmul.msk.f32.vlgmr.msra.gmra.mxu3 %vm17388_vm10, %v15343_v11 }
 0xbcb   : > { %8725 = vmatmul.msk.f32.gmra.mxu1 %vm17387_vm15, %v15359_v1  ;;  %8743 = vmatmul.msk.f32.vlgmr.msra.gmra.mxu0 %vm17389_vm12, %v15343_v11 }
 0xbd2   : > { %8736 = vmatmul.msk.f32.gmra.mxu3 %vm17391_vm6, %v15350_v52 }
 0xbd3   : > { %8726 = vmatmul.msk.f32.gmra.mxu1 %vm17390_vm14, %v15366_v63  ;;  %8744 = vmatmul.msk.f32.gmra.mxu0 %vm17392_vm4, %v15350_v52 }
 0xbda   : > { %8737 = vmatmul.msk.f32.gmra.mxu3 %vm17379_vm0, %v15359_v1 }
 0xbdb   : > { %8739 = vmatmul.msk.f32.vlgmr.msra.gmra.mxu1 %vm17393_vm7, %v15343_v11  ;;  %8745 = vmatmul.msk.f32.gmra.mxu0 %vm17394_vm2, %v15359_v1 }
 0xbe2   : > { %8738 = vmatmul.msk.f32.gmra.mxu3 %vm17396_vm5, %v15366_v63 }
 0xbe3   : > { %8740 = vmatmul.msk.f32.gmra.mxu1 %vm17395_vm13, %v15350_v52  ;;  %8746 = vmatmul.msk.f32.gmra.mxu0 %vm17397_vm8, %v15366_v63 }
 0xbeb   : > { %8741 = vmatmul.msk.f32.gmra.mxu1 %vm17398_vm1, %v15359_v1 }
 0xbf3   : > { %8742 = vmatmul.msk.f32.gmra.mxu1 %vm17399_vm3, %v15366_v63 }
 0xc00   : > { %v6829_v50 = vpop.f32.mrf.mxu2 }
 0xc01   : > { %v15442_v39 = vadd.f32 %v6829_v50, %v14936_v38  ;;  %v17400_v50 = vld [vmem:[#allocation24_spill] sm:$0xff] }
 0xc03   : > { %v7044_v58 = vmax.f32 %v15442_v39, 0.0 }
 0xc08   : > { %v6832_v2 = vpop.f32.mrf.mxu2 }
 0xc09   : > { %v15458_v13 = vadd.f32 %v6832_v2, %v14998_v53 }
 0xc0b   : > { %v7052_v8 = vmax.f32 %v15458_v13, 0.0 }
 0xc10   : > { %v6835_v11 = vpop.f32.mrf.mxu2 }
 0xc11   : > { %v6836_v61 = vadd.f32 %v6835_v11, %v14916_v43 }
 0xc13   : > { %v7060_v42 = vmax.f32 %v6836_v61, 0.0 }
 0xc18   : > { %v6838_v25 = vpop.f32.mrf.mxu2 }
 0xc19   : > { %v6839_v2 = vadd.f32 %v6838_v25, %v17400_v50 }
 0xc20   : > { %v6945_v52 = vpop.f32.mrf.mxu2 }
 0xc21   : > { %v15446_v45 = vadd.f32 %v6945_v52, %v14936_v38 }
 0xc23   : > { %v7048_v31 = vmax.f32 %v15446_v45, 0.0  ;;  %v15615_v45 = vadd.f32 %v15257_v40, %v15003_v21  ;;  %v7274_v40 = vld [vmem:[%s15885_s12 + $0x10] sm:$0xff] }
 0xc25   : > { %v7092_v63 = vmax.f32 %v7044_v58, %v7048_v31 }
 0xc27   : > { %v6916_v51 = vpop.f32.mrf.mxu0 }
 0xc28   : > { %v15450_v1 = vadd.f32 %v6916_v51, %v14936_v38  ;;  %v6948_v34 = vpop.f32.mrf.mxu2 }
 0xc29   : > { %v15463_v3 = vadd.f32 %v6948_v34, %v14998_v53 }
 0xc2a   : > { %v7047_v56 = vmax.f32 %v15450_v1, 0.0 }
 0xc2b   : > { %v7056_v30 = vmax.f32 %v15463_v3, 0.0 }
 0xc2c   : > { %v7096_v33 = vmax.f32 %v7092_v63, %v7047_v56 }
 0xc2d   : > { %v6858_v23 = vpop.f32.mrf.mxu3  ;;  %v7093_v16 = vmax.f32 %v7052_v8, %v7056_v30 }
 0xc2e   : > { %v15467_v7 = vadd.f32 %v6858_v23, %v14936_v38 }
 0xc2f   : > { %v6919_v4 = vpop.f32.mrf.mxu0 }
 0xc30   : > { %v15471_v14 = vadd.f32 %v6919_v4, %v14998_v53  ;;  %v7045_v24 = vmax.f32 %v15467_v7, 0.0  ;;  %v6951_v17 = vpop.f32.mrf.mxu2 }
 0xc31   : > { %v15483_v55 = vadd.f32 %v6951_v17, %v14916_v43 }
 0xc32   : > { %v7055_v47 = vmax.f32 %v15471_v14, 0.0  ;;  %v7116_v5 = vmax.f32 %v7096_v33, %v7045_v24 }
 0xc33   : > { %v7064_v32 = vmax.f32 %v15483_v55, 0.0 }
 0xc34   : > { %v7097_v46 = vmax.f32 %v7093_v16, %v7055_v47  ;;  %v7068_v16 = vmax.f32 %v6839_v2, 0.0 }
 0xc35   : > { %v6861_v35 = vpop.f32.mrf.mxu3  ;;  %v7094_v28 = vmax.f32 %v7060_v42, %v7064_v32 }
 0xc36   : > { %v15486_v26 = vadd.f32 %v6861_v35, %v14998_v53  ;;  %v9354_v2 = vpack.i.bf16 %v7060_v42, %v7068_v16 }
 0xc38   : > { %v6887_v9 = vpop.f32.mrf.mxu1  ;;  %v7053_v29 = vmax.f32 %v15486_v26, 0.0  ;;  %v6922_v49 = vpop.f32.mrf.mxu0 }
 0xc39   : > { %v6888_v19 = vadd.f32 %v6887_v9, %v14936_v38  ;;  %v6923_v36 = vadd.f32 %v6922_v49, %v14916_v43  ;;  %v6954_v63 = vpop.f32.mrf.mxu2 }
 0xc3a   : > { %v7117_v52 = vmax.f32 %v7097_v46, %v7053_v29  ;;  %v15496_v34 = vadd.f32 %v6954_v63, %v17400_v50 }
 0xc3b   : > { %v7046_v11 = vmax.f32 %v6888_v19, 0.0  ;;  %v7063_v51 = vmax.f32 %v6923_v36, 0.0 }
 0xc3c   : > { %v7072_v17 = vmax.f32 %v15496_v34, 0.0  ;;  %v7277_v34 = vld [vmem:[%s15885_s12 + $0x28] sm:$0xff] }
 0xc3d   : > { %v7120_v33 = vmax.f32 %v7116_v5, %v7046_v11  ;;  %v7098_v23 = vmax.f32 %v7094_v28, %v7063_v51  ;;  %v9344_v7 = vpack.i.bf16 %v7063_v51, %v7046_v11  ;;  %v6864_v4 = vpop.f32.mrf.mxu3 }
 0xc3e   : > { %v6865_v61 = vadd.f32 %v6864_v4, %v14916_v43  ;;  %v7095_v5 = vmax.f32 %v7068_v16, %v7072_v17 }
 0xc3f   : > { %9345 = vrot.lane.b32.xlu2 %v9344_v7, %s9556_s27 }
 0xc40   : > { %v6890_v35 = vpop.f32.mrf.mxu1  ;;  %v7061_v46 = vmax.f32 %v6865_v61, 0.0  ;;  %v6925_v26 = vpop.f32.mrf.mxu0 }
 0xc41   : > { %v6891_v25 = vadd.f32 %v6890_v35, %v14998_v53  ;;  %v6926_v9 = vadd.f32 %v6925_v26, %v17400_v50 }
 0xc42   : > { %v7118_v28 = vmax.f32 %v7098_v23, %v7061_v46  ;;  %v9369_v26 = vpack.i.bf16 %v7061_v46, %v7044_v58 }
 0xc43   : > { %v7054_v19 = vmax.f32 %v6891_v25, 0.0  ;;  %v7071_v49 = vmax.f32 %v6926_v9, 0.0 }
 0xc45   : > { %v7121_v36 = vmax.f32 %v7117_v52, %v7054_v19  ;;  %v7099_v11 = vmax.f32 %v7095_v5, %v7071_v49  ;;  %v9359_v51 = vpack.i.bf16 %v7071_v49, %v7054_v19  ;;  %v6867_v63 = vpop.f32.mrf.mxu3 }
 0xc46   : > { %v6868_v4 = vadd.f32 %v6867_v63, %v17400_v50 }
 0xc47   : > { %9360 = vrot.lane.b32.xlu0 %v9359_v51, %s9556_s27  ;;  %9355 = vrot.lane.b32.xlu2 %v9354_v2, %s9556_s27 }
 0xc48   : > { %v6893_v7 = vpop.f32.mrf.mxu1  ;;  %v7069_v35 = vmax.f32 %v6868_v4, 0.0  ;;  %v7032_v37 = vpop.f32.mrf.mxu0  ;;  %v9379_v4 = vpack.i.bf16 %v7064_v32, %v7047_v56 }
 0xc49   : > { %v6894_v61 = vadd.f32 %v6893_v7, %v14916_v43  ;;  %v15510_v25 = vadd.f32 %v7032_v37, %v14936_v38 }
 0xc4a   : > { %v7119_v52 = vmax.f32 %v7099_v11, %v7069_v35 }
 0xc4b   : > { %v7062_v23 = vmax.f32 %v6894_v61, 0.0  ;;  %v7051_v42 = vmax.f32 %v15510_v25, 0.0  ;;  %v9394_v25 = vpack.i.bf16 %v7072_v17, %v7055_v47  ;;  %v17403_v17 = vld [vmem:[#allocation136_spill] sm:$0xff] }
 0xc4d   : > { %v7122_v16 = vmax.f32 %v7118_v28, %v7062_v23  ;;  %v9349_v5 = vpack.i.bf16 %v7062_v23, %v7045_v24  ;;  %v7140_v9 = vmax.f32 %v7120_v33, %v7051_v42  ;;  %v6974_v19 = vpop.f32.mrf.mxu3  ;;  %v9374_v33 = vpack.i.bf16 %v7069_v35, %v7052_v8 }
 0xc4e   : > { %v6975_v49 = vadd.f32 %v6974_v19, %v14936_v38  ;;  %v17401_v19 = vld [vmem:[#allocation75_spill] sm:$0xff] }
 0xc4f   : > { %9350 = vrot.lane.b32.xlu1 %v9349_v5, %s9556_s27  ;;  %9370 = vrot.lane.b32.xlu0 %v9369_v26, %s9556_s27 }
 0xc50   : > { %v6896_v2 = vpop.f32.mrf.mxu1  ;;  %v7049_v11 = vmax.f32 %v6975_v49, 0.0  ;;  %v7035_v51 = vpop.f32.mrf.mxu0  ;;  %v15544_v49 = vadd.f32 %v17401_v19, %v15003_v21 }
 0xc51   : > { %v6897_v37 = vadd.f32 %v6896_v2, %v17400_v50  ;;  %v15522_v24 = vadd.f32 %v7035_v51, %v14998_v53 }
 0xc52   : > { %v7144_v58 = vmax.f32 %v7140_v9, %v7049_v11 }
 0xc53   : > { %v7070_v39 = vmax.f32 %v6897_v37, 0.0  ;;  %v7059_v46 = vmax.f32 %v15522_v24, 0.0  ;;  %v15646_v24 = vadd.f32 %v15249_v41, %v15003_v21  ;;  %v7278_v41 = vld [vmem:[%s15885_s12 + $0x30] sm:$0xff] }
 0xc55   : > { %v7123_v28 = vmax.f32 %v7119_v52, %v7070_v39  ;;  %v9364_v63 = vpack.i.bf16 %v7070_v39, %v7053_v29  ;;  %v7141_v7 = vmax.f32 %v7121_v36, %v7059_v46  ;;  %v6977_v61 = vpop.f32.mrf.mxu3  ;;  %v16391_v21 = vmax.f32 %v15646_v24, 0.0 }
 0xc56   : > { %v6978_v23 = vadd.f32 %v6977_v61, %v14998_v53 }
 0xc57   : > { %9375 = vrot.lane.b32.xlu1 %v9374_v33, %s9556_s27  ;;  %9365 = vrot.lane.b32.xlu2 %v9364_v63, %s9556_s27 }
 0xc58   : > { %v7003_v5 = vpop.f32.mrf.mxu1  ;;  %9380 = vrot.lane.b32.xlu0 %v9379_v4, %s9556_s27  ;;  %v7057_v8 = vmax.f32 %v6978_v23, 0.0  ;;  %v7038_v1 = vpop.f32.mrf.mxu0 }
 0xc59   : > { %v7004_v13 = vadd.f32 %v7003_v5, %v14936_v38  ;;  %v7039_v55 = vadd.f32 %v7038_v1, %v14916_v43 }
 0xc5a   : > { %v7145_v32 = vmax.f32 %v7141_v7, %v7057_v8 }
 0xc5b   : > { %v7050_v56 = vmax.f32 %v7004_v13, 0.0  ;;  %v7067_v29 = vmax.f32 %v7039_v55, 0.0 }
 0xc5d   : > { %v15539_v36 = vmax.f32 %v7144_v58, %v7050_v56  ;;  %v7142_v35 = vmax.f32 %v7122_v16, %v7067_v29  ;;  %v9384_v52 = vpack.i.bf16 %v7067_v29, %v7050_v56  ;;  %v6980_v26 = vpop.f32.mrf.mxu3  ;;  %v3162_v16 = vmax.f32 %v15544_v49, 0.0 }
 0xc5e   : > { %v6981_v9 = vadd.f32 %v6980_v26, %v14916_v43 }
 0xc5f   : > { %v9409_v7 = vpack.i.bf16 %v7057_v8, %v3162_v16  ;;  %v15566_v8 = vadd.f32 %v15243_v62, %v15014_v59 }
 0xc60   : > { %v7006_v2 = vpop.f32.mrf.mxu1  ;;  %9385 = vrot.lane.b32.xlu0 %v9384_v52, %s9556_s27  ;;  %v7065_v37 = vmax.f32 %v6981_v9, 0.0  ;;  %v7041_v51 = vpop.f32.mrf.mxu0  ;;  %v17402_v52 = vld [vmem:[#allocation89_spill] sm:$0xff] }
 0xc61   : > { %v7007_v38 = vadd.f32 %v7006_v2, %v14998_v53  ;;  %v7042_v39 = vadd.f32 %v7041_v51, %v17400_v50  ;;  %v15557_v53 = vadd.f32 %v15255_v15, %v15072_v27  ;;  %v15570_v15 = vadd.f32 %v15235_v22, %v15074_v44 }
 0xc62   : > { %v7146_v33 = vmax.f32 %v7142_v35, %v7065_v37  ;;  %v15579_v26 = vadd.f32 %v17402_v52, %v15072_v27  ;;  %v16389_v9 = vmax.f32 %v15566_v8, 0.0  ;;  %v9414_v14 = vpack.i.bf16 %v7065_v37, %v7048_v31  ;;  %v17404_v31 = vld [vmem:[#allocation85_spill] sm:$0xff] }
 0xc63   : > { %v7058_v58 = vmax.f32 %v7007_v38, 0.0  ;;  %v7075_v63 = vmax.f32 %v7042_v39, 0.0  ;;  %v3160_v29 = vmax.f32 %v15557_v53, 0.0  ;;  %v16387_v22 = vmax.f32 %v15570_v15, 0.0 }
 0xc64   : > { %v3158_v19 = vmax.f32 %v15579_v26, 0.0  ;;  %v15608_v51 = vadd.f32 %v17403_v17, %v15074_v44  ;;  %v15619_v37 = vadd.f32 %v17404_v31, %v15014_v59 }
 0xc65   : > { %v15550_v4 = vmax.f32 %v7145_v32, %v7058_v58  ;;  %v7143_v61 = vmax.f32 %v7123_v28, %v7075_v63  ;;  %v6983_v23 = vpop.f32.mrf.mxu3  ;;  %v9404_v47 = vpack.i.bf16 %v7075_v63, %v7058_v58  ;;  %v15623_v58 = vadd.f32 %v15247_v12, %v15074_v44 }
 0xc66   : > { %v6984_v5 = vadd.f32 %v6983_v23, %v17400_v50  ;;  %v16393_v39 = vmax.f32 %v15608_v51, 0.0  ;;  %v3164_v44 = vmax.f32 %v15615_v45, 0.0  ;;  %v3155_v12 = vmax.f32 %v15619_v37, 0.0  ;;  %v7405_v23 = vld [vmem:[%s15887_s14] sm:$0xff] }
 0xc67   : > { %v16388_v3 = vmax.f32 %v15623_v58, 0.0 }
 0xc68   : > { %v7009_v13 = vpop.f32.mrf.mxu1  ;;  %9410 = vrot.lane.b32.xlu0 %v9409_v7, %s9556_s27  ;;  %v7073_v55 = vmax.f32 %v6984_v5, 0.0  ;;  %v15636_v7 = vadd.f32 %v15245_v48, %v15072_v27  ;;  %v15650_v27 = vadd.f32 %v15251_v57, %v15014_v59  ;;  %v7275_v5 = vld [vmem:[%s15885_s12 + $0x18] sm:$0xff] }
 0xc69   : > { %v7010_v1 = vadd.f32 %v7009_v13, %v14916_v43  ;;  %v9434_v43 = vpack.i.bf16 %v7051_v42, %v3160_v29  ;;  %v7279_v13 = vld [vmem:[%s15885_s12 + $0x38] sm:$0xff] }
 0xc6a   : > { %v7147_v32 = vmax.f32 %v7143_v61, %v7073_v55  ;;  %v9419_v63 = vpack.i.bf16 %v7073_v55, %v7056_v30  ;;  %v16390_v30 = vmax.f32 %v15636_v7, 0.0  ;;  %v7408_v61 = vld [vmem:[%s15887_s14 + $0x18] sm:$0xff]  ;;  %v16392_v59 = vmax.f32 %v15650_v27, 0.0  ;;  %v7276_v55 = vld [vmem:[%s15885_s12 + $0x20] sm:$0xff] }
 0xc6b   : > { %v7066_v56 = vmax.f32 %v7010_v1, 0.0  ;;  %v7272_v1 = vld [vmem:[%s15885_s12] sm:$0xff] }
 0xc6c   : > { %v9444_v48 = vpack.i.bf16 %v16390_v30, %v16388_v3  ;;  %v9439_v57 = vpack.i.bf16 %v16391_v21, %v16392_v59 }
 0xc6d   : > { %v15562_v35 = vmax.f32 %v7146_v33, %v7066_v56  ;;  %v9389_v28 = vpack.i.bf16 %v7066_v56, %v7049_v11  ;;  %v9429_v33 = vpack.i.bf16 %v16393_v39, %v7059_v46  ;;  %v9424_v46 = vpack.i.bf16 %v3164_v44, %v3155_v12  ;;  %v7406_v56 = vld [vmem:[%s15887_s14 + $0x8] sm:$0xff] }
 0xc6f   : > { %9390 = vrot.lane.b32.xlu1 %v9389_v28, %s9556_s27  ;;  %v15696_v28 = vpop.permute.xlu0 %9335 }
 0xc70   : > { %v7012_v11 = vpop.f32.mrf.mxu1  ;;  %9435 = vrot.lane.b32.xlu0 %v9434_v43, %s9556_s27  ;;  %v7407_v43 = vld [vmem:[%s15887_s14 + $0x10] sm:$0xff] }
 0xc71   : > { %v7013_v62 = vadd.f32 %v7012_v11, %v17400_v50  ;;  %v9449_v50 = vpack.i.bf16 %v16387_v22, %v16389_v9 }
 0xc73   : > { %v7074_v2 = vmax.f32 %v7013_v62, 0.0  ;;  %v7475_v62 = vld [vmem:[%s15889_s16] sm:$0x7] }
 0xc75   : > { %v15590_v42 = vmax.f32 %v7147_v32, %v7074_v2  ;;  %v9399_v38 = vpack.i.bf16 %v3158_v19, %v7074_v2  ;;  %v7273_v32 = vld [vmem:[%s15885_s12 + $0x8] sm:$0xff] }
 0xc77   : > { %9400 = vrot.lane.b32.xlu2 %v9399_v38, %s9556_s27  ;;  %9395 = vrot.lane.b32.xlu1 %v9394_v25, %s9556_s27  ;;  %v15706_v38 = vpop.permute.xlu1 %9340 }
 0xc78   : > { %9450 = vrot.lane.b32.xlu0 %v9449_v50, %s9556_s27 }
 0xc7f   : > { %9415 = vrot.lane.b32.xlu1 %v9414_v14, %s9556_s27  ;;  %9405 = vrot.lane.b32.xlu2 %v9404_v47, %s9556_s27 }
 0xc80   : > { %7307 = vperm.xlu0 %9011, %v7277_v34  }
 0xc87   : > { %9430 = vrot.lane.b32.xlu1 %v9429_v33, %s9556_s27  ;;  %9420 = vrot.lane.b32.xlu2 %v9419_v63, %s9556_s27 }
 0xc88   : > { %7292 = vperm.xlu0 %9011, %v7274_v40  }
 0xc8f   : > { %9445 = vrot.lane.b32.xlu1 %v9444_v48, %s9556_s27  ;;  %9425 = vrot.lane.b32.xlu2 %v9424_v46, %s9556_s27 }
 0xc90   : > { %7426 = vperm.xlu0 %9011, %v7408_v61  }
 0xc97   : > { %7312 = vperm.xlu1 %9333, %v7278_v41   ;;  %9440 = vrot.lane.b32.xlu2 %v9439_v57, %s9556_s27 }
 0xc98   : > { %7411 = vperm.xlu0 %9011, %v7405_v23  }
 0xc99   : > { %v9346_v52 = vpop.permute.xlu2 %9345 }
 0xc9f   : > { %7297 = vperm.xlu1 %9333, %v7275_v5   ;;  %7317 = vperm.xlu2 %9012, %v7279_v13   ;;  %v9348_v5 = vunpack.i.h.bf16 %v9346_v52 }
 0xca1   : > { %v9356_v2 = vpop.permute.xlu2 %9355  ;;  %v7170_v22 = vmax.f32 %v15562_v35, %v9348_v5 }
 0xca2   : > { %v9357_v63 = vunpack.i.l.bf16 %v9356_v2 }
 0xca4   : > { %v7171_v48 = vmax.f32 %v15590_v42, %v9357_v63 }
 0xca7   : > { %7282 = vperm.xlu1 %9333, %v7272_v1   ;;  %7302 = vperm.xlu2 %9012, %v7276_v55  }
 0xcaf   : > { %7416 = vperm.xlu1 %9333, %v7406_v56   ;;  %7287 = vperm.xlu2 %9012, %v7273_v32   ;;  %v9358_v56 = vunpack.i.h.bf16 %v9356_v2 }
 0xcb1   : > { %v9366_v50 = vpop.permute.xlu2 %9365 }
 0xcb2   : > { %v9368_v40 = vunpack.i.h.bf16 %v9366_v50 }
 0xcb4   : > { %v7191_v61 = vmax.f32 %v7171_v48, %v9368_v40  ;;  %v9367_v40 = vunpack.i.l.bf16 %v9366_v50  ;;  %v7190_v48 = vmax.f32 %v7170_v22, %v9358_v56 }
 0xcb6   : > { %v7169_v35 = vmax.f32 %v15550_v4, %v9367_v40 }
 0xcb7   : > { %7421 = vperm.xlu2 %9012, %v7407_v43  }
 0xcb9   : > { %v9361_v11 = vpop.permute.xlu0 %9360 }
 0xcba   : > { %v9363_v46 = vunpack.i.h.bf16 %v9361_v11  ;;  %v9362_v21 = vunpack.i.l.bf16 %v9361_v11 }
 0xcbc   : > { %v7195_v13 = vmax.f32 %v7191_v61, %v9363_v46  ;;  %v9347_v61 = vunpack.i.l.bf16 %v9346_v52  ;;  %v9338_v52 = vunpack.i.h.bf16 %v15696_v28  ;;  %v7189_v11 = vmax.f32 %v7169_v35, %v9362_v21 }
 0xcbf   : > { %7478 = vperm.xlu2 %9012, %v7475_v62  }
 0xcc1   : > { %v15704_v25 = vpop.permute.xlu0 %9370  ;;  %v9351_v47 = vpop.permute.xlu1 %9350 }
 0xcc2   : > { %v9353_v3 = vunpack.i.h.bf16 %v9351_v47  ;;  %v9373_v9 = vunpack.i.h.bf16 %v15704_v25  ;;  %v9352_v5 = vunpack.i.l.bf16 %v9351_v47  ;;  %v9372_v4 = vunpack.i.l.bf16 %v15704_v25 }
 0xcc3   : > { %v9342_v25 = vunpack.i.l.bf16 %v15706_v38 }
 0xcc9   : > { %v9376_v31 = vpop.permute.xlu1 %9375 }
 0xcca   : > { %v15708_v14 = vpop.permute.xlu0 %9380  ;;  %v9378_v41 = vunpack.i.h.bf16 %v9376_v31 }
 0xccc   : > { %v7215_v32 = vmax.f32 %v7195_v13, %v9378_v41  ;;  %v7194_v41 = vmax.f32 %v7190_v48, %v9353_v3  ;;  %v9383_v13 = vunpack.i.h.bf16 %v15708_v14  ;;  %v9337_v3 = vunpack.i.l.bf16 %v15696_v28 }
 0xccd   : > { %v9382_v28 = vunpack.i.l.bf16 %v15708_v14 }
 0xcce   : > { %v7214_v22 = vmax.f32 %v7194_v41, %v9373_v9  ;;  %v3183_v21 = vmax.f32 %v3154_v18, %v9337_v3  ;;  %v17406_v3 = vmax.f32 %v15608_v51, 0.0  ;;  %v17409_v51 = vmax.f32 %v15636_v7, 0.0 }
 0xcd0   : > { %v7218_v47 = vmax.f32 %v7214_v22, %v9383_v13 }
 0xcd1   : > { %v9401_v34 = vpop.permute.xlu2 %9400 }
 0xcd2   : > { %v15710_v17 = vpop.permute.xlu0 %9385  ;;  %v9402_v1 = vunpack.i.l.bf16 %v9401_v34  ;;  %v9403_v50 = vunpack.i.h.bf16 %v9401_v34 }
 0xcd3   : > { %v9388_v56 = vunpack.i.h.bf16 %v15710_v17 }
 0xcd4   : > { %v7219_v42 = vmax.f32 %v7215_v32, %v9402_v1  ;;  %v9377_v1 = vunpack.i.l.bf16 %v9376_v31  ;;  %v3184_v10 = vmax.f32 %v3158_v19, %v9403_v50  ;;  %v9387_v19 = vunpack.i.l.bf16 %v15710_v17 }
 0xcd5   : > { %v3187_v17 = vmax.f32 %v3183_v21, %v3155_v12 }
 0xcd6   : > { %v7193_v34 = vmax.f32 %v7189_v11, %v9377_v1  ;;  %v3188_v26 = vmax.f32 %v3184_v10, %v3159_v6  ;;  %v3182_v6 = vmax.f32 %v17405_v0, %v9342_v25 }
 0xcd8   : > { %v3186_v11 = vmax.f32 %v3182_v6, %v17406_v3 }
 0xcd9   : > { %v9406_v33 = vpop.permute.xlu2 %9405 }
 0xcda   : > { %v15715_v23 = vpop.permute.xlu0 %9410  ;;  %v9408_v43 = vunpack.i.h.bf16 %v9406_v33  ;;  %v9407_v32 = vunpack.i.l.bf16 %v9406_v33 }
 0xcdb   : > { %v9412_v62 = vunpack.i.l.bf16 %v15715_v23  ;;  %v9413_v40 = vunpack.i.h.bf16 %v15715_v23 }
 0xcdc   : > { %v7239_v30 = vmax.f32 %v7219_v42, %v9408_v43  ;;  %v7168_v43 = vmax.f32 %v15539_v36, %v9347_v61  ;;  %v7213_v36 = vmax.f32 %v7193_v34, %v9407_v32 }
 0xcdd   : > { %v3185_v46 = vmax.f32 %v3162_v16, %v9412_v62 }
 0xcdf   : > { %v3189_v49 = vmax.f32 %v3185_v46, %v3163_v54  ;;  %v9343_v46 = vunpack.i.h.bf16 %v15706_v38 }
 0xce1   : > { %v15713_v57 = vpop.permute.xlu1 %9390  ;;  %v9421_v55 = vpop.permute.xlu2 %9420  ;;  %v3209_v31 = vmax.f32 %v3189_v49, %v9338_v52  ;;  %v3208_v45 = vmax.f32 %v3188_v26, %v9343_v46 }
 0xce2   : > { %v9423_v63 = vunpack.i.h.bf16 %v9421_v55  ;;  %v9393_v9 = vunpack.i.h.bf16 %v15713_v57  ;;  %v9422_v54 = vunpack.i.l.bf16 %v9421_v55  ;;  %v9436_v18 = vpop.permute.xlu0 %9435  ;;  %v9392_v41 = vunpack.i.l.bf16 %v15713_v57 }
 0xce3   : > { %v3213_v60 = vmax.f32 %v3209_v31, %v3164_v44  ;;  %v9438_v44 = vunpack.i.h.bf16 %v9436_v18  ;;  %v9437_v49 = vunpack.i.l.bf16 %v9436_v18  ;;  %v3212_v37 = vmax.f32 %v3208_v45, %v3160_v29  ;;  %v7270_v18 = vld [vmem:[%s15884_s11 + $0x30] sm:$0xff] }
 0xce4   : > { %v7243_v59 = vmax.f32 %v7239_v30, %v9423_v63  ;;  %v7217_v55 = vmax.f32 %v7213_v36, %v9422_v54 }
 0xce5   : > { %v3232_v34 = vmax.f32 %v3212_v37, %v9437_v49 }
 0xce7   : > { %v3236_v21 = vmax.f32 %v3232_v34, %v17409_v51  ;;  %v7402_v34 = vld [vmem:[%s15886_s13 + $0x8] sm:$0xff] }
 0xce9   : > { %v9396_v2 = vpop.permute.xlu1 %9395  ;;  %v9426_v30 = vpop.permute.xlu2 %9425 }
 0xcea   : > { %v9398_v39 = vunpack.i.h.bf16 %v9396_v2  ;;  %v9427_v48 = vunpack.i.l.bf16 %v9426_v30  ;;  %v9397_v13 = vunpack.i.l.bf16 %v9396_v2  ;;  %v9428_v35 = vunpack.i.h.bf16 %v9426_v30 }
 0xceb   : > { %v17407_v30 = vmax.f32 %v15650_v27, 0.0  ;;  %v17410_v27 = vmax.f32 %v15566_v8, 0.0  ;;  %v7264_v8 = vld [vmem:[%s15884_s11] sm:$0xff] }
 0xcec   : > { %v7263_v16 = vmax.f32 %v7243_v59, %v9398_v39  ;;  %v7188_v39 = vmax.f32 %v7168_v43, %v9352_v5  ;;  %v7238_v59 = vmax.f32 %v7218_v47, %v9388_v56  ;;  %v7237_v5 = vmax.f32 %v7217_v55, %v9413_v40  ;;  %v7267_v40 = vld [vmem:[%s15884_s11 + $0x18] sm:$0xff] }
 0xced   : > { %v3207_v50 = vmax.f32 %v3187_v17, %v9427_v48  ;;  %v3233_v22 = vmax.f32 %v3213_v60, %v9428_v35  ;;  %v7268_v48 = vld [vmem:[%s15884_s11 + $0x20] sm:$0xff]  ;;  %v7269_v60 = vld [vmem:[%s15884_s11 + $0x28] sm:$0xff] }
 0xcee   : > { %7352 = vmatpush.msra.mxu2 %v7263_v16  ;;  %v7192_v62 = vmax.f32 %v7188_v39, %v9372_v4  ;;  %v7242_v42 = vmax.f32 %v7238_v59, %v9393_v9  ;;  %v7241_v56 = vmax.f32 %v7237_v5, %v9397_v13  ;;  %v17408_v4 = vmax.f32 %v15646_v24, 0.0  ;;  %v9451_v39 = vpop.permute.xlu0 %9450 }
 0xcef   : > { %v3211_v43 = vmax.f32 %v3207_v50, %v17407_v30  ;;  %v9452_v29 = vunpack.i.l.bf16 %v9451_v39 }
 0xcf0   : > { %v7212_v61 = vmax.f32 %v7192_v62, %v9382_v28  ;;  %v3237_v47 = vmax.f32 %v3233_v22, %v17408_v4 }
 0xcf1   : > { %v9416_v33 = vpop.permute.xlu1 %9415  ;;  %v9441_v1 = vpop.permute.xlu2 %9440 }
 0xcf2   : > { %v9418_v63 = vunpack.i.h.bf16 %v9416_v33  ;;  %v7216_v23 = vmax.f32 %v7212_v61, %v9387_v19  ;;  %v9417_v2 = vunpack.i.l.bf16 %v9416_v33  ;;  %v9442_v16 = vunpack.i.l.bf16 %v9441_v1 }
 0xcf3   : > { %v9443_v32 = vunpack.i.h.bf16 %v9441_v1  ;;  %v17411_v33 = vmax.f32 %v15623_v58, 0.0  ;;  %v17412_v19 = vmax.f32 %v15570_v15, 0.0  ;;  %v7265_v58 = vld [vmem:[%s15884_s11 + $0x8] sm:$0xff]  ;;  %v7266_v15 = vld [vmem:[%s15884_s11 + $0x10] sm:$0xff] }
 0xcf4   : > { %v7262_v14 = vmax.f32 %v7242_v42, %v9418_v63  ;;  %v7236_v38 = vmax.f32 %v7216_v23, %v9392_v41  ;;  %v3231_v54 = vmax.f32 %v3211_v43, %v9442_v16  ;;  %v9453_v63 = vunpack.i.h.bf16 %v9451_v39 }
 0xcf5   : > { %v3257_v53 = vmax.f32 %v3237_v47, %v9443_v32 }
 0xcf6   : > { %7353 = vmatpush.msra.mxu2 %v7262_v14  ;;  %v7240_v12 = vmax.f32 %v7236_v38, %v9438_v44  ;;  %v3235_v28 = vmax.f32 %v3231_v54, %v17410_v27  ;;  %v7271_v14 = vld [vmem:[%s15884_s11 + $0x38] sm:$0xff]  ;;  %v7308_v23 = vpop.permute.xlu0 %7307 }
 0xcf7   : > { %v7404_v54 = vld [vmem:[%s15886_s13 + $0x18] sm:$0xff] }
 0xcf8   : > { %v7260_v10 = vmax.f32 %v7240_v12, %v9417_v2  ;;  %v3255_v26 = vmax.f32 %v3235_v28, %v9452_v29 }
 0xcf9   : > { %v9431_v57 = vpop.permute.xlu1 %9430  ;;  %v7318_v61 = vpop.permute.xlu2 %7317 }
 0xcfa   : > { %v9433_v20 = vunpack.i.h.bf16 %v9431_v57  ;;  %v9432_v52 = vunpack.i.l.bf16 %v9431_v57 }
 0xcfc   : > { %v7261_v9 = vmax.f32 %v7241_v56, %v9432_v52  ;;  %v3206_v59 = vmax.f32 %v3186_v11, %v9433_v20 }
 0xcfe   : > { %7354 = vmatpush.msra.mxu2 %v7261_v9  ;;  %v3210_v25 = vmax.f32 %v3206_v59, %v17411_v33  ;;  %v7293_v50 = vpop.permute.xlu0 %7292  ;;  %v7401_v9 = vld [vmem:[%s15886_s13] sm:$0xff] }
 0xd00   : > { %7355 = vmatpush.msra.mxu2 %v7260_v10  ;;  %v7403_v10 = vld [vmem:[%s15886_s13 + $0x10] sm:$0xff] }
 0xd01   : > { %v9446_v31 = vpop.permute.xlu1 %9445  ;;  %v7303_v13 = vpop.permute.xlu2 %7302 }
 0xd02   : > { %v9448_v36 = vunpack.i.h.bf16 %v9446_v31  ;;  %v9447_v24 = vunpack.i.l.bf16 %v9446_v31  ;;  %7356 = vmatpush.msra.mxu2 %v3257_v53 }
 0xd04   : > { %v3230_v62 = vmax.f32 %v3210_v25, %v9447_v24  ;;  %v3256_v42 = vmax.f32 %v3236_v21, %v9448_v36 }
 0xd06   : > { %v3234_v55 = vmax.f32 %v3230_v62, %v17412_v19  ;;  %7357 = vmatpush.msra.mxu2 %v3256_v42  ;;  %v7427_v29 = vpop.permute.xlu0 %7426 }
 0xd08   : > { %7358 = vmatpush.msra.mxu2 %v3255_v26  ;;  %v3254_v7 = vmax.f32 %v3234_v55, %v9453_v63  ;;  %v7474_v26 = vld [vmem:[%s17415_s3] sm:$0x7] }
 0xd09   : > { %v7313_v46 = vpop.permute.xlu1 %7312  ;;  %v7288_v5 = vpop.permute.xlu2 %7287 }
 0xd0a   : > { %7359 = vmatpush.msra.mxu2 %v3254_v7 }
 0xd0b   : > { %8747 = vmatmul.msk.f32.vlgmr.msra.gmra.mxu2 %vm1213_vm11, %v7264_v8 }
 0xd0e   : > { %v7412_v33 = vpop.permute.xlu0 %7411 }
 0xd11   : > { %v7298_v41 = vpop.permute.xlu1 %7297  ;;  %v7422_v31 = vpop.permute.xlu2 %7421 }
 0xd13   : > { %8748 = vmatmul.msk.f32.gmra.mxu2 %vm1213_vm11, %v7265_v58 }
 0xd19   : > { %v7283_v0 = vpop.permute.xlu1 %7282 }
 0xd1b   : > { %8749 = vmatmul.msk.f32.gmra.mxu2 %vm1213_vm11, %v7266_v15 }
 0xd21   : > { %v7417_v28 = vpop.permute.xlu1 %7416 }
 0xd23   : > { %8750 = vmatmul.msk.f32.gmra.mxu2 %vm1213_vm11, %v7267_v40 }
 0xd2b   : > { %8751 = vmatmul.msk.f32.gmra.mxu2 %vm1213_vm11, %v7268_v48 }
 0xd33   : > { %8752 = vmatmul.msk.f32.gmra.mxu2 %vm1213_vm11, %v7269_v60 }
 0xd3b   : > { %8753 = vmatmul.msk.f32.gmra.mxu2 %vm1213_vm11, %v7270_v18 }
 0xd43   : > { %8754 = vmatmul.msk.f32.gmra.mxu2 %vm1213_vm11, %v7271_v14 }
 0xd8e   : > { %v7361_v6 = vpop.f32.mrf.mxu2 }
 0xd8f   : > { %v7362_v17 = vadd.f32 %v7361_v6, %v7283_v0 }
 0xd91   : > { %v7385_v35 = vmax.f32 %v7362_v17, 0.0 }
 0xd93   : > { %7393 = vst.msk [vmem:[%s9779_s30] sm:$0xff] %vm1213_vm11, %v7385_v35 }
 0xd96   : > { %v7364_v45 = vpop.f32.mrf.mxu2 }
 0xd97   : > { %v7365_v44 = vadd.f32 %v7364_v45, %v7288_v5 }
 0xd99   : > { %v7386_v1 = vmax.f32 %v7365_v44, 0.0 }
 0xd9b   : > { %7394 = vst.msk [vmem:[%s9779_s30 + $0x8] sm:$0xff] %vm1213_vm11, %v7386_v1 }
 0xd9e   : > { %v7367_v22 = vpop.f32.mrf.mxu2 }
 0xd9f   : > { %v7368_v38 = vadd.f32 %v7367_v22, %v7293_v50 }
 0xda1   : > { %v7387_v56 = vmax.f32 %v7368_v38, 0.0 }
 0xda3   : > { %7395 = vst.msk [vmem:[%s9779_s30 + $0x10] sm:$0xff] %vm1213_vm11, %v7387_v56 }
 0xda6   : > { %v7370_v49 = vpop.f32.mrf.mxu2 }
 0xda7   : > { %v7371_v57 = vadd.f32 %v7370_v49, %v7298_v41 }
 0xda9   : > { %v7388_v2 = vmax.f32 %v7371_v57, 0.0 }
 0xdab   : > { %7396 = vst.msk [vmem:[%s9779_s30 + $0x18] sm:$0xff] %vm1213_vm11, %v7388_v2 }
 0xdae   : > { %v7373_v16 = vpop.f32.mrf.mxu2 }
 0xdaf   : > { %v7374_v20 = vadd.f32 %v7373_v16, %v7303_v13 }
 0xdb1   : > { %v7389_v52 = vmax.f32 %v7374_v20, 0.0 }
 0xdb3   : > { %7397 = vst.msk [vmem:[%s9779_s30 + $0x20] sm:$0xff] %vm1213_vm11, %v7389_v52 }
 0xdb6   : > { %v7376_v37 = vpop.f32.mrf.mxu2 }
 0xdb7   : > { %v7377_v12 = vadd.f32 %v7376_v37, %v7308_v23 }
 0xdb9   : > { %v7390_v3 = vmax.f32 %v7377_v12, 0.0 }
 0xdbb   : > { %7398 = vst.msk [vmem:[%s9779_s30 + $0x28] sm:$0xff] %vm1213_vm11, %v7390_v3 }
 0xdbe   : > { %v7379_v11 = vpop.f32.mrf.mxu2 }
 0xdbf   : > { %v7380_v32 = vadd.f32 %v7379_v11, %v7313_v46 }
 0xdc1   : > { %v7391_v30 = vmax.f32 %v7380_v32, 0.0 }
 0xdc3   : > { %7399 = vst.msk [vmem:[%s9779_s30 + $0x30] sm:$0xff] %vm1213_vm11, %v7391_v30 }
 0xdc6   : > { %v7382_v43 = vpop.f32.mrf.mxu2 }
 0xdc7   : > { %v7383_v4 = vadd.f32 %v7382_v43, %v7318_v61 }
 0xdc9   : > { %v7392_v47 = vmax.f32 %v7383_v4, 0.0 }
 0xdcb   : > { %7400 = vst.msk [vmem:[%s9779_s30 + $0x38] sm:$0xff] %vm1213_vm11, %v7392_v47  ;;  %7449 = vmatpush.msrb.mxu3 %v7392_v47 }
 0xdcd   : > { %7450 = vmatpush.msrb.mxu3 %v7391_v30 }
 0xdcf   : > { %7451 = vmatpush.msrb.mxu3 %v7390_v3 }
 0xdd1   : > { %7452 = vmatpush.msrb.mxu3 %v7389_v52 }
 0xdd3   : > { %7453 = vmatpush.msrb.mxu3 %v7388_v2 }
 0xdd5   : > { %7454 = vmatpush.msrb.mxu3 %v7387_v56 }
 0xdd7   : > { %7455 = vmatpush.msrb.mxu3 %v7386_v1 }
 0xdd9   : > { %7456 = vmatpush.msrb.mxu3 %v7385_v35 }
 0xdda   : > { %8755 = vmatmul.msk.f32.vlgmr.msrb.gmra.mxu3 %vm1213_vm11, %v7401_v9 }
 0xde2   : > { %8756 = vmatmul.msk.f32.gmra.mxu3 %vm1213_vm11, %v7402_v34 }
 0xdea   : > { %8757 = vmatmul.msk.f32.gmra.mxu3 %vm1213_vm11, %v7403_v10 }
 0xdf2   : > { %8758 = vmatmul.msk.f32.gmra.mxu3 %vm1213_vm11, %v7404_v54  ;;  %vm7481_vm11 = vcmask 261120  }
 0xe5d   : > { %v7458_v39 = vpop.f32.mrf.mxu3 }
 0xe5e   : > { %v7459_v25 = vadd.f32 %v7458_v39, %v7412_v33 }
 0xe60   : > { %v7470_v63 = vmax.f32 %v7459_v25, 0.0 }
 0xe65   : > { %v7461_v59 = vpop.f32.mrf.mxu3 }
 0xe66   : > { %v7462_v36 = vadd.f32 %v7461_v59, %v7417_v28 }
 0xe68   : > { %v7471_v42 = vmax.f32 %v7462_v36, 0.0 }
 0xe6d   : > { %v7464_v53 = vpop.f32.mrf.mxu3 }
 0xe6e   : > { %v7465_v21 = vadd.f32 %v7464_v53, %v7422_v31 }
 0xe70   : > { %v7472_v62 = vmax.f32 %v7465_v21, 0.0 }
 0xe75   : > { %v7467_v51 = vpop.f32.mrf.mxu3 }
 0xe76   : > { %v7468_v27 = vadd.f32 %v7467_v51, %v7427_v29 }
 0xe78   : > { %v7473_v24 = vmax.f32 %v7468_v27, 0.0 }
 0xe7a   : > { %7497 = vmatpush.msrb.mxu1 %v7473_v24 }
 0xe7c   : > { %7498 = vmatpush.msrb.mxu1 %v7472_v62 }
 0xe7e   : > { %7499 = vmatpush.msrb.mxu1 %v7471_v42 }
 0xe80   : > { %7500 = vmatpush.msrb.mxu1 %v7470_v63 }
 0xe81   : > { %8759 = vmatmul.msk.f32.vlgmr.msrb.gmra.mxu1 %vm7481_vm11, %v7474_v26 }
 0xe82   : > { %9483 = shalt.err (!%p9480_p4)
}
 0xe83   : > { %s9558_s1 = smov 128   ;;  %s9559_s30 = smov 8   ;;  %v7479_v19 = vpop.permute.xlu2 %7478  ;;  %vm17419_vm9 = vcmask 518144  }
 0xe84   : > { %8771 = dma.vmem_to_hbm [thread:$0]  (%p9698_p5), %s7531_s0, 1024, %s7533_s20, %s7511_s4, %s9558_s1, %s9558_s1, %s9559_s30  }
 0xe85   : > { %s17420_s28 = scalar_lea.vmem %s15892_s19, %s9716_s22 }
 0xefe   : > { %v7502_v55 = vpop.f32.mrf.mxu1 }
 0xeff   : > { %v7503_v7 = vadd.f32 %v7502_v55, %v7479_v19 }
 0xf01   : > { %7505 = vst.msk [vmem:[%s17420_s28] sm:$0x7] %vm17419_vm9, %v7503_v7 }
 0xf02 PF: > { %s17421_s5 = sld [smem:[#allocation8_spill]] }
 0xf03   : > { %s17422_s6 = sld [smem:[#allocation5_spill]] }
 0xf08   : > { %p8777_p7 = scmp.ge.s32.totalorder %s17421_s5, 2 }
 0xf09   : > { %s7557_s18 = sand.u32 1, %s17422_s6  }
 0xf0a   : > { %p8774_p8 = pnand %p8777_p7, %p9702_p6  ;;  %s7558_s29 = scalar_lea.sflag [#allocation3], %s7557_s18 }
 0xf0c   : > { %p8775_p9 = pneg %p8774_p8 }
 0xf0e   : > { %9517 = dma.done.wait (%p8775_p9), %s7558_s29, 1024  }
 0xf0f   : > { %9519 = vsyncadd (%p8775_p9), %s7558_s29, 4294966272  ;;  %s17424_s21 = sld [smem:[#allocation10_spill]] }
 0xf10   : > { %s17425_s0 = sld [smem:[#allocation6_spill]] }
 0xf11   : > { %s17426_s30 = sld [smem:[#allocation7_spill]] }
 0xf12   : > { %s17427_s20 = sld [smem:[#allocation11_spill]] }
 0xf15   : > { %p30_p5 = scmp.ge.s32.totalorder %s17424_s21, 4  }
 0xf17   :  { %32 = sbr.rel (!%p30_p5) target bundleno = 13 (0xd), region = 171 }
 0xf1c   :  { %7571 = vsyncpa [#allocation3], 1 }
 0xf1d   :  { %7573 = vsyncpa [#allocation3 + $0x1], 1 }

</bundles_post_ra>
